<compile_context>
chip_gen: v7x
topology: tpu7x:2x2x1
jax: 0.10.0
libtpu: 0.0.40
codegen_flags: <defaults>
</compile_context>

<pallas_src>
import functools

import jax
import jax.numpy as jnp
from jax.experimental import pallas as pl
from jax.experimental.pallas import tpu as pltpu


# Static network configuration (matches the PyTorch module).
CONV_CFG = [  # (out_ch, in_ch, k, stride)
    (24, 3, 5, 2),
    (36, 24, 5, 2),
    (48, 36, 3, 2),
    (64, 48, 3, 1),
    (64, 64, 3, 1),
]
DENSE_CFG = [(8064, 100), (100, 50), (50, 10), (10, 4)]
INPUT_HW = (117, 157)


def _round_up(x, m):
    return ((x + m - 1) // m) * m


# ----------------------------------------------------------------------------
# Pallas kernel: Y = (relu?)(X @ W + b) on one M-tile; K and N are full-width.
# x/w tiles are bf16 (native MXU rate, half the DMA bytes); accumulation,
# bias-add and ReLU run in f32; result is cast to the output ref dtype.
# ----------------------------------------------------------------------------
def _linear_kernel(x_ref, w_ref, b_ref, o_ref, *, relu):
    y = jnp.dot(x_ref[...], w_ref[...], preferred_element_type=jnp.float32)
    y = y + b_ref[...]
    if relu:
        y = jnp.maximum(y, 0.0)
    o_ref[...] = y.astype(o_ref.dtype)


def pallas_linear(x, w, b, *, relu, out_dtype=jnp.bfloat16):
    """x: [M, K] bf16, w: [K, N] bf16, b: [1, N] f32 -> [M, N] out_dtype."""
    M, K = x.shape
    N = w.shape[1]

    # Only M is rounded (sublane / tile multiple). K and N are left un-padded:
    # full-array blocks are legal and Mosaic handles internal MXU padding.
    TM = min(256, _round_up(M, 8))
    Mp = _round_up(M, TM)
    if Mp != M:
        x = jnp.pad(x, ((0, Mp - M), (0, 0)))

    out = pl.pallas_call(
        functools.partial(_linear_kernel, relu=relu),
        out_shape=jax.ShapeDtypeStruct((Mp, N), out_dtype),
        grid=(Mp // TM,),
        in_specs=[
            pl.BlockSpec((TM, K), lambda i: (i, 0)),
            pl.BlockSpec((K, N), lambda i: (0, 0)),   # weight resident across grid
            pl.BlockSpec((1, N), lambda i: (0, 0)),
        ],
        out_specs=pl.BlockSpec((TM, N), lambda i: (i, 0)),
        compiler_params=pltpu.CompilerParams(
            dimension_semantics=("parallel",),
            vmem_limit_bytes=48 << 20,
        ),
    )(x, w, b)
    return out[:M] if Mp != M else out


# ----------------------------------------------------------------------------
# im2col (NHWC, data movement only — fuses under jit) + Pallas matmul conv.
# ----------------------------------------------------------------------------
def _im2col_nhwc(x, kh, kw, stride):
    # x: [B, H, W, C] -> patches [B*Ho*Wo, kh*kw*C]  (row order: kh, kw, C)
    B, H, W, C = x.shape
    Ho = (H - kh) // stride + 1
    Wo = (W - kw) // stride + 1
    cols = []
    for i in range(kh):
        for j in range(kw):
            cols.append(x[:, i:i + stride * Ho:stride, j:j + stride * Wo:stride, :])
    p = jnp.stack(cols, axis=3)                       # [B, Ho, Wo, kh*kw, C]
    return p.reshape(B * Ho * Wo, kh * kw * C), Ho, Wo


# TODO(synk): replace im2col+matmul with a direct-conv Pallas kernel (input
# tile resident in VMEM, kh*kw shifted matmuls accumulated into a VMEM f32
# accumulator) — im2col still replicates each input element kh*kw times in HBM.
def conv2d_relu_nhwc(x, w_flat, b, k, stride):
    # x: [B, H, W, Cin] bf16; w_flat: [k*k*Cin, Cout] bf16; b: [1, Cout] f32
    B = x.shape[0]
    patches, Ho, Wo = _im2col_nhwc(x, k, k, stride)
    y = pallas_linear(patches, w_flat, b, relu=True, out_dtype=jnp.bfloat16)
    return y.reshape(B, Ho, Wo, w_flat.shape[1])      # stay NHWC (lane-dense C)


# ----------------------------------------------------------------------------
# Parameter construction (PyTorch-default-style uniform init, PyTorch layout)
# and a one-time conversion into the kernel-friendly NHWC / bf16 layout.
# ----------------------------------------------------------------------------
def _uniform(key, shape, bound):
    return jax.random.uniform(key, shape, jnp.float32, -bound, bound)


def init_params_torch_layout(key):
    keys = jax.random.split(key, 2 * (len(CONV_CFG) + len(DENSE_CFG)))
    ki = 0
    convs = []
    for (co, ci, k, s) in CONV_CFG:
        bound = 1.0 / ((ci * k * k) ** 0.5)
        w = _uniform(keys[ki], (co, ci, k, k), bound); ki += 1
        b = _uniform(keys[ki], (co,), bound); ki += 1
        convs.append((w, b))
    denses = []
    for (fi, fo) in DENSE_CFG:
        bound = 1.0 / (fi ** 0.5)
        w = _uniform(keys[ki], (fo, fi), bound); ki += 1   # PyTorch [out, in]
        b = _uniform(keys[ki], (fo,), bound); ki += 1
        denses.append((w, b))
    return convs, denses


def prepare_params(torch_params, input_hw):
    convs_t, denses_t = torch_params

    H, W = input_hw
    convs = []
    for (co, ci, k, s), (w, b) in zip(CONV_CFG, convs_t):
        # [Cout, Cin, kh, kw] -> rows ordered (kh, kw, Cin), cols = Cout.
        w_flat = w.transpose(2, 3, 1, 0).reshape(k * k * ci, co)
        convs.append((w_flat.astype(jnp.bfloat16),
                      b.reshape(1, co).astype(jnp.float32)))
        H = (H - k) // s + 1
        W = (W - k) // s + 1
    c_final = CONV_CFG[-1][0]

    denses = []
    for li, ((fi, fo), (w, b)) in enumerate(zip(DENSE_CFG, denses_t)):
        w_in_out = w.T                                   # [in, out]
        if li == 0:
            # PyTorch flattens conv output as (C,H,W); our activations are
            # NHWC flattened as (H,W,C). Permute the weight rows once here.
            w_in_out = (w_in_out.reshape(c_final, H, W, fo)
                        .transpose(1, 2, 0, 3).reshape(fi, fo))
        denses.append((w_in_out.astype(jnp.bfloat16),
                       b.reshape(1, fo).astype(jnp.float32)))
    return convs, denses


# ----------------------------------------------------------------------------
# Full forward pass (matches nikola.forward semantics), jitted end-to-end.
# ----------------------------------------------------------------------------
@jax.jit
def nikola_forward(x_nchw, params):
    convs, denses = params
    # NCHW -> NHWC once; channels-last (lane dimension) for the whole network.
    x = x_nchw.transpose(0, 2, 3, 1).astype(jnp.bfloat16)
    for (co, ci, k, s), (w_flat, b) in zip(CONV_CFG, convs):
        x = conv2d_relu_nhwc(x, w_flat, b, k, s)         # Conv2d + ReLU
    x = x.reshape(x.shape[0], -1)                        # nn.Flatten (NHWC order;
                                                         # compensated in W1 rows)
    for i, (w, b) in enumerate(denses):                  # Linear(+ReLU) x3, Linear
        last = (i == len(denses) - 1)
        x = pallas_linear(x, w, b, relu=not last,
                          out_dtype=jnp.float32 if last else jnp.bfloat16)
    return x


if __name__ == "__main__":
    key = jax.random.PRNGKey(0)
    pkey, xkey = jax.random.split(key)
    params = prepare_params(init_params_torch_layout(pkey), INPUT_HW)

    x = jax.random.normal(xkey, (2, 3, INPUT_HW[0], INPUT_HW[1]), jnp.float32)

    out = nikola_forward(x, params)
    out = jax.block_until_ready(out)
    assert out.shape == (2, 4), out.shape
    print("KERNEL_OK")
</pallas_src>

<mosaic_0001>
module attributes {stable_mosaic.version = 11 : i64} {
  func.func @_linear_kernel(%arg0: i32, %arg1: memref<256x75xbf16, #tpu.memory_space<vmem>>, %arg2: memref<75x24xbf16, #tpu.memory_space<vmem>>, %arg3: memref<1x24xf32, #tpu.memory_space<vmem>>, %arg4: memref<256x24xbf16, #tpu.memory_space<vmem>>) attributes {dimension_semantics = [#tpu.dimension_semantics<parallel>], iteration_bounds = array<i64: 35>, scalar_prefetch = 0 : i64, scratch_operands = 0 : i64, tpu.core_type = #tpu.core_type<tc>, window_params = [{transform_indices = @transform_0, window_bounds = array<i64: 256, 75>}, {pipeline_mode = #tpu.pipeline_mode<synchronous>, transform_indices = @transform_1, window_bounds = array<i64: 75, 24>}, {pipeline_mode = #tpu.pipeline_mode<synchronous>, transform_indices = @transform_2, window_bounds = array<i64: 1, 24>}, {transform_indices = @transform_3, window_bounds = array<i64: 256, 24>}]} {
    %c0 = arith.constant 0 : index
    %c0_0 = arith.constant 0 : index
    %0 = vector.load %arg1[%c0, %c0_0] : memref<256x75xbf16, #tpu.memory_space<vmem>>, vector<256x75xbf16>
    %c0_1 = arith.constant 0 : index
    %c0_2 = arith.constant 0 : index
    %1 = vector.load %arg2[%c0_1, %c0_2] : memref<75x24xbf16, #tpu.memory_space<vmem>>, vector<75x24xbf16>
    %cst = arith.constant dense<0.000000e+00> : vector<256x24xf32>
    %2 = tpu.matmul %0, %1, %cst {dimension_numbers = #tpu.dot_dimension_numbers<[1], [0], [0], [1], [0, 0, 1, 1], [], []>} : vector<256x75xbf16>, vector<75x24xbf16>, vector<256x24xf32> -> vector<256x24xf32>
    %c0_3 = arith.constant 0 : index
    %c0_4 = arith.constant 0 : index
    %3 = vector.load %arg3[%c0_3, %c0_4] : memref<1x24xf32, #tpu.memory_space<vmem>>, vector<1x24xf32>
    %4 = vector.broadcast %3 : vector<1x24xf32> to vector<256x24xf32>
    %5 = arith.addf %2, %4 : vector<256x24xf32>
    %cst_5 = arith.constant 0.000000e+00 : f32
    %6 = vector.broadcast %cst_5 : f32 to vector<256x24xf32>
    %7 = arith.maximumf %5, %6 : vector<256x24xf32>
    %8 = arith.truncf %7 : vector<256x24xf32> to vector<256x24xbf16>
    %c0_6 = arith.constant 0 : index
    %c0_7 = arith.constant 0 : index
    %9 = vector.load %arg4[%c0_6, %c0_7] : memref<256x24xbf16, #tpu.memory_space<vmem>>, vector<256x24xbf16>
    tpu.vector_store %arg4[%c0_6, %c0_7], %8 {strides = array<i32>} : memref<256x24xbf16, #tpu.memory_space<vmem>>, vector<256x24xbf16>,
    return
  }
  func.func @transform_0(%arg0: i32) -> (i32, i32) {
    %c0_i32 = arith.constant 0 : i32
    %c0_i32_0 = arith.constant 0 : i32
    return %arg0, %c0_i32 : i32, i32
  }
  func.func @transform_1(%arg0: i32) -> (i32, i32) {
    %c0_i32 = arith.constant 0 : i32
    %c0_i32_0 = arith.constant 0 : i32
    %c0_i32_1 = arith.constant 0 : i32
    return %c0_i32, %c0_i32_0 : i32, i32
  }
  func.func @transform_2(%arg0: i32) -> (i32, i32) {
    %c0_i32 = arith.constant 0 : i32
    %c0_i32_0 = arith.constant 0 : i32
    %c0_i32_1 = arith.constant 0 : i32
    return %c0_i32, %c0_i32_0 : i32, i32
  }
  func.func @transform_3(%arg0: i32) -> (i32, i32) {
    %c0_i32 = arith.constant 0 : i32
    %c0_i32_0 = arith.constant 0 : i32
    return %arg0, %c0_i32 : i32, i32
  }
}

module attributes {stable_mosaic.version = 11 : i64} {
  func.func @_linear_kernel(%arg0: i32, %arg1: memref<256x600xbf16, #tpu.memory_space<vmem>>, %arg2: memref<600x36xbf16, #tpu.memory_space<vmem>>, %arg3: memref<1x36xf32, #tpu.memory_space<vmem>>, %arg4: memref<256x36xbf16, #tpu.memory_space<vmem>>) attributes {dimension_semantics = [#tpu.dimension_semantics<parallel>], iteration_bounds = array<i64: 8>, scalar_prefetch = 0 : i64, scratch_operands = 0 : i64, tpu.core_type = #tpu.core_type<tc>, window_params = [{transform_indices = @transform_0, window_bounds = array<i64: 256, 600>}, {pipeline_mode = #tpu.pipeline_mode<synchronous>, transform_indices = @transform_1, window_bounds = array<i64: 600, 36>}, {pipeline_mode = #tpu.pipeline_mode<synchronous>, transform_indices = @transform_2, window_bounds = array<i64: 1, 36>}, {transform_indices = @transform_3, window_bounds = array<i64: 256, 36>}]} {
    %c0 = arith.constant 0 : index
    %c0_0 = arith.constant 0 : index
    %0 = vector.load %arg1[%c0, %c0_0] : memref<256x600xbf16, #tpu.memory_space<vmem>>, vector<256x600xbf16>
    %c0_1 = arith.constant 0 : index
    %c0_2 = arith.constant 0 : index
    %1 = vector.load %arg2[%c0_1, %c0_2] : memref<600x36xbf16, #tpu.memory_space<vmem>>, vector<600x36xbf16>
    %cst = arith.constant dense<0.000000e+00> : vector<256x36xf32>
    %2 = tpu.matmul %0, %1, %cst {dimension_numbers = #tpu.dot_dimension_numbers<[1], [0], [0], [1], [0, 0, 1, 1], [], []>} : vector<256x600xbf16>, vector<600x36xbf16>, vector<256x36xf32> -> vector<256x36xf32>
    %c0_3 = arith.constant 0 : index
    %c0_4 = arith.constant 0 : index
    %3 = vector.load %arg3[%c0_3, %c0_4] : memref<1x36xf32, #tpu.memory_space<vmem>>, vector<1x36xf32>
    %4 = vector.broadcast %3 : vector<1x36xf32> to vector<256x36xf32>
    %5 = arith.addf %2, %4 : vector<256x36xf32>
    %cst_5 = arith.constant 0.000000e+00 : f32
    %6 = vector.broadcast %cst_5 : f32 to vector<256x36xf32>
    %7 = arith.maximumf %5, %6 : vector<256x36xf32>
    %8 = arith.truncf %7 : vector<256x36xf32> to vector<256x36xbf16>
    %c0_6 = arith.constant 0 : index
    %c0_7 = arith.constant 0 : index
    %9 = vector.load %arg4[%c0_6, %c0_7] : memref<256x36xbf16, #tpu.memory_space<vmem>>, vector<256x36xbf16>
    tpu.vector_store %arg4[%c0_6, %c0_7], %8 {strides = array<i32>} : memref<256x36xbf16, #tpu.memory_space<vmem>>, vector<256x36xbf16>,
    return
  }
  func.func @transform_0(%arg0: i32) -> (i32, i32) {
    %c0_i32 = arith.constant 0 : i32
    %c0_i32_0 = arith.constant 0 : i32
    return %arg0, %c0_i32 : i32, i32
  }
  func.func @transform_1(%arg0: i32) -> (i32, i32) {
    %c0_i32 = arith.constant 0 : i32
    %c0_i32_0 = arith.constant 0 : i32
    %c0_i32_1 = arith.constant 0 : i32
    return %c0_i32, %c0_i32_0 : i32, i32
  }
  func.func @transform_2(%arg0: i32) -> (i32, i32) {
    %c0_i32 = arith.constant 0 : i32
    %c0_i32_0 = arith.constant 0 : i32
    %c0_i32_1 = arith.constant 0 : i32
    return %c0_i32, %c0_i32_0 : i32, i32
  }
  func.func @transform_3(%arg0: i32) -> (i32, i32) {
    %c0_i32 = arith.constant 0 : i32
    %c0_i32_0 = arith.constant 0 : i32
    return %arg0, %c0_i32 : i32, i32
  }
}

module attributes {stable_mosaic.version = 11 : i64} {
  func.func @_linear_kernel(%arg0: i32, %arg1: memref<256x324xbf16, #tpu.memory_space<vmem>>, %arg2: memref<324x48xbf16, #tpu.memory_space<vmem>>, %arg3: memref<1x48xf32, #tpu.memory_space<vmem>>, %arg4: memref<256x48xbf16, #tpu.memory_space<vmem>>) attributes {dimension_semantics = [#tpu.dimension_semantics<parallel>], iteration_bounds = array<i64: 2>, scalar_prefetch = 0 : i64, scratch_operands = 0 : i64, tpu.core_type = #tpu.core_type<tc>, window_params = [{transform_indices = @transform_0, window_bounds = array<i64: 256, 324>}, {pipeline_mode = #tpu.pipeline_mode<synchronous>, transform_indices = @transform_1, window_bounds = array<i64: 324, 48>}, {pipeline_mode = #tpu.pipeline_mode<synchronous>, transform_indices = @transform_2, window_bounds = array<i64: 1, 48>}, {transform_indices = @transform_3, window_bounds = array<i64: 256, 48>}]} {
    %c0 = arith.constant 0 : index
    %c0_0 = arith.constant 0 : index
    %0 = vector.load %arg1[%c0, %c0_0] : memref<256x324xbf16, #tpu.memory_space<vmem>>, vector<256x324xbf16>
    %c0_1 = arith.constant 0 : index
    %c0_2 = arith.constant 0 : index
    %1 = vector.load %arg2[%c0_1, %c0_2] : memref<324x48xbf16, #tpu.memory_space<vmem>>, vector<324x48xbf16>
    %cst = arith.constant dense<0.000000e+00> : vector<256x48xf32>
    %2 = tpu.matmul %0, %1, %cst {dimension_numbers = #tpu.dot_dimension_numbers<[1], [0], [0], [1], [0, 0, 1, 1], [], []>} : vector<256x324xbf16>, vector<324x48xbf16>, vector<256x48xf32> -> vector<256x48xf32>
    %c0_3 = arith.constant 0 : index
    %c0_4 = arith.constant 0 : index
    %3 = vector.load %arg3[%c0_3, %c0_4] : memref<1x48xf32, #tpu.memory_space<vmem>>, vector<1x48xf32>
    %4 = vector.broadcast %3 : vector<1x48xf32> to vector<256x48xf32>
    %5 = arith.addf %2, %4 : vector<256x48xf32>
    %cst_5 = arith.constant 0.000000e+00 : f32
    %6 = vector.broadcast %cst_5 : f32 to vector<256x48xf32>
    %7 = arith.maximumf %5, %6 : vector<256x48xf32>
    %8 = arith.truncf %7 : vector<256x48xf32> to vector<256x48xbf16>
    %c0_6 = arith.constant 0 : index
    %c0_7 = arith.constant 0 : index
    %9 = vector.load %arg4[%c0_6, %c0_7] : memref<256x48xbf16, #tpu.memory_space<vmem>>, vector<256x48xbf16>
    tpu.vector_store %arg4[%c0_6, %c0_7], %8 {strides = array<i32>} : memref<256x48xbf16, #tpu.memory_space<vmem>>, vector<256x48xbf16>,
    return
  }
  func.func @transform_0(%arg0: i32) -> (i32, i32) {
    %c0_i32 = arith.constant 0 : i32
    %c0_i32_0 = arith.constant 0 : i32
    return %arg0, %c0_i32 : i32, i32
  }
  func.func @transform_1(%arg0: i32) -> (i32, i32) {
    %c0_i32 = arith.constant 0 : i32
    %c0_i32_0 = arith.constant 0 : i32
    %c0_i32_1 = arith.constant 0 : i32
    return %c0_i32, %c0_i32_0 : i32, i32
  }
  func.func @transform_2(%arg0: i32) -> (i32, i32) {
    %c0_i32 = arith.constant 0 : i32
    %c0_i32_0 = arith.constant 0 : i32
    %c0_i32_1 = arith.constant 0 : i32
    return %c0_i32, %c0_i32_0 : i32, i32
  }
  func.func @transform_3(%arg0: i32) -> (i32, i32) {
    %c0_i32 = arith.constant 0 : i32
    %c0_i32_0 = arith.constant 0 : i32
    return %arg0, %c0_i32 : i32, i32
  }
}

module attributes {stable_mosaic.version = 11 : i64} {
  func.func @_linear_kernel(%arg0: i32, %arg1: memref<256x432xbf16, #tpu.memory_space<vmem>>, %arg2: memref<432x64xbf16, #tpu.memory_space<vmem>>, %arg3: memref<1x64xf32, #tpu.memory_space<vmem>>, %arg4: memref<256x64xbf16, #tpu.memory_space<vmem>>) attributes {dimension_semantics = [#tpu.dimension_semantics<parallel>], iteration_bounds = array<i64: 2>, scalar_prefetch = 0 : i64, scratch_operands = 0 : i64, tpu.core_type = #tpu.core_type<tc>, window_params = [{transform_indices = @transform_0, window_bounds = array<i64: 256, 432>}, {pipeline_mode = #tpu.pipeline_mode<synchronous>, transform_indices = @transform_1, window_bounds = array<i64: 432, 64>}, {pipeline_mode = #tpu.pipeline_mode<synchronous>, transform_indices = @transform_2, window_bounds = array<i64: 1, 64>}, {transform_indices = @transform_3, window_bounds = array<i64: 256, 64>}]} {
    %c0 = arith.constant 0 : index
    %c0_0 = arith.constant 0 : index
    %0 = vector.load %arg1[%c0, %c0_0] : memref<256x432xbf16, #tpu.memory_space<vmem>>, vector<256x432xbf16>
    %c0_1 = arith.constant 0 : index
    %c0_2 = arith.constant 0 : index
    %1 = vector.load %arg2[%c0_1, %c0_2] : memref<432x64xbf16, #tpu.memory_space<vmem>>, vector<432x64xbf16>
    %cst = arith.constant dense<0.000000e+00> : vector<256x64xf32>
    %2 = tpu.matmul %0, %1, %cst {dimension_numbers = #tpu.dot_dimension_numbers<[1], [0], [0], [1], [0, 0, 1, 1], [], []>} : vector<256x432xbf16>, vector<432x64xbf16>, vector<256x64xf32> -> vector<256x64xf32>
    %c0_3 = arith.constant 0 : index
    %c0_4 = arith.constant 0 : index
    %3 = vector.load %arg3[%c0_3, %c0_4] : memref<1x64xf32, #tpu.memory_space<vmem>>, vector<1x64xf32>
    %4 = vector.broadcast %3 : vector<1x64xf32> to vector<256x64xf32>
    %5 = arith.addf %2, %4 : vector<256x64xf32>
    %cst_5 = arith.constant 0.000000e+00 : f32
    %6 = vector.broadcast %cst_5 : f32 to vector<256x64xf32>
    %7 = arith.maximumf %5, %6 : vector<256x64xf32>
    %8 = arith.truncf %7 : vector<256x64xf32> to vector<256x64xbf16>
    %c0_6 = arith.constant 0 : index
    %c0_7 = arith.constant 0 : index
    %9 = vector.load %arg4[%c0_6, %c0_7] : memref<256x64xbf16, #tpu.memory_space<vmem>>, vector<256x64xbf16>
    tpu.vector_store %arg4[%c0_6, %c0_7], %8 {strides = array<i32>} : memref<256x64xbf16, #tpu.memory_space<vmem>>, vector<256x64xbf16>,
    return
  }
  func.func @transform_0(%arg0: i32) -> (i32, i32) {
    %c0_i32 = arith.constant 0 : i32
    %c0_i32_0 = arith.constant 0 : i32
    return %arg0, %c0_i32 : i32, i32
  }
  func.func @transform_1(%arg0: i32) -> (i32, i32) {
    %c0_i32 = arith.constant 0 : i32
    %c0_i32_0 = arith.constant 0 : i32
    %c0_i32_1 = arith.constant 0 : i32
    return %c0_i32, %c0_i32_0 : i32, i32
  }
  func.func @transform_2(%arg0: i32) -> (i32, i32) {
    %c0_i32 = arith.constant 0 : i32
    %c0_i32_0 = arith.constant 0 : i32
    %c0_i32_1 = arith.constant 0 : i32
    return %c0_i32, %c0_i32_0 : i32, i32
  }
  func.func @transform_3(%arg0: i32) -> (i32, i32) {
    %c0_i32 = arith.constant 0 : i32
    %c0_i32_0 = arith.constant 0 : i32
    return %arg0, %c0_i32 : i32, i32
  }
}

module attributes {stable_mosaic.version = 11 : i64} {
  func.func @_linear_kernel(%arg0: i32, %arg1: memref<256x576xbf16, #tpu.memory_space<vmem>>, %arg2: memref<576x64xbf16, #tpu.memory_space<vmem>>, %arg3: memref<1x64xf32, #tpu.memory_space<vmem>>, %arg4: memref<256x64xbf16, #tpu.memory_space<vmem>>) attributes {dimension_semantics = [#tpu.dimension_semantics<parallel>], iteration_bounds = array<i64: 1>, scalar_prefetch = 0 : i64, scratch_operands = 0 : i64, tpu.core_type = #tpu.core_type<tc>, window_params = [{transform_indices = @transform_0, window_bounds = array<i64: 256, 576>}, {pipeline_mode = #tpu.pipeline_mode<synchronous>, transform_indices = @transform_1, window_bounds = array<i64: 576, 64>}, {pipeline_mode = #tpu.pipeline_mode<synchronous>, transform_indices = @transform_2, window_bounds = array<i64: 1, 64>}, {transform_indices = @transform_3, window_bounds = array<i64: 256, 64>}]} {
    %c0 = arith.constant 0 : index
    %c0_0 = arith.constant 0 : index
    %0 = vector.load %arg1[%c0, %c0_0] : memref<256x576xbf16, #tpu.memory_space<vmem>>, vector<256x576xbf16>
    %c0_1 = arith.constant 0 : index
    %c0_2 = arith.constant 0 : index
    %1 = vector.load %arg2[%c0_1, %c0_2] : memref<576x64xbf16, #tpu.memory_space<vmem>>, vector<576x64xbf16>
    %cst = arith.constant dense<0.000000e+00> : vector<256x64xf32>
    %2 = tpu.matmul %0, %1, %cst {dimension_numbers = #tpu.dot_dimension_numbers<[1], [0], [0], [1], [0, 0, 1, 1], [], []>} : vector<256x576xbf16>, vector<576x64xbf16>, vector<256x64xf32> -> vector<256x64xf32>
    %c0_3 = arith.constant 0 : index
    %c0_4 = arith.constant 0 : index
    %3 = vector.load %arg3[%c0_3, %c0_4] : memref<1x64xf32, #tpu.memory_space<vmem>>, vector<1x64xf32>
    %4 = vector.broadcast %3 : vector<1x64xf32> to vector<256x64xf32>
    %5 = arith.addf %2, %4 : vector<256x64xf32>
    %cst_5 = arith.constant 0.000000e+00 : f32
    %6 = vector.broadcast %cst_5 : f32 to vector<256x64xf32>
    %7 = arith.maximumf %5, %6 : vector<256x64xf32>
    %8 = arith.truncf %7 : vector<256x64xf32> to vector<256x64xbf16>
    %c0_6 = arith.constant 0 : index
    %c0_7 = arith.constant 0 : index
    %9 = vector.load %arg4[%c0_6, %c0_7] : memref<256x64xbf16, #tpu.memory_space<vmem>>, vector<256x64xbf16>
    tpu.vector_store %arg4[%c0_6, %c0_7], %8 {strides = array<i32>} : memref<256x64xbf16, #tpu.memory_space<vmem>>, vector<256x64xbf16>,
    return
  }
  func.func @transform_0(%arg0: i32) -> (i32, i32) {
    %c0_i32 = arith.constant 0 : i32
    %c0_i32_0 = arith.constant 0 : i32
    return %arg0, %c0_i32 : i32, i32
  }
  func.func @transform_1(%arg0: i32) -> (i32, i32) {
    %c0_i32 = arith.constant 0 : i32
    %c0_i32_0 = arith.constant 0 : i32
    %c0_i32_1 = arith.constant 0 : i32
    return %c0_i32, %c0_i32_0 : i32, i32
  }
  func.func @transform_2(%arg0: i32) -> (i32, i32) {
    %c0_i32 = arith.constant 0 : i32
    %c0_i32_0 = arith.constant 0 : i32
    %c0_i32_1 = arith.constant 0 : i32
    return %c0_i32, %c0_i32_0 : i32, i32
  }
  func.func @transform_3(%arg0: i32) -> (i32, i32) {
    %c0_i32 = arith.constant 0 : i32
    %c0_i32_0 = arith.constant 0 : i32
    return %arg0, %c0_i32 : i32, i32
  }
}

module attributes {stable_mosaic.version = 11 : i64} {
  func.func @_linear_kernel(%arg0: i32, %arg1: memref<8x8064xbf16, #tpu.memory_space<vmem>>, %arg2: memref<8064x100xbf16, #tpu.memory_space<vmem>>, %arg3: memref<1x100xf32, #tpu.memory_space<vmem>>, %arg4: memref<8x100xbf16, #tpu.memory_space<vmem>>) attributes {dimension_semantics = [#tpu.dimension_semantics<parallel>], iteration_bounds = array<i64: 1>, scalar_prefetch = 0 : i64, scratch_operands = 0 : i64, tpu.core_type = #tpu.core_type<tc>, window_params = [{transform_indices = @transform_0, window_bounds = array<i64: 8, 8064>}, {pipeline_mode = #tpu.pipeline_mode<synchronous>, transform_indices = @transform_1, window_bounds = array<i64: 8064, 100>}, {pipeline_mode = #tpu.pipeline_mode<synchronous>, transform_indices = @transform_2, window_bounds = array<i64: 1, 100>}, {transform_indices = @transform_3, window_bounds = array<i64: 8, 100>}]} {
    %c0 = arith.constant 0 : index
    %c0_0 = arith.constant 0 : index
    %0 = vector.load %arg1[%c0, %c0_0] : memref<8x8064xbf16, #tpu.memory_space<vmem>>, vector<8x8064xbf16>
    %c0_1 = arith.constant 0 : index
    %c0_2 = arith.constant 0 : index
    %1 = vector.load %arg2[%c0_1, %c0_2] : memref<8064x100xbf16, #tpu.memory_space<vmem>>, vector<8064x100xbf16>
    %cst = arith.constant dense<0.000000e+00> : vector<8x100xf32>
    %2 = tpu.matmul %0, %1, %cst {dimension_numbers = #tpu.dot_dimension_numbers<[1], [0], [0], [1], [0, 0, 1, 1], [], []>} : vector<8x8064xbf16>, vector<8064x100xbf16>, vector<8x100xf32> -> vector<8x100xf32>
    %c0_3 = arith.constant 0 : index
    %c0_4 = arith.constant 0 : index
    %3 = vector.load %arg3[%c0_3, %c0_4] : memref<1x100xf32, #tpu.memory_space<vmem>>, vector<1x100xf32>
    %4 = vector.broadcast %3 : vector<1x100xf32> to vector<8x100xf32>
    %5 = arith.addf %2, %4 : vector<8x100xf32>
    %cst_5 = arith.constant 0.000000e+00 : f32
    %6 = vector.broadcast %cst_5 : f32 to vector<8x100xf32>
    %7 = arith.maximumf %5, %6 : vector<8x100xf32>
    %8 = arith.truncf %7 : vector<8x100xf32> to vector<8x100xbf16>
    %c0_6 = arith.constant 0 : index
    %c0_7 = arith.constant 0 : index
    %9 = vector.load %arg4[%c0_6, %c0_7] : memref<8x100xbf16, #tpu.memory_space<vmem>>, vector<8x100xbf16>
    tpu.vector_store %arg4[%c0_6, %c0_7], %8 {strides = array<i32>} : memref<8x100xbf16, #tpu.memory_space<vmem>>, vector<8x100xbf16>,
    return
  }
  func.func @transform_0(%arg0: i32) -> (i32, i32) {
    %c0_i32 = arith.constant 0 : i32
    %c0_i32_0 = arith.constant 0 : i32
    return %arg0, %c0_i32 : i32, i32
  }
  func.func @transform_1(%arg0: i32) -> (i32, i32) {
    %c0_i32 = arith.constant 0 : i32
    %c0_i32_0 = arith.constant 0 : i32
    %c0_i32_1 = arith.constant 0 : i32
    return %c0_i32, %c0_i32_0 : i32, i32
  }
  func.func @transform_2(%arg0: i32) -> (i32, i32) {
    %c0_i32 = arith.constant 0 : i32
    %c0_i32_0 = arith.constant 0 : i32
    %c0_i32_1 = arith.constant 0 : i32
    return %c0_i32, %c0_i32_0 : i32, i32
  }
  func.func @transform_3(%arg0: i32) -> (i32, i32) {
    %c0_i32 = arith.constant 0 : i32
    %c0_i32_0 = arith.constant 0 : i32
    return %arg0, %c0_i32 : i32, i32
  }
}

module attributes {stable_mosaic.version = 11 : i64} {
  func.func @_linear_kernel(%arg0: i32, %arg1: memref<8x100xbf16, #tpu.memory_space<vmem>>, %arg2: memref<100x50xbf16, #tpu.memory_space<vmem>>, %arg3: memref<1x50xf32, #tpu.memory_space<vmem>>, %arg4: memref<8x50xbf16, #tpu.memory_space<vmem>>) attributes {dimension_semantics = [#tpu.dimension_semantics<parallel>], iteration_bounds = array<i64: 1>, scalar_prefetch = 0 : i64, scratch_operands = 0 : i64, tpu.core_type = #tpu.core_type<tc>, window_params = [{transform_indices = @transform_0, window_bounds = array<i64: 8, 100>}, {pipeline_mode = #tpu.pipeline_mode<synchronous>, transform_indices = @transform_1, window_bounds = array<i64: 100, 50>}, {pipeline_mode = #tpu.pipeline_mode<synchronous>, transform_indices = @transform_2, window_bounds = array<i64: 1, 50>}, {transform_indices = @transform_3, window_bounds = array<i64: 8, 50>}]} {
    %c0 = arith.constant 0 : index
    %c0_0 = arith.constant 0 : index
    %0 = vector.load %arg1[%c0, %c0_0] : memref<8x100xbf16, #tpu.memory_space<vmem>>, vector<8x100xbf16>
    %c0_1 = arith.constant 0 : index
    %c0_2 = arith.constant 0 : index
    %1 = vector.load %arg2[%c0_1, %c0_2] : memref<100x50xbf16, #tpu.memory_space<vmem>>, vector<100x50xbf16>
    %cst = arith.constant dense<0.000000e+00> : vector<8x50xf32>
    %2 = tpu.matmul %0, %1, %cst {dimension_numbers = #tpu.dot_dimension_numbers<[1], [0], [0], [1], [0, 0, 1, 1], [], []>} : vector<8x100xbf16>, vector<100x50xbf16>, vector<8x50xf32> -> vector<8x50xf32>
    %c0_3 = arith.constant 0 : index
    %c0_4 = arith.constant 0 : index
    %3 = vector.load %arg3[%c0_3, %c0_4] : memref<1x50xf32, #tpu.memory_space<vmem>>, vector<1x50xf32>
    %4 = vector.broadcast %3 : vector<1x50xf32> to vector<8x50xf32>
    %5 = arith.addf %2, %4 : vector<8x50xf32>
    %cst_5 = arith.constant 0.000000e+00 : f32
    %6 = vector.broadcast %cst_5 : f32 to vector<8x50xf32>
    %7 = arith.maximumf %5, %6 : vector<8x50xf32>
    %8 = arith.truncf %7 : vector<8x50xf32> to vector<8x50xbf16>
    %c0_6 = arith.constant 0 : index
    %c0_7 = arith.constant 0 : index
    %9 = vector.load %arg4[%c0_6, %c0_7] : memref<8x50xbf16, #tpu.memory_space<vmem>>, vector<8x50xbf16>
    tpu.vector_store %arg4[%c0_6, %c0_7], %8 {strides = array<i32>} : memref<8x50xbf16, #tpu.memory_space<vmem>>, vector<8x50xbf16>,
    return
  }
  func.func @transform_0(%arg0: i32) -> (i32, i32) {
    %c0_i32 = arith.constant 0 : i32
    %c0_i32_0 = arith.constant 0 : i32
    return %arg0, %c0_i32 : i32, i32
  }
  func.func @transform_1(%arg0: i32) -> (i32, i32) {
    %c0_i32 = arith.constant 0 : i32
    %c0_i32_0 = arith.constant 0 : i32
    %c0_i32_1 = arith.constant 0 : i32
    return %c0_i32, %c0_i32_0 : i32, i32
  }
  func.func @transform_2(%arg0: i32) -> (i32, i32) {
    %c0_i32 = arith.constant 0 : i32
    %c0_i32_0 = arith.constant 0 : i32
    %c0_i32_1 = arith.constant 0 : i32
    return %c0_i32, %c0_i32_0 : i32, i32
  }
  func.func @transform_3(%arg0: i32) -> (i32, i32) {
    %c0_i32 = arith.constant 0 : i32
    %c0_i32_0 = arith.constant 0 : i32
    return %arg0, %c0_i32 : i32, i32
  }
}

module attributes {stable_mosaic.version = 11 : i64} {
  func.func @_linear_kernel(%arg0: i32, %arg1: memref<8x50xbf16, #tpu.memory_space<vmem>>, %arg2: memref<50x10xbf16, #tpu.memory_space<vmem>>, %arg3: memref<1x10xf32, #tpu.memory_space<vmem>>, %arg4: memref<8x10xbf16, #tpu.memory_space<vmem>>) attributes {dimension_semantics = [#tpu.dimension_semantics<parallel>], iteration_bounds = array<i64: 1>, scalar_prefetch = 0 : i64, scratch_operands = 0 : i64, tpu.core_type = #tpu.core_type<tc>, window_params = [{transform_indices = @transform_0, window_bounds = array<i64: 8, 50>}, {pipeline_mode = #tpu.pipeline_mode<synchronous>, transform_indices = @transform_1, window_bounds = array<i64: 50, 10>}, {pipeline_mode = #tpu.pipeline_mode<synchronous>, transform_indices = @transform_2, window_bounds = array<i64: 1, 10>}, {transform_indices = @transform_3, window_bounds = array<i64: 8, 10>}]} {
    %c0 = arith.constant 0 : index
    %c0_0 = arith.constant 0 : index
    %0 = vector.load %arg1[%c0, %c0_0] : memref<8x50xbf16, #tpu.memory_space<vmem>>, vector<8x50xbf16>
    %c0_1 = arith.constant 0 : index
    %c0_2 = arith.constant 0 : index
    %1 = vector.load %arg2[%c0_1, %c0_2] : memref<50x10xbf16, #tpu.memory_space<vmem>>, vector<50x10xbf16>
    %cst = arith.constant dense<0.000000e+00> : vector<8x10xf32>
    %2 = tpu.matmul %0, %1, %cst {dimension_numbers = #tpu.dot_dimension_numbers<[1], [0], [0], [1], [0, 0, 1, 1], [], []>} : vector<8x50xbf16>, vector<50x10xbf16>, vector<8x10xf32> -> vector<8x10xf32>
    %c0_3 = arith.constant 0 : index
    %c0_4 = arith.constant 0 : index
    %3 = vector.load %arg3[%c0_3, %c0_4] : memref<1x10xf32, #tpu.memory_space<vmem>>, vector<1x10xf32>
    %4 = vector.broadcast %3 : vector<1x10xf32> to vector<8x10xf32>
    %5 = arith.addf %2, %4 : vector<8x10xf32>
    %cst_5 = arith.constant 0.000000e+00 : f32
    %6 = vector.broadcast %cst_5 : f32 to vector<8x10xf32>
    %7 = arith.maximumf %5, %6 : vector<8x10xf32>
    %8 = arith.truncf %7 : vector<8x10xf32> to vector<8x10xbf16>
    %c0_6 = arith.constant 0 : index
    %c0_7 = arith.constant 0 : index
    %9 = vector.load %arg4[%c0_6, %c0_7] : memref<8x10xbf16, #tpu.memory_space<vmem>>, vector<8x10xbf16>
    tpu.vector_store %arg4[%c0_6, %c0_7], %8 {strides = array<i32>} : memref<8x10xbf16, #tpu.memory_space<vmem>>, vector<8x10xbf16>,
    return
  }
  func.func @transform_0(%arg0: i32) -> (i32, i32) {
    %c0_i32 = arith.constant 0 : i32
    %c0_i32_0 = arith.constant 0 : i32
    return %arg0, %c0_i32 : i32, i32
  }
  func.func @transform_1(%arg0: i32) -> (i32, i32) {
    %c0_i32 = arith.constant 0 : i32
    %c0_i32_0 = arith.constant 0 : i32
    %c0_i32_1 = arith.constant 0 : i32
    return %c0_i32, %c0_i32_0 : i32, i32
  }
  func.func @transform_2(%arg0: i32) -> (i32, i32) {
    %c0_i32 = arith.constant 0 : i32
    %c0_i32_0 = arith.constant 0 : i32
    %c0_i32_1 = arith.constant 0 : i32
    return %c0_i32, %c0_i32_0 : i32, i32
  }
  func.func @transform_3(%arg0: i32) -> (i32, i32) {
    %c0_i32 = arith.constant 0 : i32
    %c0_i32_0 = arith.constant 0 : i32
    return %arg0, %c0_i32 : i32, i32
  }
}

module attributes {stable_mosaic.version = 11 : i64} {
  func.func @_linear_kernel(%arg0: i32, %arg1: memref<8x10xbf16, #tpu.memory_space<vmem>>, %arg2: memref<10x4xbf16, #tpu.memory_space<vmem>>, %arg3: memref<1x4xf32, #tpu.memory_space<vmem>>, %arg4: memref<8x4xf32, #tpu.memory_space<vmem>>) attributes {dimension_semantics = [#tpu.dimension_semantics<parallel>], iteration_bounds = array<i64: 1>, scalar_prefetch = 0 : i64, scratch_operands = 0 : i64, tpu.core_type = #tpu.core_type<tc>, window_params = [{transform_indices = @transform_0, window_bounds = array<i64: 8, 10>}, {pipeline_mode = #tpu.pipeline_mode<synchronous>, transform_indices = @transform_1, window_bounds = array<i64: 10, 4>}, {pipeline_mode = #tpu.pipeline_mode<synchronous>, transform_indices = @transform_2, window_bounds = array<i64: 1, 4>}, {transform_indices = @transform_3, window_bounds = array<i64: 8, 4>}]} {
    %c0 = arith.constant 0 : index
    %c0_0 = arith.constant 0 : index
    %0 = vector.load %arg1[%c0, %c0_0] : memref<8x10xbf16, #tpu.memory_space<vmem>>, vector<8x10xbf16>
    %c0_1 = arith.constant 0 : index
    %c0_2 = arith.constant 0 : index
    %1 = vector.load %arg2[%c0_1, %c0_2] : memref<10x4xbf16, #tpu.memory_space<vmem>>, vector<10x4xbf16>
    %cst = arith.constant dense<0.000000e+00> : vector<8x4xf32>
    %2 = tpu.matmul %0, %1, %cst {dimension_numbers = #tpu.dot_dimension_numbers<[1], [0], [0], [1], [0, 0, 1, 1], [], []>} : vector<8x10xbf16>, vector<10x4xbf16>, vector<8x4xf32> -> vector<8x4xf32>
    %c0_3 = arith.constant 0 : index
    %c0_4 = arith.constant 0 : index
    %3 = vector.load %arg3[%c0_3, %c0_4] : memref<1x4xf32, #tpu.memory_space<vmem>>, vector<1x4xf32>
    %4 = vector.broadcast %3 : vector<1x4xf32> to vector<8x4xf32>
    %5 = arith.addf %2, %4 : vector<8x4xf32>
    %c0_5 = arith.constant 0 : index
    %c0_6 = arith.constant 0 : index
    %6 = vector.load %arg4[%c0_5, %c0_6] : memref<8x4xf32, #tpu.memory_space<vmem>>, vector<8x4xf32>
    tpu.vector_store %arg4[%c0_5, %c0_6], %5 {strides = array<i32>} : memref<8x4xf32, #tpu.memory_space<vmem>>, vector<8x4xf32>,
    return
  }
  func.func @transform_0(%arg0: i32) -> (i32, i32) {
    %c0_i32 = arith.constant 0 : i32
    %c0_i32_0 = arith.constant 0 : i32
    return %arg0, %c0_i32 : i32, i32
  }
  func.func @transform_1(%arg0: i32) -> (i32, i32) {
    %c0_i32 = arith.constant 0 : i32
    %c0_i32_0 = arith.constant 0 : i32
    %c0_i32_1 = arith.constant 0 : i32
    return %c0_i32, %c0_i32_0 : i32, i32
  }
  func.func @transform_2(%arg0: i32) -> (i32, i32) {
    %c0_i32 = arith.constant 0 : i32
    %c0_i32_0 = arith.constant 0 : i32
    %c0_i32_1 = arith.constant 0 : i32
    return %c0_i32, %c0_i32_0 : i32, i32
  }
  func.func @transform_3(%arg0: i32) -> (i32, i32) {
    %c0_i32 = arith.constant 0 : i32
    %c0_i32_0 = arith.constant 0 : i32
    return %arg0, %c0_i32 : i32, i32
  }
}

</mosaic_0001>

<bundles_post_ra>
// kernel: nikola_forward.9
= control target key start
LH: loop header
LB: loop body
LE: loop exit
PB: predicated region body
PF: predicated region fallthrough
CT: control target
= control target key end

     0   :  { %s1044_s12 = smov 0   ;;  %s1220_s0 = inlined_call_operand.vmem [shape: bf16[8960,75], index: 0, kind: input, shape index: {}]   ;;  %s1221_s1 = inlined_call_operand.vmem [shape: bf16[75,24], index: 1, kind: input, shape index: {}]   ;;  %s1222_s2 = inlined_call_operand.vmem [shape: f32[1,24], index: 2, kind: input, shape index: {}]   ;;  %s1223_s3 = inlined_call_operand.vmem [shape: bf16[8960,24], index: 3, kind: output, shape index: {}]  }
   0x1 LB: > { %s799_s13 = sadd.s32 4294967295, %s1021_s12   ;;  %p803_p0 = scmp.ge.s32.totalorder %s1021_s12, 1  ;;  %s1021_s12 = sphi %s1044_s12, %s13_s12  }
   0x2   : > { %p138_p1 = scmp.lt.s32.totalorder %s1021_s12, 36 }
   0x4   : > { %p139_p2 = pnand %p803_p0, %p138_p1 }
   0x5   : > { %v994_v0 = vld [vmem:[%s1221_s1] sm:$0xff] (!%p139_p2)   ;;  %v995_v1 = vld [vmem:[%s1221_s1 + $0x8] sm:$0xff] (!%p139_p2)   ;;  %vm382_vm0 = vcmask (!%p139_p2), 1044480   ;;  %v996_v2 = vld [vmem:[%s1221_s1 + $0x10] sm:$0xff] (!%p139_p2)   ;;  %s804_s20 = sshll.u32 (!%p139_p2), %s799_s13, 5  ;;  %vm383_vm1 = vcmask (!%p139_p2), 1045504  }
   0x6   : > { %142 = sbr.rel (%p139_p2) target bundleno = 272 (0x110), region = 32  ;;  %933 = vmatprep.subr.bf16.mxu0 (!%p139_p2), %v994_v0  ;;  %975 = vmatprep.subr.bf16.mxu1 (!%p139_p2), %v994_v0  ;;  %v1023_v3 = vmov (!%p139_p2), 65535   ;;  %p163_p3 = scmp.lt.s32.totalorder (!%p139_p2), %s804_s20, 1119  ;;  %v997_v5 = vld [vmem:[%s1221_s1 + $0x18] sm:$0xff] (!%p139_p2)   ;;  %v998_v6 = vld [vmem:[%s1221_s1 + $0x20] sm:$0x3f] (!%p139_p2)  }
   0x7   : > { %934 = vmatpush3.bf16.msra.mxu0 (!%p139_p2), %v994_v0  ;;  %980 = vmatpush3.bf16.msra.mxu1 (!%p139_p2), %v994_v0  ;;  %v384_v4 = vsel (!%p139_p2), %vm382_vm0, 4294967295, %v1023_v3  ;;  %vm333_vm2 = vcmask (!%p139_p2), 613376   ;;  %v1112_v25 = vld [vmem:[%s1222_s2] ss:$0 sm:$0xff] (!%p139_p2)  ;;  %vm710_vm3 = vcmask (!%p139_p2), 191488  }
   0x8   : > { %935 = vmatprep.subr.bf16.mxu0 (!%p139_p2), %v995_v1  ;;  %976 = vmatprep.subr.bf16.mxu1 (!%p139_p2), %v995_v1  ;;  %v385_v7 = vsel (!%p139_p2), %vm383_vm1, %v384_v4, 0 }
   0x9   : > { %v387_v8 = vand.u32 (!%p139_p2), %v998_v6, %v385_v7 }
   0xb   : > { %936 = vmatpush3.bf16.msra.mxu0 (!%p139_p2), %v995_v1  ;;  %981 = vmatpush3.bf16.msra.mxu1 (!%p139_p2), %v995_v1 }
   0xc   : > { %937 = vmatprep.subr.bf16.mxu0 (!%p139_p2), %v996_v2  ;;  %977 = vmatprep.subr.bf16.mxu1 (!%p139_p2), %v996_v2 }
   0xd   : > { %s1225_s20 = smov (!%p163_p3, %s804_s20), 1119 }
   0xe   : > { %s805_s25 = sshll.u32 %s1225_s20, 2 }
   0xf   : > { %938 = vmatpush3.bf16.msra.mxu0 %v996_v2  ;;  %982 = vmatpush3.bf16.msra.mxu1 %v996_v2  ;;  %s1075_s28 = scalar_lea.vmem %s1220_s0, %s805_s25  ;;  %s1125_s6 = scalar_lea.vmem %s1223_s3, %s805_s25 }
  0x10   : > { %939 = vmatprep.subr.bf16.mxu0 %v997_v5  ;;  %978 = vmatprep.subr.bf16.mxu1 %v997_v5  ;;  %v999_v9 = vld [vmem:[%s1075_s28] sm:$0xff]   ;;  %v1001_v11 = vld [vmem:[%s1075_s28 + $0x8] sm:$0xff]   ;;  %v1003_v13 = vld [vmem:[%s1075_s28 + $0x10] sm:$0xff]  }
  0x11   : > { %v1000_v10 = vld [vmem:[%s1075_s28 + $0x40] sm:$0xff]   ;;  %943 = vmatprep.mubr.msk.bf16.mxu0 %vm333_vm2, %v999_v9  ;;  %v1002_v12 = vld [vmem:[%s1075_s28 + $0x48] sm:$0xff]   ;;  %v1004_v14 = vld [vmem:[%s1075_s28 + $0x50] sm:$0xff]  }
  0x12   : > { %959 = vmatprep.mubr.msk.bf16.mxu1 %vm333_vm2, %v1000_v10  ;;  %v1005_v15 = vld [vmem:[%s1075_s28 + $0x18] sm:$0xff]   ;;  %v1007_v17 = vld [vmem:[%s1075_s28 + $0x20] sm:$0xff]   ;;  %v1009_v19 = vld [vmem:[%s1075_s28 + $0x28] sm:$0xff]  }
  0x13   : > { %940 = vmatpush3.bf16.msra.mxu0 %v997_v5  ;;  %983 = vmatpush3.bf16.msra.mxu1 %v997_v5  ;;  %v1006_v16 = vld [vmem:[%s1075_s28 + $0x58] sm:$0xff]   ;;  %v1008_v18 = vld [vmem:[%s1075_s28 + $0x60] sm:$0xff]   ;;  %v1010_v20 = vld [vmem:[%s1075_s28 + $0x68] sm:$0xff]  }
  0x14   : > { %941 = vmatprep.subr.bf16.mxu0 %v387_v8  ;;  %979 = vmatprep.subr.bf16.mxu1 %v387_v8  ;;  %v1011_v21 = vld [vmem:[%s1075_s28 + $0x30] sm:$0xff]   ;;  %v1013_v23 = vld [vmem:[%s1075_s28 + $0x38] sm:$0xff]  }
  0x15   : > { %v1012_v22 = vld [vmem:[%s1075_s28 + $0x70] sm:$0xff]   ;;  %v1014_v24 = vld [vmem:[%s1075_s28 + $0x78] sm:$0xff]  }
  0x17   : > { %942 = vmatpush3.bf16.msra.mxu0 %v387_v8  ;;  %984 = vmatpush3.bf16.msra.mxu1 %v387_v8 }
  0x1a   : > { %944 = vmatmul.mubr.msk.bf16.vlgmr.msra.gmra.mrb[0].mxu0 %vm333_vm2, %v1001_v11  ;;  %960 = vmatmul.mubr.msk.bf16.vlgmr.msra.gmra.mrb[0].mxu1 %vm333_vm2, %v1002_v12 }
  0x1b   : > { %947 = vmatprep.mubr.msk.bf16.mxu0 %vm333_vm2, %v1003_v13  ;;  %963 = vmatprep.mubr.msk.bf16.mxu1 %vm333_vm2, %v1004_v14 }
  0x22   : > { %948 = vmatmul.mubr.msk.bf16.gmra.mrb[4].mxu0 %vm333_vm2, %v1005_v15  ;;  %964 = vmatmul.mubr.msk.bf16.gmra.mrb[4].mxu1 %vm333_vm2, %v1006_v16 }
  0x23   : > { %951 = vmatprep.mubr.msk.bf16.mxu0 %vm333_vm2, %v1007_v17  ;;  %967 = vmatprep.mubr.msk.bf16.mxu1 %vm333_vm2, %v1008_v18 }
  0x2a   : > { %952 = vmatmul.mubr.msk.bf16.gmra.mrb[8].mxu0 %vm333_vm2, %v1009_v19  ;;  %968 = vmatmul.mubr.msk.bf16.gmra.mrb[8].mxu1 %vm333_vm2, %v1010_v20 }
  0x2b   : > { %955 = vmatprep.mubr.msk.bf16.mxu0 %vm333_vm2, %v1011_v21  ;;  %971 = vmatprep.mubr.msk.bf16.mxu1 %vm333_vm2, %v1012_v22 }
  0x32   : > { %956 = vmatmul.mubr.msk.bf16.gmra.mrb[12].mxu0 %vm333_vm2, %v1013_v23  ;;  %972 = vmatmul.mubr.msk.bf16.gmra.mrb[12].mxu1 %vm333_vm2, %v1014_v24 }
  0xed   : > { %v945_v26 = vpop.f32.mrb[0].mxu0  ;;  %v961_v27 = vpop.f32.mrb[0].mxu1 }
  0xee   : > { %v432_v28 = vadd.f32 %v945_v26, %v1112_v25  ;;  %v496_v29 = vadd.f32 %v961_v27, %v1112_v25  ;;  %v423_v30 = vpop.f32.mrb[1].mxu0  ;;  %v487_v31 = vpop.f32.mrb[1].mxu1 }
  0xef   : > { %v424_v32 = vadd.f32 %v1112_v25, %v423_v30  ;;  %v488_v33 = vadd.f32 %v1112_v25, %v487_v31  ;;  %v946_v34 = vpop.f32.mrb[2].mxu0  ;;  %v962_v35 = vpop.f32.mrb[2].mxu1 }
  0xf0   : > { %v552_v36 = vmax.f32 %v432_v28, 0.0  ;;  %v568_v37 = vmax.f32 %v496_v29, 0.0  ;;  %v435_v38 = vadd.f32 %v946_v34, %v1112_v25  ;;  %v499_v39 = vadd.f32 %v962_v35, %v1112_v25  ;;  %v426_v40 = vpop.f32.mrb[3].mxu0  ;;  %v490_v41 = vpop.f32.mrb[3].mxu1 }
  0xf1   : > { %v550_v42 = vmax.f32 %v424_v32, 0.0  ;;  %v566_v43 = vmax.f32 %v488_v33, 0.0  ;;  %v427_v44 = vadd.f32 %v1112_v25, %v426_v40  ;;  %v491_v45 = vadd.f32 %v1112_v25, %v490_v41 }
  0xf2   : > { %v882_v46 = vpack.c.bf16 %v552_v36, %v552_v36  ;;  %v898_v47 = vpack.c.bf16 %v568_v37, %v568_v37  ;;  %v553_v48 = vmax.f32 %v435_v38, 0.0  ;;  %v569_v49 = vmax.f32 %v499_v39, 0.0 }
  0xf3   : > { %v880_v50 = vpack.c.bf16 %v550_v42, %v550_v42  ;;  %v896_v51 = vpack.c.bf16 %v566_v43, %v566_v43  ;;  %v551_v52 = vmax.f32 %v427_v44, 0.0  ;;  %v567_v53 = vmax.f32 %v491_v45, 0.0 }
  0xf4   : > { %713 = vst.msk [vmem:[%s1125_s6 + $0x8] sm:$0xf] %vm710_vm3, %v882_v46  ;;  %729 = vst.msk [vmem:[%s1125_s6 + $0x48] sm:$0xf] %vm710_vm3, %v898_v47  ;;  %v883_v54 = vpack.c.bf16 %v553_v48, %v553_v48  ;;  %v899_v55 = vpack.c.bf16 %v569_v49, %v569_v49 }
  0xf5   : > { %711 = vst.msk [vmem:[%s1125_s6] sm:$0xf] %vm710_vm3, %v880_v50  ;;  %727 = vst.msk [vmem:[%s1125_s6 + $0x40] sm:$0xf] %vm710_vm3, %v896_v51  ;;  %v881_v56 = vpack.c.bf16 %v551_v52, %v551_v52  ;;  %v897_v57 = vpack.c.bf16 %v567_v53, %v567_v53  ;;  %v949_v58 = vpop.f32.mrb[4].mxu0  ;;  %v965_v59 = vpop.f32.mrb[4].mxu1 }
  0xf6   : > { %714 = vst.msk [vmem:[%s1125_s6 + $0xc] sm:$0xf] %vm710_vm3, %v883_v54  ;;  %730 = vst.msk [vmem:[%s1125_s6 + $0x4c] sm:$0xf] %vm710_vm3, %v899_v55  ;;  %v448_v60 = vadd.f32 %v949_v58, %v1112_v25  ;;  %v512_v61 = vadd.f32 %v965_v59, %v1112_v25  ;;  %v439_v62 = vpop.f32.mrb[5].mxu0  ;;  %v503_v63 = vpop.f32.mrb[5].mxu1 }
  0xf7   : > { %712 = vst.msk [vmem:[%s1125_s6 + $0x4] sm:$0xf] %vm710_vm3, %v881_v56  ;;  %728 = vst.msk [vmem:[%s1125_s6 + $0x44] sm:$0xf] %vm710_vm3, %v897_v57  ;;  %v440_v0 = vadd.f32 %v1112_v25, %v439_v62  ;;  %v504_v1 = vadd.f32 %v1112_v25, %v503_v63  ;;  %v950_v2 = vpop.f32.mrb[6].mxu0  ;;  %v966_v3 = vpop.f32.mrb[6].mxu1 }
  0xf8   : > { %v556_v4 = vmax.f32 %v448_v60, 0.0  ;;  %v572_v5 = vmax.f32 %v512_v61, 0.0  ;;  %v451_v6 = vadd.f32 %v950_v2, %v1112_v25  ;;  %v515_v7 = vadd.f32 %v966_v3, %v1112_v25  ;;  %v442_v8 = vpop.f32.mrb[7].mxu0  ;;  %v506_v9 = vpop.f32.mrb[7].mxu1 }
  0xf9   : > { %v554_v10 = vmax.f32 %v440_v0, 0.0  ;;  %v570_v11 = vmax.f32 %v504_v1, 0.0  ;;  %v443_v12 = vadd.f32 %v1112_v25, %v442_v8  ;;  %v507_v13 = vadd.f32 %v1112_v25, %v506_v9 }
  0xfa   : > { %v886_v14 = vpack.c.bf16 %v556_v4, %v556_v4  ;;  %v902_v15 = vpack.c.bf16 %v572_v5, %v572_v5  ;;  %v557_v16 = vmax.f32 %v451_v6, 0.0  ;;  %v573_v17 = vmax.f32 %v515_v7, 0.0 }
  0xfb   : > { %v884_v18 = vpack.c.bf16 %v554_v10, %v554_v10  ;;  %v900_v19 = vpack.c.bf16 %v570_v11, %v570_v11  ;;  %v555_v20 = vmax.f32 %v443_v12, 0.0  ;;  %v571_v21 = vmax.f32 %v507_v13, 0.0 }
  0xfc   : > { %717 = vst.msk [vmem:[%s1125_s6 + $0x18] sm:$0xf] %vm710_vm3, %v886_v14  ;;  %733 = vst.msk [vmem:[%s1125_s6 + $0x58] sm:$0xf] %vm710_vm3, %v902_v15  ;;  %v887_v22 = vpack.c.bf16 %v557_v16, %v557_v16  ;;  %v903_v23 = vpack.c.bf16 %v573_v17, %v573_v17 }
  0xfd   : > { %715 = vst.msk [vmem:[%s1125_s6 + $0x10] sm:$0xf] %vm710_vm3, %v884_v18  ;;  %731 = vst.msk [vmem:[%s1125_s6 + $0x50] sm:$0xf] %vm710_vm3, %v900_v19  ;;  %v885_v24 = vpack.c.bf16 %v555_v20, %v555_v20  ;;  %v901_v26 = vpack.c.bf16 %v571_v21, %v571_v21  ;;  %v953_v27 = vpop.f32.mrb[8].mxu0  ;;  %v969_v28 = vpop.f32.mrb[8].mxu1 }
  0xfe   : > { %718 = vst.msk [vmem:[%s1125_s6 + $0x1c] sm:$0xf] %vm710_vm3, %v887_v22  ;;  %734 = vst.msk [vmem:[%s1125_s6 + $0x5c] sm:$0xf] %vm710_vm3, %v903_v23  ;;  %v464_v29 = vadd.f32 %v953_v27, %v1112_v25  ;;  %v528_v30 = vadd.f32 %v969_v28, %v1112_v25  ;;  %v455_v31 = vpop.f32.mrb[9].mxu0  ;;  %v519_v32 = vpop.f32.mrb[9].mxu1 }
  0xff   : > { %716 = vst.msk [vmem:[%s1125_s6 + $0x14] sm:$0xf] %vm710_vm3, %v885_v24  ;;  %732 = vst.msk [vmem:[%s1125_s6 + $0x54] sm:$0xf] %vm710_vm3, %v901_v26  ;;  %v456_v33 = vadd.f32 %v1112_v25, %v455_v31  ;;  %v520_v34 = vadd.f32 %v1112_v25, %v519_v32  ;;  %v954_v35 = vpop.f32.mrb[10].mxu0  ;;  %v970_v36 = vpop.f32.mrb[10].mxu1 }
 0x100   : > { %v560_v37 = vmax.f32 %v464_v29, 0.0  ;;  %v576_v38 = vmax.f32 %v528_v30, 0.0  ;;  %v467_v39 = vadd.f32 %v954_v35, %v1112_v25  ;;  %v531_v40 = vadd.f32 %v970_v36, %v1112_v25  ;;  %v458_v41 = vpop.f32.mrb[11].mxu0  ;;  %v522_v42 = vpop.f32.mrb[11].mxu1 }
 0x101   : > { %v558_v43 = vmax.f32 %v456_v33, 0.0  ;;  %v574_v44 = vmax.f32 %v520_v34, 0.0  ;;  %v459_v45 = vadd.f32 %v1112_v25, %v458_v41  ;;  %v523_v46 = vadd.f32 %v1112_v25, %v522_v42 }
 0x102   : > { %v890_v47 = vpack.c.bf16 %v560_v37, %v560_v37  ;;  %v906_v48 = vpack.c.bf16 %v576_v38, %v576_v38  ;;  %v561_v49 = vmax.f32 %v467_v39, 0.0  ;;  %v577_v50 = vmax.f32 %v531_v40, 0.0 }
 0x103   : > { %v888_v51 = vpack.c.bf16 %v558_v43, %v558_v43  ;;  %v904_v52 = vpack.c.bf16 %v574_v44, %v574_v44  ;;  %v559_v53 = vmax.f32 %v459_v45, 0.0  ;;  %v575_v54 = vmax.f32 %v523_v46, 0.0 }
 0x104   : > { %721 = vst.msk [vmem:[%s1125_s6 + $0x28] sm:$0xf] %vm710_vm3, %v890_v47  ;;  %737 = vst.msk [vmem:[%s1125_s6 + $0x68] sm:$0xf] %vm710_vm3, %v906_v48  ;;  %v891_v55 = vpack.c.bf16 %v561_v49, %v561_v49  ;;  %v907_v56 = vpack.c.bf16 %v577_v50, %v577_v50 }
 0x105   : > { %719 = vst.msk [vmem:[%s1125_s6 + $0x20] sm:$0xf] %vm710_vm3, %v888_v51  ;;  %735 = vst.msk [vmem:[%s1125_s6 + $0x60] sm:$0xf] %vm710_vm3, %v904_v52  ;;  %v889_v57 = vpack.c.bf16 %v559_v53, %v559_v53  ;;  %v905_v58 = vpack.c.bf16 %v575_v54, %v575_v54  ;;  %v957_v59 = vpop.f32.mrb[12].mxu0  ;;  %v973_v60 = vpop.f32.mrb[12].mxu1 }
 0x106   : > { %722 = vst.msk [vmem:[%s1125_s6 + $0x2c] sm:$0xf] %vm710_vm3, %v891_v55  ;;  %738 = vst.msk [vmem:[%s1125_s6 + $0x6c] sm:$0xf] %vm710_vm3, %v907_v56  ;;  %v480_v61 = vadd.f32 %v957_v59, %v1112_v25  ;;  %v544_v62 = vadd.f32 %v973_v60, %v1112_v25  ;;  %v471_v63 = vpop.f32.mrb[13].mxu0  ;;  %v535_v0 = vpop.f32.mrb[13].mxu1 }
 0x107   : > { %720 = vst.msk [vmem:[%s1125_s6 + $0x24] sm:$0xf] %vm710_vm3, %v889_v57  ;;  %736 = vst.msk [vmem:[%s1125_s6 + $0x64] sm:$0xf] %vm710_vm3, %v905_v58  ;;  %v472_v1 = vadd.f32 %v1112_v25, %v471_v63  ;;  %v536_v2 = vadd.f32 %v1112_v25, %v535_v0  ;;  %v958_v3 = vpop.f32.mrb[14].mxu0  ;;  %v974_v4 = vpop.f32.mrb[14].mxu1 }
 0x108   : > { %v564_v5 = vmax.f32 %v480_v61, 0.0  ;;  %v580_v6 = vmax.f32 %v544_v62, 0.0  ;;  %v483_v7 = vadd.f32 %v958_v3, %v1112_v25  ;;  %v547_v8 = vadd.f32 %v974_v4, %v1112_v25  ;;  %v474_v9 = vpop.f32.mrb[15].mxu0  ;;  %v538_v10 = vpop.f32.mrb[15].mxu1 }
 0x109   : > { %v562_v11 = vmax.f32 %v472_v1, 0.0  ;;  %v578_v12 = vmax.f32 %v536_v2, 0.0  ;;  %v475_v13 = vadd.f32 %v1112_v25, %v474_v9  ;;  %v539_v14 = vadd.f32 %v1112_v25, %v538_v10 }
 0x10a   : > { %v894_v15 = vpack.c.bf16 %v564_v5, %v564_v5  ;;  %v910_v16 = vpack.c.bf16 %v580_v6, %v580_v6  ;;  %v565_v17 = vmax.f32 %v483_v7, 0.0  ;;  %v581_v18 = vmax.f32 %v547_v8, 0.0 }
 0x10b   : > { %v892_v19 = vpack.c.bf16 %v562_v11, %v562_v11  ;;  %v908_v20 = vpack.c.bf16 %v578_v12, %v578_v12  ;;  %v563_v21 = vmax.f32 %v475_v13, 0.0  ;;  %v579_v22 = vmax.f32 %v539_v14, 0.0 }
 0x10c   : > { %725 = vst.msk [vmem:[%s1125_s6 + $0x38] sm:$0xf] %vm710_vm3, %v894_v15  ;;  %741 = vst.msk [vmem:[%s1125_s6 + $0x78] sm:$0xf] %vm710_vm3, %v910_v16  ;;  %v895_v23 = vpack.c.bf16 %v565_v17, %v565_v17  ;;  %v911_v24 = vpack.c.bf16 %v581_v18, %v581_v18 }
 0x10d   : > { %723 = vst.msk [vmem:[%s1125_s6 + $0x30] sm:$0xf] %vm710_vm3, %v892_v19  ;;  %739 = vst.msk [vmem:[%s1125_s6 + $0x70] sm:$0xf] %vm710_vm3, %v908_v20  ;;  %v893_v25 = vpack.c.bf16 %v563_v21, %v563_v21  ;;  %v909_v26 = vpack.c.bf16 %v579_v22, %v579_v22 }
 0x10e   : > { %726 = vst.msk [vmem:[%s1125_s6 + $0x3c] sm:$0xf] %vm710_vm3, %v895_v23  ;;  %742 = vst.msk [vmem:[%s1125_s6 + $0x7c] sm:$0xf] %vm710_vm3, %v911_v24 }
 0x10f   : > { %724 = vst.msk [vmem:[%s1125_s6 + $0x34] sm:$0xf] %vm710_vm3, %v893_v25  ;;  %740 = vst.msk [vmem:[%s1125_s6 + $0x74] sm:$0xf] %vm710_vm3, %v909_v26 }
 0x110 PF: > { %s13_s12 = sadd.s32 1, %s1021_s12  }
 0x111   : > { %p10_p4 = scmp.ge.s32.totalorder %s13_s12, 37  }
 0x113   :  { %12 = sbr.rel (!%p10_p4) target bundleno = 1 (0x1), region = 62 }

// kernel: nikola_forward.10
= control target key start
LH: loop header
LB: loop body
LE: loop exit
PB: predicated region body
PF: predicated region fallthrough
CT: control target
= control target key end

     0   :  { %s2470_s12 = smov 0   ;;  %s2917_s0 = inlined_call_operand.vmem [shape: bf16[2048,600], index: 0, kind: input, shape index: {}]   ;;  %s2918_s1 = inlined_call_operand.vmem [shape: bf16[600,36], index: 1, kind: input, shape index: {}]   ;;  %s2919_s2 = inlined_call_operand.vmem [shape: f32[1,36], index: 2, kind: input, shape index: {}]   ;;  %s2920_s3 = inlined_call_operand.vmem [shape: bf16[2048,36], index: 3, kind: output, shape index: {}]  }
   0x1 LB: > { %s1766_s13 = sadd.s32 4294967295, %s2448_s12   ;;  %p1770_p0 = scmp.ge.s32.totalorder %s2448_s12, 1  ;;  %s2448_s12 = sphi %s2470_s12, %s13_s12  }
   0x2   : > { %p139_p1 = scmp.lt.s32.totalorder %s2448_s12, 9 }
   0x4   : > { %p140_p2 = pnand %p1770_p0, %p139_p1 }
   0x5   : > { %v2292_v0 = vld [vmem:[%s2918_s1 + $0x40] sm:$0xff] (!%p140_p2)   ;;  %s1771_s16 = sshll.u32 (!%p140_p2), %s1766_s13, 5  ;;  %v2294_v2 = vld [vmem:[%s2918_s1 + $0x48] sm:$0xff] (!%p140_p2)   ;;  %v2296_v4 = vld [vmem:[%s2918_s1 + $0x50] sm:$0xff] (!%p140_p2)   ;;  %vm1030_vm0 = vcmask (!%p140_p2), 1043456   ;;  %vm981_vm1 = vcmask (!%p140_p2), 719872  }
   0x6   : > { %143 = sbr.rel (%p140_p2) target bundleno = 416 (0x1a0), region = 32  ;;  %v2293_v1 = vld [vmem:[%s2918_s1] sm:$0xff] (!%p140_p2)   ;;  %1976 = vmatprep.subr.bf16.mxu0 (!%p140_p2), %v2292_v0  ;;  %2266 = vmatprep.subr.bf16.mxu1 (!%p140_p2), %v2292_v0  ;;  %p165_p3 = scmp.lt.s32.totalorder (!%p140_p2), %s1771_s16, 255  ;;  %v2295_v3 = vld [vmem:[%s2918_s1 + $0x8] sm:$0xff] (!%p140_p2)   ;;  %v2297_v5 = vld [vmem:[%s2918_s1 + $0x10] sm:$0xff] (!%p140_p2)   ;;  %vm1677_vm2 = vcmask (!%p140_p2), 289792  }
   0x7   : > { %1977 = vmatpush3.bf16.msra.mxu0 (!%p140_p2), %v2293_v1  ;;  %2274 = vmatpush3.bf16.msra.mxu1 (!%p140_p2), %v2293_v1  ;;  %v2298_v6 = vld [vmem:[%s2918_s1 + $0x58] sm:$0xff] (!%p140_p2)   ;;  %v2300_v8 = vld [vmem:[%s2918_s1 + $0x60] sm:$0xff] (!%p140_p2)   ;;  %v2302_v10 = vld [vmem:[%s2918_s1 + $0x68] sm:$0xff] (!%p140_p2)  }
   0x8   : > { %1978 = vmatprep.subr.bf16.mxu0 (!%p140_p2), %v2294_v2  ;;  %2267 = vmatprep.subr.bf16.mxu1 (!%p140_p2), %v2294_v2  ;;  %v2299_v7 = vld [vmem:[%s2918_s1 + $0x18] sm:$0xff] (!%p140_p2)   ;;  %v2301_v9 = vld [vmem:[%s2918_s1 + $0x20] sm:$0xff] (!%p140_p2)   ;;  %v2303_v13 = vld [vmem:[%s2918_s1 + $0x28] sm:$0xff] (!%p140_p2)  }
   0x9   : > { %v2304_v14 = vld [vmem:[%s2918_s1 + $0x70] sm:$0xff] (!%p140_p2)   ;;  %v2306_v16 = vld [vmem:[%s2918_s1 + $0x78] sm:$0xff] (!%p140_p2)   ;;  %v2314_v18 = vld [vmem:[%s2918_s1 + $0xc0] sm:$0xff] (!%p140_p2)  }
   0xa   : > { %v2305_v15 = vld [vmem:[%s2918_s1 + $0x30] sm:$0xff] (!%p140_p2)   ;;  %v2307_v17 = vld [vmem:[%s2918_s1 + $0x38] sm:$0xff] (!%p140_p2)   ;;  %v2317_v19 = vld [vmem:[%s2918_s1 + $0x100] sm:$0xff] (!%p140_p2)  }
   0xb   : > { %1979 = vmatpush3.bf16.msra.mxu0 (!%p140_p2), %v2295_v3  ;;  %2275 = vmatpush3.bf16.msra.mxu1 (!%p140_p2), %v2295_v3  ;;  %v2315_v22 = vld [vmem:[%s2918_s1 + $0x80] sm:$0xff] (!%p140_p2)   ;;  %v2316_v23 = vld [vmem:[%s2918_s1 + $0xc8] sm:$0xff] (!%p140_p2)   ;;  %v2325_v27 = vld [vmem:[%s2918_s1 + $0xd0] sm:$0xff] (!%p140_p2)  }
   0xc   : > { %1980 = vmatprep.subr.bf16.mxu0 (!%p140_p2), %v2296_v4  ;;  %2268 = vmatprep.subr.bf16.mxu1 (!%p140_p2), %v2296_v4  ;;  %v2318_v26 = vld [vmem:[%s2918_s1 + $0x88] sm:$0xff] (!%p140_p2)   ;;  %v2326_v31 = vld [vmem:[%s2918_s1 + $0x90] sm:$0xff] (!%p140_p2)   ;;  %v2327_v33 = vld [vmem:[%s2918_s1 + $0xd8] sm:$0xff] (!%p140_p2)  }
   0xd   : > { %s2922_s16 = smov (!%p165_p3, %s1771_s16), 255  ;;  %v2338_v29 = vld [vmem:[%s2918_s1 + $0x108] sm:$0xff]   ;;  %v2328_v35 = vld [vmem:[%s2918_s1 + $0x98] sm:$0xff]   ;;  %v2335_v37 = vld [vmem:[%s2918_s1 + $0xe0] sm:$0xff]  }
   0xe   : > { %s2283_s29 = smul.u32 20, %s2922_s16  ;;  %v2336_v39 = vld [vmem:[%s2918_s1 + $0xa0] sm:$0xff]   ;;  %v2337_v40 = vld [vmem:[%s2918_s1 + $0xe8] sm:$0xff]   ;;  %v2356_v43 = vld [vmem:[%s2918_s1 + $0x110] sm:$0xff]   ;;  %s1774_s23 = sshll.u32 %s2922_s16, 2 }
   0xf   : > { %1981 = vmatpush3.bf16.msra.mxu0 %v2297_v5  ;;  %2276 = vmatpush3.bf16.msra.mxu1 %v2297_v5  ;;  %v2339_v44 = vld [vmem:[%s2918_s1 + $0xa8] sm:$0xff]   ;;  %v2346_v46 = vld [vmem:[%s2918_s1 + $0xf0] sm:$0xff]   ;;  %v2369_v49 = vld [vmem:[%s2918_s1 + $0x118] sm:$0xff]   ;;  %s2789_s25 = scalar_lea.vmem %s2920_s3, %s1774_s23 }
  0x10   : > { %1982 = vmatprep.subr.bf16.mxu0 %v2298_v6  ;;  %2269 = vmatprep.subr.bf16.mxu1 %v2298_v6  ;;  %s2511_s9 = scalar_lea.vmem %s2917_s0, %s2283_s29  ;;  %v2347_v48 = vld [vmem:[%s2918_s1 + $0xb0] sm:$0xff]   ;;  %v2348_v51 = vld [vmem:[%s2918_s1 + $0xf8] sm:$0xff]   ;;  %v2382_v54 = vld [vmem:[%s2918_s1 + $0x120] sm:$0xff]  }
  0x11   : > { %v2310_v11 = vld [vmem:[%s2511_s9 + $0x4] ss:$20 sps:$4 sm:$0xff]   ;;  %v2308_v20 = vld [vmem:[%s2511_s9] ss:$20 sps:$4 sm:$0xff]   ;;  %v2323_v28 = vld [vmem:[%s2511_s9 + $0x28] ss:$20 sps:$4 sm:$0xff]  }
  0x12   : > { %v2313_v12 = vld [vmem:[%s2511_s9 + $0x1e4] ss:$20 sps:$4 sm:$0xff]   ;;  %1066 = vmatprep.mubr.bf16.mxu0 %v2310_v11  ;;  %v2311_v21 = vld [vmem:[%s2511_s9 + $0x1e0] ss:$20 sps:$4 sm:$0xff]   ;;  %v2324_v30 = vld [vmem:[%s2511_s9 + $0x208] ss:$20 sps:$4 sm:$0xff]  }
  0x13   : > { %1983 = vmatpush3.bf16.msra.mxu0 %v2299_v7  ;;  %2277 = vmatpush3.bf16.msra.mxu1 %v2299_v7  ;;  %v2319_v24 = vld [vmem:[%s2511_s9 + $0x2c] ss:$20 sps:$4 sm:$0xff]   ;;  %v2329_v32 = vld [vmem:[%s2511_s9 + $0x54] ss:$20 sps:$4 sm:$0xff]   ;;  %v2333_v36 = vld [vmem:[%s2511_s9 + $0x50] ss:$20 sps:$4 sm:$0xff]  }
  0x14   : > { %1984 = vmatprep.subr.bf16.mxu0 %v2300_v8  ;;  %2270 = vmatprep.subr.bf16.mxu1 %v2300_v8  ;;  %v2321_v25 = vld [vmem:[%s2511_s9 + $0x20c] ss:$20 sps:$4 sm:$0xff]   ;;  %v2331_v34 = vld [vmem:[%s2511_s9 + $0x234] ss:$20 sps:$4 sm:$0xff]   ;;  %v2334_v38 = vld [vmem:[%s2511_s9 + $0x230] ss:$20 sps:$4 sm:$0xff]  }
  0x15   : > { %1162 = vmatprep.mubr.bf16.mxu1 %v2313_v12  ;;  %v2340_v41 = vld [vmem:[%s2511_s9 + $0x7c] ss:$20 sps:$4 sm:$0xff]   ;;  %v2344_v45 = vld [vmem:[%s2511_s9 + $0x78] ss:$20 sps:$4 sm:$0xff]   ;;  %v2355_v56 = vld [vmem:[%s2511_s9 + $0xa0] ss:$20 sps:$4 sm:$0xff]  }
  0x16   : > { %v2342_v42 = vld [vmem:[%s2511_s9 + $0x25c] ss:$20 sps:$4 sm:$0xff]   ;;  %v2345_v47 = vld [vmem:[%s2511_s9 + $0x258] ss:$20 sps:$4 sm:$0xff]   ;;  %v2359_v58 = vld [vmem:[%s2511_s9 + $0x34] ss:$20 sps:$4 sm:$0xff]  }
  0x17   : > { %1985 = vmatpush3.bf16.msra.mxu0 %v2301_v9  ;;  %2278 = vmatpush3.bf16.msra.mxu1 %v2301_v9  ;;  %v2350_v50 = vld [vmem:[%s2511_s9 + $0xa4] ss:$20 sps:$4 sm:$0xff]   ;;  %v2354_v52 = vld [vmem:[%s2511_s9 + $0xc] ss:$20 sps:$4 sm:$0xff]   ;;  %v2352_v55 = vld [vmem:[%s2511_s9 + $0x8] ss:$20 sps:$4 sm:$0xff]  }
  0x18   : > { %1986 = vmatprep.subr.bf16.mxu0 %v2302_v10  ;;  %2271 = vmatprep.subr.bf16.mxu1 %v2302_v10  ;;  %v2349_v53 = vld [vmem:[%s2918_s1 + $0xb8] sm:$0xff]   ;;  %v2357_v57 = vld [vmem:[%s2511_s9 + $0xcc] ss:$20 sps:$4 sm:$0xff]   ;;  %v2395_v59 = vld [vmem:[%s2918_s1 + $0x128] ss:$0 sps:$4 sm:$0xff]  }
  0x19   : > { %v1032_v60 = vsel %vm1030_vm0, %v2395_v59, 0  ;;  %v2361_v61 = vld [vmem:[%s2511_s9 + $0xc8] ss:$20 sps:$4 sm:$0xff]   ;;  %v2362_v62 = vld [vmem:[%s2511_s9 + $0x30] ss:$20 sps:$4 sm:$0xff]  }
  0x1a   : > { %v2363_v63 = vld [vmem:[%s2511_s9 + $0xf4] ss:$20 sps:$4 sm:$0xff]   ;;  %v2365_v0 = vld [vmem:[%s2511_s9 + $0x5c] ss:$20 sps:$4 sm:$0xff]   ;;  %v2368_v2 = vld [vmem:[%s2511_s9 + $0x58] ss:$20 sps:$4 sm:$0xff]  }
  0x1b   : > { %1987 = vmatpush3.bf16.msra.mxu0 %v2303_v13  ;;  %2279 = vmatpush3.bf16.msra.mxu1 %v2303_v13  ;;  %v2367_v1 = vld [vmem:[%s2511_s9 + $0xf0] ss:$20 sps:$4 sm:$0xff]   ;;  %v2374_v5 = vld [vmem:[%s2511_s9 + $0x118] ss:$20 sps:$4 sm:$0xff]   ;;  %v2375_v6 = vld [vmem:[%s2511_s9 + $0x80] ss:$20 sps:$4 sm:$0xff]  }
  0x1c   : > { %1988 = vmatprep.subr.bf16.mxu0 %v2304_v14  ;;  %2272 = vmatprep.subr.bf16.mxu1 %v2304_v14  ;;  %v2370_v3 = vld [vmem:[%s2511_s9 + $0x11c] ss:$20 sps:$4 sm:$0xff]   ;;  %v2372_v4 = vld [vmem:[%s2511_s9 + $0x84] ss:$20 sps:$4 sm:$0xff]   ;;  %v2378_v8 = vld [vmem:[%s2511_s9 + $0xac] ss:$20 sps:$4 sm:$0xff]  }
  0x1d   : > { %v2376_v7 = vld [vmem:[%s2511_s9 + $0x144] ss:$20 sps:$4 sm:$0xff]   ;;  %v2380_v9 = vld [vmem:[%s2511_s9 + $0x140] ss:$20 sps:$4 sm:$0xff]   ;;  %v2381_v10 = vld [vmem:[%s2511_s9 + $0xa8] ss:$20 sps:$4 sm:$0xff]  }
  0x1e   : > { %v2383_v11 = vld [vmem:[%s2511_s9 + $0x16c] ss:$20 sps:$4 sm:$0xff]   ;;  %v2385_v12 = vld [vmem:[%s2511_s9 + $0xd4] ss:$20 sps:$4 sm:$0xff]   ;;  %v2388_v14 = vld [vmem:[%s2511_s9 + $0xd0] ss:$20 sps:$4 sm:$0xff]  }
  0x1f   : > { %1989 = vmatpush3.bf16.msra.mxu0 %v2305_v15  ;;  %2280 = vmatpush3.bf16.msra.mxu1 %v2305_v15  ;;  %v2387_v13 = vld [vmem:[%s2511_s9 + $0x168] ss:$20 sps:$4 sm:$0xff]  }
  0x20   : > { %1990 = vmatprep.subr.bf16.mxu0 %v2306_v16  ;;  %2273 = vmatprep.subr.bf16.mxu1 %v2306_v16  ;;  %v2389_v15 = vld [vmem:[%s2511_s9 + $0x194] ss:$20 sps:$4 sm:$0xff]   ;;  %v2391_v16 = vld [vmem:[%s2511_s9 + $0xfc] ss:$20 sps:$4 sm:$0xff]  }
  0x23   : > { %1991 = vmatpush3.bf16.msra.mxu0 %v2307_v17  ;;  %2281 = vmatpush3.bf16.msra.mxu1 %v2307_v17  ;;  %v2393_v17 = vld [vmem:[%s2511_s9 + $0x190] ss:$20 sps:$4 sm:$0xff]  }
  0x24   : > { %2088 = vmatprep.subr.bf16.mxu1 %v2314_v18  ;;  %2222 = vmatprep.subr.bf16.mxu0 %v2317_v19  ;;  %v2394_v18 = vld [vmem:[%s2511_s9 + $0xf8] ss:$20 sps:$4 sm:$0xff]  }
  0x26   : > { %1067 = vmatmul.mubr.bf16.vlgmr.msra.gmra.mrb[0].mxu0 %v2308_v20  ;;  %1163 = vmatmul.mubr.bf16.vlgmr.msra.gmra.mrb[0].mxu1 %v2311_v21  ;;  %v2398_v20 = vld [vmem:[%s2511_s9 + $0x124] ss:$20 sps:$4 sm:$0xff]  }
  0x27   : > { %2089 = vmatpush3.bf16.msra.mxu1 %v2315_v22  ;;  %2223 = vmatpush3.bf16.msra.mxu0 %v2317_v19  ;;  %v2396_v19 = vld [vmem:[%s2511_s9 + $0x1bc] ss:$20 sps:$4 sm:$0xff]   ;;  %v2400_v21 = vld [vmem:[%s2511_s9 + $0x1b8] ss:$20 sps:$4 sm:$0xff]   ;;  %v2401_v22 = vld [vmem:[%s2511_s9 + $0x120] ss:$20 sps:$4 sm:$0xff]  }
  0x28   : > { %2090 = vmatprep.subr.bf16.mxu1 %v2316_v23  ;;  %1074 = vmatprep.mubr.bf16.mxu0 %v2319_v24  ;;  %v2402_v23 = vld [vmem:[%s2511_s9 + $0x14c] ss:$20 sps:$4 sm:$0xff]   ;;  %v2404_v24 = vld [vmem:[%s2511_s9 + $0x10] ss:$20 sps:$4 sm:$0xff]  }
  0x29   : > { %1170 = vmatprep.mubr.bf16.mxu1 %v2321_v25  ;;  %2224 = vmatprep.subr.bf16.mxu0 %v2338_v29  ;;  %v2405_v25 = vld [vmem:[%s2511_s9 + $0x148] ss:$20 sps:$4 sm:$0xff]  }
  0x2b   : > { %2091 = vmatpush3.bf16.msra.mxu1 %v2318_v26  ;;  %2225 = vmatpush3.bf16.msra.mxu0 %v2338_v29  ;;  %v2406_v26 = vld [vmem:[%s2511_s9 + $0x38] ss:$20 sps:$4 sm:$0xff]   ;;  %v2410_v29 = vld [vmem:[%s2511_s9 + $0x170] ss:$20 sps:$4 sm:$0xff]  }
  0x2c   : > { %2092 = vmatprep.subr.bf16.mxu1 %v2325_v27  ;;  %2226 = vmatprep.subr.bf16.mxu0 %v2356_v43  ;;  %v2407_v27 = vld [vmem:[%s2511_s9 + $0x174] ss:$20 sps:$4 sm:$0xff]  }
  0x2e   : > { %1075 = vmatmul.mubr.bf16.gmra.mrb[4].mxu0 %v2323_v28  ;;  %1171 = vmatmul.mubr.bf16.gmra.mrb[4].mxu1 %v2324_v30  ;;  %v2409_v28 = vld [vmem:[%s2511_s9 + $0x60] ss:$20 sps:$4 sm:$0xff]   ;;  %v2411_v30 = vld [vmem:[%s2511_s9 + $0x88] ss:$20 sps:$4 sm:$0xff]  }
  0x2f   : > { %2093 = vmatpush3.bf16.msra.mxu1 %v2326_v31  ;;  %1082 = vmatprep.mubr.bf16.mxu0 %v2329_v32  ;;  %v2412_v31 = vld [vmem:[%s2511_s9 + $0x19c] ss:$20 sps:$4 sm:$0xff]  }
  0x30   : > { %2094 = vmatprep.subr.bf16.mxu1 %v2327_v33  ;;  %1178 = vmatprep.mubr.bf16.mxu1 %v2331_v34  ;;  %v2414_v32 = vld [vmem:[%s2511_s9 + $0xb0] ss:$20 sps:$4 sm:$0xff]   ;;  %v2415_v33 = vld [vmem:[%s2511_s9 + $0x198] ss:$20 sps:$4 sm:$0xff]  }
  0x31   : > { %2227 = vmatpush3.bf16.msra.mxu0 %v2356_v43  ;;  %v2416_v34 = vld [vmem:[%s2511_s9 + $0xd8] ss:$20 sps:$4 sm:$0xff]   ;;  %v2427_v43 = vld [vmem:[%s2511_s9 + $0x214] ss:$20 sps:$4 sm:$0xff]  }
  0x32   : > { %2228 = vmatprep.subr.bf16.mxu0 %v2369_v49 }
  0x33   : > { %2095 = vmatpush3.bf16.msra.mxu1 %v2328_v35  ;;  %v2417_v35 = vld [vmem:[%s2511_s9 + $0x1c4] ss:$20 sps:$4 sm:$0xff]  }
  0x34   : > { %2096 = vmatprep.subr.bf16.mxu1 %v2335_v37  ;;  %v2420_v37 = vld [vmem:[%s2511_s9 + $0x1c0] ss:$20 sps:$4 sm:$0xff]  }
  0x35   : > { %2229 = vmatpush3.bf16.msra.mxu0 %v2369_v49  ;;  %v2435_v49 = vld [vmem:[%s2511_s9 + $0x238] ss:$20 sps:$4 sm:$0xff]  }
  0x36   : > { %1083 = vmatmul.mubr.bf16.gmra.mrb[8].mxu0 %v2333_v36  ;;  %1179 = vmatmul.mubr.bf16.gmra.mrb[8].mxu1 %v2334_v38  ;;  %v2419_v36 = vld [vmem:[%s2511_s9 + $0x100] ss:$20 sps:$4 sm:$0xff]   ;;  %v2421_v38 = vld [vmem:[%s2511_s9 + $0x128] ss:$20 sps:$4 sm:$0xff]  }
  0x37   : > { %2097 = vmatpush3.bf16.msra.mxu1 %v2336_v39  ;;  %1090 = vmatprep.mubr.bf16.mxu0 %v2340_v41  ;;  %v2422_v39 = vld [vmem:[%s2511_s9 + $0x1ec] ss:$20 sps:$4 sm:$0xff]   ;;  %v2425_v41 = vld [vmem:[%s2511_s9 + $0x1e8] ss:$20 sps:$4 sm:$0xff]  }
  0x38   : > { %2098 = vmatprep.subr.bf16.mxu1 %v2337_v40  ;;  %1186 = vmatprep.mubr.bf16.mxu1 %v2342_v42  ;;  %v2424_v40 = vld [vmem:[%s2511_s9 + $0x150] ss:$20 sps:$4 sm:$0xff]   ;;  %v2426_v42 = vld [vmem:[%s2511_s9 + $0x178] ss:$20 sps:$4 sm:$0xff]  }
  0x39   : > { %2230 = vmatprep.subr.bf16.mxu0 %v2382_v54 }
  0x3a   : > { %2231 = vmatpush3.bf16.msra.mxu0 %v2382_v54  ;;  %v2441_v54 = vld [vmem:[%s2511_s9 + $0x268] ss:$20 sps:$4 sm:$0xff]  }
  0x3b   : > { %2099 = vmatpush3.bf16.msra.mxu1 %v2339_v44  ;;  %2282 = vmatprep.subr.msk.bf16.mxu0 %vm1030_vm0, %v2395_v59  ;;  %v2429_v44 = vld [vmem:[%s2511_s9 + $0x1a0] ss:$20 sps:$4 sm:$0xff]  }
  0x3c   : > { %2100 = vmatprep.subr.bf16.mxu1 %v2346_v46  ;;  %v2431_v46 = vld [vmem:[%s2511_s9 + $0x1c8] ss:$20 sps:$4 sm:$0xff]  }
  0x3e   : > { %1091 = vmatmul.mubr.bf16.gmra.mrb[12].mxu0 %v2344_v45  ;;  %1187 = vmatmul.mubr.bf16.gmra.mrb[12].mxu1 %v2345_v47  ;;  %v2430_v45 = vld [vmem:[%s2511_s9 + $0x210] ss:$20 sps:$4 sm:$0xff]  }
  0x3f   : > { %2101 = vmatpush3.bf16.msra.mxu1 %v2347_v48  ;;  %1098 = vmatprep.mubr.bf16.mxu0 %v2350_v50  ;;  %v2432_v47 = vld [vmem:[%s2511_s9 + $0x23c] ss:$20 sps:$4 sm:$0xff]   ;;  %v2436_v50 = vld [vmem:[%s2511_s9 + $0x218] ss:$20 sps:$4 sm:$0xff]  }
  0x40   : > { %2102 = vmatprep.subr.bf16.mxu1 %v2348_v51  ;;  %1227 = vmatprep.mubr.bf16.mxu1 %v2354_v52  ;;  %v2434_v48 = vld [vmem:[%s2511_s9 + $0x1f0] ss:$20 sps:$4 sm:$0xff]   ;;  %v2439_v52 = vld [vmem:[%s2511_s9 + $0x240] ss:$20 sps:$4 sm:$0xff]  }
  0x41   : > { %2233 = vmatpush3.bf16.msra.mxu0 %v1032_v60  ;;  %v2437_v51 = vld [vmem:[%s2511_s9 + $0x264] ss:$20 sps:$4 sm:$0xff]  }
  0x43   : > { %2103 = vmatpush3.bf16.msra.mxu1 %v2349_v53  ;;  %v2440_v53 = vld [vmem:[%s2511_s9 + $0x260] ss:$20 sps:$4 sm:$0xff]  }
  0x46   : > { %1099 = vmatmul.mubr.bf16.gmra.mrb[16].mxu0 %v2355_v56  ;;  %1228 = vmatmul.mubr.bf16.vlgmr.msra.gmra.mrb[16].mxu1 %v2352_v55 }
  0x47   : > { %1106 = vmatprep.mubr.bf16.mxu0 %v2357_v57  ;;  %1235 = vmatprep.mubr.bf16.mxu1 %v2359_v58 }
  0x4e   : > { %1107 = vmatmul.mubr.bf16.gmra.mrb[20].mxu0 %v2361_v61  ;;  %1236 = vmatmul.mubr.bf16.gmra.mrb[20].mxu1 %v2362_v62 }
  0x4f   : > { %1114 = vmatprep.mubr.bf16.mxu0 %v2363_v63  ;;  %1243 = vmatprep.mubr.bf16.mxu1 %v2365_v0 }
  0x56   : > { %1115 = vmatmul.mubr.bf16.gmra.mrb[24].mxu0 %v2367_v1  ;;  %1244 = vmatmul.mubr.bf16.gmra.mrb[24].mxu1 %v2368_v2 }
  0x57   : > { %1122 = vmatprep.mubr.bf16.mxu0 %v2370_v3  ;;  %1251 = vmatprep.mubr.bf16.mxu1 %v2372_v4 }
  0x5e   : > { %1123 = vmatmul.mubr.bf16.gmra.mrb[28].mxu0 %v2374_v5  ;;  %1252 = vmatmul.mubr.bf16.gmra.mrb[28].mxu1 %v2375_v6 }
  0x5f   : > { %1130 = vmatprep.mubr.bf16.mxu0 %v2376_v7  ;;  %1259 = vmatprep.mubr.bf16.mxu1 %v2378_v8 }
  0x66   : > { %1131 = vmatmul.mubr.bf16.gmra.mrb[32].mxu0 %v2380_v9  ;;  %1260 = vmatmul.mubr.bf16.gmra.mrb[32].mxu1 %v2381_v10 }
  0x67   : > { %1138 = vmatprep.mubr.bf16.mxu0 %v2383_v11  ;;  %1267 = vmatprep.mubr.bf16.mxu1 %v2385_v12 }
  0x6e   : > { %1139 = vmatmul.mubr.bf16.gmra.mrb[36].mxu0 %v2387_v13  ;;  %1268 = vmatmul.mubr.bf16.gmra.mrb[36].mxu1 %v2388_v14 }
  0x6f   : > { %1146 = vmatprep.mubr.bf16.mxu0 %v2389_v15  ;;  %1275 = vmatprep.mubr.bf16.mxu1 %v2391_v16 }
  0x76   : > { %1147 = vmatmul.mubr.bf16.gmra.mrb[40].mxu0 %v2393_v17  ;;  %1276 = vmatmul.mubr.bf16.gmra.mrb[40].mxu1 %v2394_v18 }
  0x77   : > { %1154 = vmatprep.mubr.bf16.mxu0 %v2396_v19  ;;  %1283 = vmatprep.mubr.bf16.mxu1 %v2398_v20 }
  0x7e   : > { %1155 = vmatmul.mubr.bf16.gmra.mrb[44].mxu0 %v2400_v21  ;;  %1284 = vmatmul.mubr.bf16.gmra.mrb[44].mxu1 %v2401_v22 }
  0x7f   : > { %1291 = vmatprep.mubr.bf16.mxu1 %v2402_v23  ;;  %2234 = vmatprep.mubr.msk.bf16.mxu0 %vm981_vm1, %v2404_v24 }
  0x86   : > { %1292 = vmatmul.mubr.bf16.gmra.mrb[48].mxu1 %v2405_v25  ;;  %2235 = vmatmul.mubr.msk.bf16.vlgmr.msra.gmra.mrb[48].mxu0 %vm981_vm1, %v2406_v26 }
  0x87   : > { %1299 = vmatprep.mubr.bf16.mxu1 %v2407_v27  ;;  %2238 = vmatprep.mubr.msk.bf16.mxu0 %vm981_vm1, %v2409_v28 }
  0x8e   : > { %1300 = vmatmul.mubr.bf16.gmra.mrb[52].mxu1 %v2410_v29  ;;  %2239 = vmatmul.mubr.msk.bf16.gmra.mrb[52].mxu0 %vm981_vm1, %v2411_v30 }
  0x8f   : > { %1307 = vmatprep.mubr.bf16.mxu1 %v2412_v31  ;;  %2242 = vmatprep.mubr.msk.bf16.mxu0 %vm981_vm1, %v2414_v32 }
  0x96   : > { %1308 = vmatmul.mubr.bf16.gmra.mrb[56].mxu1 %v2415_v33  ;;  %2243 = vmatmul.mubr.msk.bf16.gmra.mrb[56].mxu0 %vm981_vm1, %v2416_v34 }
  0x97   : > { %1315 = vmatprep.mubr.bf16.mxu1 %v2417_v35  ;;  %2246 = vmatprep.mubr.msk.bf16.mxu0 %vm981_vm1, %v2419_v36 }
  0x9e   : > { %1316 = vmatmul.mubr.bf16.gmra.mrb[60].mxu1 %v2420_v37  ;;  %2247 = vmatmul.mubr.msk.bf16.gmra.mrb[60].mxu0 %vm981_vm1, %v2421_v38 }
  0x9f   : > { %1323 = vmatprep.mubr.bf16.mxu1 %v2422_v39  ;;  %2250 = vmatprep.mubr.msk.bf16.mxu0 %vm981_vm1, %v2424_v40 }
  0xa6   : > { %1324 = vmatmul.mubr.bf16.gmra.mrb[64].mxu1 %v2425_v41  ;;  %2251 = vmatmul.mubr.msk.bf16.gmra.mrb[64].mxu0 %vm981_vm1, %v2426_v42  ;;  %v2715_v41 = vld [vmem:[%s2919_s2] ss:$0 sm:$0xff] }
  0xa7   : > { %1331 = vmatprep.mubr.bf16.mxu1 %v2427_v43  ;;  %2254 = vmatprep.mubr.msk.bf16.mxu0 %vm981_vm1, %v2429_v44 }
  0xae   : > { %1332 = vmatmul.mubr.bf16.gmra.mrb[68].mxu1 %v2430_v45  ;;  %2255 = vmatmul.mubr.msk.bf16.gmra.mrb[68].mxu0 %vm981_vm1, %v2431_v46 }
  0xaf   : > { %1339 = vmatprep.mubr.bf16.mxu1 %v2432_v47  ;;  %2258 = vmatprep.mubr.msk.bf16.mxu0 %vm981_vm1, %v2434_v48 }
  0xb6   : > { %1340 = vmatmul.mubr.bf16.gmra.mrb[72].mxu1 %v2435_v49  ;;  %2259 = vmatmul.mubr.msk.bf16.gmra.mrb[72].mxu0 %vm981_vm1, %v2436_v50 }
  0xb7   : > { %1347 = vmatprep.mubr.bf16.mxu1 %v2437_v51  ;;  %2262 = vmatprep.mubr.msk.bf16.mxu0 %vm981_vm1, %v2439_v52 }
  0xbe   : > { %1348 = vmatmul.mubr.bf16.gmra.mrb[76].mxu1 %v2440_v53  ;;  %2263 = vmatmul.mubr.msk.bf16.gmra.mrb[76].mxu0 %vm981_vm1, %v2441_v54 }
  0xf9   : > { %v2064_v55 = vpop.f32.mrb[0].mxu1  ;;  %v1992_v56 = vpop.f32.mrb[0].mxu0 }
  0xfa   : > { %v2065_v57 = vpop.f32.mrb[1].mxu1  ;;  %v1993_v58 = vpop.f32.mrb[1].mxu0 }
  0xfb   : > { %v2696_v59 = vadd.f32 %v2065_v57, %v2064_v55  ;;  %v2067_v60 = vpop.f32.mrb[2].mxu1  ;;  %v1994_v61 = vadd.f32 %v1993_v58, %v1992_v56  ;;  %v1995_v62 = vpop.f32.mrb[2].mxu0 }
  0xfc   : > { %v2068_v63 = vpop.f32.mrb[3].mxu1  ;;  %v1996_v0 = vpop.f32.mrb[3].mxu0 }
  0xfd   : > { %v2698_v1 = vadd.f32 %v2068_v63, %v2067_v60  ;;  %v1997_v2 = vadd.f32 %v1996_v0, %v1995_v62  ;;  %v1069_v44 = vadd.f32 %v1994_v61, %v2715_v41 }
  0xff   : > { %v1072_v51 = vadd.f32 %v1997_v2, %v2715_v41 }
 0x101   : > { %v2070_v3 = vpop.f32.mrb[4].mxu1  ;;  %v1998_v4 = vpop.f32.mrb[4].mxu0 }
 0x102   : > { %v2071_v5 = vpop.f32.mrb[5].mxu1  ;;  %v1999_v6 = vpop.f32.mrb[5].mxu0 }
 0x103   : > { %v2700_v7 = vadd.f32 %v2071_v5, %v2070_v3  ;;  %v2073_v8 = vpop.f32.mrb[6].mxu1  ;;  %v2000_v9 = vadd.f32 %v1999_v6, %v1998_v4  ;;  %v2001_v10 = vpop.f32.mrb[6].mxu0 }
 0x104   : > { %v2074_v11 = vpop.f32.mrb[7].mxu1  ;;  %v2002_v12 = vpop.f32.mrb[7].mxu0 }
 0x105   : > { %v2702_v13 = vadd.f32 %v2074_v11, %v2073_v8  ;;  %v2003_v14 = vadd.f32 %v2002_v12, %v2001_v10  ;;  %v1077_v61 = vadd.f32 %v2000_v9, %v2715_v41 }
 0x107   : > { %v1080_v2 = vadd.f32 %v2003_v14, %v2715_v41 }
 0x109   : > { %v2076_v15 = vpop.f32.mrb[8].mxu1  ;;  %v2004_v16 = vpop.f32.mrb[8].mxu0 }
 0x10a   : > { %v2077_v17 = vpop.f32.mrb[9].mxu1  ;;  %v2005_v18 = vpop.f32.mrb[9].mxu0 }
 0x10b   : > { %v2704_v19 = vadd.f32 %v2077_v17, %v2076_v15  ;;  %v2079_v20 = vpop.f32.mrb[10].mxu1  ;;  %v2006_v21 = vadd.f32 %v2005_v18, %v2004_v16  ;;  %v2007_v22 = vpop.f32.mrb[10].mxu0 }
 0x10c   : > { %v2080_v23 = vpop.f32.mrb[11].mxu1  ;;  %v2008_v24 = vpop.f32.mrb[11].mxu0 }
 0x10d   : > { %v2706_v25 = vadd.f32 %v2080_v23, %v2079_v20  ;;  %v2009_v26 = vadd.f32 %v2008_v24, %v2007_v22  ;;  %v1085_v9 = vadd.f32 %v2006_v21, %v2715_v41 }
 0x10f   : > { %v1088_v14 = vadd.f32 %v2009_v26, %v2715_v41 }
 0x111   : > { %v2082_v27 = vpop.f32.mrb[12].mxu1  ;;  %v2010_v28 = vpop.f32.mrb[12].mxu0 }
 0x112   : > { %v2083_v29 = vpop.f32.mrb[13].mxu1  ;;  %v2011_v30 = vpop.f32.mrb[13].mxu0 }
 0x113   : > { %v2708_v31 = vadd.f32 %v2083_v29, %v2082_v27  ;;  %v2085_v32 = vpop.f32.mrb[14].mxu1  ;;  %v2012_v33 = vadd.f32 %v2011_v30, %v2010_v28  ;;  %v2013_v34 = vpop.f32.mrb[14].mxu0 }
 0x114   : > { %v2086_v35 = vpop.f32.mrb[15].mxu1  ;;  %v2014_v36 = vpop.f32.mrb[15].mxu0 }
 0x115   : > { %v2710_v37 = vadd.f32 %v2086_v35, %v2085_v32  ;;  %v2015_v38 = vadd.f32 %v2014_v36, %v2013_v34  ;;  %v1093_v21 = vadd.f32 %v2012_v33, %v2715_v41 }
 0x117   : > { %v1096_v26 = vadd.f32 %v2015_v38, %v2715_v41 }
 0x119   : > { %v2104_v39 = vpop.f32.mrb[16].mxu1  ;;  %v2016_v40 = vpop.f32.mrb[16].mxu0 }
 0x11a   : > { %v2105_v42 = vpop.f32.mrb[17].mxu1  ;;  %v2017_v43 = vpop.f32.mrb[17].mxu0 }
 0x11b   : > { %v2106_v45 = vadd.f32 %v2105_v42, %v2104_v39  ;;  %v2107_v46 = vpop.f32.mrb[18].mxu1  ;;  %v2018_v47 = vadd.f32 %v2017_v43, %v2016_v40  ;;  %v2019_v48 = vpop.f32.mrb[18].mxu0 }
 0x11c   : > { %v2108_v49 = vpop.f32.mrb[19].mxu1  ;;  %v2020_v50 = vpop.f32.mrb[19].mxu0 }
 0x11d   : > { %v2109_v52 = vadd.f32 %v2108_v49, %v2107_v46  ;;  %v2021_v53 = vadd.f32 %v2020_v50, %v2019_v48  ;;  %v2719_v54 = vadd.f32 %v2106_v45, %v1069_v44  ;;  %v1101_v33 = vadd.f32 %v2018_v47, %v2715_v41 }
 0x11f   : > { %v2721_v55 = vadd.f32 %v2109_v52, %v1072_v51  ;;  %v1104_v38 = vadd.f32 %v2021_v53, %v2715_v41 }
 0x121   : > { %v2110_v56 = vpop.f32.mrb[20].mxu1  ;;  %v2022_v57 = vpop.f32.mrb[20].mxu0 }
 0x122   : > { %v2111_v58 = vpop.f32.mrb[21].mxu1  ;;  %v2023_v60 = vpop.f32.mrb[21].mxu0 }
 0x123   : > { %v2112_v62 = vadd.f32 %v2111_v58, %v2110_v56  ;;  %v2113_v63 = vpop.f32.mrb[22].mxu1  ;;  %v2024_v0 = vadd.f32 %v2023_v60, %v2022_v57  ;;  %v2025_v3 = vpop.f32.mrb[22].mxu0 }
 0x124   : > { %v2114_v4 = vpop.f32.mrb[23].mxu1  ;;  %v2026_v5 = vpop.f32.mrb[23].mxu0 }
 0x125   : > { %v2115_v6 = vadd.f32 %v2114_v4, %v2113_v63  ;;  %v2027_v8 = vadd.f32 %v2026_v5, %v2025_v3  ;;  %v2725_v10 = vadd.f32 %v2112_v62, %v1077_v61  ;;  %v1109_v47 = vadd.f32 %v2024_v0, %v2715_v41 }
 0x127   : > { %v2727_v11 = vadd.f32 %v2115_v6, %v1080_v2  ;;  %v1112_v53 = vadd.f32 %v2027_v8, %v2715_v41 }
 0x129   : > { %v2116_v12 = vpop.f32.mrb[24].mxu1  ;;  %v2028_v15 = vpop.f32.mrb[24].mxu0 }
 0x12a   : > { %v2117_v16 = vpop.f32.mrb[25].mxu1  ;;  %v2029_v17 = vpop.f32.mrb[25].mxu0 }
 0x12b   : > { %v2118_v18 = vadd.f32 %v2117_v16, %v2116_v12  ;;  %v2119_v20 = vpop.f32.mrb[26].mxu1  ;;  %v2030_v22 = vadd.f32 %v2029_v17, %v2028_v15  ;;  %v2031_v23 = vpop.f32.mrb[26].mxu0 }
 0x12c   : > { %v2120_v24 = vpop.f32.mrb[27].mxu1  ;;  %v2032_v27 = vpop.f32.mrb[27].mxu0 }
 0x12d   : > { %v2121_v28 = vadd.f32 %v2120_v24, %v2119_v20  ;;  %v2033_v29 = vadd.f32 %v2032_v27, %v2031_v23  ;;  %v2731_v30 = vadd.f32 %v2118_v18, %v1085_v9 }
 0x12f   : > { %v2733_v32 = vadd.f32 %v2121_v28, %v1088_v14 }
 0x131   : > { %v2122_v34 = vpop.f32.mrb[28].mxu1  ;;  %v2034_v35 = vpop.f32.mrb[28].mxu0 }
 0x132   : > { %v2123_v36 = vpop.f32.mrb[29].mxu1  ;;  %v2035_v39 = vpop.f32.mrb[29].mxu0 }
 0x133   : > { %v2124_v40 = vadd.f32 %v2123_v36, %v2122_v34  ;;  %v2125_v42 = vpop.f32.mrb[30].mxu1  ;;  %v2036_v43 = vadd.f32 %v2035_v39, %v2034_v35  ;;  %v2037_v44 = vpop.f32.mrb[30].mxu0 }
 0x134   : > { %v2126_v45 = vpop.f32.mrb[31].mxu1  ;;  %v2038_v46 = vpop.f32.mrb[31].mxu0 }
 0x135   : > { %v2127_v48 = vadd.f32 %v2126_v45, %v2125_v42  ;;  %v2039_v49 = vadd.f32 %v2038_v46, %v2037_v44  ;;  %v2737_v50 = vadd.f32 %v2124_v40, %v1093_v21  ;;  %v1117_v42 = vadd.f32 %v2030_v22, %v2715_v41 }
 0x137   : > { %v2739_v51 = vadd.f32 %v2127_v48, %v1096_v26 }
 0x139   : > { %v2128_v52 = vpop.f32.mrb[32].mxu1  ;;  %v2040_v56 = vpop.f32.mrb[32].mxu0 }
 0x13a   : > { %v2129_v57 = vpop.f32.mrb[33].mxu1  ;;  %v2041_v58 = vpop.f32.mrb[33].mxu0 }
 0x13b   : > { %v2130_v60 = vadd.f32 %v2129_v57, %v2128_v52  ;;  %v2131_v61 = vpop.f32.mrb[34].mxu1  ;;  %v2742_v62 = vadd.f32 %v2041_v58, %v2040_v56  ;;  %v2043_v63 = vpop.f32.mrb[34].mxu0  ;;  %v1120_v52 = vadd.f32 %v2033_v29, %v2715_v41 }
 0x13c   : > { %v2132_v3 = vpop.f32.mrb[35].mxu1  ;;  %v2044_v4 = vpop.f32.mrb[35].mxu0 }
 0x13d   : > { %v2133_v5 = vadd.f32 %v2132_v3, %v2131_v61  ;;  %v2045_v2 = vadd.f32 %v2044_v4, %v2043_v63  ;;  %v2745_v6 = vadd.f32 %v2130_v60, %v1101_v33  ;;  %v1125_v3 = vadd.f32 %v2036_v43, %v2715_v41 }
 0x13f   : > { %v2747_v12 = vadd.f32 %v2133_v5, %v1104_v38 }
 0x141   : > { %v2134_v15 = vpop.f32.mrb[36].mxu1  ;;  %v2046_v16 = vpop.f32.mrb[36].mxu0 }
 0x142   : > { %v2135_v17 = vpop.f32.mrb[37].mxu1  ;;  %v2047_v9 = vpop.f32.mrb[37].mxu0 }
 0x143   : > { %v2136_v18 = vadd.f32 %v2135_v17, %v2134_v15  ;;  %v2137_v20 = vpop.f32.mrb[38].mxu1  ;;  %v2750_v23 = vadd.f32 %v2047_v9, %v2046_v16  ;;  %v2049_v24 = vpop.f32.mrb[38].mxu0  ;;  %v1128_v17 = vadd.f32 %v2039_v49, %v2715_v41 }
 0x144   : > { %v2138_v27 = vpop.f32.mrb[39].mxu1  ;;  %v2050_v14 = vpop.f32.mrb[39].mxu0 }
 0x145   : > { %v2139_v28 = vadd.f32 %v2138_v27, %v2137_v20  ;;  %v2753_v34 = vadd.f32 %v2050_v14, %v2049_v24  ;;  %v2755_v35 = vadd.f32 %v2136_v18, %v1109_v47 }
 0x147   : > { %v2757_v36 = vadd.f32 %v2139_v28, %v1112_v53  ;;  %v1133_v28 = vadd.f32 %v2742_v62, %v2715_v41 }
 0x149   : > { %v2140_v39 = vpop.f32.mrb[40].mxu1  ;;  %v2052_v21 = vpop.f32.mrb[40].mxu0 }
 0x14a   : > { %v2141_v40 = vpop.f32.mrb[41].mxu1  ;;  %v2053_v0 = vpop.f32.mrb[41].mxu0 }
 0x14b   : > { %v2142_v44 = vadd.f32 %v2141_v40, %v2140_v39  ;;  %v2143_v45 = vpop.f32.mrb[42].mxu1  ;;  %v2760_v46 = vadd.f32 %v2053_v0, %v2052_v21  ;;  %v2055_v26 = vpop.f32.mrb[42].mxu0  ;;  %v1136_v0 = vadd.f32 %v2045_v2, %v2715_v41 }
 0x14c   : > { %v2144_v48 = vpop.f32.mrb[43].mxu1  ;;  %v2056_v8 = vpop.f32.mrb[43].mxu0 }
 0x14d   : > { %v2145_v56 = vadd.f32 %v2144_v48, %v2143_v45  ;;  %v2763_v57 = vadd.f32 %v2056_v8, %v2055_v26  ;;  %v2765_v58 = vadd.f32 %v2142_v44, %v1117_v42 }
 0x14f   : > { %v2767_v33 = vadd.f32 %v2145_v56, %v1120_v52 }
 0x151   : > { %v2146_v60 = vpop.f32.mrb[44].mxu1  ;;  %v2058_v61 = vpop.f32.mrb[44].mxu0 }
 0x152   : > { %v2147_v63 = vpop.f32.mrb[45].mxu1  ;;  %v2059_v22 = vpop.f32.mrb[45].mxu0 }
 0x153   : > { %v2148_v4 = vadd.f32 %v2147_v63, %v2146_v60  ;;  %v2149_v38 = vpop.f32.mrb[46].mxu1  ;;  %v2770_v5 = vadd.f32 %v2059_v22, %v2058_v61  ;;  %v2061_v15 = vpop.f32.mrb[46].mxu0 }
 0x154   : > { %v2150_v29 = vpop.f32.mrb[47].mxu1  ;;  %v2062_v16 = vpop.f32.mrb[47].mxu0 }
 0x155   : > { %v2151_v9 = vadd.f32 %v2150_v29, %v2149_v38  ;;  %v2773_v47 = vadd.f32 %v2062_v16, %v2061_v15  ;;  %v2775_v18 = vadd.f32 %v2148_v4, %v1125_v3  ;;  %v1141_v38 = vadd.f32 %v2750_v23, %v2715_v41 }
 0x157   : > { %v2777_v20 = vadd.f32 %v2151_v9, %v1128_v17  ;;  %v1144_v9 = vadd.f32 %v2753_v34, %v2715_v41 }
 0x159   : > { %v2152_v24 = vpop.f32.mrb[48].mxu1  ;;  %v2236_v27 = vpop.f32.mrb[48].mxu0 }
 0x15a   : > { %v1399_v43 = vadd.f32 %v2236_v27, %v2725_v10  ;;  %v2153_v14 = vpop.f32.mrb[49].mxu1  ;;  %v1390_v53 = vpop.f32.mrb[49].mxu0 }
 0x15b   : > { %v2154_v39 = vadd.f32 %v2153_v14, %v2152_v24  ;;  %v1391_v49 = vadd.f32 %v1390_v53, %v2719_v54  ;;  %v2155_v21 = vpop.f32.mrb[50].mxu1  ;;  %v2237_v40 = vpop.f32.mrb[50].mxu0 }
 0x15c   : > { %v1519_v42 = vmax.f32 %v1399_v43, 0.0  ;;  %v1402_v44 = vadd.f32 %v2237_v40, %v2727_v11  ;;  %v2156_v45 = vpop.f32.mrb[51].mxu1  ;;  %v1393_v26 = vpop.f32.mrb[51].mxu0 }
 0x15d   : > { %v1517_v10 = vmax.f32 %v1391_v49, 0.0  ;;  %v2157_v54 = vadd.f32 %v2156_v45, %v2155_v21  ;;  %v1394_v62 = vadd.f32 %v1393_v26, %v2721_v55  ;;  %v2792_v48 = vadd.f32 %v2154_v39, %v1133_v28 }
 0x15e   : > { %v1946_v2 = vpack.c.bf16 %v1519_v42, %v1519_v42  ;;  %v1520_v8 = vmax.f32 %v1402_v44, 0.0  ;;  %v1149_v26 = vadd.f32 %v2760_v46, %v2715_v41 }
 0x15f   : > { %v1944_v11 = vpack.c.bf16 %v1517_v10, %v1517_v10  ;;  %v1518_v52 = vmax.f32 %v1394_v62, 0.0  ;;  %v2794_v56 = vadd.f32 %v2157_v54, %v1136_v0 }
 0x160   : > { %1680 = vst.msk [vmem:[%s2789_s25 + $0x8] sm:$0xf] %vm1677_vm2, %v1946_v2  ;;  %v1947_v60 = vpack.c.bf16 %v1520_v8, %v1520_v8  ;;  %v1152_v8 = vadd.f32 %v2763_v57, %v2715_v41 }
 0x161   : > { %1678 = vst.msk [vmem:[%s2789_s25] sm:$0xf] %vm1677_vm2, %v1944_v11  ;;  %v1945_v61 = vpack.c.bf16 %v1518_v52, %v1518_v52  ;;  %v2158_v63 = vpop.f32.mrb[52].mxu1  ;;  %v2240_v22 = vpop.f32.mrb[52].mxu0 }
 0x162   : > { %1681 = vst.msk [vmem:[%s2789_s25 + $0xc] sm:$0xf] %vm1677_vm2, %v1947_v60  ;;  %v1415_v55 = vadd.f32 %v2240_v22, %v2737_v50  ;;  %v2159_v3 = vpop.f32.mrb[53].mxu1  ;;  %v1406_v4 = vpop.f32.mrb[53].mxu0 }
 0x163   : > { %1679 = vst.msk [vmem:[%s2789_s25 + $0x4] sm:$0xf] %vm1677_vm2, %v1945_v61  ;;  %v2160_v15 = vadd.f32 %v2159_v3, %v2158_v63  ;;  %v1407_v29 = vadd.f32 %v1406_v4, %v2731_v30  ;;  %v2161_v16 = vpop.f32.mrb[54].mxu1  ;;  %v2241_v17 = vpop.f32.mrb[54].mxu0 }
 0x164   : > { %v1523_v24 = vmax.f32 %v1415_v55, 0.0  ;;  %v1418_v50 = vadd.f32 %v2241_v17, %v2739_v51  ;;  %v2162_v27 = vpop.f32.mrb[55].mxu1  ;;  %v1409_v43 = vpop.f32.mrb[55].mxu0 }
 0x165   : > { %v1521_v14 = vmax.f32 %v1407_v29, 0.0  ;;  %v2163_v23 = vadd.f32 %v2162_v27, %v2161_v16  ;;  %v1410_v53 = vadd.f32 %v1409_v43, %v2733_v32  ;;  %v2812_v28 = vadd.f32 %v2160_v15, %v1141_v38 }
 0x166   : > { %v1950_v30 = vpack.c.bf16 %v1523_v24, %v1523_v24  ;;  %v1524_v39 = vmax.f32 %v1418_v50, 0.0 }
 0x167   : > { %v1948_v49 = vpack.c.bf16 %v1521_v14, %v1521_v14  ;;  %v1522_v21 = vmax.f32 %v1410_v53, 0.0  ;;  %v2814_v40 = vadd.f32 %v2163_v23, %v1144_v9  ;;  %v1157_v9 = vadd.f32 %v2770_v5, %v2715_v41 }
 0x168   : > { %1684 = vst.msk [vmem:[%s2789_s25 + $0x18] sm:$0xf] %vm1677_vm2, %v1950_v30  ;;  %v1951_v34 = vpack.c.bf16 %v1524_v39, %v1524_v39  ;;  %v1160_v14 = vadd.f32 %v2773_v47, %v2715_v41 }
 0x169   : > { %1682 = vst.msk [vmem:[%s2789_s25 + $0x10] sm:$0xf] %vm1677_vm2, %v1948_v49  ;;  %v1949_v51 = vpack.c.bf16 %v1522_v21, %v1522_v21  ;;  %v2164_v0 = vpop.f32.mrb[56].mxu1  ;;  %v2244_v42 = vpop.f32.mrb[56].mxu0 }
 0x16a   : > { %1685 = vst.msk [vmem:[%s2789_s25 + $0x1c] sm:$0xf] %vm1677_vm2, %v1951_v34  ;;  %v1431_v32 = vadd.f32 %v2244_v42, %v2755_v35  ;;  %v2165_v44 = vpop.f32.mrb[57].mxu1  ;;  %v1422_v45 = vpop.f32.mrb[57].mxu0 }
 0x16b   : > { %1683 = vst.msk [vmem:[%s2789_s25 + $0x14] sm:$0xf] %vm1677_vm2, %v1949_v51  ;;  %v2166_v10 = vadd.f32 %v2165_v44, %v2164_v0  ;;  %v1423_v54 = vadd.f32 %v1422_v45, %v2745_v6  ;;  %v2167_v62 = vpop.f32.mrb[58].mxu1  ;;  %v2245_v2 = vpop.f32.mrb[58].mxu0 }
 0x16c   : > { %v1527_v11 = vmax.f32 %v1431_v32, 0.0  ;;  %v1434_v35 = vadd.f32 %v2245_v2, %v2757_v36  ;;  %v2168_v52 = vpop.f32.mrb[59].mxu1  ;;  %v1425_v60 = vpop.f32.mrb[59].mxu0 }
 0x16d   : > { %v1525_v61 = vmax.f32 %v1423_v54, 0.0  ;;  %v2169_v46 = vadd.f32 %v2168_v52, %v2167_v62  ;;  %v1426_v63 = vadd.f32 %v1425_v60, %v2747_v12  ;;  %v2832_v22 = vadd.f32 %v2166_v10, %v1149_v26 }
 0x16e   : > { %v1954_v6 = vpack.c.bf16 %v1527_v11, %v1527_v11  ;;  %v1528_v55 = vmax.f32 %v1434_v35, 0.0  ;;  %v1165_v10 = vadd.f32 %v2696_v59, %v2715_v41  ;;  %v1168_v11 = vadd.f32 %v2698_v1, %v2715_v41 }
 0x16f   : > { %v1952_v3 = vpack.c.bf16 %v1525_v61, %v1525_v61  ;;  %v1526_v4 = vmax.f32 %v1426_v63, 0.0  ;;  %v2834_v38 = vadd.f32 %v2169_v46, %v1152_v8 }
 0x170   : > { %1688 = vst.msk [vmem:[%s2789_s25 + $0x28] sm:$0xf] %vm1677_vm2, %v1954_v6  ;;  %v1955_v57 = vpack.c.bf16 %v1528_v55, %v1528_v55 }
 0x171   : > { %1686 = vst.msk [vmem:[%s2789_s25 + $0x20] sm:$0xf] %vm1677_vm2, %v1952_v3  ;;  %v1953_v36 = vpack.c.bf16 %v1526_v4, %v1526_v4  ;;  %v2170_v15 = vpop.f32.mrb[60].mxu1  ;;  %v2248_v29 = vpop.f32.mrb[60].mxu0 }
 0x172   : > { %1689 = vst.msk [vmem:[%s2789_s25 + $0x2c] sm:$0xf] %vm1677_vm2, %v1955_v57  ;;  %v1447_v12 = vadd.f32 %v2248_v29, %v2775_v18  ;;  %v2171_v16 = vpop.f32.mrb[61].mxu1  ;;  %v1438_v17 = vpop.f32.mrb[61].mxu0 }
 0x173   : > { %1687 = vst.msk [vmem:[%s2789_s25 + $0x24] sm:$0xf] %vm1677_vm2, %v1953_v36  ;;  %v2172_v24 = vadd.f32 %v2171_v16, %v2170_v15  ;;  %v1439_v50 = vadd.f32 %v1438_v17, %v2765_v58  ;;  %v2173_v27 = vpop.f32.mrb[62].mxu1  ;;  %v2249_v43 = vpop.f32.mrb[62].mxu0 }
 0x174   : > { %v1531_v23 = vmax.f32 %v1447_v12, 0.0  ;;  %v1450_v18 = vadd.f32 %v2249_v43, %v2777_v20  ;;  %v2174_v53 = vpop.f32.mrb[63].mxu1  ;;  %v1441_v30 = vpop.f32.mrb[63].mxu0  ;;  %v1173_v12 = vadd.f32 %v2700_v7, %v2715_v41 }
 0x175   : > { %v1529_v39 = vmax.f32 %v1439_v50, 0.0  ;;  %v2175_v5 = vadd.f32 %v2174_v53, %v2173_v27  ;;  %v1442_v49 = vadd.f32 %v1441_v30, %v2767_v33  ;;  %v1318_v21 = vadd.f32 %v2172_v24, %v1157_v9 }
 0x176   : > { %v1958_v34 = vpack.c.bf16 %v1531_v23, %v1531_v23  ;;  %v1532_v58 = vmax.f32 %v1450_v18, 0.0  ;;  %v1176_v50 = vadd.f32 %v2702_v13, %v2715_v41 }
 0x177   : > { %v1956_v51 = vpack.c.bf16 %v1529_v39, %v1529_v39  ;;  %v1530_v0 = vmax.f32 %v1442_v49, 0.0  ;;  %v1321_v42 = vadd.f32 %v2175_v5, %v1160_v14 }
 0x178   : > { %1692 = vst.msk [vmem:[%s2789_s25 + $0x38] sm:$0xf] %vm1677_vm2, %v1958_v34  ;;  %v1959_v47 = vpack.c.bf16 %v1532_v58, %v1532_v58 }
 0x179   : > { %1690 = vst.msk [vmem:[%s2789_s25 + $0x30] sm:$0xf] %vm1677_vm2, %v1956_v51  ;;  %v1957_v20 = vpack.c.bf16 %v1530_v0, %v1530_v0  ;;  %v2176_v32 = vpop.f32.mrb[64].mxu1  ;;  %v2252_v44 = vpop.f32.mrb[64].mxu0 }
 0x17a   : > { %1693 = vst.msk [vmem:[%s2789_s25 + $0x3c] sm:$0xf] %vm1677_vm2, %v1959_v47  ;;  %v1463_v45 = vadd.f32 %v2252_v44, %v2812_v28  ;;  %v2177_v33 = vpop.f32.mrb[65].mxu1  ;;  %v1454_v26 = vpop.f32.mrb[65].mxu0  ;;  %v1181_v47 = vadd.f32 %v2704_v19, %v2715_v41 }
 0x17b   : > { %1691 = vst.msk [vmem:[%s2789_s25 + $0x34] sm:$0xf] %vm1677_vm2, %v1957_v20  ;;  %v2178_v54 = vadd.f32 %v2177_v33, %v2176_v32  ;;  %v1455_v62 = vadd.f32 %v1454_v26, %v2792_v48  ;;  %v2179_v2 = vpop.f32.mrb[66].mxu1  ;;  %v2253_v8 = vpop.f32.mrb[66].mxu0  ;;  %v1184_v33 = vadd.f32 %v2706_v25, %v2715_v41 }
 0x17c   : > { %v1535_v35 = vmax.f32 %v1463_v45, 0.0  ;;  %v1466_v28 = vadd.f32 %v2253_v8, %v2814_v40  ;;  %v2180_v52 = vpop.f32.mrb[67].mxu1  ;;  %v1457_v60 = vpop.f32.mrb[67].mxu0 }
 0x17d   : > { %v1533_v61 = vmax.f32 %v1455_v62, 0.0  ;;  %v2181_v59 = vadd.f32 %v2180_v52, %v2179_v2  ;;  %v1458_v46 = vadd.f32 %v1457_v60, %v2794_v56  ;;  %v1326_v63 = vadd.f32 %v2178_v54, %v1165_v10 }
 0x17e   : > { %v1962_v6 = vpack.c.bf16 %v1535_v35, %v1535_v35  ;;  %v1536_v48 = vmax.f32 %v1466_v28, 0.0 }
 0x17f   : > { %v1960_v55 = vpack.c.bf16 %v1533_v61, %v1533_v61  ;;  %v1534_v3 = vmax.f32 %v1458_v46, 0.0  ;;  %v1329_v4 = vadd.f32 %v2181_v59, %v1168_v11 }
 0x180   : > { %1696 = vst.msk [vmem:[%s2789_s25 + $0x48] sm:$0xf] %vm1677_vm2, %v1962_v6  ;;  %v1963_v1 = vpack.c.bf16 %v1536_v48, %v1536_v48 }
 0x181   : > { %1694 = vst.msk [vmem:[%s2789_s25 + $0x40] sm:$0xf] %vm1677_vm2, %v1960_v55  ;;  %v1961_v40 = vpack.c.bf16 %v1534_v3, %v1534_v3  ;;  %v2182_v57 = vpop.f32.mrb[68].mxu1  ;;  %v2256_v36 = vpop.f32.mrb[68].mxu0  ;;  %v1189_v55 = vadd.f32 %v2708_v31, %v2715_v41 }
 0x182   : > { %1697 = vst.msk [vmem:[%s2789_s25 + $0x4c] sm:$0xf] %vm1677_vm2, %v1963_v1  ;;  %v1479_v15 = vadd.f32 %v2256_v36, %v1318_v21  ;;  %v2183_v29 = vpop.f32.mrb[69].mxu1  ;;  %v1470_v56 = vpop.f32.mrb[69].mxu0 }
 0x183   : > { %1695 = vst.msk [vmem:[%s2789_s25 + $0x44] sm:$0xf] %vm1677_vm2, %v1961_v40  ;;  %v2184_v16 = vadd.f32 %v2183_v29, %v2182_v57  ;;  %v1471_v17 = vadd.f32 %v1470_v56, %v2832_v22  ;;  %v2185_v9 = vpop.f32.mrb[70].mxu1  ;;  %v2257_v24 = vpop.f32.mrb[70].mxu0  ;;  %v1192_v57 = vadd.f32 %v2710_v37, %v2715_v41 }
 0x184   : > { %v1539_v27 = vmax.f32 %v1479_v15, 0.0  ;;  %v1482_v43 = vadd.f32 %v2257_v24, %v1321_v42  ;;  %v2186_v14 = vpop.f32.mrb[71].mxu1  ;;  %v1473_v23 = vpop.f32.mrb[71].mxu0 }
 0x185   : > { %v1537_v18 = vmax.f32 %v1471_v17, 0.0  ;;  %v2187_v53 = vadd.f32 %v2186_v14, %v2185_v9  ;;  %v1474_v7 = vadd.f32 %v1473_v23, %v2834_v38  ;;  %v1334_v30 = vadd.f32 %v2184_v16, %v1173_v12 }
 0x186   : > { %v1966_v39 = vpack.c.bf16 %v1539_v27, %v1539_v27  ;;  %v1540_v22 = vmax.f32 %v1482_v43, 0.0 }
 0x187   : > { %v1964_v5 = vpack.c.bf16 %v1537_v18, %v1537_v18  ;;  %v1538_v49 = vmax.f32 %v1474_v7, 0.0  ;;  %v1337_v21 = vadd.f32 %v2187_v53, %v1176_v50 }
 0x188   : > { %1700 = vst.msk [vmem:[%s2789_s25 + $0x58] sm:$0xf] %vm1677_vm2, %v1966_v39  ;;  %v1967_v13 = vpack.c.bf16 %v1540_v22, %v1540_v22 }
 0x189   : > { %1698 = vst.msk [vmem:[%s2789_s25 + $0x50] sm:$0xf] %vm1677_vm2, %v1964_v5  ;;  %v1965_v34 = vpack.c.bf16 %v1538_v49, %v1538_v49  ;;  %v2188_v58 = vpop.f32.mrb[72].mxu1  ;;  %v2260_v51 = vpop.f32.mrb[72].mxu0 }
 0x18a   : > { %1701 = vst.msk [vmem:[%s2789_s25 + $0x5c] sm:$0xf] %vm1677_vm2, %v1967_v13  ;;  %v1495_v0 = vadd.f32 %v2260_v51, %v1334_v30  ;;  %v2189_v42 = vpop.f32.mrb[73].mxu1  ;;  %v1486_v38 = vpop.f32.mrb[73].mxu0 }
 0x18b   : > { %1699 = vst.msk [vmem:[%s2789_s25 + $0x54] sm:$0xf] %vm1677_vm2, %v1965_v34  ;;  %v2190_v20 = vadd.f32 %v2189_v42, %v2188_v58  ;;  %v1487_v32 = vadd.f32 %v1486_v38, %v1326_v63  ;;  %v2191_v44 = vpop.f32.mrb[74].mxu1  ;;  %v2261_v45 = vpop.f32.mrb[74].mxu0 }
 0x18c   : > { %v1543_v26 = vmax.f32 %v1495_v0, 0.0  ;;  %v1498_v10 = vadd.f32 %v2261_v45, %v1337_v21  ;;  %v2192_v54 = vpop.f32.mrb[75].mxu1  ;;  %v1489_v62 = vpop.f32.mrb[75].mxu0 }
 0x18d   : > { %v1541_v2 = vmax.f32 %v1487_v32, 0.0  ;;  %v2193_v8 = vadd.f32 %v2192_v54, %v2191_v44  ;;  %v1490_v11 = vadd.f32 %v1489_v62, %v1329_v4  ;;  %v1342_v19 = vadd.f32 %v2190_v20, %v1181_v47 }
 0x18e   : > { %v1970_v35 = vpack.c.bf16 %v1543_v26, %v1543_v26  ;;  %v1544_v28 = vmax.f32 %v1498_v10, 0.0 }
 0x18f   : > { %v1968_v52 = vpack.c.bf16 %v1541_v2, %v1541_v2  ;;  %v1542_v60 = vmax.f32 %v1490_v11, 0.0  ;;  %v1345_v61 = vadd.f32 %v2193_v8, %v1184_v33 }
 0x190   : > { %1704 = vst.msk [vmem:[%s2789_s25 + $0x68] sm:$0xf] %vm1677_vm2, %v1970_v35  ;;  %v1971_v59 = vpack.c.bf16 %v1544_v28, %v1544_v28 }
 0x191   : > { %1702 = vst.msk [vmem:[%s2789_s25 + $0x60] sm:$0xf] %vm1677_vm2, %v1968_v52  ;;  %v1969_v25 = vpack.c.bf16 %v1542_v60, %v1542_v60  ;;  %v2194_v46 = vpop.f32.mrb[76].mxu1  ;;  %v2264_v63 = vpop.f32.mrb[76].mxu0 }
 0x192   : > { %1705 = vst.msk [vmem:[%s2789_s25 + $0x6c] sm:$0xf] %vm1677_vm2, %v1971_v59  ;;  %v2195_v6 = vpop.f32.mrb[77].mxu1  ;;  %v1502_v48 = vpop.f32.mrb[77].mxu0 }
 0x193   : > { %1703 = vst.msk [vmem:[%s2789_s25 + $0x64] sm:$0xf] %vm1677_vm2, %v1969_v25  ;;  %v2196_v3 = vadd.f32 %v2195_v6, %v2194_v46  ;;  %v1503_v4 = vadd.f32 %v1502_v48, %v1342_v19  ;;  %v2197_v1 = vpop.f32.mrb[78].mxu1  ;;  %v2265_v40 = vpop.f32.mrb[78].mxu0 }
 0x194   : > { %v2198_v36 = vpop.f32.mrb[79].mxu1  ;;  %v1505_v15 = vpop.f32.mrb[79].mxu0 }
 0x195   : > { %v1350_v29 = vadd.f32 %v2196_v3, %v1189_v55  ;;  %v1545_v56 = vmax.f32 %v1503_v4, 0.0  ;;  %v2199_v12 = vadd.f32 %v2198_v36, %v2197_v1  ;;  %v1506_v16 = vadd.f32 %v1505_v15, %v1345_v61 }
 0x197   : > { %v1511_v31 = vadd.f32 %v2264_v63, %v1350_v29  ;;  %v1972_v17 = vpack.c.bf16 %v1545_v56, %v1545_v56  ;;  %v1353_v9 = vadd.f32 %v2199_v12, %v1192_v57  ;;  %v1546_v24 = vmax.f32 %v1506_v16, 0.0 }
 0x199   : > { %v1547_v50 = vmax.f32 %v1511_v31, 0.0  ;;  %1706 = vst.msk [vmem:[%s2789_s25 + $0x70] sm:$0xf] %vm1677_vm2, %v1972_v17  ;;  %v1514_v27 = vadd.f32 %v2265_v40, %v1353_v9  ;;  %v1973_v43 = vpack.c.bf16 %v1546_v24, %v1546_v24 }
 0x19b   : > { %v1974_v14 = vpack.c.bf16 %v1547_v50, %v1547_v50  ;;  %v1548_v37 = vmax.f32 %v1514_v27, 0.0  ;;  %1707 = vst.msk [vmem:[%s2789_s25 + $0x74] sm:$0xf] %vm1677_vm2, %v1973_v43 }
 0x19d   : > { %1708 = vst.msk [vmem:[%s2789_s25 + $0x78] sm:$0xf] %vm1677_vm2, %v1974_v14  ;;  %v1975_v41 = vpack.c.bf16 %v1548_v37, %v1548_v37 }
 0x19f   : > { %1709 = vst.msk [vmem:[%s2789_s25 + $0x7c] sm:$0xf] %vm1677_vm2, %v1975_v41 }
 0x1a0 PF: > { %s13_s12 = sadd.s32 1, %s2448_s12  }
 0x1a1   : > { %p10_p4 = scmp.ge.s32.totalorder %s13_s12, 10  }
 0x1a3   :  { %12 = sbr.rel (!%p10_p4) target bundleno = 1 (0x1), region = 62 }

// kernel: nikola_forward.11
= control target key start
LH: loop header
LB: loop body
LE: loop exit
PB: predicated region body
PF: predicated region fallthrough
CT: control target
= control target key end

     0   :  { %s1752_s12 = smov 0   ;;  %s2035_s0 = inlined_call_operand.vmem [shape: bf16[512,324], index: 0, kind: input, shape index: {}]   ;;  %s2036_s1 = inlined_call_operand.vmem [shape: bf16[324,48], index: 1, kind: input, shape index: {}]   ;;  %s2037_s2 = inlined_call_operand.vmem [shape: f32[1,48], index: 2, kind: input, shape index: {}]   ;;  %s2038_s3 = inlined_call_operand.vmem [shape: bf16[512,48], index: 3, kind: output, shape index: {}]  }
   0x1 LB: > { %s1277_s13 = sadd.s32 4294967295, %s1730_s12   ;;  %p1281_p0 = scmp.ge.s32.totalorder %s1730_s12, 1  ;;  %s1730_s12 = sphi %s1752_s12, %s13_s12  }
   0x2   : > { %p139_p1 = scmp.lt.s32.totalorder %s1730_s12, 3 }
   0x4   : > { %p140_p2 = pnand %p1281_p0, %p139_p1 }
   0x5   : > { %v1639_v0 = vld [vmem:[%s2036_s1 + $0x40] sm:$0xff] (!%p140_p2)   ;;  %s1282_s16 = sshll.u32 (!%p140_p2), %s1277_s13, 5  ;;  %v1641_v2 = vld [vmem:[%s2036_s1 + $0x48] sm:$0xff] (!%p140_p2)   ;;  %v1643_v4 = vld [vmem:[%s2036_s1 + $0x50] sm:$0xff] (!%p140_p2)   ;;  %vm702_vm0 = vcmask (!%p140_p2), 1041408   ;;  %vm653_vm1 = vcmask (!%p140_p2), 556032  }
   0x6   : > { %143 = sbr.rel (%p140_p2) target bundleno = 352 (0x160), region = 32  ;;  %v1640_v1 = vld [vmem:[%s2036_s1] sm:$0xff] (!%p140_p2)   ;;  %1438 = vmatprep.subr.bf16.mxu0 (!%p140_p2), %v1639_v0  ;;  %1613 = vmatprep.subr.bf16.mxu1 (!%p140_p2), %v1639_v0  ;;  %p165_p3 = scmp.lt.s32.totalorder (!%p140_p2), %s1282_s16, 63  ;;  %v1642_v3 = vld [vmem:[%s2036_s1 + $0x8] sm:$0xff] (!%p140_p2)   ;;  %v1644_v5 = vld [vmem:[%s2036_s1 + $0x10] sm:$0xff] (!%p140_p2)   ;;  %vm1188_vm2 = vcmask (!%p140_p2), 388096  }
   0x7   : > { %1439 = vmatpush3.bf16.msra.mxu0 (!%p140_p2), %v1640_v1  ;;  %1621 = vmatpush3.bf16.msra.mxu1 (!%p140_p2), %v1640_v1  ;;  %v1645_v6 = vld [vmem:[%s2036_s1 + $0x58] sm:$0xff] (!%p140_p2)   ;;  %v1647_v8 = vld [vmem:[%s2036_s1 + $0x60] sm:$0xff] (!%p140_p2)   ;;  %v1649_v10 = vld [vmem:[%s2036_s1 + $0x68] sm:$0xff] (!%p140_p2)  }
   0x8   : > { %1440 = vmatprep.subr.bf16.mxu0 (!%p140_p2), %v1641_v2  ;;  %1614 = vmatprep.subr.bf16.mxu1 (!%p140_p2), %v1641_v2  ;;  %v1646_v7 = vld [vmem:[%s2036_s1 + $0x18] sm:$0xff] (!%p140_p2)   ;;  %v1648_v9 = vld [vmem:[%s2036_s1 + $0x20] sm:$0xff] (!%p140_p2)   ;;  %v1650_v13 = vld [vmem:[%s2036_s1 + $0x28] sm:$0xff] (!%p140_p2)  }
   0x9   : > { %v1651_v14 = vld [vmem:[%s2036_s1 + $0x70] sm:$0xff] (!%p140_p2)   ;;  %v1653_v16 = vld [vmem:[%s2036_s1 + $0x78] sm:$0xff] (!%p140_p2)   ;;  %v1661_v18 = vld [vmem:[%s2036_s1 + $0x80] sm:$0xff] (!%p140_p2)  }
   0xa   : > { %v1652_v15 = vld [vmem:[%s2036_s1 + $0x30] sm:$0xff] (!%p140_p2)   ;;  %v1654_v17 = vld [vmem:[%s2036_s1 + $0x38] sm:$0xff] (!%p140_p2)   ;;  %v1668_v23 = vld [vmem:[%s2036_s1 + $0x88] sm:$0xff] (!%p140_p2)  }
   0xb   : > { %1441 = vmatpush3.bf16.msra.mxu0 (!%p140_p2), %v1642_v3  ;;  %1622 = vmatpush3.bf16.msra.mxu1 (!%p140_p2), %v1642_v3  ;;  %v1675_v25 = vld [vmem:[%s2036_s1 + $0x90] sm:$0xff] (!%p140_p2)   ;;  %v1680_v29 = vld [vmem:[%s2036_s1 + $0x98] sm:$0xff] (!%p140_p2)   ;;  %v1683_v31 = vld [vmem:[%s2036_s1 + $0xa0] ss:$0 sps:$4 sm:$0x33] (!%p140_p2)  }
   0xc   : > { %1442 = vmatprep.subr.bf16.mxu0 (!%p140_p2), %v1643_v4  ;;  %1615 = vmatprep.subr.bf16.mxu1 (!%p140_p2), %v1643_v4  ;;  %v704_v35 = vsel (!%p140_p2), %vm702_vm0, %v1683_v31, 0 }
   0xd   : > { %s2040_s16 = smov (!%p165_p3, %s1282_s16), 63 }
   0xe   : > { %s1630_s29 = smul.u32 12, %s2040_s16  ;;  %s1285_s11 = sshll.u32 %s2040_s16, 2 }
   0xf   : > { %1443 = vmatpush3.bf16.msra.mxu0 %v1644_v5  ;;  %1623 = vmatpush3.bf16.msra.mxu1 %v1644_v5  ;;  %s1924_s15 = scalar_lea.vmem %s2038_s3, %s1285_s11 }
  0x10   : > { %1444 = vmatprep.subr.bf16.mxu0 %v1645_v6  ;;  %1616 = vmatprep.subr.bf16.mxu1 %v1645_v6  ;;  %s1793_s9 = scalar_lea.vmem %s2035_s0, %s1630_s29 }
  0x11   : > { %v1657_v11 = vld [vmem:[%s1793_s9 + $0x4] ss:$12 sps:$4 sm:$0xff]   ;;  %v1655_v19 = vld [vmem:[%s1793_s9] ss:$12 sps:$4 sm:$0xff]   ;;  %v1662_v21 = vld [vmem:[%s1793_s9 + $0x1c] ss:$12 sps:$4 sm:$0xff]  }
  0x12   : > { %v1660_v12 = vld [vmem:[%s1793_s9 + $0x124] ss:$12 sps:$4 sm:$0xff]   ;;  %738 = vmatprep.mubr.bf16.mxu0 %v1657_v11  ;;  %v1658_v20 = vld [vmem:[%s1793_s9 + $0x120] ss:$12 sps:$4 sm:$0xff]   ;;  %v1664_v22 = vld [vmem:[%s1793_s9 + $0x13c] ss:$12 sps:$4 sm:$0xff]  }
  0x13   : > { %1445 = vmatpush3.bf16.msra.mxu0 %v1646_v7  ;;  %1624 = vmatpush3.bf16.msra.mxu1 %v1646_v7  ;;  %v1666_v24 = vld [vmem:[%s1793_s9 + $0x18] ss:$12 sps:$4 sm:$0xff]   ;;  %v1669_v27 = vld [vmem:[%s1793_s9 + $0x34] ss:$12 sps:$4 sm:$0xff]   ;;  %v1673_v30 = vld [vmem:[%s1793_s9 + $0x30] ss:$12 sps:$4 sm:$0xff]  }
  0x14   : > { %1446 = vmatprep.subr.bf16.mxu0 %v1647_v8  ;;  %1617 = vmatprep.subr.bf16.mxu1 %v1647_v8  ;;  %v1667_v26 = vld [vmem:[%s1793_s9 + $0x138] ss:$12 sps:$4 sm:$0xff]   ;;  %v1671_v28 = vld [vmem:[%s1793_s9 + $0x154] ss:$12 sps:$4 sm:$0xff]   ;;  %v1674_v32 = vld [vmem:[%s1793_s9 + $0x150] ss:$12 sps:$4 sm:$0xff]  }
  0x15   : > { %834 = vmatprep.mubr.bf16.mxu1 %v1660_v12  ;;  %v1676_v33 = vld [vmem:[%s1793_s9 + $0x4c] ss:$12 sps:$4 sm:$0xff]   ;;  %v1681_v36 = vld [vmem:[%s1793_s9 + $0x48] ss:$12 sps:$4 sm:$0xff]   ;;  %v1684_v38 = vld [vmem:[%s1793_s9 + $0x64] ss:$12 sps:$4 sm:$0xff]  }
  0x16   : > { %v1678_v34 = vld [vmem:[%s1793_s9 + $0x16c] ss:$12 sps:$4 sm:$0xff]   ;;  %v1682_v37 = vld [vmem:[%s1793_s9 + $0x168] ss:$12 sps:$4 sm:$0xff]   ;;  %v1693_v45 = vld [vmem:[%s1793_s9 + $0x50] ss:$12 sps:$4 sm:$0xff]  }
  0x17   : > { %1447 = vmatpush3.bf16.msra.mxu0 %v1648_v9  ;;  %1625 = vmatpush3.bf16.msra.mxu1 %v1648_v9  ;;  %v1686_v39 = vld [vmem:[%s1793_s9 + $0x8] ss:$12 sps:$4 sm:$0xff]   ;;  %v1687_v40 = vld [vmem:[%s1793_s9 + $0x60] ss:$12 sps:$4 sm:$0xff]   ;;  %v1691_v43 = vld [vmem:[%s1793_s9 + $0x38] ss:$12 sps:$4 sm:$0xff]  }
  0x18   : > { %1448 = vmatprep.subr.bf16.mxu0 %v1649_v10  ;;  %1618 = vmatprep.subr.bf16.mxu1 %v1649_v10  ;;  %v1688_v41 = vld [vmem:[%s1793_s9 + $0x20] ss:$12 sps:$4 sm:$0xff]   ;;  %v1689_v42 = vld [vmem:[%s1793_s9 + $0x7c] ss:$12 sps:$4 sm:$0xff]   ;;  %v1692_v44 = vld [vmem:[%s1793_s9 + $0x78] ss:$12 sps:$4 sm:$0xff]  }
  0x19   : > { %v1694_v46 = vld [vmem:[%s1793_s9 + $0x94] ss:$12 sps:$4 sm:$0xff]   ;;  %v1697_v48 = vld [vmem:[%s1793_s9 + $0x90] ss:$12 sps:$4 sm:$0xff]   ;;  %v1699_v50 = vld [vmem:[%s1793_s9 + $0xac] ss:$12 sps:$4 sm:$0xff]  }
  0x1a   : > { %v1696_v47 = vld [vmem:[%s1793_s9 + $0x68] ss:$12 sps:$4 sm:$0xff]   ;;  %v1698_v49 = vld [vmem:[%s1793_s9 + $0x80] ss:$12 sps:$4 sm:$0xff]   ;;  %v1701_v51 = vld [vmem:[%s1793_s9 + $0x98] ss:$12 sps:$4 sm:$0xff]  }
  0x1b   : > { %1449 = vmatpush3.bf16.msra.mxu0 %v1650_v13  ;;  %1626 = vmatpush3.bf16.msra.mxu1 %v1650_v13  ;;  %v1702_v52 = vld [vmem:[%s1793_s9 + $0xa8] ss:$12 sps:$4 sm:$0xff]   ;;  %v1703_v53 = vld [vmem:[%s1793_s9 + $0xb0] ss:$12 sps:$4 sm:$0xff]   ;;  %v1707_v56 = vld [vmem:[%s1793_s9 + $0xc0] ss:$12 sps:$4 sm:$0xff]  }
  0x1c   : > { %1450 = vmatprep.subr.bf16.mxu0 %v1651_v14  ;;  %1619 = vmatprep.subr.bf16.mxu1 %v1651_v14  ;;  %v1704_v54 = vld [vmem:[%s1793_s9 + $0xc4] ss:$12 sps:$4 sm:$0xff]   ;;  %v1706_v55 = vld [vmem:[%s1793_s9 + $0xc8] ss:$12 sps:$4 sm:$0xff]   ;;  %v1708_v57 = vld [vmem:[%s1793_s9 + $0xe0] ss:$12 sps:$4 sm:$0xff]  }
  0x1d   : > { %v1709_v58 = vld [vmem:[%s1793_s9 + $0xdc] ss:$12 sps:$4 sm:$0xff]   ;;  %v1711_v59 = vld [vmem:[%s1793_s9 + $0xf8] ss:$12 sps:$4 sm:$0xff]   ;;  %v1714_v62 = vld [vmem:[%s1793_s9 + $0xf4] ss:$12 sps:$4 sm:$0xff]  }
  0x1e   : > { %v1712_v60 = vld [vmem:[%s1793_s9 + $0xd8] ss:$12 sps:$4 sm:$0xff]   ;;  %v1713_v61 = vld [vmem:[%s1793_s9 + $0x110] ss:$12 sps:$4 sm:$0xff]   ;;  %v1716_v63 = vld [vmem:[%s1793_s9 + $0x128] ss:$12 sps:$4 sm:$0xff]  }
  0x1f   : > { %1451 = vmatpush3.bf16.msra.mxu0 %v1652_v15  ;;  %1627 = vmatpush3.bf16.msra.mxu1 %v1652_v15  ;;  %v1717_v0 = vld [vmem:[%s1793_s9 + $0xf0] ss:$12 sps:$4 sm:$0xff]   ;;  %v1718_v1 = vld [vmem:[%s1793_s9 + $0x140] ss:$12 sps:$4 sm:$0xff]   ;;  %v1721_v3 = vld [vmem:[%s1793_s9 + $0x158] ss:$12 sps:$4 sm:$0xff]  }
  0x20   : > { %1452 = vmatprep.subr.bf16.mxu0 %v1653_v16  ;;  %1620 = vmatprep.subr.bf16.mxu1 %v1653_v16  ;;  %v1719_v2 = vld [vmem:[%s1793_s9 + $0x10c] ss:$12 sps:$4 sm:$0xff]   ;;  %v1722_v4 = vld [vmem:[%s1793_s9 + $0x108] ss:$12 sps:$4 sm:$0xff]   ;;  %v1723_v5 = vld [vmem:[%s1793_s9 + $0x170] ss:$12 sps:$4 sm:$0xff]  }
  0x23   : > { %1453 = vmatpush3.bf16.msra.mxu0 %v1654_v17  ;;  %1628 = vmatpush3.bf16.msra.mxu1 %v1654_v17 }
  0x24   : > { %1571 = vmatprep.subr.bf16.mxu1 %v1661_v18 }
  0x26   : > { %739 = vmatmul.mubr.bf16.vlgmr.msra.gmra.mrb[0].mxu0 %v1655_v19  ;;  %835 = vmatmul.mubr.bf16.vlgmr.msra.gmra.mrb[0].mxu1 %v1658_v20 }
  0x27   : > { %1572 = vmatpush3.bf16.msra.mxu1 %v1661_v18  ;;  %746 = vmatprep.mubr.bf16.mxu0 %v1662_v21 }
  0x28   : > { %842 = vmatprep.mubr.bf16.mxu1 %v1664_v22  ;;  %1573 = vmatprep.subr.bf16.mxu1 %v1668_v23 }
  0x2b   : > { %1574 = vmatpush3.bf16.msra.mxu1 %v1668_v23 }
  0x2c   : > { %1575 = vmatprep.subr.bf16.mxu1 %v1675_v25 }
  0x2e   : > { %747 = vmatmul.mubr.bf16.gmra.mrb[4].mxu0 %v1666_v24  ;;  %843 = vmatmul.mubr.bf16.gmra.mrb[4].mxu1 %v1667_v26 }
  0x2f   : > { %754 = vmatprep.mubr.bf16.mxu0 %v1669_v27  ;;  %850 = vmatprep.mubr.bf16.mxu1 %v1671_v28 }
  0x30   : > { %1576 = vmatpush3.bf16.msra.mxu1 %v1675_v25 }
  0x31   : > { %1577 = vmatprep.subr.bf16.mxu1 %v1680_v29 }
  0x34   : > { %1578 = vmatpush3.bf16.msra.mxu1 %v1680_v29 }
  0x35   : > { %1629 = vmatprep.subr.msk.bf16.mxu1 %vm702_vm0, %v1683_v31 }
  0x36   : > { %755 = vmatmul.mubr.bf16.gmra.mrb[8].mxu0 %v1673_v30  ;;  %851 = vmatmul.mubr.bf16.gmra.mrb[8].mxu1 %v1674_v32 }
  0x37   : > { %762 = vmatprep.mubr.bf16.mxu0 %v1676_v33  ;;  %858 = vmatprep.mubr.bf16.mxu1 %v1678_v34 }
  0x38   : > { %1580 = vmatpush3.bf16.msra.mxu1 %v704_v35 }
  0x3e   : > { %763 = vmatmul.mubr.bf16.gmra.mrb[12].mxu0 %v1681_v36  ;;  %859 = vmatmul.mubr.bf16.gmra.mrb[12].mxu1 %v1682_v37 }
  0x3f   : > { %770 = vmatprep.mubr.bf16.mxu0 %v1684_v38  ;;  %1581 = vmatprep.mubr.msk.bf16.mxu1 %vm653_vm1, %v1686_v39 }
  0x46   : > { %771 = vmatmul.mubr.bf16.gmra.mrb[16].mxu0 %v1687_v40  ;;  %1582 = vmatmul.mubr.msk.bf16.vlgmr.msra.gmra.mrb[16].mxu1 %vm653_vm1, %v1688_v41 }
  0x47   : > { %778 = vmatprep.mubr.bf16.mxu0 %v1689_v42  ;;  %1585 = vmatprep.mubr.msk.bf16.mxu1 %vm653_vm1, %v1691_v43 }
  0x4e   : > { %779 = vmatmul.mubr.bf16.gmra.mrb[20].mxu0 %v1692_v44  ;;  %1586 = vmatmul.mubr.msk.bf16.gmra.mrb[20].mxu1 %vm653_vm1, %v1693_v45 }
  0x4f   : > { %786 = vmatprep.mubr.bf16.mxu0 %v1694_v46  ;;  %1589 = vmatprep.mubr.msk.bf16.mxu1 %vm653_vm1, %v1696_v47 }
  0x56   : > { %787 = vmatmul.mubr.bf16.gmra.mrb[24].mxu0 %v1697_v48  ;;  %1590 = vmatmul.mubr.msk.bf16.gmra.mrb[24].mxu1 %vm653_vm1, %v1698_v49 }
  0x57   : > { %794 = vmatprep.mubr.bf16.mxu0 %v1699_v50  ;;  %1593 = vmatprep.mubr.msk.bf16.mxu1 %vm653_vm1, %v1701_v51 }
  0x5e   : > { %795 = vmatmul.mubr.bf16.gmra.mrb[28].mxu0 %v1702_v52  ;;  %1594 = vmatmul.mubr.msk.bf16.gmra.mrb[28].mxu1 %vm653_vm1, %v1703_v53 }
  0x5f   : > { %802 = vmatprep.mubr.bf16.mxu0 %v1704_v54  ;;  %1597 = vmatprep.mubr.msk.bf16.mxu1 %vm653_vm1, %v1706_v55  ;;  %v1914_v54 = vld [vmem:[%s2037_s2] ss:$0 sm:$0xff] }
  0x66   : > { %803 = vmatmul.mubr.bf16.gmra.mrb[32].mxu0 %v1707_v56  ;;  %1598 = vmatmul.mubr.msk.bf16.gmra.mrb[32].mxu1 %vm653_vm1, %v1708_v57 }
  0x67   : > { %810 = vmatprep.mubr.bf16.mxu0 %v1709_v58  ;;  %1601 = vmatprep.mubr.msk.bf16.mxu1 %vm653_vm1, %v1711_v59 }
  0x6e   : > { %811 = vmatmul.mubr.bf16.gmra.mrb[36].mxu0 %v1712_v60  ;;  %1602 = vmatmul.mubr.msk.bf16.gmra.mrb[36].mxu1 %vm653_vm1, %v1713_v61 }
  0x6f   : > { %818 = vmatprep.mubr.bf16.mxu0 %v1714_v62  ;;  %1605 = vmatprep.mubr.msk.bf16.mxu1 %vm653_vm1, %v1716_v63 }
  0x76   : > { %819 = vmatmul.mubr.bf16.gmra.mrb[40].mxu0 %v1717_v0  ;;  %1606 = vmatmul.mubr.msk.bf16.gmra.mrb[40].mxu1 %vm653_vm1, %v1718_v1 }
  0x77   : > { %826 = vmatprep.mubr.bf16.mxu0 %v1719_v2  ;;  %1609 = vmatprep.mubr.msk.bf16.mxu1 %vm653_vm1, %v1721_v3 }
  0x7e   : > { %827 = vmatmul.mubr.bf16.gmra.mrb[44].mxu0 %v1722_v4  ;;  %1610 = vmatmul.mubr.msk.bf16.gmra.mrb[44].mxu1 %vm653_vm1, %v1723_v5 }
  0xf9   : > { %v1454_v6 = vpop.f32.mrb[0].mxu0  ;;  %v1526_v7 = vpop.f32.mrb[0].mxu1 }
  0xfa   : > { %v1455_v8 = vpop.f32.mrb[1].mxu0  ;;  %v1527_v9 = vpop.f32.mrb[1].mxu1 }
  0xfb   : > { %v1456_v10 = vadd.f32 %v1455_v8, %v1454_v6  ;;  %v1457_v11 = vpop.f32.mrb[2].mxu0  ;;  %v1895_v12 = vadd.f32 %v1527_v9, %v1526_v7  ;;  %v1529_v13 = vpop.f32.mrb[2].mxu1 }
  0xfc   : > { %v1458_v14 = vpop.f32.mrb[3].mxu0  ;;  %v1530_v15 = vpop.f32.mrb[3].mxu1 }
  0xfd   : > { %v1459_v16 = vadd.f32 %v1458_v14, %v1457_v11  ;;  %v1897_v17 = vadd.f32 %v1530_v15, %v1529_v13  ;;  %v741_v58 = vadd.f32 %v1456_v10, %v1914_v54 }
  0xff   : > { %v744_v3 = vadd.f32 %v1459_v16, %v1914_v54 }
 0x101   : > { %v1460_v18 = vpop.f32.mrb[4].mxu0  ;;  %v1532_v19 = vpop.f32.mrb[4].mxu1 }
 0x102   : > { %v1461_v20 = vpop.f32.mrb[5].mxu0  ;;  %v1533_v21 = vpop.f32.mrb[5].mxu1 }
 0x103   : > { %v1462_v22 = vadd.f32 %v1461_v20, %v1460_v18  ;;  %v1463_v23 = vpop.f32.mrb[6].mxu0  ;;  %v1899_v24 = vadd.f32 %v1533_v21, %v1532_v19  ;;  %v1535_v25 = vpop.f32.mrb[6].mxu1 }
 0x104   : > { %v1464_v26 = vpop.f32.mrb[7].mxu0  ;;  %v1536_v27 = vpop.f32.mrb[7].mxu1 }
 0x105   : > { %v1465_v28 = vadd.f32 %v1464_v26, %v1463_v23  ;;  %v1901_v29 = vadd.f32 %v1536_v27, %v1535_v25  ;;  %v749_v55 = vadd.f32 %v1462_v22, %v1914_v54 }
 0x107   : > { %v752_v62 = vadd.f32 %v1465_v28, %v1914_v54 }
 0x109   : > { %v1466_v30 = vpop.f32.mrb[8].mxu0  ;;  %v1538_v31 = vpop.f32.mrb[8].mxu1 }
 0x10a   : > { %v1467_v32 = vpop.f32.mrb[9].mxu0  ;;  %v1539_v33 = vpop.f32.mrb[9].mxu1 }
 0x10b   : > { %v1468_v34 = vadd.f32 %v1467_v32, %v1466_v30  ;;  %v1469_v35 = vpop.f32.mrb[10].mxu0  ;;  %v1903_v36 = vadd.f32 %v1539_v33, %v1538_v31  ;;  %v1541_v37 = vpop.f32.mrb[10].mxu1 }
 0x10c   : > { %v1470_v38 = vpop.f32.mrb[11].mxu0  ;;  %v1542_v39 = vpop.f32.mrb[11].mxu1 }
 0x10d   : > { %v1471_v40 = vadd.f32 %v1470_v38, %v1469_v35  ;;  %v1905_v41 = vadd.f32 %v1542_v39, %v1541_v37  ;;  %v757_v22 = vadd.f32 %v1468_v34, %v1914_v54 }
 0x10f   : > { %v760_v33 = vadd.f32 %v1471_v40, %v1914_v54 }
 0x111   : > { %v1472_v42 = vpop.f32.mrb[12].mxu0  ;;  %v1544_v43 = vpop.f32.mrb[12].mxu1 }
 0x112   : > { %v1473_v44 = vpop.f32.mrb[13].mxu0  ;;  %v1545_v45 = vpop.f32.mrb[13].mxu1 }
 0x113   : > { %v1474_v46 = vadd.f32 %v1473_v44, %v1472_v42  ;;  %v1475_v47 = vpop.f32.mrb[14].mxu0  ;;  %v1907_v48 = vadd.f32 %v1545_v45, %v1544_v43  ;;  %v1547_v49 = vpop.f32.mrb[14].mxu1 }
 0x114   : > { %v1476_v50 = vpop.f32.mrb[15].mxu0  ;;  %v1548_v51 = vpop.f32.mrb[15].mxu1 }
 0x115   : > { %v1477_v52 = vadd.f32 %v1476_v50, %v1475_v47  ;;  %v1909_v53 = vadd.f32 %v1548_v51, %v1547_v49  ;;  %v765_v18 = vadd.f32 %v1474_v46, %v1914_v54 }
 0x117   : > { %v768_v27 = vadd.f32 %v1477_v52, %v1914_v54 }
 0x119   : > { %v1478_v56 = vpop.f32.mrb[16].mxu0  ;;  %v1583_v57 = vpop.f32.mrb[16].mxu1 }
 0x11a   : > { %v910_v59 = vadd.f32 %v1583_v57, %v749_v55  ;;  %v1479_v60 = vpop.f32.mrb[17].mxu0  ;;  %v901_v61 = vpop.f32.mrb[17].mxu1 }
 0x11b   : > { %v1480_v63 = vadd.f32 %v1479_v60, %v1478_v56  ;;  %v902_v0 = vadd.f32 %v901_v61, %v741_v58  ;;  %v1481_v1 = vpop.f32.mrb[18].mxu0  ;;  %v1584_v2 = vpop.f32.mrb[18].mxu1 }
 0x11c   : > { %v1030_v4 = vmax.f32 %v910_v59, 0.0  ;;  %v913_v5 = vadd.f32 %v1584_v2, %v752_v62  ;;  %v1482_v6 = vpop.f32.mrb[19].mxu0  ;;  %v904_v7 = vpop.f32.mrb[19].mxu1 }
 0x11d   : > { %v1028_v8 = vmax.f32 %v902_v0, 0.0  ;;  %v1483_v9 = vadd.f32 %v1482_v6, %v1481_v1  ;;  %v905_v10 = vadd.f32 %v904_v7, %v744_v3  ;;  %v773_v55 = vadd.f32 %v1480_v63, %v1914_v54 }
 0x11e   : > { %v1408_v11 = vpack.c.bf16 %v1030_v4, %v1030_v4  ;;  %v1031_v13 = vmax.f32 %v913_v5, 0.0 }
 0x11f   : > { %v1406_v14 = vpack.c.bf16 %v1028_v8, %v1028_v8  ;;  %v1029_v15 = vmax.f32 %v905_v10, 0.0  ;;  %v776_v1 = vadd.f32 %v1483_v9, %v1914_v54 }
 0x120   : > { %1191 = vst.msk [vmem:[%s1924_s15 + $0x8] sm:$0xf] %vm1188_vm2, %v1408_v11  ;;  %v1409_v16 = vpack.c.bf16 %v1031_v13, %v1031_v13 }
 0x121   : > { %1189 = vst.msk [vmem:[%s1924_s15] sm:$0xf] %vm1188_vm2, %v1406_v14  ;;  %v1407_v19 = vpack.c.bf16 %v1029_v15, %v1029_v15  ;;  %v1484_v20 = vpop.f32.mrb[20].mxu0  ;;  %v1587_v21 = vpop.f32.mrb[20].mxu1 }
 0x122   : > { %1192 = vst.msk [vmem:[%s1924_s15 + $0xc] sm:$0xf] %vm1188_vm2, %v1409_v16  ;;  %v926_v23 = vadd.f32 %v1587_v21, %v765_v18  ;;  %v1485_v25 = vpop.f32.mrb[21].mxu0  ;;  %v917_v26 = vpop.f32.mrb[21].mxu1 }
 0x123   : > { %1190 = vst.msk [vmem:[%s1924_s15 + $0x4] sm:$0xf] %vm1188_vm2, %v1407_v19  ;;  %v1486_v28 = vadd.f32 %v1485_v25, %v1484_v20  ;;  %v918_v30 = vadd.f32 %v917_v26, %v757_v22  ;;  %v1487_v31 = vpop.f32.mrb[22].mxu0  ;;  %v1588_v32 = vpop.f32.mrb[22].mxu1 }
 0x124   : > { %v1034_v35 = vmax.f32 %v926_v23, 0.0  ;;  %v929_v37 = vadd.f32 %v1588_v32, %v768_v27  ;;  %v1488_v34 = vpop.f32.mrb[23].mxu0  ;;  %v920_v38 = vpop.f32.mrb[23].mxu1 }
 0x125   : > { %v1032_v39 = vmax.f32 %v918_v30, 0.0  ;;  %v1489_v42 = vadd.f32 %v1488_v34, %v1487_v31  ;;  %v921_v43 = vadd.f32 %v920_v38, %v760_v33  ;;  %v781_v50 = vadd.f32 %v1486_v28, %v1914_v54 }
 0x126   : > { %v1412_v44 = vpack.c.bf16 %v1034_v35, %v1034_v35  ;;  %v1035_v45 = vmax.f32 %v929_v37, 0.0 }
 0x127   : > { %v1410_v46 = vpack.c.bf16 %v1032_v39, %v1032_v39  ;;  %v1033_v47 = vmax.f32 %v921_v43, 0.0  ;;  %v784_v59 = vadd.f32 %v1489_v42, %v1914_v54 }
 0x128   : > { %1195 = vst.msk [vmem:[%s1924_s15 + $0x18] sm:$0xf] %vm1188_vm2, %v1412_v44  ;;  %v1413_v49 = vpack.c.bf16 %v1035_v45, %v1035_v45 }
 0x129   : > { %1193 = vst.msk [vmem:[%s1924_s15 + $0x10] sm:$0xf] %vm1188_vm2, %v1410_v46  ;;  %v1411_v40 = vpack.c.bf16 %v1033_v47, %v1033_v47  ;;  %v1490_v51 = vpop.f32.mrb[24].mxu0  ;;  %v1591_v52 = vpop.f32.mrb[24].mxu1 }
 0x12a   : > { %1196 = vst.msk [vmem:[%s1924_s15 + $0x1c] sm:$0xf] %vm1188_vm2, %v1413_v49  ;;  %v942_v56 = vadd.f32 %v1591_v52, %v781_v50  ;;  %v1491_v57 = vpop.f32.mrb[25].mxu0  ;;  %v933_v58 = vpop.f32.mrb[25].mxu1 }
 0x12b   : > { %1194 = vst.msk [vmem:[%s1924_s15 + $0x14] sm:$0xf] %vm1188_vm2, %v1411_v40  ;;  %v1492_v60 = vadd.f32 %v1491_v57, %v1490_v51  ;;  %v934_v61 = vadd.f32 %v933_v58, %v773_v55  ;;  %v1493_v62 = vpop.f32.mrb[26].mxu0  ;;  %v1592_v0 = vpop.f32.mrb[26].mxu1 }
 0x12c   : > { %v1038_v2 = vmax.f32 %v942_v56, 0.0  ;;  %v945_v3 = vadd.f32 %v1592_v0, %v784_v59  ;;  %v1494_v63 = vpop.f32.mrb[27].mxu0  ;;  %v936_v4 = vpop.f32.mrb[27].mxu1 }
 0x12d   : > { %v1036_v5 = vmax.f32 %v934_v61, 0.0  ;;  %v1495_v6 = vadd.f32 %v1494_v63, %v1493_v62  ;;  %v937_v7 = vadd.f32 %v936_v4, %v776_v1  ;;  %v789_v18 = vadd.f32 %v1492_v60, %v1914_v54 }
 0x12e   : > { %v1416_v8 = vpack.c.bf16 %v1038_v2, %v1038_v2  ;;  %v1039_v10 = vmax.f32 %v945_v3, 0.0 }
 0x12f   : > { %v1414_v11 = vpack.c.bf16 %v1036_v5, %v1036_v5  ;;  %v1037_v13 = vmax.f32 %v937_v7, 0.0  ;;  %v792_v26 = vadd.f32 %v1495_v6, %v1914_v54 }
 0x130   : > { %1199 = vst.msk [vmem:[%s1924_s15 + $0x28] sm:$0xf] %vm1188_vm2, %v1416_v8  ;;  %v1417_v14 = vpack.c.bf16 %v1039_v10, %v1039_v10 }
 0x131   : > { %1197 = vst.msk [vmem:[%s1924_s15 + $0x20] sm:$0xf] %vm1188_vm2, %v1414_v11  ;;  %v1415_v15 = vpack.c.bf16 %v1037_v13, %v1037_v13  ;;  %v1496_v9 = vpop.f32.mrb[28].mxu0  ;;  %v1595_v16 = vpop.f32.mrb[28].mxu1 }
 0x132   : > { %1200 = vst.msk [vmem:[%s1924_s15 + $0x2c] sm:$0xf] %vm1188_vm2, %v1417_v14  ;;  %v1497_v19 = vpop.f32.mrb[29].mxu0  ;;  %v949_v20 = vpop.f32.mrb[29].mxu1 }
 0x133   : > { %1198 = vst.msk [vmem:[%s1924_s15 + $0x24] sm:$0xf] %vm1188_vm2, %v1415_v15  ;;  %v1498_v21 = vadd.f32 %v1497_v19, %v1496_v9  ;;  %v950_v22 = vadd.f32 %v949_v20, %v789_v18  ;;  %v1499_v23 = vpop.f32.mrb[30].mxu0  ;;  %v1596_v25 = vpop.f32.mrb[30].mxu1  ;;  %v845_v18 = vadd.f32 %v1899_v24, %v1914_v54 }
 0x134   : > { %v1500_v27 = vpop.f32.mrb[31].mxu0  ;;  %v952_v28 = vpop.f32.mrb[31].mxu1 }
 0x135   : > { %v797_v30 = vadd.f32 %v1498_v21, %v1914_v54  ;;  %v1040_v31 = vmax.f32 %v950_v22, 0.0  ;;  %v1501_v32 = vadd.f32 %v1500_v27, %v1499_v23  ;;  %v953_v33 = vadd.f32 %v952_v28, %v792_v26 }
 0x136   : > { %v837_v23 = vadd.f32 %v1895_v12, %v1914_v54  ;;  %v848_v28 = vadd.f32 %v1901_v29, %v1914_v54  ;;  %v840_v12 = vadd.f32 %v1897_v17, %v1914_v54 }
 0x137   : > { %v958_v35 = vadd.f32 %v1595_v16, %v797_v30  ;;  %v1418_v37 = vpack.c.bf16 %v1040_v31, %v1040_v31  ;;  %v800_v34 = vadd.f32 %v1501_v32, %v1914_v54  ;;  %v1041_v38 = vmax.f32 %v953_v33, 0.0 }
 0x139   : > { %v1042_v39 = vmax.f32 %v958_v35, 0.0  ;;  %1201 = vst.msk [vmem:[%s1924_s15 + $0x30] sm:$0xf] %vm1188_vm2, %v1418_v37  ;;  %v961_v42 = vadd.f32 %v1596_v25, %v800_v34  ;;  %v1419_v43 = vpack.c.bf16 %v1041_v38, %v1041_v38  ;;  %v1502_v44 = vpop.f32.mrb[32].mxu0  ;;  %v1599_v45 = vpop.f32.mrb[32].mxu1 }
 0x13a   : > { %v1503_v46 = vpop.f32.mrb[33].mxu0  ;;  %v965_v47 = vpop.f32.mrb[33].mxu1 }
 0x13b   : > { %v1420_v49 = vpack.c.bf16 %v1042_v39, %v1042_v39  ;;  %v1043_v50 = vmax.f32 %v961_v42, 0.0  ;;  %1202 = vst.msk [vmem:[%s1924_s15 + $0x34] sm:$0xf] %vm1188_vm2, %v1419_v43  ;;  %v1504_v40 = vadd.f32 %v1503_v46, %v1502_v44  ;;  %v1505_v51 = vpop.f32.mrb[34].mxu0  ;;  %v1600_v52 = vpop.f32.mrb[34].mxu1 }
 0x13c   : > { %v1506_v55 = vpop.f32.mrb[35].mxu0  ;;  %v968_v56 = vpop.f32.mrb[35].mxu1 }
 0x13d   : > { %1203 = vst.msk [vmem:[%s1924_s15 + $0x38] sm:$0xf] %vm1188_vm2, %v1420_v49  ;;  %v1421_v57 = vpack.c.bf16 %v1043_v50, %v1043_v50  ;;  %v805_v58 = vadd.f32 %v1504_v40, %v1914_v54  ;;  %v1507_v59 = vadd.f32 %v1506_v55, %v1505_v51 }
 0x13f   : > { %1204 = vst.msk [vmem:[%s1924_s15 + $0x3c] sm:$0xf] %vm1188_vm2, %v1421_v57  ;;  %v966_v60 = vadd.f32 %v965_v47, %v805_v58  ;;  %v808_v61 = vadd.f32 %v1507_v59, %v1914_v54  ;;  %v853_v59 = vadd.f32 %v1903_v36, %v1914_v54 }
 0x141   : > { %v1044_v62 = vmax.f32 %v966_v60, 0.0  ;;  %v969_v0 = vadd.f32 %v968_v56, %v808_v61  ;;  %v1508_v1 = vpop.f32.mrb[36].mxu0  ;;  %v1972_v2 = vpop.f32.mrb[36].mxu1 }
 0x142   : > { %v1509_v3 = vpop.f32.mrb[37].mxu0  ;;  %v981_v63 = vpop.f32.mrb[37].mxu1 }
 0x143   : > { %v1422_v4 = vpack.c.bf16 %v1044_v62, %v1044_v62  ;;  %v1045_v5 = vmax.f32 %v969_v0, 0.0  ;;  %v1510_v6 = vadd.f32 %v1509_v3, %v1508_v1  ;;  %v1511_v7 = vpop.f32.mrb[38].mxu0  ;;  %v1974_v8 = vpop.f32.mrb[38].mxu1 }
 0x144   : > { %v1512_v10 = vpop.f32.mrb[39].mxu0  ;;  %v984_v11 = vpop.f32.mrb[39].mxu1 }
 0x145   : > { %1205 = vst.msk [vmem:[%s1924_s15 + $0x40] sm:$0xf] %vm1188_vm2, %v1422_v4  ;;  %v1423_v13 = vpack.c.bf16 %v1045_v5, %v1045_v5  ;;  %v813_v14 = vadd.f32 %v1510_v6, %v1914_v54  ;;  %v1513_v15 = vadd.f32 %v1512_v10, %v1511_v7 }
 0x147   : > { %1206 = vst.msk [vmem:[%s1924_s15 + $0x44] sm:$0xf] %vm1188_vm2, %v1423_v13  ;;  %v974_v9 = vadd.f32 %v1599_v45, %v813_v14  ;;  %v816_v16 = vadd.f32 %v1513_v15, %v1914_v54 }
 0x149   : > { %v1046_v19 = vmax.f32 %v974_v9, 0.0  ;;  %v977_v20 = vadd.f32 %v1600_v52, %v816_v16  ;;  %v1514_v21 = vpop.f32.mrb[40].mxu0  ;;  %v1607_v22 = vpop.f32.mrb[40].mxu1  ;;  %v861_v52 = vadd.f32 %v1907_v48, %v1914_v54  ;;  %v864_v48 = vadd.f32 %v1909_v53, %v1914_v54 }
 0x14a   : > { %v1006_v25 = vadd.f32 %v1607_v22, %v845_v18  ;;  %v1515_v26 = vpop.f32.mrb[41].mxu0  ;;  %v997_v27 = vpop.f32.mrb[41].mxu1 }
 0x14b   : > { %v1424_v30 = vpack.c.bf16 %v1046_v19, %v1046_v19  ;;  %v1047_v31 = vmax.f32 %v977_v20, 0.0  ;;  %v1516_v32 = vadd.f32 %v1515_v26, %v1514_v21  ;;  %v998_v33 = vadd.f32 %v997_v27, %v837_v23  ;;  %v1517_v24 = vpop.f32.mrb[42].mxu0  ;;  %v1608_v35 = vpop.f32.mrb[42].mxu1 }
 0x14c   : > { %v1054_v37 = vmax.f32 %v1006_v25, 0.0  ;;  %v1009_v34 = vadd.f32 %v1608_v35, %v848_v28  ;;  %v1518_v38 = vpop.f32.mrb[43].mxu0  ;;  %v1000_v39 = vpop.f32.mrb[43].mxu1 }
 0x14d   : > { %1207 = vst.msk [vmem:[%s1924_s15 + $0x48] sm:$0xf] %vm1188_vm2, %v1424_v30  ;;  %v1425_v42 = vpack.c.bf16 %v1047_v31, %v1047_v31  ;;  %v821_v29 = vadd.f32 %v1516_v32, %v1914_v54  ;;  %v1052_v43 = vmax.f32 %v998_v33, 0.0  ;;  %v1519_v44 = vadd.f32 %v1518_v38, %v1517_v24 }
 0x14e   : > { %v1432_v45 = vpack.c.bf16 %v1054_v37, %v1054_v37  ;;  %v1055_v46 = vmax.f32 %v1009_v34, 0.0  ;;  %v1001_v47 = vadd.f32 %v1000_v39, %v840_v12 }
 0x14f   : > { %1208 = vst.msk [vmem:[%s1924_s15 + $0x4c] sm:$0xf] %vm1188_vm2, %v1425_v42  ;;  %v982_v49 = vadd.f32 %v981_v63, %v821_v29  ;;  %v1430_v50 = vpack.c.bf16 %v1052_v43, %v1052_v43  ;;  %v824_v40 = vadd.f32 %v1519_v44, %v1914_v54 }
 0x150   : > { %1215 = vst.msk [vmem:[%s1924_s15 + $0x68] sm:$0xf] %vm1188_vm2, %v1432_v45  ;;  %v1433_v17 = vpack.c.bf16 %v1055_v46, %v1055_v46  ;;  %v1053_v51 = vmax.f32 %v1001_v47, 0.0 }
 0x151   : > { %v1048_v55 = vmax.f32 %v982_v49, 0.0  ;;  %1213 = vst.msk [vmem:[%s1924_s15 + $0x60] sm:$0xf] %vm1188_vm2, %v1430_v50  ;;  %v985_v56 = vadd.f32 %v984_v11, %v824_v40  ;;  %v1520_v57 = vpop.f32.mrb[44].mxu0  ;;  %v1611_v58 = vpop.f32.mrb[44].mxu1  ;;  %v856_v11 = vadd.f32 %v1905_v41, %v1914_v54 }
 0x152   : > { %1216 = vst.msk [vmem:[%s1924_s15 + $0x6c] sm:$0xf] %vm1188_vm2, %v1433_v17  ;;  %v1431_v60 = vpack.c.bf16 %v1053_v51, %v1053_v51  ;;  %v1022_v61 = vadd.f32 %v1611_v58, %v861_v52  ;;  %v1521_v62 = vpop.f32.mrb[45].mxu0  ;;  %v1013_v0 = vpop.f32.mrb[45].mxu1 }
 0x153   : > { %v1426_v1 = vpack.c.bf16 %v1048_v55, %v1048_v55  ;;  %v1049_v3 = vmax.f32 %v985_v56, 0.0  ;;  %v1522_v63 = vadd.f32 %v1521_v62, %v1520_v57  ;;  %v1014_v4 = vadd.f32 %v1013_v0, %v853_v59  ;;  %v1523_v5 = vpop.f32.mrb[46].mxu0  ;;  %v1612_v6 = vpop.f32.mrb[46].mxu1 }
 0x154   : > { %1214 = vst.msk [vmem:[%s1924_s15 + $0x64] sm:$0xf] %vm1188_vm2, %v1431_v60  ;;  %v1058_v36 = vmax.f32 %v1022_v61, 0.0  ;;  %v1025_v7 = vadd.f32 %v1612_v6, %v864_v48  ;;  %v1524_v10 = vpop.f32.mrb[47].mxu0  ;;  %v1016_v13 = vpop.f32.mrb[47].mxu1 }
 0x155   : > { %1209 = vst.msk [vmem:[%s1924_s15 + $0x50] sm:$0xf] %vm1188_vm2, %v1426_v1  ;;  %v1427_v53 = vpack.c.bf16 %v1049_v3, %v1049_v3  ;;  %v829_v14 = vadd.f32 %v1522_v63, %v1914_v54  ;;  %v1056_v15 = vmax.f32 %v1014_v4, 0.0  ;;  %v1525_v9 = vadd.f32 %v1524_v10, %v1523_v5 }
 0x156   : > { %v1436_v16 = vpack.c.bf16 %v1058_v36, %v1058_v36  ;;  %v1059_v18 = vmax.f32 %v1025_v7, 0.0  ;;  %v1017_v19 = vadd.f32 %v1016_v13, %v856_v11 }
 0x157   : > { %1210 = vst.msk [vmem:[%s1924_s15 + $0x54] sm:$0xf] %vm1188_vm2, %v1427_v53  ;;  %v990_v20 = vadd.f32 %v1972_v2, %v829_v14  ;;  %v1434_v41 = vpack.c.bf16 %v1056_v15, %v1056_v15  ;;  %v832_v21 = vadd.f32 %v1525_v9, %v1914_v54 }
 0x158   : > { %1219 = vst.msk [vmem:[%s1924_s15 + $0x78] sm:$0xf] %vm1188_vm2, %v1436_v16  ;;  %v1437_v22 = vpack.c.bf16 %v1059_v18, %v1059_v18  ;;  %v1057_v23 = vmax.f32 %v1017_v19, 0.0 }
 0x159   : > { %v1050_v25 = vmax.f32 %v990_v20, 0.0  ;;  %1217 = vst.msk [vmem:[%s1924_s15 + $0x70] sm:$0xf] %vm1188_vm2, %v1434_v41  ;;  %v993_v26 = vadd.f32 %v1974_v8, %v832_v21 }
 0x15a   : > { %1220 = vst.msk [vmem:[%s1924_s15 + $0x7c] sm:$0xf] %vm1188_vm2, %v1437_v22  ;;  %v1435_v27 = vpack.c.bf16 %v1057_v23, %v1057_v23 }
 0x15b   : > { %v1428_v28 = vpack.c.bf16 %v1050_v25, %v1050_v25  ;;  %v1051_v30 = vmax.f32 %v993_v26, 0.0 }
 0x15c   : > { %1218 = vst.msk [vmem:[%s1924_s15 + $0x74] sm:$0xf] %vm1188_vm2, %v1435_v27 }
 0x15d   : > { %1211 = vst.msk [vmem:[%s1924_s15 + $0x58] sm:$0xf] %vm1188_vm2, %v1428_v28  ;;  %v1429_v2 = vpack.c.bf16 %v1051_v30, %v1051_v30 }
 0x15f   : > { %1212 = vst.msk [vmem:[%s1924_s15 + $0x5c] sm:$0xf] %vm1188_vm2, %v1429_v2 }
 0x160 PF: > { %s13_s12 = sadd.s32 1, %s1730_s12  }
 0x161   : > { %p10_p4 = scmp.ge.s32.totalorder %s13_s12, 4  }
 0x163   :  { %12 = sbr.rel (!%p10_p4) target bundleno = 1 (0x1), region = 62 }

// kernel: nikola_forward.12
= control target key start
LH: loop header
LB: loop body
LE: loop exit
PB: predicated region body
PF: predicated region fallthrough
CT: control target
= control target key end

     0   :  { %s1847_s12 = smov 0   ;;  %s2145_s0 = inlined_call_operand.vmem [shape: bf16[512,432], index: 0, kind: input, shape index: {}]   ;;  %s2146_s1 = inlined_call_operand.vmem [shape: bf16[432,64], index: 1, kind: input, shape index: {}]   ;;  %s2147_s2 = inlined_call_operand.vmem [shape: f32[1,64], index: 2, kind: input, shape index: {}]   ;;  %s2148_s3 = inlined_call_operand.vmem [shape: bf16[512,64], index: 3, kind: output, shape index: {}]  }
   0x1 LB: > { %s1389_s13 = sadd.s32 4294967295, %s1824_s12   ;;  %p1393_p0 = scmp.ge.s32.totalorder %s1824_s12, 1  ;;  %s1824_s12 = sphi %s1847_s12, %s13_s12  }
   0x2   : > { %p139_p1 = scmp.lt.s32.totalorder %s1824_s12, 3 }
   0x4   : > { %p140_p2 = pnand %p1393_p0, %p139_p1 }
   0x5   : > { %v1695_v0 = vld [vmem:[%s2146_s1 + $0x80] sm:$0xff] (!%p140_p2)   ;;  %v1826_v1 = vmov (!%p140_p2), 0   ;;  %v1698_v4 = vld [vmem:[%s2146_s1 + $0x88] sm:$0xff] (!%p140_p2)   ;;  %v1701_v7 = vld [vmem:[%s2146_s1 + $0x90] sm:$0xff] (!%p140_p2)   ;;  %s1394_s7 = sshll.u32 (!%p140_p2), %s1389_s13, 5  ;;  %vm769_vm0 = vcmask (!%p140_p2), 392192  }
   0x6   : > { %143 = sbr.rel (%p140_p2) target bundleno = 391 (0x187), region = 32  ;;  %979 = vmatprep.subr.bf16.mxu1 (!%p140_p2), %v1826_v1  ;;  %v1696_v2 = vld [vmem:[%s2146_s1 + $0x40] sm:$0xff] (!%p140_p2)   ;;  %v1699_v5 = vld [vmem:[%s2146_s1 + $0x48] sm:$0xff] (!%p140_p2)   ;;  %v1702_v8 = vld [vmem:[%s2146_s1 + $0x50] sm:$0xff] (!%p140_p2)   ;;  %p165_p3 = scmp.lt.s32.totalorder (!%p140_p2), %s1394_s7, 63  ;;  %vm1300_vm1 = vcmask (!%p140_p2), 519168  }
   0x7   : > { %980 = vmatpush1.bf16.msra.mxu1 (!%p140_p2), %v1695_v0  ;;  %v1697_v3 = vld [vmem:[%s2146_s1] sm:$0xff] (!%p140_p2)   ;;  %1574 = vmatprep.subr.bf16.mxu0 (!%p140_p2), %v1696_v2  ;;  %v1700_v6 = vld [vmem:[%s2146_s1 + $0x8] sm:$0xff] (!%p140_p2)   ;;  %v1703_v9 = vld [vmem:[%s2146_s1 + $0x10] sm:$0xff] (!%p140_p2)  }
   0x8   : > { %981 = vmatprep.subr.bf16.mxu1 (!%p140_p2), %v1826_v1  ;;  %1575 = vmatpush3.bf16.msra.mxu0 (!%p140_p2), %v1697_v3  ;;  %v1704_v10 = vld [vmem:[%s2146_s1 + $0x98] sm:$0xff] (!%p140_p2)   ;;  %v1708_v13 = vld [vmem:[%s2146_s1 + $0x60] sm:$0xff] (!%p140_p2)   ;;  %v1711_v16 = vld [vmem:[%s2146_s1 + $0x68] sm:$0xff] (!%p140_p2)  }
   0x9   : > { %1576 = vmatprep.subr.bf16.mxu0 (!%p140_p2), %v1699_v5  ;;  %v1705_v11 = vld [vmem:[%s2146_s1 + $0x58] sm:$0xff] (!%p140_p2)   ;;  %v1707_v14 = vld [vmem:[%s2146_s1 + $0xa0] sm:$0xff] (!%p140_p2)   ;;  %v1710_v17 = vld [vmem:[%s2146_s1 + $0xa8] sm:$0xff] (!%p140_p2)  }
   0xa   : > { %v1706_v12 = vld [vmem:[%s2146_s1 + $0x18] sm:$0xff] (!%p140_p2)   ;;  %v1709_v15 = vld [vmem:[%s2146_s1 + $0x20] sm:$0xff] (!%p140_p2)   ;;  %v1712_v18 = vld [vmem:[%s2146_s1 + $0x28] sm:$0xff] (!%p140_p2)  }
   0xb   : > { %982 = vmatpush1.bf16.msra.mxu1 (!%p140_p2), %v1698_v4  ;;  %v1714_v19 = vld [vmem:[%s2146_s1 + $0x70] sm:$0xff] (!%p140_p2)   ;;  %v1716_v22 = vld [vmem:[%s2146_s1 + $0xb8] sm:$0xff] (!%p140_p2)   ;;  %v1719_v26 = vld [vmem:[%s2146_s1 + $0xc0] sm:$0xff] (!%p140_p2)  }
   0xc   : > { %983 = vmatprep.subr.bf16.mxu1 (!%p140_p2), %v1826_v1  ;;  %1577 = vmatpush3.bf16.msra.mxu0 (!%p140_p2), %v1700_v6  ;;  %v1713_v20 = vld [vmem:[%s2146_s1 + $0xb0] sm:$0xff] (!%p140_p2)   ;;  %v1717_v23 = vld [vmem:[%s2146_s1 + $0x78] sm:$0xff] (!%p140_p2)   ;;  %v1723_v30 = vld [vmem:[%s2146_s1 + $0xc8] sm:$0xff] (!%p140_p2)  }
   0xd   : > { %1578 = vmatprep.subr.bf16.mxu0 %v1702_v8  ;;  %s2150_s7 = smov (!%p165_p3, %s1394_s7), 63  ;;  %v1715_v21 = vld [vmem:[%s2146_s1 + $0x30] sm:$0xff]   ;;  %v1718_v25 = vld [vmem:[%s2146_s1 + $0x38] sm:$0xff]  }
   0xe   : > { %s1541_s25 = sshll.u32 %s2150_s7, 4  ;;  %v1724_v31 = vld [vmem:[%s2146_s1 + $0xd0] sm:$0xff]   ;;  %s1398_s24 = sshll.u32 %s2150_s7, 2 }
   0xf   : > { %984 = vmatpush1.bf16.msra.mxu1 %v1701_v7  ;;  %s1931_s8 = scalar_lea.vmem %s2145_s0, %s1541_s25  ;;  %s2046_s27 = scalar_lea.vmem %s2148_s3, %s1398_s24 }
  0x10   : > { %985 = vmatprep.subr.bf16.mxu1 %v1826_v1  ;;  %1579 = vmatpush3.bf16.msra.mxu0 %v1703_v9  ;;  %v1722_v24 = vld [vmem:[%s1931_s8 + $0x4] ss:$16 sps:$4 sm:$0xff]   ;;  %v1729_v27 = vld [vmem:[%s1931_s8 + $0xc] ss:$16 sps:$4 sm:$0xff]   ;;  %v1720_v28 = vld [vmem:[%s1931_s8] ss:$16 sps:$4 sm:$0xff]  }
  0x11   : > { %1580 = vmatprep.subr.bf16.mxu0 %v1705_v11  ;;  %850 = vmatprep.mubr.bf16.mxu0 %v1722_v24  ;;  %v1725_v29 = vld [vmem:[%s1931_s8 + $0x24] ss:$16 sps:$4 sm:$0xff]   ;;  %v1730_v32 = vld [vmem:[%s1931_s8 + $0x20] ss:$16 sps:$4 sm:$0xff]   ;;  %v1727_v34 = vld [vmem:[%s1931_s8 + $0x8] ss:$16 sps:$4 sm:$0xff]  }
  0x12   : > { %1491 = vmatprep.mubr.msk.bf16.mxu1 %vm769_vm0, %v1729_v27  ;;  %v1731_v33 = vld [vmem:[%s1931_s8 + $0x44] ss:$16 sps:$4 sm:$0xff]   ;;  %v1733_v35 = vld [vmem:[%s1931_s8 + $0x2c] ss:$16 sps:$4 sm:$0xff]   ;;  %v1735_v36 = vld [vmem:[%s1931_s8 + $0x40] ss:$16 sps:$4 sm:$0xff]  }
  0x13   : > { %986 = vmatpush1.bf16.msra.mxu1 %v1704_v10  ;;  %v1737_v37 = vld [vmem:[%s1931_s8 + $0x64] ss:$16 sps:$4 sm:$0xff]   ;;  %v1736_v38 = vld [vmem:[%s1931_s8 + $0x28] ss:$16 sps:$4 sm:$0xff]   ;;  %v1739_v39 = vld [vmem:[%s1931_s8 + $0x4c] ss:$16 sps:$4 sm:$0xff]  }
  0x14   : > { %987 = vmatprep.subr.bf16.mxu1 %v1826_v1  ;;  %1581 = vmatpush3.bf16.msra.mxu0 %v1706_v12  ;;  %v1741_v40 = vld [vmem:[%s1931_s8 + $0x60] ss:$16 sps:$4 sm:$0xff]   ;;  %v1743_v41 = vld [vmem:[%s1931_s8 + $0x84] ss:$16 sps:$4 sm:$0xff]   ;;  %v1742_v42 = vld [vmem:[%s1931_s8 + $0x48] ss:$16 sps:$4 sm:$0xff]  }
  0x15   : > { %1582 = vmatprep.subr.bf16.mxu0 %v1708_v13  ;;  %v1745_v43 = vld [vmem:[%s1931_s8 + $0x6c] ss:$16 sps:$4 sm:$0xff]   ;;  %v1747_v44 = vld [vmem:[%s1931_s8 + $0x80] ss:$16 sps:$4 sm:$0xff]   ;;  %v1749_v45 = vld [vmem:[%s1931_s8 + $0xa4] ss:$16 sps:$4 sm:$0xff]  }
  0x16   : > { %v1748_v46 = vld [vmem:[%s1931_s8 + $0x68] ss:$16 sps:$4 sm:$0xff]   ;;  %v1751_v47 = vld [vmem:[%s1931_s8 + $0x8c] ss:$16 sps:$4 sm:$0xff]   ;;  %v1753_v48 = vld [vmem:[%s1931_s8 + $0xa0] ss:$16 sps:$4 sm:$0xff]  }
  0x17   : > { %988 = vmatpush1.bf16.msra.mxu1 %v1707_v14  ;;  %v1755_v49 = vld [vmem:[%s1931_s8 + $0xc4] ss:$16 sps:$4 sm:$0xff]   ;;  %v1754_v50 = vld [vmem:[%s1931_s8 + $0x88] ss:$16 sps:$4 sm:$0xff]   ;;  %v1757_v51 = vld [vmem:[%s1931_s8 + $0xac] ss:$16 sps:$4 sm:$0xff]  }
  0x18   : > { %989 = vmatprep.subr.bf16.mxu1 %v1826_v1  ;;  %1583 = vmatpush3.bf16.msra.mxu0 %v1709_v15  ;;  %v1759_v52 = vld [vmem:[%s1931_s8 + $0xc0] ss:$16 sps:$4 sm:$0xff]   ;;  %v1761_v53 = vld [vmem:[%s1931_s8 + $0xe4] ss:$16 sps:$4 sm:$0xff]   ;;  %v1760_v54 = vld [vmem:[%s1931_s8 + $0xa8] ss:$16 sps:$4 sm:$0xff]  }
  0x19   : > { %1584 = vmatprep.subr.bf16.mxu0 %v1711_v16  ;;  %v1763_v55 = vld [vmem:[%s1931_s8 + $0xcc] ss:$16 sps:$4 sm:$0xff]   ;;  %v1765_v56 = vld [vmem:[%s1931_s8 + $0xe0] ss:$16 sps:$4 sm:$0xff]   ;;  %v1767_v57 = vld [vmem:[%s1931_s8 + $0x104] ss:$16 sps:$4 sm:$0xff]  }
  0x1a   : > { %v1766_v58 = vld [vmem:[%s1931_s8 + $0xc8] ss:$16 sps:$4 sm:$0xff]   ;;  %v1769_v59 = vld [vmem:[%s1931_s8 + $0xec] ss:$16 sps:$4 sm:$0xff]   ;;  %v1771_v60 = vld [vmem:[%s1931_s8 + $0x100] ss:$16 sps:$4 sm:$0xff]  }
  0x1b   : > { %990 = vmatpush1.bf16.msra.mxu1 %v1710_v17  ;;  %v1773_v61 = vld [vmem:[%s1931_s8 + $0x124] ss:$16 sps:$4 sm:$0xff]   ;;  %v1772_v62 = vld [vmem:[%s1931_s8 + $0xe8] ss:$16 sps:$4 sm:$0xff]   ;;  %v1775_v63 = vld [vmem:[%s1931_s8 + $0x10c] ss:$16 sps:$4 sm:$0xff]  }
  0x1c   : > { %991 = vmatprep.subr.bf16.mxu1 %v1826_v1  ;;  %1585 = vmatpush3.bf16.msra.mxu0 %v1712_v18  ;;  %v1777_v0 = vld [vmem:[%s1931_s8 + $0x120] ss:$16 sps:$4 sm:$0xff]   ;;  %v1778_v2 = vld [vmem:[%s1931_s8 + $0x108] ss:$16 sps:$4 sm:$0xff]   ;;  %v1781_v3 = vld [vmem:[%s1931_s8 + $0x12c] ss:$16 sps:$4 sm:$0xff]  }
  0x1d   : > { %1586 = vmatprep.subr.bf16.mxu0 %v1714_v19  ;;  %v1783_v4 = vld [vmem:[%s1931_s8 + $0x140] ss:$16 sps:$4 sm:$0xff]   ;;  %v1785_v5 = vld [vmem:[%s1931_s8 + $0x164] ss:$16 sps:$4 sm:$0xff]   ;;  %v1784_v6 = vld [vmem:[%s1931_s8 + $0x128] ss:$16 sps:$4 sm:$0xff]  }
  0x1e   : > { %v1787_v7 = vld [vmem:[%s1931_s8 + $0x14c] ss:$16 sps:$4 sm:$0xff]   ;;  %v1789_v8 = vld [vmem:[%s1931_s8 + $0x160] ss:$16 sps:$4 sm:$0xff]   ;;  %v1791_v9 = vld [vmem:[%s1931_s8 + $0x184] ss:$16 sps:$4 sm:$0xff]  }
  0x1f   : > { %992 = vmatpush1.bf16.msra.mxu1 %v1713_v20  ;;  %v1790_v10 = vld [vmem:[%s1931_s8 + $0x148] ss:$16 sps:$4 sm:$0xff]   ;;  %v1793_v11 = vld [vmem:[%s1931_s8 + $0x16c] ss:$16 sps:$4 sm:$0xff]   ;;  %v1795_v12 = vld [vmem:[%s1931_s8 + $0x180] ss:$16 sps:$4 sm:$0xff]  }
  0x20   : > { %993 = vmatprep.subr.bf16.mxu1 %v1826_v1  ;;  %1587 = vmatpush3.bf16.msra.mxu0 %v1715_v21  ;;  %v1797_v13 = vld [vmem:[%s1931_s8 + $0x1a4] ss:$16 sps:$4 sm:$0xff]   ;;  %v1796_v14 = vld [vmem:[%s1931_s8 + $0x168] ss:$16 sps:$4 sm:$0xff]   ;;  %v1799_v15 = vld [vmem:[%s1931_s8 + $0x18c] ss:$16 sps:$4 sm:$0xff]  }
  0x21   : > { %1588 = vmatprep.subr.bf16.mxu0 %v1717_v23  ;;  %v1801_v16 = vld [vmem:[%s1931_s8 + $0x1a0] ss:$16 sps:$4 sm:$0xff]   ;;  %v1803_v17 = vld [vmem:[%s1931_s8 + $0x1c4] ss:$16 sps:$4 sm:$0xff]   ;;  %v1802_v18 = vld [vmem:[%s1931_s8 + $0x188] ss:$16 sps:$4 sm:$0xff]  }
  0x22   : > { %v1805_v19 = vld [vmem:[%s1931_s8 + $0x1ac] ss:$16 sps:$4 sm:$0xff]   ;;  %v1807_v20 = vld [vmem:[%s1931_s8 + $0x1c0] ss:$16 sps:$4 sm:$0xff]   ;;  %v1809_v21 = vld [vmem:[%s1931_s8 + $0x1e4] ss:$16 sps:$4 sm:$0xff]  }
  0x23   : > { %994 = vmatpush1.bf16.msra.mxu1 %v1716_v22  ;;  %v1808_v22 = vld [vmem:[%s1931_s8 + $0x1a8] ss:$16 sps:$4 sm:$0xff]   ;;  %v1811_v23 = vld [vmem:[%s1931_s8 + $0x1cc] ss:$16 sps:$4 sm:$0xff]   ;;  %v1813_v24 = vld [vmem:[%s1931_s8 + $0x1e0] ss:$16 sps:$4 sm:$0xff]  }
  0x24   : > { %995 = vmatprep.subr.bf16.mxu1 %v1826_v1  ;;  %1589 = vmatpush3.bf16.msra.mxu0 %v1718_v25  ;;  %v1814_v25 = vld [vmem:[%s1931_s8 + $0x1c8] ss:$16 sps:$4 sm:$0xff]  }
  0x25   : > { %v1817_v27 = vld [vmem:[%s1931_s8 + $0x1e8] ss:$16 sps:$4 sm:$0xff]  }
  0x27   : > { %996 = vmatpush1.bf16.msra.mxu1 %v1719_v26  ;;  %851 = vmatmul.mubr.bf16.vlgmr.msra.gmra.mrb[0].mxu0 %v1720_v28  ;;  %v1815_v26 = vld [vmem:[%s1931_s8 + $0x1ec] ss:$16 sps:$4 sm:$0xff]  }
  0x28   : > { %997 = vmatprep.subr.bf16.mxu1 %v1826_v1  ;;  %858 = vmatprep.mubr.bf16.mxu0 %v1725_v29 }
  0x2b   : > { %998 = vmatpush1.bf16.msra.mxu1 %v1723_v30 }
  0x2c   : > { %999 = vmatprep.subr.bf16.mxu1 %v1826_v1  ;;  %v1779_v1 = vld [vmem:[%s1931_s8 + $0x144] ss:$16 sps:$4 sm:$0xff]  }
  0x2f   : > { %1000 = vmatpush1.bf16.msra.mxu1 %v1724_v31  ;;  %859 = vmatmul.mubr.bf16.gmra.mrb[4].mxu0 %v1730_v32 }
  0x30   : > { %866 = vmatprep.mubr.bf16.mxu0 %v1731_v33 }
  0x32   : > { %1012 = vmatmul.mubr.bf16.vlgmr.msra.gmra.mrb[0].mxu1 %v1727_v34  ;;  %v2038_v34 = vld [vmem:[%s2147_s2] ss:$0 sm:$0xff] }
  0x33   : > { %1492 = vmatprep.mubr.msk.bf16.mxu1 %vm769_vm0, %v1733_v35 }
  0x37   : > { %867 = vmatmul.mubr.bf16.gmra.mrb[8].mxu0 %v1735_v36 }
  0x38   : > { %874 = vmatprep.mubr.bf16.mxu0 %v1737_v37 }
  0x3a   : > { %1020 = vmatmul.mubr.bf16.gmra.mrb[4].mxu1 %v1736_v38 }
  0x3b   : > { %1493 = vmatprep.mubr.msk.bf16.mxu1 %vm769_vm0, %v1739_v39 }
  0x3f   : > { %875 = vmatmul.mubr.bf16.gmra.mrb[12].mxu0 %v1741_v40 }
  0x40   : > { %882 = vmatprep.mubr.bf16.mxu0 %v1743_v41 }
  0x42   : > { %1028 = vmatmul.mubr.bf16.gmra.mrb[8].mxu1 %v1742_v42 }
  0x43   : > { %1494 = vmatprep.mubr.msk.bf16.mxu1 %vm769_vm0, %v1745_v43 }
  0x47   : > { %883 = vmatmul.mubr.bf16.gmra.mrb[16].mxu0 %v1747_v44 }
  0x48   : > { %890 = vmatprep.mubr.bf16.mxu0 %v1749_v45 }
  0x4a   : > { %1036 = vmatmul.mubr.bf16.gmra.mrb[12].mxu1 %v1748_v46 }
  0x4b   : > { %1495 = vmatprep.mubr.msk.bf16.mxu1 %vm769_vm0, %v1751_v47 }
  0x4f   : > { %891 = vmatmul.mubr.bf16.gmra.mrb[20].mxu0 %v1753_v48 }
  0x50   : > { %898 = vmatprep.mubr.bf16.mxu0 %v1755_v49 }
  0x52   : > { %1044 = vmatmul.mubr.bf16.gmra.mrb[16].mxu1 %v1754_v50 }
  0x53   : > { %1496 = vmatprep.mubr.msk.bf16.mxu1 %vm769_vm0, %v1757_v51 }
  0x57   : > { %899 = vmatmul.mubr.bf16.gmra.mrb[24].mxu0 %v1759_v52 }
  0x58   : > { %906 = vmatprep.mubr.bf16.mxu0 %v1761_v53 }
  0x5a   : > { %1052 = vmatmul.mubr.bf16.gmra.mrb[20].mxu1 %v1760_v54 }
  0x5b   : > { %1497 = vmatprep.mubr.msk.bf16.mxu1 %vm769_vm0, %v1763_v55 }
  0x5f   : > { %907 = vmatmul.mubr.bf16.gmra.mrb[28].mxu0 %v1765_v56 }
  0x60   : > { %914 = vmatprep.mubr.bf16.mxu0 %v1767_v57 }
  0x62   : > { %1060 = vmatmul.mubr.bf16.gmra.mrb[24].mxu1 %v1766_v58 }
  0x63   : > { %1498 = vmatprep.mubr.msk.bf16.mxu1 %vm769_vm0, %v1769_v59 }
  0x67   : > { %915 = vmatmul.mubr.bf16.gmra.mrb[32].mxu0 %v1771_v60 }
  0x68   : > { %922 = vmatprep.mubr.bf16.mxu0 %v1773_v61 }
  0x6a   : > { %1068 = vmatmul.mubr.bf16.gmra.mrb[28].mxu1 %v1772_v62 }
  0x6b   : > { %1499 = vmatprep.mubr.msk.bf16.mxu1 %vm769_vm0, %v1775_v63 }
  0x6f   : > { %923 = vmatmul.mubr.bf16.gmra.mrb[36].mxu0 %v1777_v0 }
  0x70   : > { %930 = vmatprep.mubr.bf16.mxu0 %v1779_v1 }
  0x72   : > { %1076 = vmatmul.mubr.bf16.gmra.mrb[32].mxu1 %v1778_v2 }
  0x73   : > { %1500 = vmatprep.mubr.msk.bf16.mxu1 %vm769_vm0, %v1781_v3 }
  0x77   : > { %931 = vmatmul.mubr.bf16.gmra.mrb[40].mxu0 %v1783_v4 }
  0x78   : > { %938 = vmatprep.mubr.bf16.mxu0 %v1785_v5 }
  0x7a   : > { %1084 = vmatmul.mubr.bf16.gmra.mrb[36].mxu1 %v1784_v6 }
  0x7b   : > { %1501 = vmatprep.mubr.msk.bf16.mxu1 %vm769_vm0, %v1787_v7 }
  0x7f   : > { %939 = vmatmul.mubr.bf16.gmra.mrb[44].mxu0 %v1789_v8 }
  0x80   : > { %946 = vmatprep.mubr.bf16.mxu0 %v1791_v9 }
  0x82   : > { %1092 = vmatmul.mubr.bf16.gmra.mrb[40].mxu1 %v1790_v10 }
  0x83   : > { %1502 = vmatprep.mubr.msk.bf16.mxu1 %vm769_vm0, %v1793_v11 }
  0x87   : > { %947 = vmatmul.mubr.bf16.gmra.mrb[48].mxu0 %v1795_v12 }
  0x88   : > { %954 = vmatprep.mubr.bf16.mxu0 %v1797_v13 }
  0x8a   : > { %1100 = vmatmul.mubr.bf16.gmra.mrb[44].mxu1 %v1796_v14 }
  0x8b   : > { %1503 = vmatprep.mubr.msk.bf16.mxu1 %vm769_vm0, %v1799_v15 }
  0x8f   : > { %955 = vmatmul.mubr.bf16.gmra.mrb[52].mxu0 %v1801_v16 }
  0x90   : > { %962 = vmatprep.mubr.bf16.mxu0 %v1803_v17 }
  0x92   : > { %1108 = vmatmul.mubr.bf16.gmra.mrb[48].mxu1 %v1802_v18 }
  0x93   : > { %1504 = vmatprep.mubr.msk.bf16.mxu1 %vm769_vm0, %v1805_v19 }
  0x97   : > { %963 = vmatmul.mubr.bf16.gmra.mrb[56].mxu0 %v1807_v20 }
  0x98   : > { %970 = vmatprep.mubr.bf16.mxu0 %v1809_v21 }
  0x9a   : > { %1116 = vmatmul.mubr.bf16.gmra.mrb[52].mxu1 %v1808_v22 }
  0x9b   : > { %1505 = vmatprep.mubr.msk.bf16.mxu1 %vm769_vm0, %v1811_v23 }
  0x9f   : > { %971 = vmatmul.mubr.bf16.gmra.mrb[60].mxu0 %v1813_v24 }
  0xa2   : > { %1124 = vmatmul.mubr.bf16.gmra.mrb[56].mxu1 %v1814_v25 }
  0xa3   : > { %1506 = vmatprep.mubr.msk.bf16.mxu1 %vm769_vm0, %v1815_v26 }
  0xaa   : > { %1132 = vmatmul.mubr.bf16.gmra.mrb[60].mxu1 %v1817_v27 }
  0xfa   : > { %v1590_v28 = vpop.f32.mrb[0].mxu0 }
  0xfb   : > { %v1591_v29 = vpop.f32.mrb[1].mxu0 }
  0xfc   : > { %v1592_v30 = vadd.f32 %v1591_v29, %v1590_v28  ;;  %v1593_v31 = vpop.f32.mrb[2].mxu0 }
  0xfd   : > { %v1594_v32 = vpop.f32.mrb[3].mxu0 }
  0xfe   : > { %v1595_v33 = vadd.f32 %v1594_v32, %v1593_v31  ;;  %v853_v35 = vadd.f32 %v1592_v30, %v2038_v34 }
 0x100   : > { %v856_v43 = vadd.f32 %v1595_v33, %v2038_v34 }
 0x102   : > { %v1596_v36 = vpop.f32.mrb[4].mxu0 }
 0x103   : > { %v1597_v37 = vpop.f32.mrb[5].mxu0 }
 0x104   : > { %v1598_v39 = vadd.f32 %v1597_v37, %v1596_v36  ;;  %v1599_v40 = vpop.f32.mrb[6].mxu0 }
 0x105   : > { %v1013_v38 = vpop.f32.mrb[0].mxu1  ;;  %v1600_v44 = vpop.f32.mrb[7].mxu0 }
 0x106   : > { %v1014_v41 = vadd.f32 %v1013_v38, %v853_v35  ;;  %v1015_v42 = vpop.f32.mrb[1].mxu1  ;;  %v1601_v46 = vadd.f32 %v1600_v44, %v1599_v40  ;;  %v861_v52 = vadd.f32 %v1598_v39, %v2038_v34 }
 0x107   : > { %v1016_v45 = vpop.f32.mrb[2].mxu1 }
 0x108   : > { %v1140_v47 = vmax.f32 %v1014_v41, 0.0  ;;  %v1017_v48 = vadd.f32 %v1016_v45, %v856_v43  ;;  %v1018_v49 = vpop.f32.mrb[3].mxu1  ;;  %v864_v61 = vadd.f32 %v1601_v46, %v2038_v34 }
 0x10a   : > { %v1542_v50 = vpack.c.bf16 %v1140_v47, %v1140_v47  ;;  %v1141_v51 = vmax.f32 %v1017_v48, 0.0  ;;  %v1602_v53 = vpop.f32.mrb[8].mxu0 }
 0x10b   : > { %v1603_v55 = vpop.f32.mrb[9].mxu0 }
 0x10c   : > { %1301 = vst.msk [vmem:[%s2046_s27] sm:$0xf] %vm1300_vm1, %v1542_v50  ;;  %v1543_v54 = vpack.c.bf16 %v1141_v51, %v1141_v51  ;;  %v1604_v57 = vadd.f32 %v1603_v55, %v1602_v53  ;;  %v1605_v58 = vpop.f32.mrb[10].mxu0 }
 0x10d   : > { %v1021_v56 = vpop.f32.mrb[4].mxu1  ;;  %v1606_v62 = vpop.f32.mrb[11].mxu0 }
 0x10e   : > { %1302 = vst.msk [vmem:[%s2046_s27 + $0x4] sm:$0xf] %vm1300_vm1, %v1543_v54  ;;  %v1022_v59 = vadd.f32 %v1021_v56, %v861_v52  ;;  %v1023_v60 = vpop.f32.mrb[5].mxu1  ;;  %v1607_v0 = vadd.f32 %v1606_v62, %v1605_v58  ;;  %v869_v6 = vadd.f32 %v1604_v57, %v2038_v34 }
 0x10f   : > { %v1024_v63 = vpop.f32.mrb[6].mxu1 }
 0x110   : > { %v1142_v1 = vmax.f32 %v1022_v59, 0.0  ;;  %v1025_v2 = vadd.f32 %v1024_v63, %v864_v61  ;;  %v1026_v3 = vpop.f32.mrb[7].mxu1  ;;  %v872_v15 = vadd.f32 %v1607_v0, %v2038_v34 }
 0x112   : > { %v1544_v4 = vpack.c.bf16 %v1142_v1, %v1142_v1  ;;  %v1143_v5 = vmax.f32 %v1025_v2, 0.0  ;;  %v1608_v7 = vpop.f32.mrb[12].mxu0 }
 0x113   : > { %v1609_v9 = vpop.f32.mrb[13].mxu0 }
 0x114   : > { %1303 = vst.msk [vmem:[%s2046_s27 + $0x8] sm:$0xf] %vm1300_vm1, %v1544_v4  ;;  %v1545_v8 = vpack.c.bf16 %v1143_v5, %v1143_v5  ;;  %v1610_v11 = vadd.f32 %v1609_v9, %v1608_v7  ;;  %v1611_v12 = vpop.f32.mrb[14].mxu0 }
 0x115   : > { %v1029_v10 = vpop.f32.mrb[8].mxu1  ;;  %v1612_v16 = vpop.f32.mrb[15].mxu0 }
 0x116   : > { %1304 = vst.msk [vmem:[%s2046_s27 + $0xc] sm:$0xf] %vm1300_vm1, %v1545_v8  ;;  %v1030_v13 = vadd.f32 %v1029_v10, %v869_v6  ;;  %v1031_v14 = vpop.f32.mrb[9].mxu1  ;;  %v1613_v18 = vadd.f32 %v1612_v16, %v1611_v12  ;;  %v877_v24 = vadd.f32 %v1610_v11, %v2038_v34 }
 0x117   : > { %v1032_v17 = vpop.f32.mrb[10].mxu1 }
 0x118   : > { %v1144_v19 = vmax.f32 %v1030_v13, 0.0  ;;  %v1033_v20 = vadd.f32 %v1032_v17, %v872_v15  ;;  %v1034_v21 = vpop.f32.mrb[11].mxu1  ;;  %v880_v33 = vadd.f32 %v1613_v18, %v2038_v34 }
 0x11a   : > { %v1546_v22 = vpack.c.bf16 %v1144_v19, %v1144_v19  ;;  %v1145_v23 = vmax.f32 %v1033_v20, 0.0  ;;  %v1614_v25 = vpop.f32.mrb[16].mxu0 }
 0x11b   : > { %v1615_v27 = vpop.f32.mrb[17].mxu0 }
 0x11c   : > { %1305 = vst.msk [vmem:[%s2046_s27 + $0x10] sm:$0xf] %vm1300_vm1, %v1546_v22  ;;  %v1547_v26 = vpack.c.bf16 %v1145_v23, %v1145_v23  ;;  %v1616_v29 = vadd.f32 %v1615_v27, %v1614_v25  ;;  %v1617_v30 = vpop.f32.mrb[18].mxu0 }
 0x11d   : > { %v1037_v28 = vpop.f32.mrb[12].mxu1  ;;  %v1618_v35 = vpop.f32.mrb[19].mxu0 }
 0x11e   : > { %1306 = vst.msk [vmem:[%s2046_s27 + $0x14] sm:$0xf] %vm1300_vm1, %v1547_v26  ;;  %v1038_v31 = vadd.f32 %v1037_v28, %v877_v24  ;;  %v1039_v32 = vpop.f32.mrb[13].mxu1  ;;  %v1619_v37 = vadd.f32 %v1618_v35, %v1617_v30  ;;  %v885_v43 = vadd.f32 %v1616_v29, %v2038_v34 }
 0x11f   : > { %v1040_v36 = vpop.f32.mrb[14].mxu1 }
 0x120   : > { %v1146_v38 = vmax.f32 %v1038_v31, 0.0  ;;  %v1041_v39 = vadd.f32 %v1040_v36, %v880_v33  ;;  %v1042_v40 = vpop.f32.mrb[15].mxu1  ;;  %v888_v52 = vadd.f32 %v1619_v37, %v2038_v34 }
 0x122   : > { %v1548_v41 = vpack.c.bf16 %v1146_v38, %v1146_v38  ;;  %v1147_v42 = vmax.f32 %v1041_v39, 0.0  ;;  %v1620_v44 = vpop.f32.mrb[20].mxu0 }
 0x123   : > { %v1621_v46 = vpop.f32.mrb[21].mxu0 }
 0x124   : > { %1307 = vst.msk [vmem:[%s2046_s27 + $0x18] sm:$0xf] %vm1300_vm1, %v1548_v41  ;;  %v1549_v45 = vpack.c.bf16 %v1147_v42, %v1147_v42  ;;  %v1622_v48 = vadd.f32 %v1621_v46, %v1620_v44  ;;  %v1623_v49 = vpop.f32.mrb[22].mxu0 }
 0x125   : > { %v1045_v47 = vpop.f32.mrb[16].mxu1  ;;  %v1624_v53 = vpop.f32.mrb[23].mxu0 }
 0x126   : > { %1308 = vst.msk [vmem:[%s2046_s27 + $0x1c] sm:$0xf] %vm1300_vm1, %v1549_v45  ;;  %v1046_v50 = vadd.f32 %v1045_v47, %v885_v43  ;;  %v1047_v51 = vpop.f32.mrb[17].mxu1  ;;  %v1625_v55 = vadd.f32 %v1624_v53, %v1623_v49  ;;  %v893_v61 = vadd.f32 %v1622_v48, %v2038_v34 }
 0x127   : > { %v1048_v54 = vpop.f32.mrb[18].mxu1 }
 0x128   : > { %v1148_v56 = vmax.f32 %v1046_v50, 0.0  ;;  %v1049_v57 = vadd.f32 %v1048_v54, %v888_v52  ;;  %v1050_v58 = vpop.f32.mrb[19].mxu1  ;;  %v896_v6 = vadd.f32 %v1625_v55, %v2038_v34 }
 0x12a   : > { %v1550_v59 = vpack.c.bf16 %v1148_v56, %v1148_v56  ;;  %v1149_v60 = vmax.f32 %v1049_v57, 0.0  ;;  %v1626_v62 = vpop.f32.mrb[24].mxu0 }
 0x12b   : > { %v1627_v0 = vpop.f32.mrb[25].mxu0 }
 0x12c   : > { %1309 = vst.msk [vmem:[%s2046_s27 + $0x20] sm:$0xf] %vm1300_vm1, %v1550_v59  ;;  %v1551_v63 = vpack.c.bf16 %v1149_v60, %v1149_v60  ;;  %v1628_v2 = vadd.f32 %v1627_v0, %v1626_v62  ;;  %v1629_v3 = vpop.f32.mrb[26].mxu0 }
 0x12d   : > { %v1053_v1 = vpop.f32.mrb[20].mxu1  ;;  %v1630_v7 = vpop.f32.mrb[27].mxu0 }
 0x12e   : > { %1310 = vst.msk [vmem:[%s2046_s27 + $0x24] sm:$0xf] %vm1300_vm1, %v1551_v63  ;;  %v1054_v4 = vadd.f32 %v1053_v1, %v893_v61  ;;  %v1055_v5 = vpop.f32.mrb[21].mxu1  ;;  %v1631_v9 = vadd.f32 %v1630_v7, %v1629_v3  ;;  %v901_v15 = vadd.f32 %v1628_v2, %v2038_v34 }
 0x12f   : > { %v1056_v8 = vpop.f32.mrb[22].mxu1 }
 0x130   : > { %v1150_v10 = vmax.f32 %v1054_v4, 0.0  ;;  %v1057_v11 = vadd.f32 %v1056_v8, %v896_v6  ;;  %v1058_v12 = vpop.f32.mrb[23].mxu1  ;;  %v904_v24 = vadd.f32 %v1631_v9, %v2038_v34 }
 0x132   : > { %v1552_v13 = vpack.c.bf16 %v1150_v10, %v1150_v10  ;;  %v1151_v14 = vmax.f32 %v1057_v11, 0.0  ;;  %v1632_v16 = vpop.f32.mrb[28].mxu0 }
 0x133   : > { %v1633_v18 = vpop.f32.mrb[29].mxu0 }
 0x134   : > { %1311 = vst.msk [vmem:[%s2046_s27 + $0x28] sm:$0xf] %vm1300_vm1, %v1552_v13  ;;  %v1553_v17 = vpack.c.bf16 %v1151_v14, %v1151_v14  ;;  %v1634_v20 = vadd.f32 %v1633_v18, %v1632_v16  ;;  %v1635_v21 = vpop.f32.mrb[30].mxu0 }
 0x135   : > { %v1061_v19 = vpop.f32.mrb[24].mxu1  ;;  %v1636_v25 = vpop.f32.mrb[31].mxu0 }
 0x136   : > { %1312 = vst.msk [vmem:[%s2046_s27 + $0x2c] sm:$0xf] %vm1300_vm1, %v1553_v17  ;;  %v1062_v22 = vadd.f32 %v1061_v19, %v901_v15  ;;  %v1063_v23 = vpop.f32.mrb[25].mxu1  ;;  %v1637_v27 = vadd.f32 %v1636_v25, %v1635_v21  ;;  %v909_v33 = vadd.f32 %v1634_v20, %v2038_v34 }
 0x137   : > { %v1064_v26 = vpop.f32.mrb[26].mxu1 }
 0x138   : > { %v1152_v28 = vmax.f32 %v1062_v22, 0.0  ;;  %v1065_v29 = vadd.f32 %v1064_v26, %v904_v24  ;;  %v1066_v30 = vpop.f32.mrb[27].mxu1  ;;  %v912_v43 = vadd.f32 %v1637_v27, %v2038_v34 }
 0x13a   : > { %v1554_v31 = vpack.c.bf16 %v1152_v28, %v1152_v28  ;;  %v1153_v32 = vmax.f32 %v1065_v29, 0.0  ;;  %v1638_v35 = vpop.f32.mrb[32].mxu0 }
 0x13b   : > { %v1639_v37 = vpop.f32.mrb[33].mxu0 }
 0x13c   : > { %1313 = vst.msk [vmem:[%s2046_s27 + $0x30] sm:$0xf] %vm1300_vm1, %v1554_v31  ;;  %v1555_v36 = vpack.c.bf16 %v1153_v32, %v1153_v32  ;;  %v1640_v39 = vadd.f32 %v1639_v37, %v1638_v35  ;;  %v1641_v40 = vpop.f32.mrb[34].mxu0 }
 0x13d   : > { %v1069_v38 = vpop.f32.mrb[28].mxu1  ;;  %v1642_v44 = vpop.f32.mrb[35].mxu0 }
 0x13e   : > { %1314 = vst.msk [vmem:[%s2046_s27 + $0x34] sm:$0xf] %vm1300_vm1, %v1555_v36  ;;  %v1070_v41 = vadd.f32 %v1069_v38, %v909_v33  ;;  %v1071_v42 = vpop.f32.mrb[29].mxu1  ;;  %v1643_v46 = vadd.f32 %v1642_v44, %v1641_v40  ;;  %v917_v52 = vadd.f32 %v1640_v39, %v2038_v34 }
 0x13f   : > { %v1072_v45 = vpop.f32.mrb[30].mxu1 }
 0x140   : > { %v1154_v47 = vmax.f32 %v1070_v41, 0.0  ;;  %v1073_v48 = vadd.f32 %v1072_v45, %v912_v43  ;;  %v1074_v49 = vpop.f32.mrb[31].mxu1  ;;  %v920_v61 = vadd.f32 %v1643_v46, %v2038_v34 }
 0x142   : > { %v1556_v50 = vpack.c.bf16 %v1154_v47, %v1154_v47  ;;  %v1155_v51 = vmax.f32 %v1073_v48, 0.0  ;;  %v1644_v53 = vpop.f32.mrb[36].mxu0 }
 0x143   : > { %v1645_v55 = vpop.f32.mrb[37].mxu0 }
 0x144   : > { %1315 = vst.msk [vmem:[%s2046_s27 + $0x38] sm:$0xf] %vm1300_vm1, %v1556_v50  ;;  %v1557_v54 = vpack.c.bf16 %v1155_v51, %v1155_v51  ;;  %v1646_v57 = vadd.f32 %v1645_v55, %v1644_v53  ;;  %v1647_v58 = vpop.f32.mrb[38].mxu0 }
 0x145   : > { %v1077_v56 = vpop.f32.mrb[32].mxu1  ;;  %v1648_v62 = vpop.f32.mrb[39].mxu0 }
 0x146   : > { %1316 = vst.msk [vmem:[%s2046_s27 + $0x3c] sm:$0xf] %vm1300_vm1, %v1557_v54  ;;  %v1078_v59 = vadd.f32 %v1077_v56, %v917_v52  ;;  %v1079_v60 = vpop.f32.mrb[33].mxu1  ;;  %v1649_v0 = vadd.f32 %v1648_v62, %v1647_v58  ;;  %v925_v6 = vadd.f32 %v1646_v57, %v2038_v34 }
 0x147   : > { %v1080_v63 = vpop.f32.mrb[34].mxu1 }
 0x148   : > { %v1156_v1 = vmax.f32 %v1078_v59, 0.0  ;;  %v1081_v2 = vadd.f32 %v1080_v63, %v920_v61  ;;  %v1082_v3 = vpop.f32.mrb[35].mxu1  ;;  %v928_v15 = vadd.f32 %v1649_v0, %v2038_v34 }
 0x14a   : > { %v1558_v4 = vpack.c.bf16 %v1156_v1, %v1156_v1  ;;  %v1157_v5 = vmax.f32 %v1081_v2, 0.0  ;;  %v1650_v7 = vpop.f32.mrb[40].mxu0 }
 0x14b   : > { %v1651_v9 = vpop.f32.mrb[41].mxu0 }
 0x14c   : > { %1317 = vst.msk [vmem:[%s2046_s27 + $0x40] sm:$0xf] %vm1300_vm1, %v1558_v4  ;;  %v1559_v8 = vpack.c.bf16 %v1157_v5, %v1157_v5  ;;  %v1652_v11 = vadd.f32 %v1651_v9, %v1650_v7  ;;  %v1653_v12 = vpop.f32.mrb[42].mxu0 }
 0x14d   : > { %v1085_v10 = vpop.f32.mrb[36].mxu1  ;;  %v1654_v16 = vpop.f32.mrb[43].mxu0 }
 0x14e   : > { %1318 = vst.msk [vmem:[%s2046_s27 + $0x44] sm:$0xf] %vm1300_vm1, %v1559_v8  ;;  %v1086_v13 = vadd.f32 %v1085_v10, %v925_v6  ;;  %v1087_v14 = vpop.f32.mrb[37].mxu1  ;;  %v1655_v18 = vadd.f32 %v1654_v16, %v1653_v12  ;;  %v933_v24 = vadd.f32 %v1652_v11, %v2038_v34 }
 0x14f   : > { %v1088_v17 = vpop.f32.mrb[38].mxu1 }
 0x150   : > { %v1158_v19 = vmax.f32 %v1086_v13, 0.0  ;;  %v1089_v20 = vadd.f32 %v1088_v17, %v928_v15  ;;  %v1090_v21 = vpop.f32.mrb[39].mxu1  ;;  %v936_v33 = vadd.f32 %v1655_v18, %v2038_v34 }
 0x152   : > { %v1560_v22 = vpack.c.bf16 %v1158_v19, %v1158_v19  ;;  %v1159_v23 = vmax.f32 %v1089_v20, 0.0  ;;  %v1656_v25 = vpop.f32.mrb[44].mxu0 }
 0x153   : > { %v1657_v27 = vpop.f32.mrb[45].mxu0 }
 0x154   : > { %1319 = vst.msk [vmem:[%s2046_s27 + $0x48] sm:$0xf] %vm1300_vm1, %v1560_v22  ;;  %v1561_v26 = vpack.c.bf16 %v1159_v23, %v1159_v23  ;;  %v1658_v29 = vadd.f32 %v1657_v27, %v1656_v25  ;;  %v1659_v30 = vpop.f32.mrb[46].mxu0 }
 0x155   : > { %v1093_v28 = vpop.f32.mrb[40].mxu1  ;;  %v1660_v35 = vpop.f32.mrb[47].mxu0 }
 0x156   : > { %1320 = vst.msk [vmem:[%s2046_s27 + $0x4c] sm:$0xf] %vm1300_vm1, %v1561_v26  ;;  %v1094_v31 = vadd.f32 %v1093_v28, %v933_v24  ;;  %v1095_v32 = vpop.f32.mrb[41].mxu1  ;;  %v1661_v37 = vadd.f32 %v1660_v35, %v1659_v30  ;;  %v941_v43 = vadd.f32 %v1658_v29, %v2038_v34 }
 0x157   : > { %v1096_v36 = vpop.f32.mrb[42].mxu1 }
 0x158   : > { %v1160_v38 = vmax.f32 %v1094_v31, 0.0  ;;  %v1097_v39 = vadd.f32 %v1096_v36, %v936_v33  ;;  %v1098_v40 = vpop.f32.mrb[43].mxu1  ;;  %v944_v52 = vadd.f32 %v1661_v37, %v2038_v34 }
 0x15a   : > { %v1562_v41 = vpack.c.bf16 %v1160_v38, %v1160_v38  ;;  %v1161_v42 = vmax.f32 %v1097_v39, 0.0  ;;  %v1662_v44 = vpop.f32.mrb[48].mxu0 }
 0x15b   : > { %v1663_v46 = vpop.f32.mrb[49].mxu0 }
 0x15c   : > { %1321 = vst.msk [vmem:[%s2046_s27 + $0x50] sm:$0xf] %vm1300_vm1, %v1562_v41  ;;  %v1563_v45 = vpack.c.bf16 %v1161_v42, %v1161_v42  ;;  %v1664_v48 = vadd.f32 %v1663_v46, %v1662_v44  ;;  %v1665_v49 = vpop.f32.mrb[50].mxu0 }
 0x15d   : > { %v1101_v47 = vpop.f32.mrb[44].mxu1  ;;  %v1666_v53 = vpop.f32.mrb[51].mxu0 }
 0x15e   : > { %1322 = vst.msk [vmem:[%s2046_s27 + $0x54] sm:$0xf] %vm1300_vm1, %v1563_v45  ;;  %v1102_v50 = vadd.f32 %v1101_v47, %v941_v43  ;;  %v1103_v51 = vpop.f32.mrb[45].mxu1  ;;  %v1667_v55 = vadd.f32 %v1666_v53, %v1665_v49  ;;  %v949_v61 = vadd.f32 %v1664_v48, %v2038_v34 }
 0x15f   : > { %v1104_v54 = vpop.f32.mrb[46].mxu1 }
 0x160   : > { %v1162_v56 = vmax.f32 %v1102_v50, 0.0  ;;  %v1105_v57 = vadd.f32 %v1104_v54, %v944_v52  ;;  %v1106_v58 = vpop.f32.mrb[47].mxu1  ;;  %v952_v6 = vadd.f32 %v1667_v55, %v2038_v34 }
 0x162   : > { %v1564_v59 = vpack.c.bf16 %v1162_v56, %v1162_v56  ;;  %v1163_v60 = vmax.f32 %v1105_v57, 0.0  ;;  %v1668_v62 = vpop.f32.mrb[52].mxu0 }
 0x163   : > { %v1669_v0 = vpop.f32.mrb[53].mxu0 }
 0x164   : > { %1323 = vst.msk [vmem:[%s2046_s27 + $0x58] sm:$0xf] %vm1300_vm1, %v1564_v59  ;;  %v1565_v63 = vpack.c.bf16 %v1163_v60, %v1163_v60  ;;  %v1670_v2 = vadd.f32 %v1669_v0, %v1668_v62  ;;  %v1671_v3 = vpop.f32.mrb[54].mxu0 }
 0x165   : > { %v1109_v1 = vpop.f32.mrb[48].mxu1  ;;  %v1672_v7 = vpop.f32.mrb[55].mxu0 }
 0x166   : > { %1324 = vst.msk [vmem:[%s2046_s27 + $0x5c] sm:$0xf] %vm1300_vm1, %v1565_v63  ;;  %v1110_v4 = vadd.f32 %v1109_v1, %v949_v61  ;;  %v1111_v5 = vpop.f32.mrb[49].mxu1  ;;  %v1673_v9 = vadd.f32 %v1672_v7, %v1671_v3  ;;  %v957_v15 = vadd.f32 %v1670_v2, %v2038_v34 }
 0x167   : > { %v1112_v8 = vpop.f32.mrb[50].mxu1 }
 0x168   : > { %v1164_v10 = vmax.f32 %v1110_v4, 0.0  ;;  %v1113_v11 = vadd.f32 %v1112_v8, %v952_v6  ;;  %v1114_v12 = vpop.f32.mrb[51].mxu1  ;;  %v960_v24 = vadd.f32 %v1673_v9, %v2038_v34 }
 0x16a   : > { %v1566_v13 = vpack.c.bf16 %v1164_v10, %v1164_v10  ;;  %v1165_v14 = vmax.f32 %v1113_v11, 0.0  ;;  %v1674_v16 = vpop.f32.mrb[56].mxu0 }
 0x16b   : > { %v1675_v18 = vpop.f32.mrb[57].mxu0 }
 0x16c   : > { %1325 = vst.msk [vmem:[%s2046_s27 + $0x60] sm:$0xf] %vm1300_vm1, %v1566_v13  ;;  %v1567_v17 = vpack.c.bf16 %v1165_v14, %v1165_v14  ;;  %v1676_v20 = vadd.f32 %v1675_v18, %v1674_v16  ;;  %v1677_v21 = vpop.f32.mrb[58].mxu0 }
 0x16d   : > { %v1117_v19 = vpop.f32.mrb[52].mxu1  ;;  %v1678_v25 = vpop.f32.mrb[59].mxu0 }
 0x16e   : > { %1326 = vst.msk [vmem:[%s2046_s27 + $0x64] sm:$0xf] %vm1300_vm1, %v1567_v17  ;;  %v1118_v22 = vadd.f32 %v1117_v19, %v957_v15  ;;  %v1119_v23 = vpop.f32.mrb[53].mxu1  ;;  %v1679_v27 = vadd.f32 %v1678_v25, %v1677_v21  ;;  %v965_v33 = vadd.f32 %v1676_v20, %v2038_v34 }
 0x16f   : > { %v1120_v26 = vpop.f32.mrb[54].mxu1 }
 0x170   : > { %v1166_v28 = vmax.f32 %v1118_v22, 0.0  ;;  %v1121_v29 = vadd.f32 %v1120_v26, %v960_v24  ;;  %v1122_v30 = vpop.f32.mrb[55].mxu1  ;;  %v968_v43 = vadd.f32 %v1679_v27, %v2038_v34 }
 0x172   : > { %v1568_v31 = vpack.c.bf16 %v1166_v28, %v1166_v28  ;;  %v1167_v32 = vmax.f32 %v1121_v29, 0.0  ;;  %v1680_v35 = vpop.f32.mrb[60].mxu0 }
 0x173   : > { %v1681_v37 = vpop.f32.mrb[61].mxu0 }
 0x174   : > { %1327 = vst.msk [vmem:[%s2046_s27 + $0x68] sm:$0xf] %vm1300_vm1, %v1568_v31  ;;  %v1569_v36 = vpack.c.bf16 %v1167_v32, %v1167_v32  ;;  %v1682_v39 = vadd.f32 %v1681_v37, %v1680_v35  ;;  %v1683_v40 = vpop.f32.mrb[62].mxu0 }
 0x175   : > { %v1125_v38 = vpop.f32.mrb[56].mxu1  ;;  %v1684_v44 = vpop.f32.mrb[63].mxu0 }
 0x176   : > { %1328 = vst.msk [vmem:[%s2046_s27 + $0x6c] sm:$0xf] %vm1300_vm1, %v1569_v36  ;;  %v1126_v41 = vadd.f32 %v1125_v38, %v965_v33  ;;  %v1127_v42 = vpop.f32.mrb[57].mxu1  ;;  %v1685_v46 = vadd.f32 %v1684_v44, %v1683_v40  ;;  %v973_v52 = vadd.f32 %v1682_v39, %v2038_v34 }
 0x177   : > { %v1128_v45 = vpop.f32.mrb[58].mxu1 }
 0x178   : > { %v1168_v47 = vmax.f32 %v1126_v41, 0.0  ;;  %v1129_v48 = vadd.f32 %v1128_v45, %v968_v43  ;;  %v1130_v49 = vpop.f32.mrb[59].mxu1  ;;  %v976_v57 = vadd.f32 %v1685_v46, %v2038_v34 }
 0x17a   : > { %v1570_v50 = vpack.c.bf16 %v1168_v47, %v1168_v47  ;;  %v1169_v51 = vmax.f32 %v1129_v48, 0.0 }
 0x17c   : > { %1329 = vst.msk [vmem:[%s2046_s27 + $0x70] sm:$0xf] %vm1300_vm1, %v1570_v50  ;;  %v1571_v53 = vpack.c.bf16 %v1169_v51, %v1169_v51 }
 0x17d   : > { %v1133_v54 = vpop.f32.mrb[60].mxu1 }
 0x17e   : > { %1330 = vst.msk [vmem:[%s2046_s27 + $0x74] sm:$0xf] %vm1300_vm1, %v1571_v53  ;;  %v1134_v55 = vadd.f32 %v1133_v54, %v973_v52  ;;  %v1135_v56 = vpop.f32.mrb[61].mxu1 }
 0x17f   : > { %v1136_v58 = vpop.f32.mrb[62].mxu1 }
 0x180   : > { %v1170_v59 = vmax.f32 %v1134_v55, 0.0  ;;  %v1137_v60 = vadd.f32 %v1136_v58, %v976_v57  ;;  %v1138_v61 = vpop.f32.mrb[63].mxu1 }
 0x182   : > { %v1572_v62 = vpack.c.bf16 %v1170_v59, %v1170_v59  ;;  %v1171_v63 = vmax.f32 %v1137_v60, 0.0 }
 0x184   : > { %1331 = vst.msk [vmem:[%s2046_s27 + $0x78] sm:$0xf] %vm1300_vm1, %v1572_v62  ;;  %v1573_v0 = vpack.c.bf16 %v1171_v63, %v1171_v63 }
 0x186   : > { %1332 = vst.msk [vmem:[%s2046_s27 + $0x7c] sm:$0xf] %vm1300_vm1, %v1573_v0 }
 0x187 PF: > { %s13_s12 = sadd.s32 1, %s1824_s12  }
 0x188   : > { %p10_p4 = scmp.ge.s32.totalorder %s13_s12, 4  }
 0x18a   :  { %12 = sbr.rel (!%p10_p4) target bundleno = 1 (0x1), region = 62 }

// kernel: nikola_forward.13
= control target key start
LH: loop header
LB: loop body
LE: loop exit
PB: predicated region body
PF: predicated region fallthrough
CT: control target
= control target key end

     0   :  { %vm806_vm0 = vcmask 523264   ;;  %vm1498_vm1 = vcmask 519168   ;;  %s2837_s1 = inlined_call_operand.vmem [shape: bf16[576,64], index: 1, kind: input, shape index: {}]   ;;  %s2838_s0 = inlined_call_operand.vmem [shape: bf16[256,576], index: 0, kind: input, shape index: {}]   ;;  %s2839_s2 = inlined_call_operand.vmem [shape: f32[1,64], index: 2, kind: input, shape index: {}]   ;;  %s2840_s3 = inlined_call_operand.vmem [shape: bf16[256,64], index: 3, kind: output, shape index: {}]  }
   0x1   :  { %v2032_v0 = vld [vmem:[%s2837_s1 + $0x40] sm:$0xff]   ;;  %v2034_v2 = vld [vmem:[%s2837_s1 + $0x48] sm:$0xff]   ;;  %v2036_v4 = vld [vmem:[%s2837_s1 + $0x50] sm:$0xff]  }
   0x2   :  { %v2033_v1 = vld [vmem:[%s2837_s1] sm:$0xff]   ;;  %1732 = vmatprep.subr.bf16.mxu0 %v2032_v0  ;;  %2016 = vmatprep.subr.bf16.mxu1 %v2032_v0  ;;  %v2035_v3 = vld [vmem:[%s2837_s1 + $0x8] sm:$0xff]   ;;  %v2037_v5 = vld [vmem:[%s2837_s1 + $0x10] sm:$0xff]  }
   0x3   :  { %1733 = vmatpush3.bf16.msra.mxu0 %v2033_v1  ;;  %2024 = vmatpush3.bf16.msra.mxu1 %v2033_v1  ;;  %v2038_v6 = vld [vmem:[%s2837_s1 + $0x58] sm:$0xff]   ;;  %v2040_v8 = vld [vmem:[%s2837_s1 + $0x60] sm:$0xff]   ;;  %v2042_v10 = vld [vmem:[%s2837_s1 + $0x68] sm:$0xff]  }
   0x4   :  { %1734 = vmatprep.subr.bf16.mxu0 %v2034_v2  ;;  %2017 = vmatprep.subr.bf16.mxu1 %v2034_v2  ;;  %v2039_v7 = vld [vmem:[%s2837_s1 + $0x18] sm:$0xff]   ;;  %v2041_v9 = vld [vmem:[%s2837_s1 + $0x20] sm:$0xff]   ;;  %v2043_v13 = vld [vmem:[%s2837_s1 + $0x28] sm:$0xff]  }
   0x5   :  { %v2050_v11 = vld [vmem:[%s2838_s0 + $0x4] ss:$20 sps:$4 sm:$0xff]   ;;  %v2044_v14 = vld [vmem:[%s2837_s1 + $0x70] sm:$0xff]   ;;  %v2056_v23 = vld [vmem:[%s2837_s1 + $0xc8] sm:$0xff]  }
   0x6   :  { %v2053_v12 = vld [vmem:[%s2838_s0 + $0x1e4] ss:$20 sps:$4 sm:$0xff]   ;;  %887 = vmatprep.mubr.bf16.mxu0 %v2050_v11  ;;  %v2045_v15 = vld [vmem:[%s2837_s1 + $0x30] sm:$0xff]   ;;  %v2059_v24 = vld [vmem:[%s2838_s0 + $0x2c] ss:$20 sps:$4 sm:$0xff]  }
   0x7   :  { %1735 = vmatpush3.bf16.msra.mxu0 %v2035_v3  ;;  %2025 = vmatpush3.bf16.msra.mxu1 %v2035_v3  ;;  %v2046_v16 = vld [vmem:[%s2837_s1 + $0x78] sm:$0xff]   ;;  %v2054_v18 = vld [vmem:[%s2837_s1 + $0xc0] sm:$0xff]   ;;  %v2058_v26 = vld [vmem:[%s2837_s1 + $0x88] sm:$0xff]  }
   0x8   :  { %1736 = vmatprep.subr.bf16.mxu0 %v2036_v4  ;;  %2018 = vmatprep.subr.bf16.mxu1 %v2036_v4  ;;  %v2047_v17 = vld [vmem:[%s2837_s1 + $0x38] sm:$0xff]   ;;  %v2057_v19 = vld [vmem:[%s2837_s1 + $0x100] sm:$0xff]   ;;  %v2065_v28 = vld [vmem:[%s2837_s1 + $0xd0] sm:$0xff]  }
   0x9   :  { %983 = vmatprep.mubr.bf16.mxu1 %v2053_v12  ;;  %v2048_v20 = vld [vmem:[%s2838_s0] ss:$20 sps:$4 sm:$0xff]   ;;  %v2063_v27 = vld [vmem:[%s2838_s0 + $0x28] ss:$20 sps:$4 sm:$0xff]   ;;  %v2073_v36 = vld [vmem:[%s2838_s0 + $0x50] ss:$20 sps:$4 sm:$0xff]  }
   0xa   :  { %v2051_v21 = vld [vmem:[%s2838_s0 + $0x1e0] ss:$20 sps:$4 sm:$0xff]   ;;  %v2064_v29 = vld [vmem:[%s2838_s0 + $0x208] ss:$20 sps:$4 sm:$0xff]   ;;  %v2074_v38 = vld [vmem:[%s2838_s0 + $0x230] ss:$20 sps:$4 sm:$0xff]  }
   0xb   :  { %1737 = vmatpush3.bf16.msra.mxu0 %v2037_v5  ;;  %2026 = vmatpush3.bf16.msra.mxu1 %v2037_v5  ;;  %v2055_v22 = vld [vmem:[%s2837_s1 + $0x80] sm:$0xff]   ;;  %v2066_v30 = vld [vmem:[%s2837_s1 + $0x90] sm:$0xff]   ;;  %v2067_v31 = vld [vmem:[%s2837_s1 + $0xd8] sm:$0xff]  }
   0xc   :  { %1738 = vmatprep.subr.bf16.mxu0 %v2038_v6  ;;  %2019 = vmatprep.subr.bf16.mxu1 %v2038_v6  ;;  %v2061_v25 = vld [vmem:[%s2838_s0 + $0x20c] ss:$20 sps:$4 sm:$0xff]   ;;  %v2069_v32 = vld [vmem:[%s2838_s0 + $0x54] ss:$20 sps:$4 sm:$0xff]   ;;  %v2068_v34 = vld [vmem:[%s2837_s1 + $0x98] sm:$0xff]  }
   0xd   :  { %v2071_v33 = vld [vmem:[%s2838_s0 + $0x234] ss:$20 sps:$4 sm:$0xff]   ;;  %v2075_v37 = vld [vmem:[%s2837_s1 + $0xe0] sm:$0xff]   ;;  %v2079_v41 = vld [vmem:[%s2838_s0 + $0x7c] ss:$20 sps:$4 sm:$0xff]  }
   0xe   :  { %v2088_v35 = vld [vmem:[%s2837_s1 + $0x108] sm:$0xff]   ;;  %v2076_v39 = vld [vmem:[%s2837_s1 + $0xa0] sm:$0xff]   ;;  %v2081_v42 = vld [vmem:[%s2838_s0 + $0x25c] ss:$20 sps:$4 sm:$0xff]  }
   0xf   :  { %1739 = vmatpush3.bf16.msra.mxu0 %v2039_v7  ;;  %2027 = vmatpush3.bf16.msra.mxu1 %v2039_v7  ;;  %v2077_v40 = vld [vmem:[%s2837_s1 + $0xe8] sm:$0xff]   ;;  %v2085_v46 = vld [vmem:[%s2837_s1 + $0xf0] sm:$0xff]   ;;  %v2087_v49 = vld [vmem:[%s2837_s1 + $0xf8] sm:$0xff]  }
  0x10   :  { %1740 = vmatprep.subr.bf16.mxu0 %v2040_v8  ;;  %2020 = vmatprep.subr.bf16.mxu1 %v2040_v8  ;;  %v2078_v43 = vld [vmem:[%s2837_s1 + $0xa8] sm:$0xff]   ;;  %v2108_v47 = vld [vmem:[%s2837_s1 + $0x110] sm:$0xff]   ;;  %v2090_v50 = vld [vmem:[%s2838_s0 + $0xa4] ss:$20 sps:$4 sm:$0xff]  }
  0x11   :  { %v2083_v44 = vld [vmem:[%s2838_s0 + $0x78] ss:$20 sps:$4 sm:$0xff]   ;;  %v2086_v48 = vld [vmem:[%s2837_s1 + $0xb0] sm:$0xff]   ;;  %v2092_v53 = vld [vmem:[%s2838_s0 + $0x8] ss:$20 sps:$4 sm:$0xff]  }
  0x12   :  { %v2084_v45 = vld [vmem:[%s2838_s0 + $0x258] ss:$20 sps:$4 sm:$0xff]   ;;  %v2095_v54 = vld [vmem:[%s2838_s0 + $0xa0] ss:$20 sps:$4 sm:$0xff]   ;;  %v2100_v58 = vld [vmem:[%s2838_s0 + $0xc8] ss:$20 sps:$4 sm:$0xff]  }
  0x13   :  { %1741 = vmatpush3.bf16.msra.mxu0 %v2041_v9  ;;  %2028 = vmatpush3.bf16.msra.mxu1 %v2041_v9  ;;  %v2094_v51 = vld [vmem:[%s2838_s0 + $0xc] ss:$20 sps:$4 sm:$0xff]   ;;  %v2089_v52 = vld [vmem:[%s2837_s1 + $0xb8] sm:$0xff]   ;;  %v2098_v57 = vld [vmem:[%s2838_s0 + $0x34] ss:$20 sps:$4 sm:$0xff]  }
  0x14   :  { %1742 = vmatprep.subr.bf16.mxu0 %v2042_v10  ;;  %2021 = vmatprep.subr.bf16.mxu1 %v2042_v10  ;;  %v2096_v55 = vld [vmem:[%s2838_s0 + $0xcc] ss:$20 sps:$4 sm:$0xff]   ;;  %v2127_v56 = vld [vmem:[%s2837_s1 + $0x118] sm:$0xff]   ;;  %v2101_v59 = vld [vmem:[%s2838_s0 + $0x30] ss:$20 sps:$4 sm:$0xff]  }
  0x15   :  { %v2102_v60 = vld [vmem:[%s2838_s0 + $0xf4] ss:$20 sps:$4 sm:$0xff]   ;;  %v2104_v61 = vld [vmem:[%s2838_s0 + $0x5c] ss:$20 sps:$4 sm:$0xff]   ;;  %v2107_v63 = vld [vmem:[%s2838_s0 + $0x58] ss:$20 sps:$4 sm:$0xff]  }
  0x16   :  { %v2106_v62 = vld [vmem:[%s2838_s0 + $0xf0] ss:$20 sps:$4 sm:$0xff]   ;;  %v2113_v2 = vld [vmem:[%s2838_s0 + $0x118] ss:$20 sps:$4 sm:$0xff]   ;;  %v2114_v3 = vld [vmem:[%s2838_s0 + $0x80] ss:$20 sps:$4 sm:$0xff]  }
  0x17   :  { %1743 = vmatpush3.bf16.msra.mxu0 %v2043_v13  ;;  %2029 = vmatpush3.bf16.msra.mxu1 %v2043_v13  ;;  %v2109_v0 = vld [vmem:[%s2838_s0 + $0x11c] ss:$20 sps:$4 sm:$0xff]   ;;  %v2111_v1 = vld [vmem:[%s2838_s0 + $0x84] ss:$20 sps:$4 sm:$0xff]   ;;  %v2117_v5 = vld [vmem:[%s2838_s0 + $0xac] ss:$20 sps:$4 sm:$0xff]  }
  0x18   :  { %1744 = vmatprep.subr.bf16.mxu0 %v2044_v14  ;;  %2022 = vmatprep.subr.bf16.mxu1 %v2044_v14  ;;  %v2115_v4 = vld [vmem:[%s2838_s0 + $0x144] ss:$20 sps:$4 sm:$0xff]   ;;  %v2119_v6 = vld [vmem:[%s2838_s0 + $0x140] ss:$20 sps:$4 sm:$0xff]   ;;  %v2120_v7 = vld [vmem:[%s2838_s0 + $0xa8] ss:$20 sps:$4 sm:$0xff]  }
  0x19   :  { %v2121_v8 = vld [vmem:[%s2838_s0 + $0x16c] ss:$20 sps:$4 sm:$0xff]   ;;  %v2123_v9 = vld [vmem:[%s2838_s0 + $0xd4] ss:$20 sps:$4 sm:$0xff]   ;;  %v2126_v11 = vld [vmem:[%s2838_s0 + $0xd0] ss:$20 sps:$4 sm:$0xff]  }
  0x1a   :  { %v2125_v10 = vld [vmem:[%s2838_s0 + $0x168] ss:$20 sps:$4 sm:$0xff]   ;;  %v2132_v14 = vld [vmem:[%s2838_s0 + $0x190] ss:$20 sps:$4 sm:$0xff]  }
  0x1b   :  { %1745 = vmatpush3.bf16.msra.mxu0 %v2045_v15  ;;  %2030 = vmatpush3.bf16.msra.mxu1 %v2045_v15  ;;  %v2128_v12 = vld [vmem:[%s2838_s0 + $0x194] ss:$20 sps:$4 sm:$0xff]   ;;  %v2130_v13 = vld [vmem:[%s2838_s0 + $0xfc] ss:$20 sps:$4 sm:$0xff]   ;;  %v2133_v15 = vld [vmem:[%s2838_s0 + $0xf8] ss:$20 sps:$4 sm:$0xff]  }
  0x1c   :  { %1746 = vmatprep.subr.bf16.mxu0 %v2046_v16  ;;  %2023 = vmatprep.subr.bf16.mxu1 %v2046_v16  ;;  %v2134_v16 = vld [vmem:[%s2838_s0 + $0x1bc] ss:$20 sps:$4 sm:$0xff]  }
  0x1f   :  { %1747 = vmatpush3.bf16.msra.mxu0 %v2047_v17  ;;  %2031 = vmatpush3.bf16.msra.mxu1 %v2047_v17  ;;  %v2136_v17 = vld [vmem:[%s2838_s0 + $0x124] ss:$20 sps:$4 sm:$0xff]  }
  0x20   :  { %1844 = vmatprep.subr.bf16.mxu1 %v2054_v18  ;;  %1976 = vmatprep.subr.bf16.mxu0 %v2057_v19  ;;  %v2138_v18 = vld [vmem:[%s2838_s0 + $0x1b8] ss:$20 sps:$4 sm:$0xff]  }
  0x22   :  { %888 = vmatmul.mubr.bf16.vlgmr.msra.gmra.mrb[0].mxu0 %v2048_v20  ;;  %984 = vmatmul.mubr.bf16.vlgmr.msra.gmra.mrb[0].mxu1 %v2051_v21  ;;  %v2140_v20 = vld [vmem:[%s2838_s0 + $0x14c] ss:$20 sps:$4 sm:$0xff]   ;;  %v2142_v21 = vld [vmem:[%s2838_s0 + $0x10] ss:$20 sps:$4 sm:$0xff]  }
  0x23   :  { %1845 = vmatpush3.bf16.msra.mxu1 %v2055_v22  ;;  %1977 = vmatpush3.bf16.msra.mxu0 %v2057_v19  ;;  %v2139_v19 = vld [vmem:[%s2838_s0 + $0x120] ss:$20 sps:$4 sm:$0xff]   ;;  %v2143_v22 = vld [vmem:[%s2838_s0 + $0x148] ss:$20 sps:$4 sm:$0xff]  }
  0x24   :  { %1846 = vmatprep.subr.bf16.mxu1 %v2056_v23  ;;  %895 = vmatprep.mubr.bf16.mxu0 %v2059_v24  ;;  %v2144_v23 = vld [vmem:[%s2838_s0 + $0x38] ss:$20 sps:$4 sm:$0xff]   ;;  %v2145_v24 = vld [vmem:[%s2838_s0 + $0x174] ss:$20 sps:$4 sm:$0xff]  }
  0x25   :  { %991 = vmatprep.mubr.bf16.mxu1 %v2061_v25  ;;  %1978 = vmatprep.subr.bf16.mxu0 %v2088_v35  ;;  %v2147_v25 = vld [vmem:[%s2838_s0 + $0x60] ss:$20 sps:$4 sm:$0xff]  }
  0x27   :  { %1847 = vmatpush3.bf16.msra.mxu1 %v2058_v26  ;;  %1979 = vmatpush3.bf16.msra.mxu0 %v2088_v35  ;;  %v2148_v26 = vld [vmem:[%s2838_s0 + $0x170] ss:$20 sps:$4 sm:$0xff]   ;;  %v2159_v35 = vld [vmem:[%s2838_s0 + $0x128] ss:$20 sps:$4 sm:$0xff]  }
  0x28   :  { %1848 = vmatprep.subr.bf16.mxu1 %v2065_v28  ;;  %1980 = vmatprep.subr.bf16.mxu0 %v2108_v47  ;;  %v2150_v28 = vld [vmem:[%s2838_s0 + $0x19c] ss:$20 sps:$4 sm:$0xff]  }
  0x2a   :  { %896 = vmatmul.mubr.bf16.gmra.mrb[4].mxu0 %v2063_v27  ;;  %992 = vmatmul.mubr.bf16.gmra.mrb[4].mxu1 %v2064_v29  ;;  %v2149_v27 = vld [vmem:[%s2838_s0 + $0x88] ss:$20 sps:$4 sm:$0xff]   ;;  %v2152_v29 = vld [vmem:[%s2838_s0 + $0xb0] ss:$20 sps:$4 sm:$0xff]  }
  0x2b   :  { %1849 = vmatpush3.bf16.msra.mxu1 %v2066_v30  ;;  %903 = vmatprep.mubr.bf16.mxu0 %v2069_v32  ;;  %v2153_v30 = vld [vmem:[%s2838_s0 + $0x198] ss:$20 sps:$4 sm:$0xff]  }
  0x2c   :  { %1850 = vmatprep.subr.bf16.mxu1 %v2067_v31  ;;  %999 = vmatprep.mubr.bf16.mxu1 %v2071_v33  ;;  %v2154_v31 = vld [vmem:[%s2838_s0 + $0xd8] ss:$20 sps:$4 sm:$0xff]   ;;  %v2157_v33 = vld [vmem:[%s2838_s0 + $0x100] ss:$20 sps:$4 sm:$0xff]  }
  0x2d   :  { %1981 = vmatpush3.bf16.msra.mxu0 %v2108_v47  ;;  %v2155_v32 = vld [vmem:[%s2838_s0 + $0x1c4] ss:$20 sps:$4 sm:$0xff]  }
  0x2e   :  { %1982 = vmatprep.subr.bf16.mxu0 %v2127_v56  ;;  %v2174_v47 = vld [vmem:[%s2838_s0 + $0x218] ss:$20 sps:$4 sm:$0xff]  }
  0x2f   :  { %1851 = vmatpush3.bf16.msra.mxu1 %v2068_v34  ;;  %v2158_v34 = vld [vmem:[%s2838_s0 + $0x1c0] ss:$20 sps:$4 sm:$0xff]  }
  0x30   :  { %1852 = vmatprep.subr.bf16.mxu1 %v2075_v37  ;;  %v2162_v37 = vld [vmem:[%s2838_s0 + $0x150] ss:$20 sps:$4 sm:$0xff]  }
  0x31   :  { %1983 = vmatpush3.bf16.msra.mxu0 %v2127_v56 }
  0x32   :  { %904 = vmatmul.mubr.bf16.gmra.mrb[8].mxu0 %v2073_v36  ;;  %1000 = vmatmul.mubr.bf16.gmra.mrb[8].mxu1 %v2074_v38  ;;  %v2160_v36 = vld [vmem:[%s2838_s0 + $0x1ec] ss:$20 sps:$4 sm:$0xff]   ;;  %v2163_v38 = vld [vmem:[%s2838_s0 + $0x1e8] ss:$20 sps:$4 sm:$0xff]  }
  0x33   :  { %1853 = vmatpush3.bf16.msra.mxu1 %v2076_v39  ;;  %911 = vmatprep.mubr.bf16.mxu0 %v2079_v41  ;;  %v2164_v39 = vld [vmem:[%s2838_s0 + $0x178] ss:$20 sps:$4 sm:$0xff]   ;;  %v2167_v41 = vld [vmem:[%s2838_s0 + $0x1a0] ss:$20 sps:$4 sm:$0xff]  }
  0x34   :  { %1854 = vmatprep.subr.bf16.mxu1 %v2077_v40  ;;  %1007 = vmatprep.mubr.bf16.mxu1 %v2081_v42  ;;  %v2165_v40 = vld [vmem:[%s2838_s0 + $0x214] ss:$20 sps:$4 sm:$0xff]   ;;  %v2168_v42 = vld [vmem:[%s2838_s0 + $0x210] ss:$20 sps:$4 sm:$0xff]  }
  0x37   :  { %1855 = vmatpush3.bf16.msra.mxu1 %v2078_v43  ;;  %v2169_v43 = vld [vmem:[%s2838_s0 + $0x1c8] ss:$20 sps:$4 sm:$0xff]  }
  0x38   :  { %1856 = vmatprep.subr.bf16.mxu1 %v2085_v46  ;;  %v2173_v46 = vld [vmem:[%s2838_s0 + $0x238] ss:$20 sps:$4 sm:$0xff]  }
  0x3a   :  { %912 = vmatmul.mubr.bf16.gmra.mrb[12].mxu0 %v2083_v44  ;;  %1008 = vmatmul.mubr.bf16.gmra.mrb[12].mxu1 %v2084_v45  ;;  %v2170_v44 = vld [vmem:[%s2838_s0 + $0x23c] ss:$20 sps:$4 sm:$0xff]  }
  0x3b   :  { %1857 = vmatpush3.bf16.msra.mxu1 %v2086_v48  ;;  %919 = vmatprep.mubr.bf16.mxu0 %v2090_v50  ;;  %v2172_v45 = vld [vmem:[%s2838_s0 + $0x1f0] ss:$20 sps:$4 sm:$0xff]   ;;  %v2178_v50 = vld [vmem:[%s2838_s0 + $0x260] ss:$20 sps:$4 sm:$0xff]  }
  0x3c   :  { %1858 = vmatprep.subr.bf16.mxu1 %v2087_v49  ;;  %1048 = vmatprep.mubr.bf16.mxu1 %v2094_v51  ;;  %v2175_v48 = vld [vmem:[%s2838_s0 + $0x264] ss:$20 sps:$4 sm:$0xff]   ;;  %v2177_v49 = vld [vmem:[%s2838_s0 + $0x240] ss:$20 sps:$4 sm:$0xff]   ;;  %v2179_v51 = vld [vmem:[%s2838_s0 + $0x268] ss:$20 sps:$4 sm:$0xff]  }
  0x3f   :  { %1859 = vmatpush3.bf16.msra.mxu1 %v2089_v52 }
  0x42   :  { %920 = vmatmul.mubr.bf16.gmra.mrb[16].mxu0 %v2095_v54  ;;  %1049 = vmatmul.mubr.bf16.vlgmr.msra.gmra.mrb[16].mxu1 %v2092_v53 }
  0x43   :  { %927 = vmatprep.mubr.bf16.mxu0 %v2096_v55  ;;  %1056 = vmatprep.mubr.bf16.mxu1 %v2098_v57 }
  0x4a   :  { %928 = vmatmul.mubr.bf16.gmra.mrb[20].mxu0 %v2100_v58  ;;  %1057 = vmatmul.mubr.bf16.gmra.mrb[20].mxu1 %v2101_v59 }
  0x4b   :  { %935 = vmatprep.mubr.bf16.mxu0 %v2102_v60  ;;  %1064 = vmatprep.mubr.bf16.mxu1 %v2104_v61 }
  0x52   :  { %936 = vmatmul.mubr.bf16.gmra.mrb[24].mxu0 %v2106_v62  ;;  %1065 = vmatmul.mubr.bf16.gmra.mrb[24].mxu1 %v2107_v63 }
  0x53   :  { %943 = vmatprep.mubr.bf16.mxu0 %v2109_v0  ;;  %1072 = vmatprep.mubr.bf16.mxu1 %v2111_v1 }
  0x5a   :  { %944 = vmatmul.mubr.bf16.gmra.mrb[28].mxu0 %v2113_v2  ;;  %1073 = vmatmul.mubr.bf16.gmra.mrb[28].mxu1 %v2114_v3 }
  0x5b   :  { %951 = vmatprep.mubr.bf16.mxu0 %v2115_v4  ;;  %1080 = vmatprep.mubr.bf16.mxu1 %v2117_v5 }
  0x62   :  { %952 = vmatmul.mubr.bf16.gmra.mrb[32].mxu0 %v2119_v6  ;;  %1081 = vmatmul.mubr.bf16.gmra.mrb[32].mxu1 %v2120_v7 }
  0x63   :  { %959 = vmatprep.mubr.bf16.mxu0 %v2121_v8  ;;  %1088 = vmatprep.mubr.bf16.mxu1 %v2123_v9 }
  0x6a   :  { %960 = vmatmul.mubr.bf16.gmra.mrb[36].mxu0 %v2125_v10  ;;  %1089 = vmatmul.mubr.bf16.gmra.mrb[36].mxu1 %v2126_v11 }
  0x6b   :  { %967 = vmatprep.mubr.bf16.mxu0 %v2128_v12  ;;  %1096 = vmatprep.mubr.bf16.mxu1 %v2130_v13 }
  0x72   :  { %968 = vmatmul.mubr.bf16.gmra.mrb[40].mxu0 %v2132_v14  ;;  %1097 = vmatmul.mubr.bf16.gmra.mrb[40].mxu1 %v2133_v15 }
  0x73   :  { %975 = vmatprep.mubr.bf16.mxu0 %v2134_v16  ;;  %1104 = vmatprep.mubr.bf16.mxu1 %v2136_v17 }
  0x7a   :  { %976 = vmatmul.mubr.bf16.gmra.mrb[44].mxu0 %v2138_v18  ;;  %1105 = vmatmul.mubr.bf16.gmra.mrb[44].mxu1 %v2139_v19 }
  0x7b   :  { %1112 = vmatprep.mubr.bf16.mxu1 %v2140_v20  ;;  %1984 = vmatprep.mubr.msk.bf16.mxu0 %vm806_vm0, %v2142_v21 }
  0x82   :  { %1113 = vmatmul.mubr.bf16.gmra.mrb[48].mxu1 %v2143_v22  ;;  %1985 = vmatmul.mubr.msk.bf16.vlgmr.msra.gmra.mrb[48].mxu0 %vm806_vm0, %v2144_v23 }
  0x83   :  { %1120 = vmatprep.mubr.bf16.mxu1 %v2145_v24  ;;  %1988 = vmatprep.mubr.msk.bf16.mxu0 %vm806_vm0, %v2147_v25 }
  0x8a   :  { %1121 = vmatmul.mubr.bf16.gmra.mrb[52].mxu1 %v2148_v26  ;;  %1989 = vmatmul.mubr.msk.bf16.gmra.mrb[52].mxu0 %vm806_vm0, %v2149_v27 }
  0x8b   :  { %1128 = vmatprep.mubr.bf16.mxu1 %v2150_v28  ;;  %1992 = vmatprep.mubr.msk.bf16.mxu0 %vm806_vm0, %v2152_v29 }
  0x92   :  { %1129 = vmatmul.mubr.bf16.gmra.mrb[56].mxu1 %v2153_v30  ;;  %1993 = vmatmul.mubr.msk.bf16.gmra.mrb[56].mxu0 %vm806_vm0, %v2154_v31 }
  0x93   :  { %1136 = vmatprep.mubr.bf16.mxu1 %v2155_v32  ;;  %1996 = vmatprep.mubr.msk.bf16.mxu0 %vm806_vm0, %v2157_v33 }
  0x9a   :  { %1137 = vmatmul.mubr.bf16.gmra.mrb[60].mxu1 %v2158_v34  ;;  %1997 = vmatmul.mubr.msk.bf16.gmra.mrb[60].mxu0 %vm806_vm0, %v2159_v35 }
  0x9b   :  { %1144 = vmatprep.mubr.bf16.mxu1 %v2160_v36  ;;  %2000 = vmatprep.mubr.msk.bf16.mxu0 %vm806_vm0, %v2162_v37 }
  0xa2   :  { %1145 = vmatmul.mubr.bf16.gmra.mrb[64].mxu1 %v2163_v38  ;;  %2001 = vmatmul.mubr.msk.bf16.gmra.mrb[64].mxu0 %vm806_vm0, %v2164_v39  ;;  %v2583_v38 = vld [vmem:[%s2839_s2] ss:$0 sm:$0xff] }
  0xa3   :  { %1152 = vmatprep.mubr.bf16.mxu1 %v2165_v40  ;;  %2004 = vmatprep.mubr.msk.bf16.mxu0 %vm806_vm0, %v2167_v41 }
  0xaa   :  { %1153 = vmatmul.mubr.bf16.gmra.mrb[68].mxu1 %v2168_v42  ;;  %2005 = vmatmul.mubr.msk.bf16.gmra.mrb[68].mxu0 %vm806_vm0, %v2169_v43 }
  0xab   :  { %1160 = vmatprep.mubr.bf16.mxu1 %v2170_v44  ;;  %2008 = vmatprep.mubr.msk.bf16.mxu0 %vm806_vm0, %v2172_v45 }
  0xb2   :  { %1161 = vmatmul.mubr.bf16.gmra.mrb[72].mxu1 %v2173_v46  ;;  %2009 = vmatmul.mubr.msk.bf16.gmra.mrb[72].mxu0 %vm806_vm0, %v2174_v47 }
  0xb3   :  { %1168 = vmatprep.mubr.bf16.mxu1 %v2175_v48  ;;  %2012 = vmatprep.mubr.msk.bf16.mxu0 %vm806_vm0, %v2177_v49 }
  0xba   :  { %1169 = vmatmul.mubr.bf16.gmra.mrb[76].mxu1 %v2178_v50  ;;  %2013 = vmatmul.mubr.msk.bf16.gmra.mrb[76].mxu0 %vm806_vm0, %v2179_v51 }
  0xf5   :  { %v1820_v52 = vpop.f32.mrb[0].mxu1  ;;  %v1748_v53 = vpop.f32.mrb[0].mxu0 }
  0xf6   :  { %v1821_v54 = vpop.f32.mrb[1].mxu1  ;;  %v1749_v55 = vpop.f32.mrb[1].mxu0 }
  0xf7   :  { %v2564_v56 = vadd.f32 %v1821_v54, %v1820_v52  ;;  %v1823_v57 = vpop.f32.mrb[2].mxu1  ;;  %v1750_v58 = vadd.f32 %v1749_v55, %v1748_v53  ;;  %v1751_v59 = vpop.f32.mrb[2].mxu0 }
  0xf8   :  { %v1824_v60 = vpop.f32.mrb[3].mxu1  ;;  %v1752_v61 = vpop.f32.mrb[3].mxu0 }
  0xf9   :  { %v2566_v62 = vadd.f32 %v1824_v60, %v1823_v57  ;;  %v1753_v63 = vadd.f32 %v1752_v61, %v1751_v59  ;;  %v890_v41 = vadd.f32 %v1750_v58, %v2583_v38 }
  0xfb   :  { %v893_v48 = vadd.f32 %v1753_v63, %v2583_v38 }
  0xfd   :  { %v1826_v0 = vpop.f32.mrb[4].mxu1  ;;  %v1754_v1 = vpop.f32.mrb[4].mxu0 }
  0xfe   :  { %v1827_v2 = vpop.f32.mrb[5].mxu1  ;;  %v1755_v3 = vpop.f32.mrb[5].mxu0 }
  0xff   :  { %v2568_v4 = vadd.f32 %v1827_v2, %v1826_v0  ;;  %v1829_v5 = vpop.f32.mrb[6].mxu1  ;;  %v1756_v6 = vadd.f32 %v1755_v3, %v1754_v1  ;;  %v1757_v7 = vpop.f32.mrb[6].mxu0 }
 0x100   :  { %v1830_v8 = vpop.f32.mrb[7].mxu1  ;;  %v1758_v9 = vpop.f32.mrb[7].mxu0 }
 0x101   :  { %v2570_v10 = vadd.f32 %v1830_v8, %v1829_v5  ;;  %v1759_v11 = vadd.f32 %v1758_v9, %v1757_v7  ;;  %v898_v58 = vadd.f32 %v1756_v6, %v2583_v38 }
 0x103   :  { %v901_v63 = vadd.f32 %v1759_v11, %v2583_v38 }
 0x105   :  { %v1832_v12 = vpop.f32.mrb[8].mxu1  ;;  %v1760_v13 = vpop.f32.mrb[8].mxu0 }
 0x106   :  { %v1833_v14 = vpop.f32.mrb[9].mxu1  ;;  %v1761_v15 = vpop.f32.mrb[9].mxu0 }
 0x107   :  { %v2572_v16 = vadd.f32 %v1833_v14, %v1832_v12  ;;  %v1835_v17 = vpop.f32.mrb[10].mxu1  ;;  %v1762_v18 = vadd.f32 %v1761_v15, %v1760_v13  ;;  %v1763_v19 = vpop.f32.mrb[10].mxu0 }
 0x108   :  { %v1836_v20 = vpop.f32.mrb[11].mxu1  ;;  %v1764_v21 = vpop.f32.mrb[11].mxu0 }
 0x109   :  { %v2574_v22 = vadd.f32 %v1836_v20, %v1835_v17  ;;  %v1765_v23 = vadd.f32 %v1764_v21, %v1763_v19  ;;  %v906_v6 = vadd.f32 %v1762_v18, %v2583_v38 }
 0x10b   :  { %v909_v11 = vadd.f32 %v1765_v23, %v2583_v38 }
 0x10d   :  { %v1838_v24 = vpop.f32.mrb[12].mxu1  ;;  %v1766_v25 = vpop.f32.mrb[12].mxu0 }
 0x10e   :  { %v1839_v26 = vpop.f32.mrb[13].mxu1  ;;  %v1767_v27 = vpop.f32.mrb[13].mxu0 }
 0x10f   :  { %v2576_v28 = vadd.f32 %v1839_v26, %v1838_v24  ;;  %v1841_v29 = vpop.f32.mrb[14].mxu1  ;;  %v1768_v30 = vadd.f32 %v1767_v27, %v1766_v25  ;;  %v1769_v31 = vpop.f32.mrb[14].mxu0 }
 0x110   :  { %v1842_v32 = vpop.f32.mrb[15].mxu1  ;;  %v1770_v33 = vpop.f32.mrb[15].mxu0 }
 0x111   :  { %v2578_v34 = vadd.f32 %v1842_v32, %v1841_v29  ;;  %v1771_v35 = vadd.f32 %v1770_v33, %v1769_v31  ;;  %v914_v18 = vadd.f32 %v1768_v30, %v2583_v38 }
 0x113   :  { %v917_v23 = vadd.f32 %v1771_v35, %v2583_v38 }
 0x115   :  { %v1860_v36 = vpop.f32.mrb[16].mxu1  ;;  %v1772_v37 = vpop.f32.mrb[16].mxu0 }
 0x116   :  { %v1861_v39 = vpop.f32.mrb[17].mxu1  ;;  %v1773_v40 = vpop.f32.mrb[17].mxu0 }
 0x117   :  { %v1862_v42 = vadd.f32 %v1861_v39, %v1860_v36  ;;  %v1863_v43 = vpop.f32.mrb[18].mxu1  ;;  %v1774_v44 = vadd.f32 %v1773_v40, %v1772_v37  ;;  %v1775_v45 = vpop.f32.mrb[18].mxu0 }
 0x118   :  { %v1864_v46 = vpop.f32.mrb[19].mxu1  ;;  %v1776_v47 = vpop.f32.mrb[19].mxu0 }
 0x119   :  { %v1865_v49 = vadd.f32 %v1864_v46, %v1863_v43  ;;  %v1777_v50 = vadd.f32 %v1776_v47, %v1775_v45  ;;  %v2587_v51 = vadd.f32 %v1862_v42, %v890_v41  ;;  %v922_v30 = vadd.f32 %v1774_v44, %v2583_v38 }
 0x11b   :  { %v2589_v52 = vadd.f32 %v1865_v49, %v893_v48  ;;  %v925_v35 = vadd.f32 %v1777_v50, %v2583_v38 }
 0x11d   :  { %v1866_v53 = vpop.f32.mrb[20].mxu1  ;;  %v1778_v54 = vpop.f32.mrb[20].mxu0 }
 0x11e   :  { %v1867_v55 = vpop.f32.mrb[21].mxu1  ;;  %v1779_v57 = vpop.f32.mrb[21].mxu0 }
 0x11f   :  { %v1868_v59 = vadd.f32 %v1867_v55, %v1866_v53  ;;  %v1869_v60 = vpop.f32.mrb[22].mxu1  ;;  %v1780_v61 = vadd.f32 %v1779_v57, %v1778_v54  ;;  %v1781_v0 = vpop.f32.mrb[22].mxu0 }
 0x120   :  { %v1870_v1 = vpop.f32.mrb[23].mxu1  ;;  %v1782_v2 = vpop.f32.mrb[23].mxu0 }
 0x121   :  { %v1871_v3 = vadd.f32 %v1870_v1, %v1869_v60  ;;  %v1783_v5 = vadd.f32 %v1782_v2, %v1781_v0  ;;  %v2593_v7 = vadd.f32 %v1868_v59, %v898_v58  ;;  %v930_v44 = vadd.f32 %v1780_v61, %v2583_v38 }
 0x123   :  { %v2595_v8 = vadd.f32 %v1871_v3, %v901_v63  ;;  %v933_v50 = vadd.f32 %v1783_v5, %v2583_v38 }
 0x125   :  { %v1872_v9 = vpop.f32.mrb[24].mxu1  ;;  %v1784_v12 = vpop.f32.mrb[24].mxu0 }
 0x126   :  { %v1873_v13 = vpop.f32.mrb[25].mxu1  ;;  %v1785_v14 = vpop.f32.mrb[25].mxu0 }
 0x127   :  { %v1874_v15 = vadd.f32 %v1873_v13, %v1872_v9  ;;  %v1875_v17 = vpop.f32.mrb[26].mxu1  ;;  %v1786_v19 = vadd.f32 %v1785_v14, %v1784_v12  ;;  %v1787_v20 = vpop.f32.mrb[26].mxu0 }
 0x128   :  { %v1876_v21 = vpop.f32.mrb[27].mxu1  ;;  %v1788_v24 = vpop.f32.mrb[27].mxu0 }
 0x129   :  { %v1877_v25 = vadd.f32 %v1876_v21, %v1875_v17  ;;  %v1789_v26 = vadd.f32 %v1788_v24, %v1787_v20  ;;  %v2599_v27 = vadd.f32 %v1874_v15, %v906_v6 }
 0x12b   :  { %v2601_v29 = vadd.f32 %v1877_v25, %v909_v11 }
 0x12d   :  { %v1878_v31 = vpop.f32.mrb[28].mxu1  ;;  %v1790_v32 = vpop.f32.mrb[28].mxu0 }
 0x12e   :  { %v1879_v33 = vpop.f32.mrb[29].mxu1  ;;  %v1791_v36 = vpop.f32.mrb[29].mxu0 }
 0x12f   :  { %v1880_v37 = vadd.f32 %v1879_v33, %v1878_v31  ;;  %v1881_v39 = vpop.f32.mrb[30].mxu1  ;;  %v1792_v40 = vadd.f32 %v1791_v36, %v1790_v32  ;;  %v1793_v41 = vpop.f32.mrb[30].mxu0 }
 0x130   :  { %v1882_v42 = vpop.f32.mrb[31].mxu1  ;;  %v1794_v43 = vpop.f32.mrb[31].mxu0 }
 0x131   :  { %v1883_v45 = vadd.f32 %v1882_v42, %v1881_v39  ;;  %v1795_v46 = vadd.f32 %v1794_v43, %v1793_v41  ;;  %v2605_v47 = vadd.f32 %v1880_v37, %v914_v18  ;;  %v938_v39 = vadd.f32 %v1786_v19, %v2583_v38 }
 0x133   :  { %v2607_v48 = vadd.f32 %v1883_v45, %v917_v23 }
 0x135   :  { %v1884_v49 = vpop.f32.mrb[32].mxu1  ;;  %v1796_v53 = vpop.f32.mrb[32].mxu0 }
 0x136   :  { %v1885_v54 = vpop.f32.mrb[33].mxu1  ;;  %v1797_v55 = vpop.f32.mrb[33].mxu0 }
 0x137   :  { %v1886_v57 = vadd.f32 %v1885_v54, %v1884_v49  ;;  %v1887_v58 = vpop.f32.mrb[34].mxu1  ;;  %v1798_v59 = vadd.f32 %v1797_v55, %v1796_v53  ;;  %v1799_v60 = vpop.f32.mrb[34].mxu0  ;;  %v941_v49 = vadd.f32 %v1789_v26, %v2583_v38 }
 0x138   :  { %v1888_v0 = vpop.f32.mrb[35].mxu1  ;;  %v1800_v1 = vpop.f32.mrb[35].mxu0 }
 0x139   :  { %v1889_v2 = vadd.f32 %v1888_v0, %v1887_v58  ;;  %v1801_v63 = vadd.f32 %v1800_v1, %v1799_v60  ;;  %v2611_v3 = vadd.f32 %v1886_v57, %v922_v30  ;;  %v946_v0 = vadd.f32 %v1792_v40, %v2583_v38 }
 0x13b   :  { %v2613_v9 = vadd.f32 %v1889_v2, %v925_v35 }
 0x13d   :  { %v1890_v12 = vpop.f32.mrb[36].mxu1  ;;  %v1802_v13 = vpop.f32.mrb[36].mxu0 }
 0x13e   :  { %v1891_v14 = vpop.f32.mrb[37].mxu1  ;;  %v1803_v6 = vpop.f32.mrb[37].mxu0 }
 0x13f   :  { %v1892_v15 = vadd.f32 %v1891_v14, %v1890_v12  ;;  %v1893_v17 = vpop.f32.mrb[38].mxu1  ;;  %v2616_v20 = vadd.f32 %v1803_v6, %v1802_v13  ;;  %v1805_v21 = vpop.f32.mrb[38].mxu0  ;;  %v949_v14 = vadd.f32 %v1795_v46, %v2583_v38 }
 0x140   :  { %v1894_v24 = vpop.f32.mrb[39].mxu1  ;;  %v1806_v11 = vpop.f32.mrb[39].mxu0 }
 0x141   :  { %v1895_v25 = vadd.f32 %v1894_v24, %v1893_v17  ;;  %v2619_v31 = vadd.f32 %v1806_v11, %v1805_v21  ;;  %v2621_v32 = vadd.f32 %v1892_v15, %v930_v44 }
 0x143   :  { %v2623_v33 = vadd.f32 %v1895_v25, %v933_v50  ;;  %v954_v25 = vadd.f32 %v1798_v59, %v2583_v38 }
 0x145   :  { %v1896_v36 = vpop.f32.mrb[40].mxu1  ;;  %v1808_v18 = vpop.f32.mrb[40].mxu0 }
 0x146   :  { %v1897_v37 = vpop.f32.mrb[41].mxu1  ;;  %v1809_v61 = vpop.f32.mrb[41].mxu0 }
 0x147   :  { %v1898_v41 = vadd.f32 %v1897_v37, %v1896_v36  ;;  %v1899_v42 = vpop.f32.mrb[42].mxu1  ;;  %v2626_v43 = vadd.f32 %v1809_v61, %v1808_v18  ;;  %v1811_v23 = vpop.f32.mrb[42].mxu0  ;;  %v957_v61 = vadd.f32 %v1801_v63, %v2583_v38 }
 0x148   :  { %v1900_v45 = vpop.f32.mrb[43].mxu1  ;;  %v1812_v5 = vpop.f32.mrb[43].mxu0 }
 0x149   :  { %v1901_v53 = vadd.f32 %v1900_v45, %v1899_v42  ;;  %v2629_v54 = vadd.f32 %v1812_v5, %v1811_v23  ;;  %v2631_v55 = vadd.f32 %v1898_v41, %v938_v39 }
 0x14b   :  { %v2633_v30 = vadd.f32 %v1901_v53, %v941_v49 }
 0x14d   :  { %v1902_v57 = vpop.f32.mrb[44].mxu1  ;;  %v1814_v58 = vpop.f32.mrb[44].mxu0 }
 0x14e   :  { %v1903_v60 = vpop.f32.mrb[45].mxu1  ;;  %v1815_v19 = vpop.f32.mrb[45].mxu0 }
 0x14f   :  { %v1904_v1 = vadd.f32 %v1903_v60, %v1902_v57  ;;  %v1905_v35 = vpop.f32.mrb[46].mxu1  ;;  %v2636_v2 = vadd.f32 %v1815_v19, %v1814_v58  ;;  %v1817_v12 = vpop.f32.mrb[46].mxu0 }
 0x150   :  { %v1906_v13 = vpop.f32.mrb[47].mxu1  ;;  %v1818_v26 = vpop.f32.mrb[47].mxu0 }
 0x151   :  { %v1907_v6 = vadd.f32 %v1906_v13, %v1905_v35  ;;  %v2639_v44 = vadd.f32 %v1818_v26, %v1817_v12  ;;  %v2641_v15 = vadd.f32 %v1904_v1, %v946_v0  ;;  %v962_v35 = vadd.f32 %v2616_v20, %v2583_v38 }
 0x153   :  { %v2643_v17 = vadd.f32 %v1907_v6, %v949_v14  ;;  %v965_v6 = vadd.f32 %v2619_v31, %v2583_v38 }
 0x155   :  { %v1908_v21 = vpop.f32.mrb[48].mxu1  ;;  %v1986_v24 = vpop.f32.mrb[48].mxu0 }
 0x156   :  { %v1220_v40 = vadd.f32 %v1986_v24, %v2593_v7  ;;  %v1909_v11 = vpop.f32.mrb[49].mxu1  ;;  %v1211_v50 = vpop.f32.mrb[49].mxu0 }
 0x157   :  { %v1910_v36 = vadd.f32 %v1909_v11, %v1908_v21  ;;  %v1212_v18 = vadd.f32 %v1211_v50, %v2587_v51  ;;  %v1911_v37 = vpop.f32.mrb[50].mxu1  ;;  %v1987_v46 = vpop.f32.mrb[50].mxu0 }
 0x158   :  { %v1340_v39 = vmax.f32 %v1220_v40, 0.0  ;;  %v1223_v41 = vadd.f32 %v1987_v46, %v2595_v8  ;;  %v1912_v42 = vpop.f32.mrb[51].mxu1  ;;  %v1214_v23 = vpop.f32.mrb[51].mxu0 }
 0x159   :  { %v1338_v45 = vmax.f32 %v1212_v18, 0.0  ;;  %v1913_v5 = vadd.f32 %v1912_v42, %v1911_v37  ;;  %v1215_v7 = vadd.f32 %v1214_v23, %v2589_v52  ;;  %v2651_v49 = vadd.f32 %v1910_v36, %v954_v25 }
 0x15a   :  { %v1702_v59 = vpack.c.bf16 %v1340_v39, %v1340_v39  ;;  %v1341_v53 = vmax.f32 %v1223_v41, 0.0  ;;  %v970_v23 = vadd.f32 %v2626_v43, %v2583_v38 }
 0x15b   :  { %v1700_v57 = vpack.c.bf16 %v1338_v45, %v1338_v45  ;;  %v1339_v51 = vmax.f32 %v1215_v7, 0.0  ;;  %v2653_v58 = vadd.f32 %v1913_v5, %v957_v61 }
 0x15c   :  { %1501 = vst.msk [vmem:[%s2840_s3 + $0x8] sm:$0xf] %vm1498_vm1, %v1702_v59  ;;  %v1703_v8 = vpack.c.bf16 %v1341_v53, %v1341_v53  ;;  %v973_v53 = vadd.f32 %v2629_v54, %v2583_v38 }
 0x15d   :  { %1499 = vst.msk [vmem:[%s2840_s3] sm:$0xf] %vm1498_vm1, %v1700_v57  ;;  %v1701_v52 = vpack.c.bf16 %v1339_v51, %v1339_v51  ;;  %v1914_v63 = vpop.f32.mrb[52].mxu1  ;;  %v1990_v60 = vpop.f32.mrb[52].mxu0 }
 0x15e   :  { %1502 = vst.msk [vmem:[%s2840_s3 + $0xc] sm:$0xf] %vm1498_vm1, %v1703_v8  ;;  %v1236_v19 = vadd.f32 %v1990_v60, %v2605_v47  ;;  %v1915_v0 = vpop.f32.mrb[53].mxu1  ;;  %v1227_v1 = vpop.f32.mrb[53].mxu0 }
 0x15f   :  { %1500 = vst.msk [vmem:[%s2840_s3 + $0x4] sm:$0xf] %vm1498_vm1, %v1701_v52  ;;  %v1916_v12 = vadd.f32 %v1915_v0, %v1914_v63  ;;  %v1228_v13 = vadd.f32 %v1227_v1, %v2599_v27  ;;  %v1917_v26 = vpop.f32.mrb[54].mxu1  ;;  %v1991_v14 = vpop.f32.mrb[54].mxu0 }
 0x160   :  { %v1344_v21 = vmax.f32 %v1236_v19, 0.0  ;;  %v1239_v47 = vadd.f32 %v1991_v14, %v2607_v48  ;;  %v1918_v24 = vpop.f32.mrb[55].mxu1  ;;  %v1230_v40 = vpop.f32.mrb[55].mxu0 }
 0x161   :  { %v1342_v11 = vmax.f32 %v1228_v13, 0.0  ;;  %v1919_v20 = vadd.f32 %v1918_v24, %v1917_v26  ;;  %v1231_v50 = vadd.f32 %v1230_v40, %v2601_v29  ;;  %v2679_v25 = vadd.f32 %v1916_v12, %v962_v35 }
 0x162   :  { %v1706_v36 = vpack.c.bf16 %v1344_v21, %v1344_v21  ;;  %v1345_v18 = vmax.f32 %v1239_v47, 0.0 }
 0x163   :  { %v1704_v37 = vpack.c.bf16 %v1342_v11, %v1342_v11  ;;  %v1343_v27 = vmax.f32 %v1231_v50, 0.0  ;;  %v2681_v46 = vadd.f32 %v1919_v20, %v965_v6  ;;  %v978_v6 = vadd.f32 %v2636_v2, %v2583_v38 }
 0x164   :  { %1505 = vst.msk [vmem:[%s2840_s3 + $0x18] sm:$0xf] %vm1498_vm1, %v1706_v36  ;;  %v1707_v48 = vpack.c.bf16 %v1345_v18, %v1345_v18  ;;  %v981_v11 = vadd.f32 %v2639_v44, %v2583_v38 }
 0x165   :  { %1503 = vst.msk [vmem:[%s2840_s3 + $0x10] sm:$0xf] %vm1498_vm1, %v1704_v37  ;;  %v1705_v29 = vpack.c.bf16 %v1343_v27, %v1343_v27  ;;  %v1920_v31 = vpop.f32.mrb[56].mxu1  ;;  %v1994_v61 = vpop.f32.mrb[56].mxu0 }
 0x166   :  { %1506 = vst.msk [vmem:[%s2840_s3 + $0x1c] sm:$0xf] %vm1498_vm1, %v1707_v48  ;;  %v1252_v39 = vadd.f32 %v1994_v61, %v2621_v32  ;;  %v1921_v41 = vpop.f32.mrb[57].mxu1  ;;  %v1243_v42 = vpop.f32.mrb[57].mxu0 }
 0x167   :  { %1504 = vst.msk [vmem:[%s2840_s3 + $0x14] sm:$0xf] %vm1498_vm1, %v1705_v29  ;;  %v1922_v45 = vadd.f32 %v1921_v41, %v1920_v31  ;;  %v1244_v5 = vadd.f32 %v1243_v42, %v2611_v3  ;;  %v1923_v7 = vpop.f32.mrb[58].mxu1  ;;  %v1995_v59 = vpop.f32.mrb[58].mxu0 }
 0x168   :  { %v1348_v57 = vmax.f32 %v1252_v39, 0.0  ;;  %v1255_v32 = vadd.f32 %v1995_v59, %v2623_v33  ;;  %v1924_v51 = vpop.f32.mrb[59].mxu1  ;;  %v1246_v8 = vpop.f32.mrb[59].mxu0 }
 0x169   :  { %v1346_v52 = vmax.f32 %v1244_v5, 0.0  ;;  %v1925_v43 = vadd.f32 %v1924_v51, %v1923_v7  ;;  %v1247_v63 = vadd.f32 %v1246_v8, %v2613_v9  ;;  %v2707_v60 = vadd.f32 %v1922_v45, %v970_v23 }
 0x16a   :  { %v1710_v19 = vpack.c.bf16 %v1348_v57, %v1348_v57  ;;  %v1349_v0 = vmax.f32 %v1255_v32, 0.0  ;;  %v986_v45 = vadd.f32 %v2564_v56, %v2583_v38  ;;  %v989_v57 = vadd.f32 %v2566_v62, %v2583_v38 }
 0x16b   :  { %v1708_v1 = vpack.c.bf16 %v1346_v52, %v1346_v52  ;;  %v1347_v3 = vmax.f32 %v1247_v63, 0.0  ;;  %v2709_v35 = vadd.f32 %v1925_v43, %v973_v53 }
 0x16c   :  { %1509 = vst.msk [vmem:[%s2840_s3 + $0x28] sm:$0xf] %vm1498_vm1, %v1710_v19  ;;  %v1711_v33 = vpack.c.bf16 %v1349_v0, %v1349_v0 }
 0x16d   :  { %1507 = vst.msk [vmem:[%s2840_s3 + $0x20] sm:$0xf] %vm1498_vm1, %v1708_v1  ;;  %v1709_v9 = vpack.c.bf16 %v1347_v3, %v1347_v3  ;;  %v1926_v54 = vpop.f32.mrb[60].mxu1  ;;  %v1998_v12 = vpop.f32.mrb[60].mxu0 }
 0x16e   :  { %1510 = vst.msk [vmem:[%s2840_s3 + $0x2c] sm:$0xf] %vm1498_vm1, %v1711_v33  ;;  %v1268_v13 = vadd.f32 %v1998_v12, %v2641_v15  ;;  %v1927_v26 = vpop.f32.mrb[61].mxu1  ;;  %v1259_v14 = vpop.f32.mrb[61].mxu0 }
 0x16f   :  { %1508 = vst.msk [vmem:[%s2840_s3 + $0x24] sm:$0xf] %vm1498_vm1, %v1709_v9  ;;  %v1928_v21 = vadd.f32 %v1927_v26, %v1926_v54  ;;  %v1260_v47 = vadd.f32 %v1259_v14, %v2631_v55  ;;  %v1929_v24 = vpop.f32.mrb[62].mxu1  ;;  %v1999_v40 = vpop.f32.mrb[62].mxu0 }
 0x170   :  { %v1352_v20 = vmax.f32 %v1268_v13, 0.0  ;;  %v1271_v15 = vadd.f32 %v1999_v40, %v2643_v17  ;;  %v1930_v50 = vpop.f32.mrb[63].mxu1  ;;  %v1262_v36 = vpop.f32.mrb[63].mxu0  ;;  %v994_v13 = vadd.f32 %v2568_v4, %v2583_v38 }
 0x171   :  { %v1350_v18 = vmax.f32 %v1260_v47, 0.0  ;;  %v1931_v2 = vadd.f32 %v1930_v50, %v1929_v24  ;;  %v1263_v37 = vadd.f32 %v1262_v36, %v2633_v30  ;;  %v1139_v27 = vadd.f32 %v1928_v21, %v978_v6 }
 0x172   :  { %v1714_v48 = vpack.c.bf16 %v1352_v20, %v1352_v20  ;;  %v1353_v29 = vmax.f32 %v1271_v15, 0.0  ;;  %v997_v47 = vadd.f32 %v2570_v10, %v2583_v38 }
 0x173   :  { %v1712_v31 = vpack.c.bf16 %v1350_v18, %v1350_v18  ;;  %v1351_v61 = vmax.f32 %v1263_v37, 0.0  ;;  %v1142_v55 = vadd.f32 %v1931_v2, %v981_v11 }
 0x174   :  { %1513 = vst.msk [vmem:[%s2840_s3 + $0x38] sm:$0xf] %vm1498_vm1, %v1714_v48  ;;  %v1715_v44 = vpack.c.bf16 %v1353_v29, %v1353_v29 }
 0x175   :  { %1511 = vst.msk [vmem:[%s2840_s3 + $0x30] sm:$0xf] %vm1498_vm1, %v1712_v31  ;;  %v1713_v17 = vpack.c.bf16 %v1351_v61, %v1351_v61  ;;  %v1932_v39 = vpop.f32.mrb[64].mxu1  ;;  %v2002_v30 = vpop.f32.mrb[64].mxu0 }
 0x176   :  { %1514 = vst.msk [vmem:[%s2840_s3 + $0x3c] sm:$0xf] %vm1498_vm1, %v1715_v44  ;;  %v1284_v41 = vadd.f32 %v2002_v30, %v2679_v25  ;;  %v1933_v42 = vpop.f32.mrb[65].mxu1  ;;  %v1275_v23 = vpop.f32.mrb[65].mxu0  ;;  %v1002_v44 = vadd.f32 %v2572_v16, %v2583_v38 }
 0x177   :  { %1512 = vst.msk [vmem:[%s2840_s3 + $0x34] sm:$0xf] %vm1498_vm1, %v1713_v17  ;;  %v1934_v5 = vadd.f32 %v1933_v42, %v1932_v39  ;;  %v1276_v7 = vadd.f32 %v1275_v23, %v2651_v49  ;;  %v1935_v59 = vpop.f32.mrb[66].mxu1  ;;  %v2003_v53 = vpop.f32.mrb[66].mxu0  ;;  %v1005_v42 = vadd.f32 %v2574_v22, %v2583_v38 }
 0x178   :  { %v1356_v32 = vmax.f32 %v1284_v41, 0.0  ;;  %v1287_v25 = vadd.f32 %v2003_v53, %v2681_v46  ;;  %v1936_v51 = vpop.f32.mrb[67].mxu1  ;;  %v1278_v8 = vpop.f32.mrb[67].mxu0 }
 0x179   :  { %v1354_v52 = vmax.f32 %v1276_v7, 0.0  ;;  %v1937_v56 = vadd.f32 %v1936_v51, %v1935_v59  ;;  %v1279_v43 = vadd.f32 %v1278_v8, %v2653_v58  ;;  %v1147_v63 = vadd.f32 %v1934_v5, %v986_v45 }
 0x17a   :  { %v1718_v19 = vpack.c.bf16 %v1356_v32, %v1356_v32  ;;  %v1357_v0 = vmax.f32 %v1287_v25, 0.0 }
 0x17b   :  { %v1716_v1 = vpack.c.bf16 %v1354_v52, %v1354_v52  ;;  %v1355_v3 = vmax.f32 %v1279_v43, 0.0  ;;  %v1150_v49 = vadd.f32 %v1937_v56, %v989_v57 }
 0x17c   :  { %1517 = vst.msk [vmem:[%s2840_s3 + $0x48] sm:$0xf] %vm1498_vm1, %v1718_v19  ;;  %v1719_v62 = vpack.c.bf16 %v1357_v0, %v1357_v0 }
 0x17d   :  { %1515 = vst.msk [vmem:[%s2840_s3 + $0x40] sm:$0xf] %vm1498_vm1, %v1716_v1  ;;  %v1717_v46 = vpack.c.bf16 %v1355_v3, %v1355_v3  ;;  %v1938_v33 = vpop.f32.mrb[68].mxu1  ;;  %v2006_v58 = vpop.f32.mrb[68].mxu0  ;;  %v1010_v1 = vadd.f32 %v2576_v28, %v2583_v38 }
 0x17e   :  { %1518 = vst.msk [vmem:[%s2840_s3 + $0x4c] sm:$0xf] %vm1498_vm1, %v1719_v62  ;;  %v1300_v9 = vadd.f32 %v2006_v58, %v1139_v27  ;;  %v1939_v54 = vpop.f32.mrb[69].mxu1  ;;  %v1291_v12 = vpop.f32.mrb[69].mxu0 }
 0x17f   :  { %1516 = vst.msk [vmem:[%s2840_s3 + $0x44] sm:$0xf] %vm1498_vm1, %v1717_v46  ;;  %v1940_v26 = vadd.f32 %v1939_v54, %v1938_v33  ;;  %v1292_v14 = vadd.f32 %v1291_v12, %v2707_v60  ;;  %v1941_v6 = vpop.f32.mrb[70].mxu1  ;;  %v2007_v21 = vpop.f32.mrb[70].mxu0  ;;  %v1013_v33 = vadd.f32 %v2578_v34, %v2583_v38 }
 0x180   :  { %v1360_v24 = vmax.f32 %v1300_v9, 0.0  ;;  %v1303_v40 = vadd.f32 %v2007_v21, %v1142_v55  ;;  %v1942_v11 = vpop.f32.mrb[71].mxu1  ;;  %v1294_v20 = vpop.f32.mrb[71].mxu0 }
 0x181   :  { %v1358_v15 = vmax.f32 %v1292_v14, 0.0  ;;  %v1943_v50 = vadd.f32 %v1942_v11, %v1941_v6  ;;  %v1295_v4 = vadd.f32 %v1294_v20, %v2709_v35  ;;  %v1155_v36 = vadd.f32 %v1940_v26, %v994_v13 }
 0x182   :  { %v1722_v18 = vpack.c.bf16 %v1360_v24, %v1360_v24  ;;  %v1361_v2 = vmax.f32 %v1303_v40, 0.0 }
 0x183   :  { %v1720_v37 = vpack.c.bf16 %v1358_v15, %v1358_v15  ;;  %v1359_v27 = vmax.f32 %v1295_v4, 0.0  ;;  %v1158_v48 = vadd.f32 %v1943_v50, %v997_v47 }
 0x184   :  { %1521 = vst.msk [vmem:[%s2840_s3 + $0x58] sm:$0xf] %vm1498_vm1, %v1722_v18  ;;  %v1723_v10 = vpack.c.bf16 %v1361_v2, %v1361_v2 }
 0x185   :  { %1519 = vst.msk [vmem:[%s2840_s3 + $0x50] sm:$0xf] %vm1498_vm1, %v1720_v37  ;;  %v1721_v60 = vpack.c.bf16 %v1359_v27, %v1359_v27  ;;  %v1944_v29 = vpop.f32.mrb[72].mxu1  ;;  %v2010_v35 = vpop.f32.mrb[72].mxu0 }
 0x186   :  { %1522 = vst.msk [vmem:[%s2840_s3 + $0x5c] sm:$0xf] %vm1498_vm1, %v1723_v10  ;;  %v1316_v31 = vadd.f32 %v2010_v35, %v1155_v36  ;;  %v1945_v61 = vpop.f32.mrb[73].mxu1  ;;  %v1307_v55 = vpop.f32.mrb[73].mxu0 }
 0x187   :  { %1520 = vst.msk [vmem:[%s2840_s3 + $0x54] sm:$0xf] %vm1498_vm1, %v1721_v60  ;;  %v1946_v17 = vadd.f32 %v1945_v61, %v1944_v29  ;;  %v1308_v39 = vadd.f32 %v1307_v55, %v1147_v63  ;;  %v1947_v30 = vpop.f32.mrb[74].mxu1  ;;  %v2011_v41 = vpop.f32.mrb[74].mxu0 }
 0x188   :  { %v1364_v23 = vmax.f32 %v1316_v31, 0.0  ;;  %v1319_v45 = vadd.f32 %v2011_v41, %v1158_v48  ;;  %v1948_v5 = vpop.f32.mrb[75].mxu1  ;;  %v1310_v7 = vpop.f32.mrb[75].mxu0 }
 0x189   :  { %v1362_v59 = vmax.f32 %v1308_v39, 0.0  ;;  %v1949_v53 = vadd.f32 %v1948_v5, %v1947_v30  ;;  %v1311_v57 = vadd.f32 %v1310_v7, %v1150_v49  ;;  %v1163_v16 = vadd.f32 %v1946_v17, %v1002_v44 }
 0x18a   :  { %v1726_v32 = vpack.c.bf16 %v1364_v23, %v1364_v23  ;;  %v1365_v25 = vmax.f32 %v1319_v45, 0.0 }
 0x18b   :  { %v1724_v51 = vpack.c.bf16 %v1362_v59, %v1362_v59  ;;  %v1363_v8 = vmax.f32 %v1311_v57, 0.0  ;;  %v1166_v52 = vadd.f32 %v1949_v53, %v1005_v42 }
 0x18c   :  { %1525 = vst.msk [vmem:[%s2840_s3 + $0x68] sm:$0xf] %vm1498_vm1, %v1726_v32  ;;  %v1727_v56 = vpack.c.bf16 %v1365_v25, %v1365_v25 }
 0x18d   :  { %1523 = vst.msk [vmem:[%s2840_s3 + $0x60] sm:$0xf] %vm1498_vm1, %v1724_v51  ;;  %v1725_v22 = vpack.c.bf16 %v1363_v8, %v1363_v8  ;;  %v1950_v43 = vpop.f32.mrb[76].mxu1  ;;  %v2014_v63 = vpop.f32.mrb[76].mxu0 }
 0x18e   :  { %1526 = vst.msk [vmem:[%s2840_s3 + $0x6c] sm:$0xf] %vm1498_vm1, %v1727_v56  ;;  %v1951_v19 = vpop.f32.mrb[77].mxu1  ;;  %v1323_v0 = vpop.f32.mrb[77].mxu0 }
 0x18f   :  { %1524 = vst.msk [vmem:[%s2840_s3 + $0x64] sm:$0xf] %vm1498_vm1, %v1725_v22  ;;  %v1952_v3 = vadd.f32 %v1951_v19, %v1950_v43  ;;  %v1324_v49 = vadd.f32 %v1323_v0, %v1163_v16  ;;  %v1953_v62 = vpop.f32.mrb[78].mxu1  ;;  %v2015_v46 = vpop.f32.mrb[78].mxu0 }
 0x190   :  { %v1954_v58 = vpop.f32.mrb[79].mxu1  ;;  %v1326_v9 = vpop.f32.mrb[79].mxu0 }
 0x191   :  { %v1171_v54 = vadd.f32 %v1952_v3, %v1010_v1  ;;  %v1366_v12 = vmax.f32 %v1324_v49, 0.0  ;;  %v1955_v13 = vadd.f32 %v1954_v58, %v1953_v62  ;;  %v1327_v26 = vadd.f32 %v1326_v9, %v1166_v52 }
 0x193   :  { %v1332_v14 = vadd.f32 %v2014_v63, %v1171_v54  ;;  %v1728_v28 = vpack.c.bf16 %v1366_v12, %v1366_v12  ;;  %v1174_v6 = vadd.f32 %v1955_v13, %v1013_v33  ;;  %v1367_v21 = vmax.f32 %v1327_v26, 0.0 }
 0x195   :  { %v1368_v47 = vmax.f32 %v1332_v14, 0.0  ;;  %1527 = vst.msk [vmem:[%s2840_s3 + $0x70] sm:$0xf] %vm1498_vm1, %v1728_v28  ;;  %v1335_v24 = vadd.f32 %v2015_v46, %v1174_v6  ;;  %v1729_v40 = vpack.c.bf16 %v1367_v21, %v1367_v21 }
 0x197   :  { %v1730_v11 = vpack.c.bf16 %v1368_v47, %v1368_v47  ;;  %v1369_v34 = vmax.f32 %v1335_v24, 0.0  ;;  %1528 = vst.msk [vmem:[%s2840_s3 + $0x74] sm:$0xf] %vm1498_vm1, %v1729_v40 }
 0x199   :  { %1529 = vst.msk [vmem:[%s2840_s3 + $0x78] sm:$0xf] %vm1498_vm1, %v1730_v11  ;;  %v1731_v38 = vpack.c.bf16 %v1369_v34, %v1369_v34 }
 0x19b   :  { %1530 = vst.msk [vmem:[%s2840_s3 + $0x7c] sm:$0xf] %vm1498_vm1, %v1731_v38 }

// kernel: nikola_forward.14
= control target key start
LH: loop header
LB: loop body
LE: loop exit
PB: predicated region body
PF: predicated region fallthrough
CT: control target
= control target key end

     0   :  { %vm7444_vm0 = vmmov 0   ;;  %vm5589_vm1 = vcmask 814080   ;;  %s9112_s1 = inlined_call_operand.vmem [shape: bf16[8064,100], index: 1, kind: input, shape index: {}]   ;;  %s9113_s0 = inlined_call_operand.vmem [shape: bf16[8,8064], index: 0, kind: input, shape index: {}]   ;;  %s9114_s2 = inlined_call_operand.vmem [shape: f32[1,100], index: 2, kind: input, shape index: {}]   ;;  %s9115_s3 = inlined_call_operand.vmem [shape: bf16[8,100], index: 3, kind: output, shape index: {}]  }
   0x1   :  { %v6876_v0 = vld [vmem:[%s9112_s1 + $0x40] sm:$0xff]   ;;  %v6880_v4 = vld [vmem:[%s9112_s1 + $0x48] sm:$0xff]   ;;  %v6884_v8 = vld [vmem:[%s9112_s1 + $0x50] sm:$0xff]  }
   0x2   :  { %v6877_v1 = vld [vmem:[%s9112_s1] sm:$0xff]   ;;  %6163 = vmatprep.subr.bf16.mxu0 %v6876_v0  ;;  %v6881_v5 = vld [vmem:[%s9112_s1 + $0x8] sm:$0xff]   ;;  %v6885_v9 = vld [vmem:[%s9112_s1 + $0x10] sm:$0xff]  }
   0x3   :  { %v6878_v2 = vld [vmem:[%s9112_s1 + $0xc0] sm:$0xff]   ;;  %6164 = vmatpush3.bf16.msra.mxu0 %v6877_v1  ;;  %v6882_v6 = vld [vmem:[%s9112_s1 + $0xc8] sm:$0xff]   ;;  %v6886_v10 = vld [vmem:[%s9112_s1 + $0xd0] sm:$0xff]  }
   0x4   :  { %v6879_v3 = vld [vmem:[%s9112_s1 + $0x80] sm:$0xff]   ;;  %6185 = vmatprep.subr.bf16.mxu1 %v6878_v2  ;;  %6165 = vmatprep.subr.bf16.mxu0 %v6880_v4  ;;  %v6883_v7 = vld [vmem:[%s9112_s1 + $0x88] sm:$0xff]   ;;  %v6887_v11 = vld [vmem:[%s9112_s1 + $0x90] sm:$0xff]  }
   0x5   :  { %6186 = vmatpush3.bf16.msra.mxu1 %v6879_v3  ;;  %v6888_v12 = vld [vmem:[%s9112_s1 + $0x58] sm:$0xff]   ;;  %v6892_v16 = vld [vmem:[%s9112_s1 + $0x60] sm:$0xff]   ;;  %v6896_v20 = vld [vmem:[%s9112_s1 + $0x68] sm:$0xff]  }
   0x6   :  { %6187 = vmatprep.subr.bf16.mxu1 %v6882_v6  ;;  %v6889_v13 = vld [vmem:[%s9112_s1 + $0x18] sm:$0xff]   ;;  %v6893_v17 = vld [vmem:[%s9112_s1 + $0x20] sm:$0xff]   ;;  %v6897_v21 = vld [vmem:[%s9112_s1 + $0x28] sm:$0xff]  }
   0x7   :  { %6166 = vmatpush3.bf16.msra.mxu0 %v6881_v5  ;;  %v6890_v14 = vld [vmem:[%s9112_s1 + $0xd8] sm:$0xff]   ;;  %v6894_v18 = vld [vmem:[%s9112_s1 + $0xe0] sm:$0xff]   ;;  %v6898_v22 = vld [vmem:[%s9112_s1 + $0xe8] sm:$0xff]  }
   0x8   :  { %6167 = vmatprep.subr.bf16.mxu0 %v6884_v8  ;;  %v6891_v15 = vld [vmem:[%s9112_s1 + $0x98] sm:$0xff]   ;;  %v6895_v19 = vld [vmem:[%s9112_s1 + $0xa0] sm:$0xff]   ;;  %v6899_v23 = vld [vmem:[%s9112_s1 + $0xa8] sm:$0xff]  }
   0x9   :  { %6188 = vmatpush3.bf16.msra.mxu1 %v6883_v7  ;;  %v6900_v24 = vld [vmem:[%s9112_s1 + $0x70] sm:$0xff]   ;;  %v6904_v28 = vld [vmem:[%s9112_s1 + $0x78] sm:$0xff]   ;;  %v15_v31 = vld [vmem:[%s9113_s0] sm:$0xff] }
   0xa   :  { %6189 = vmatprep.subr.bf16.mxu1 %v6886_v10  ;;  %v6901_v25 = vld [vmem:[%s9112_s1 + $0x30] sm:$0xff]   ;;  %v6905_v29 = vld [vmem:[%s9112_s1 + $0x38] sm:$0xff]   ;;  %v5596_v32 = vcombine.low %v15_v31, %v15_v31  ;;  %v5597_v33 = vcombine.high %v15_v31, %v15_v31  ;;  %v6910_v35 = vld [vmem:[%s9112_s1 + $0x140] sm:$0xff]  }
   0xb   :  { %6168 = vmatpush3.bf16.msra.mxu0 %v6885_v9  ;;  %v6902_v26 = vld [vmem:[%s9112_s1 + $0xf0] sm:$0xff]   ;;  %v6906_v30 = vld [vmem:[%s9112_s1 + $0xf8] sm:$0xff]   ;;  %v16_v36 = vld [vmem:[%s9113_s0 + $0x8] sm:$0xff] }
   0xc   :  { %6169 = vmatprep.subr.bf16.mxu0 %v6888_v12  ;;  %v6903_v27 = vld [vmem:[%s9112_s1 + $0xb0] sm:$0xff]   ;;  %v6909_v34 = vld [vmem:[%s9112_s1 + $0xb8] sm:$0xff]   ;;  %4339 = vmatprep.mubr.bf16.mxu0 %v5597_v33  ;;  %v5598_v37 = vcombine.low %v16_v36, %v16_v36  ;;  %v5599_v38 = vcombine.high %v16_v36, %v16_v36  ;;  %v6913_v39 = vld [vmem:[%s9112_s1 + $0x100] sm:$0xff]  }
   0xd   :  { %6190 = vmatpush3.bf16.msra.mxu1 %v6887_v11  ;;  %v6914_v40 = vld [vmem:[%s9112_s1 + $0x1c0] sm:$0xff]   ;;  %v6916_v42 = vld [vmem:[%s9112_s1 + $0x148] sm:$0xff]   ;;  %v6920_v46 = vld [vmem:[%s9112_s1 + $0x150] sm:$0xff]  }
   0xe   :  { %6191 = vmatprep.subr.bf16.mxu1 %v6890_v14  ;;  %4379 = vmatprep.mubr.bf16.mxu1 %v5599_v38  ;;  %v6915_v41 = vld [vmem:[%s9112_s1 + $0x180] sm:$0xff]   ;;  %v6917_v43 = vld [vmem:[%s9112_s1 + $0x108] sm:$0xff]   ;;  %v6921_v47 = vld [vmem:[%s9112_s1 + $0x110] sm:$0xff]  }
   0xf   :  { %6170 = vmatpush3.bf16.msra.mxu0 %v6889_v13  ;;  %v6918_v44 = vld [vmem:[%s9112_s1 + $0x1c8] sm:$0xff]   ;;  %v6922_v48 = vld [vmem:[%s9112_s1 + $0x1d0] sm:$0xff]   ;;  %v6924_v50 = vld [vmem:[%s9112_s1 + $0x158] sm:$0xff]  }
  0x10   :  { %6171 = vmatprep.subr.bf16.mxu0 %v6892_v16  ;;  %v6919_v45 = vld [vmem:[%s9112_s1 + $0x188] sm:$0xff]   ;;  %v6923_v49 = vld [vmem:[%s9112_s1 + $0x190] sm:$0xff]   ;;  %v6925_v51 = vld [vmem:[%s9112_s1 + $0x118] sm:$0xff]  }
  0x11   :  { %6192 = vmatpush3.bf16.msra.mxu1 %v6891_v15  ;;  %v6926_v52 = vld [vmem:[%s9112_s1 + $0x1d8] sm:$0xff]   ;;  %v6928_v54 = vld [vmem:[%s9112_s1 + $0x160] sm:$0xff]   ;;  %v6932_v58 = vld [vmem:[%s9112_s1 + $0x168] sm:$0xff]  }
  0x12   :  { %6193 = vmatprep.subr.bf16.mxu1 %v6894_v18  ;;  %v6927_v53 = vld [vmem:[%s9112_s1 + $0x198] sm:$0xff]   ;;  %v6929_v55 = vld [vmem:[%s9112_s1 + $0x120] sm:$0xff]   ;;  %v6933_v59 = vld [vmem:[%s9112_s1 + $0x128] sm:$0xff]  }
  0x13   :  { %6172 = vmatpush3.bf16.msra.mxu0 %v6893_v17  ;;  %v6930_v56 = vld [vmem:[%s9112_s1 + $0x1e0] sm:$0xff]   ;;  %v6934_v60 = vld [vmem:[%s9112_s1 + $0x1e8] sm:$0xff]   ;;  %v6936_v62 = vld [vmem:[%s9112_s1 + $0x170] sm:$0xff]  }
  0x14   :  { %6173 = vmatprep.subr.bf16.mxu0 %v6896_v20  ;;  %v6931_v57 = vld [vmem:[%s9112_s1 + $0x1a0] sm:$0xff]   ;;  %v6935_v61 = vld [vmem:[%s9112_s1 + $0x1a8] sm:$0xff]   ;;  %v6937_v63 = vld [vmem:[%s9112_s1 + $0x130] sm:$0xff]  }
  0x15   :  { %6194 = vmatpush3.bf16.msra.mxu1 %v6895_v19  ;;  %v6938_v0 = vld [vmem:[%s9112_s1 + $0x1f0] sm:$0xff]   ;;  %v6940_v2 = vld [vmem:[%s9112_s1 + $0x178] sm:$0xff]   ;;  %v6946_v9 = vld [vmem:[%s9112_s1 + $0x240] sm:$0xff]  }
  0x16   :  { %6195 = vmatprep.subr.bf16.mxu1 %v6898_v22  ;;  %v6939_v1 = vld [vmem:[%s9112_s1 + $0x1b0] sm:$0xff]   ;;  %v6941_v3 = vld [vmem:[%s9112_s1 + $0x138] sm:$0xff]   ;;  %v6949_v13 = vld [vmem:[%s9112_s1 + $0x200] sm:$0xff]  }
  0x17   :  { %6174 = vmatpush3.bf16.msra.mxu0 %v6897_v21  ;;  %v6942_v4 = vld [vmem:[%s9112_s1 + $0x1f8] sm:$0xff]   ;;  %v17_v5 = vld [vmem:[%s9113_s0 + $0x10] sm:$0xff]  ;;  %v6950_v14 = vld [vmem:[%s9112_s1 + $0x2c0] sm:$0xff]  }
  0x18   :  { %6175 = vmatprep.subr.bf16.mxu0 %v6900_v24  ;;  %v5600_v6 = vcombine.low %v17_v5, %v17_v5  ;;  %v5601_v7 = vcombine.high %v17_v5, %v17_v5  ;;  %v6945_v8 = vld [vmem:[%s9112_s1 + $0x1b8] sm:$0xff]   ;;  %v6951_v15 = vld [vmem:[%s9112_s1 + $0x280] sm:$0xff]   ;;  %v6952_v16 = vld [vmem:[%s9112_s1 + $0x248] sm:$0xff]  }
  0x19   :  { %6196 = vmatpush3.bf16.msra.mxu1 %v6899_v23  ;;  %v18_v10 = vld [vmem:[%s9113_s0 + $0x18] sm:$0xff]  ;;  %v6953_v17 = vld [vmem:[%s9112_s1 + $0x208] sm:$0xff]   ;;  %v6956_v20 = vld [vmem:[%s9112_s1 + $0x250] sm:$0xff]  }
  0x1a   :  { %6197 = vmatprep.subr.bf16.mxu1 %v6902_v26  ;;  %v5602_v11 = vcombine.low %v18_v10, %v18_v10  ;;  %v5603_v12 = vcombine.high %v18_v10, %v18_v10  ;;  %v6954_v18 = vld [vmem:[%s9112_s1 + $0x2c8] sm:$0xff]   ;;  %v6957_v21 = vld [vmem:[%s9112_s1 + $0x210] sm:$0xff]   ;;  %v6960_v24 = vld [vmem:[%s9112_s1 + $0x258] sm:$0xff]  }
  0x1b   :  { %6176 = vmatpush3.bf16.msra.mxu0 %v6901_v25  ;;  %v6955_v19 = vld [vmem:[%s9112_s1 + $0x288] sm:$0xff]   ;;  %v6958_v22 = vld [vmem:[%s9112_s1 + $0x2d0] sm:$0xff]   ;;  %v6961_v25 = vld [vmem:[%s9112_s1 + $0x218] sm:$0xff]  }
  0x1c   :  { %6177 = vmatprep.subr.bf16.mxu0 %v6904_v28  ;;  %v6959_v23 = vld [vmem:[%s9112_s1 + $0x290] sm:$0xff]   ;;  %v6962_v26 = vld [vmem:[%s9112_s1 + $0x2d8] sm:$0xff]   ;;  %v6964_v28 = vld [vmem:[%s9112_s1 + $0x260] sm:$0xff]  }
  0x1d   :  { %6198 = vmatpush3.bf16.msra.mxu1 %v6903_v27  ;;  %v6963_v27 = vld [vmem:[%s9112_s1 + $0x298] sm:$0xff]   ;;  %v6967_v31 = vld [vmem:[%s9112_s1 + $0x2a0] sm:$0xff]   ;;  %v6969_v33 = vld [vmem:[%s9112_s1 + $0x228] sm:$0xff]  }
  0x1e   :  { %6199 = vmatprep.subr.bf16.mxu1 %v6906_v30  ;;  %v6966_v30 = vld [vmem:[%s9112_s1 + $0x2e0] sm:$0xff]   ;;  %v6972_v36 = vld [vmem:[%s9112_s1 + $0x270] sm:$0xff]  }
  0x1f   :  { %6178 = vmatpush3.bf16.msra.mxu0 %v6905_v29  ;;  %v6965_v29 = vld [vmem:[%s9112_s1 + $0x220] sm:$0xff]   ;;  %v6974_v38 = vld [vmem:[%s9112_s1 + $0x2f0] sm:$0xff]  }
  0x20   :  { %6207 = vmatprep.subr.bf16.mxu0 %v6910_v35  ;;  %v6971_v35 = vld [vmem:[%s9112_s1 + $0x2a8] sm:$0xff]   ;;  %v7003_v5 = vld [vmem:[%s9112_s1 + $0x3a0] sm:$0xff]   ;;  %v7008_v10 = vld [vmem:[%s9112_s1 + $0x370] sm:$0xff]  }
  0x21   :  { %6200 = vmatpush3.bf16.msra.mxu1 %v6909_v34  ;;  %v6970_v34 = vld [vmem:[%s9112_s1 + $0x2e8] sm:$0xff]  }
  0x22   :  { %4340 = vmatmul.mubr.bf16.vlgmr.msra.gmra.mrb[0].mxu0 %v5596_v32  ;;  %6229 = vmatprep.subr.bf16.mxu1 %v6914_v40  ;;  %v6968_v32 = vld [vmem:[%s9112_s1 + $0x268] sm:$0xff]   ;;  %v6976_v40 = vld [vmem:[%s9112_s1 + $0x278] sm:$0xff]  }
  0x23   :  { %6208 = vmatpush3.bf16.msra.mxu0 %v6913_v39  ;;  %4419 = vmatprep.mubr.bf16.mxu0 %v5601_v7  ;;  %v6975_v39 = vld [vmem:[%s9112_s1 + $0x2b0] sm:$0xff]   ;;  %v7005_v7 = vld [vmem:[%s9112_s1 + $0x328] sm:$0xff]  }
  0x24   :  { %4380 = vmatmul.mubr.bf16.vlgmr.msra.gmra.mrb[0].mxu1 %v5598_v37  ;;  %6209 = vmatprep.subr.bf16.mxu0 %v6916_v42  ;;  %v6973_v37 = vld [vmem:[%s9112_s1 + $0x230] sm:$0xff]   ;;  %v6978_v42 = vld [vmem:[%s9112_s1 + $0x2f8] sm:$0xff]  }
  0x25   :  { %6230 = vmatpush3.bf16.msra.mxu1 %v6915_v41  ;;  %4459 = vmatprep.mubr.bf16.mxu1 %v5603_v12  ;;  %v6977_v41 = vld [vmem:[%s9112_s1 + $0x238] sm:$0xff]   ;;  %v7010_v12 = vld [vmem:[%s9112_s1 + $0x3f0] sm:$0xff]  }
  0x26   :  { %6231 = vmatprep.subr.bf16.mxu1 %v6918_v44 }
  0x27   :  { %6210 = vmatpush3.bf16.msra.mxu0 %v6917_v43  ;;  %v19_v43 = vld [vmem:[%s9113_s0 + $0x20] sm:$0xff] }
  0x28   :  { %6211 = vmatprep.subr.bf16.mxu0 %v6920_v46  ;;  %v5604_v44 = vcombine.low %v19_v43, %v19_v43  ;;  %v6981_v46 = vld [vmem:[%s9112_s1 + $0x2b8] sm:$0xff]  }
  0x29   :  { %6232 = vmatpush3.bf16.msra.mxu1 %v6919_v45  ;;  %v5605_v45 = vcombine.high %v19_v43, %v19_v43  ;;  %v7039_v43 = vld [vmem:[%s9112_s1 + $0x4a0] sm:$0xff]  }
  0x2a   :  { %6233 = vmatprep.subr.bf16.mxu1 %v6922_v48  ;;  %v20_v48 = vld [vmem:[%s9113_s0 + $0x28] sm:$0xff] }
  0x2b   :  { %6212 = vmatpush3.bf16.msra.mxu0 %v6921_v47  ;;  %v6982_v47 = vld [vmem:[%s9112_s1 + $0x340] sm:$0xff]  }
  0x2c   :  { %6213 = vmatprep.subr.bf16.mxu0 %v6924_v50  ;;  %v5607_v50 = vcombine.high %v20_v48, %v20_v48 }
  0x2d   :  { %6234 = vmatpush3.bf16.msra.mxu1 %v6923_v49  ;;  %v5606_v49 = vcombine.low %v20_v48, %v20_v48  ;;  %v7044_v48 = vld [vmem:[%s9112_s1 + $0x470] sm:$0xff]  }
  0x2e   :  { %6235 = vmatprep.subr.bf16.mxu1 %v6926_v52  ;;  %v6986_v52 = vld [vmem:[%s9112_s1 + $0x3c0] sm:$0xff]  }
  0x2f   :  { %6214 = vmatpush3.bf16.msra.mxu0 %v6925_v51  ;;  %v6985_v51 = vld [vmem:[%s9112_s1 + $0x300] sm:$0xff]  }
  0x30   :  { %6215 = vmatprep.subr.bf16.mxu0 %v6928_v54  ;;  %v6988_v54 = vld [vmem:[%s9112_s1 + $0x348] sm:$0xff]  }
  0x31   :  { %6236 = vmatpush3.bf16.msra.mxu1 %v6927_v53  ;;  %v6987_v53 = vld [vmem:[%s9112_s1 + $0x380] sm:$0xff]  }
  0x32   :  { %6237 = vmatprep.subr.bf16.mxu1 %v6930_v56  ;;  %v6990_v56 = vld [vmem:[%s9112_s1 + $0x3c8] sm:$0xff]  }
  0x33   :  { %6216 = vmatpush3.bf16.msra.mxu0 %v6929_v55  ;;  %v6989_v55 = vld [vmem:[%s9112_s1 + $0x308] sm:$0xff]  }
  0x34   :  { %6217 = vmatprep.subr.bf16.mxu0 %v6932_v58  ;;  %v6992_v58 = vld [vmem:[%s9112_s1 + $0x350] sm:$0xff]  }
  0x35   :  { %6238 = vmatpush3.bf16.msra.mxu1 %v6931_v57  ;;  %v6991_v57 = vld [vmem:[%s9112_s1 + $0x388] sm:$0xff]  }
  0x36   :  { %6239 = vmatprep.subr.bf16.mxu1 %v6934_v60  ;;  %v6994_v60 = vld [vmem:[%s9112_s1 + $0x3d0] sm:$0xff]  }
  0x37   :  { %6218 = vmatpush3.bf16.msra.mxu0 %v6933_v59  ;;  %v6993_v59 = vld [vmem:[%s9112_s1 + $0x310] sm:$0xff]  }
  0x38   :  { %6219 = vmatprep.subr.bf16.mxu0 %v6936_v62  ;;  %v6996_v62 = vld [vmem:[%s9112_s1 + $0x358] sm:$0xff]  }
  0x39   :  { %6240 = vmatpush3.bf16.msra.mxu1 %v6935_v61  ;;  %v6995_v61 = vld [vmem:[%s9112_s1 + $0x390] sm:$0xff]  }
  0x3a   :  { %6241 = vmatprep.subr.bf16.mxu1 %v6938_v0  ;;  %v6998_v0 = vld [vmem:[%s9112_s1 + $0x3d8] sm:$0xff]  }
  0x3b   :  { %6220 = vmatpush3.bf16.msra.mxu0 %v6937_v63  ;;  %v6997_v63 = vld [vmem:[%s9112_s1 + $0x318] sm:$0xff]  }
  0x3c   :  { %6221 = vmatprep.subr.bf16.mxu0 %v6940_v2  ;;  %v7000_v2 = vld [vmem:[%s9112_s1 + $0x360] sm:$0xff]  }
  0x3d   :  { %6242 = vmatpush3.bf16.msra.mxu1 %v6939_v1  ;;  %v6999_v1 = vld [vmem:[%s9112_s1 + $0x398] sm:$0xff]  }
  0x3e   :  { %6243 = vmatprep.subr.bf16.mxu1 %v6942_v4  ;;  %v7002_v4 = vld [vmem:[%s9112_s1 + $0x3e0] sm:$0xff]  }
  0x3f   :  { %6222 = vmatpush3.bf16.msra.mxu0 %v6941_v3  ;;  %v7001_v3 = vld [vmem:[%s9112_s1 + $0x320] sm:$0xff]  }
  0x40   :  { %6251 = vmatprep.subr.bf16.mxu0 %v6946_v9  ;;  %v7007_v9 = vld [vmem:[%s9112_s1 + $0x3a8] sm:$0xff]  }
  0x41   :  { %6244 = vmatpush3.bf16.msra.mxu1 %v6945_v8  ;;  %v7006_v8 = vld [vmem:[%s9112_s1 + $0x3e8] sm:$0xff]  }
  0x42   :  { %4420 = vmatmul.mubr.bf16.vlgmr.msra.gmra.mrb[4].mxu0 %v5600_v6  ;;  %6273 = vmatprep.subr.bf16.mxu1 %v6950_v14  ;;  %v7004_v6 = vld [vmem:[%s9112_s1 + $0x368] sm:$0xff]   ;;  %v7012_v14 = vld [vmem:[%s9112_s1 + $0x378] sm:$0xff]  }
  0x43   :  { %6252 = vmatpush3.bf16.msra.mxu0 %v6949_v13  ;;  %4499 = vmatprep.mubr.bf16.mxu0 %v5605_v45  ;;  %v7011_v13 = vld [vmem:[%s9112_s1 + $0x3b0] sm:$0xff]   ;;  %v7041_v45 = vld [vmem:[%s9112_s1 + $0x428] sm:$0xff]  }
  0x44   :  { %4460 = vmatmul.mubr.bf16.vlgmr.msra.gmra.mrb[4].mxu1 %v5602_v11  ;;  %6253 = vmatprep.subr.bf16.mxu0 %v6952_v16  ;;  %v7009_v11 = vld [vmem:[%s9112_s1 + $0x330] sm:$0xff]   ;;  %v7014_v16 = vld [vmem:[%s9112_s1 + $0x3f8] sm:$0xff]  }
  0x45   :  { %6274 = vmatpush3.bf16.msra.mxu1 %v6951_v15  ;;  %4539 = vmatprep.mubr.bf16.mxu1 %v5607_v50  ;;  %v7013_v15 = vld [vmem:[%s9112_s1 + $0x338] sm:$0xff]   ;;  %v7046_v50 = vld [vmem:[%s9112_s1 + $0x4f0] sm:$0xff]  }
  0x46   :  { %6275 = vmatprep.subr.bf16.mxu1 %v6954_v18 }
  0x47   :  { %6254 = vmatpush3.bf16.msra.mxu0 %v6953_v17  ;;  %v21_v17 = vld [vmem:[%s9113_s0 + $0x30] sm:$0xff] }
  0x48   :  { %6255 = vmatprep.subr.bf16.mxu0 %v6956_v20  ;;  %v5608_v18 = vcombine.low %v21_v17, %v21_v17  ;;  %v7017_v20 = vld [vmem:[%s9112_s1 + $0x3b8] sm:$0xff]  }
  0x49   :  { %6276 = vmatpush3.bf16.msra.mxu1 %v6955_v19  ;;  %v5609_v19 = vcombine.high %v21_v17, %v21_v17  ;;  %v7075_v17 = vld [vmem:[%s9112_s1 + $0x5a0] sm:$0xff]  }
  0x4a   :  { %6277 = vmatprep.subr.bf16.mxu1 %v6958_v22  ;;  %v22_v22 = vld [vmem:[%s9113_s0 + $0x38] sm:$0xff] }
  0x4b   :  { %6256 = vmatpush3.bf16.msra.mxu0 %v6957_v21  ;;  %v7018_v21 = vld [vmem:[%s9112_s1 + $0x440] sm:$0xff]  }
  0x4c   :  { %6257 = vmatprep.subr.bf16.mxu0 %v6960_v24  ;;  %v5611_v24 = vcombine.high %v22_v22, %v22_v22 }
  0x4d   :  { %6278 = vmatpush3.bf16.msra.mxu1 %v6959_v23  ;;  %v5610_v23 = vcombine.low %v22_v22, %v22_v22  ;;  %v7080_v22 = vld [vmem:[%s9112_s1 + $0x570] sm:$0xff]  }
  0x4e   :  { %6279 = vmatprep.subr.bf16.mxu1 %v6962_v26  ;;  %v7022_v26 = vld [vmem:[%s9112_s1 + $0x4c0] sm:$0xff]  }
  0x4f   :  { %6258 = vmatpush3.bf16.msra.mxu0 %v6961_v25  ;;  %v7021_v25 = vld [vmem:[%s9112_s1 + $0x400] sm:$0xff]  }
  0x50   :  { %6259 = vmatprep.subr.bf16.mxu0 %v6964_v28  ;;  %v7024_v28 = vld [vmem:[%s9112_s1 + $0x448] sm:$0xff]  }
  0x51   :  { %6280 = vmatpush3.bf16.msra.mxu1 %v6963_v27  ;;  %v7023_v27 = vld [vmem:[%s9112_s1 + $0x480] sm:$0xff]  }
  0x52   :  { %6281 = vmatprep.subr.bf16.mxu1 %v6966_v30  ;;  %v7026_v30 = vld [vmem:[%s9112_s1 + $0x4c8] sm:$0xff]  }
  0x53   :  { %6260 = vmatpush3.bf16.msra.mxu0 %v6965_v29  ;;  %v7025_v29 = vld [vmem:[%s9112_s1 + $0x408] sm:$0xff]  }
  0x54   :  { %6261 = vmatprep.subr.bf16.mxu0 %v6968_v32  ;;  %v7028_v32 = vld [vmem:[%s9112_s1 + $0x450] sm:$0xff]  }
  0x55   :  { %6282 = vmatpush3.bf16.msra.mxu1 %v6967_v31  ;;  %v7027_v31 = vld [vmem:[%s9112_s1 + $0x488] sm:$0xff]  }
  0x56   :  { %6283 = vmatprep.subr.bf16.mxu1 %v6970_v34  ;;  %v7030_v34 = vld [vmem:[%s9112_s1 + $0x4d0] sm:$0xff]  }
  0x57   :  { %6262 = vmatpush3.bf16.msra.mxu0 %v6969_v33  ;;  %v7029_v33 = vld [vmem:[%s9112_s1 + $0x410] sm:$0xff]  }
  0x58   :  { %6263 = vmatprep.subr.bf16.mxu0 %v6972_v36  ;;  %v7032_v36 = vld [vmem:[%s9112_s1 + $0x458] sm:$0xff]  }
  0x59   :  { %6284 = vmatpush3.bf16.msra.mxu1 %v6971_v35  ;;  %v7031_v35 = vld [vmem:[%s9112_s1 + $0x490] sm:$0xff]  }
  0x5a   :  { %6285 = vmatprep.subr.bf16.mxu1 %v6974_v38  ;;  %v7034_v38 = vld [vmem:[%s9112_s1 + $0x4d8] sm:$0xff]  }
  0x5b   :  { %6264 = vmatpush3.bf16.msra.mxu0 %v6973_v37  ;;  %v7033_v37 = vld [vmem:[%s9112_s1 + $0x418] sm:$0xff]  }
  0x5c   :  { %6265 = vmatprep.subr.bf16.mxu0 %v6976_v40  ;;  %v7036_v40 = vld [vmem:[%s9112_s1 + $0x460] sm:$0xff]  }
  0x5d   :  { %6286 = vmatpush3.bf16.msra.mxu1 %v6975_v39  ;;  %v7035_v39 = vld [vmem:[%s9112_s1 + $0x498] sm:$0xff]  }
  0x5e   :  { %6287 = vmatprep.subr.bf16.mxu1 %v6978_v42  ;;  %v7038_v42 = vld [vmem:[%s9112_s1 + $0x4e0] sm:$0xff]  }
  0x5f   :  { %6266 = vmatpush3.bf16.msra.mxu0 %v6977_v41  ;;  %v7037_v41 = vld [vmem:[%s9112_s1 + $0x420] sm:$0xff]  }
  0x60   :  { %6295 = vmatprep.subr.bf16.mxu0 %v6982_v47  ;;  %v7043_v47 = vld [vmem:[%s9112_s1 + $0x4a8] sm:$0xff]  }
  0x61   :  { %6288 = vmatpush3.bf16.msra.mxu1 %v6981_v46  ;;  %v7042_v46 = vld [vmem:[%s9112_s1 + $0x4e8] sm:$0xff]  }
  0x62   :  { %4500 = vmatmul.mubr.bf16.vlgmr.msra.gmra.mrb[8].mxu0 %v5604_v44  ;;  %6317 = vmatprep.subr.bf16.mxu1 %v6986_v52  ;;  %v7040_v44 = vld [vmem:[%s9112_s1 + $0x468] sm:$0xff]   ;;  %v7048_v52 = vld [vmem:[%s9112_s1 + $0x478] sm:$0xff]  }
  0x63   :  { %6296 = vmatpush3.bf16.msra.mxu0 %v6985_v51  ;;  %4579 = vmatprep.mubr.bf16.mxu0 %v5609_v19  ;;  %v7047_v51 = vld [vmem:[%s9112_s1 + $0x4b0] sm:$0xff]   ;;  %v7077_v19 = vld [vmem:[%s9112_s1 + $0x528] sm:$0xff]  }
  0x64   :  { %4540 = vmatmul.mubr.bf16.vlgmr.msra.gmra.mrb[8].mxu1 %v5606_v49  ;;  %6297 = vmatprep.subr.bf16.mxu0 %v6988_v54  ;;  %v7045_v49 = vld [vmem:[%s9112_s1 + $0x430] sm:$0xff]   ;;  %v7050_v54 = vld [vmem:[%s9112_s1 + $0x4f8] sm:$0xff]  }
  0x65   :  { %6318 = vmatpush3.bf16.msra.mxu1 %v6987_v53  ;;  %4619 = vmatprep.mubr.bf16.mxu1 %v5611_v24  ;;  %v7049_v53 = vld [vmem:[%s9112_s1 + $0x438] sm:$0xff]   ;;  %v7082_v24 = vld [vmem:[%s9112_s1 + $0x5f0] sm:$0xff]  }
  0x66   :  { %6319 = vmatprep.subr.bf16.mxu1 %v6990_v56 }
  0x67   :  { %6298 = vmatpush3.bf16.msra.mxu0 %v6989_v55  ;;  %v23_v55 = vld [vmem:[%s9113_s0 + $0x40] sm:$0xff] }
  0x68   :  { %6299 = vmatprep.subr.bf16.mxu0 %v6992_v58  ;;  %v5612_v56 = vcombine.low %v23_v55, %v23_v55  ;;  %v7053_v58 = vld [vmem:[%s9112_s1 + $0x4b8] sm:$0xff]  }
  0x69   :  { %6320 = vmatpush3.bf16.msra.mxu1 %v6991_v57  ;;  %v5613_v57 = vcombine.high %v23_v55, %v23_v55  ;;  %v7111_v55 = vld [vmem:[%s9112_s1 + $0x6a0] sm:$0xff]  }
  0x6a   :  { %6321 = vmatprep.subr.bf16.mxu1 %v6994_v60  ;;  %v24_v60 = vld [vmem:[%s9113_s0 + $0x48] sm:$0xff] }
  0x6b   :  { %6300 = vmatpush3.bf16.msra.mxu0 %v6993_v59  ;;  %v7054_v59 = vld [vmem:[%s9112_s1 + $0x540] sm:$0xff]  }
  0x6c   :  { %6301 = vmatprep.subr.bf16.mxu0 %v6996_v62  ;;  %v5615_v62 = vcombine.high %v24_v60, %v24_v60 }
  0x6d   :  { %6322 = vmatpush3.bf16.msra.mxu1 %v6995_v61  ;;  %v5614_v61 = vcombine.low %v24_v60, %v24_v60  ;;  %v7116_v60 = vld [vmem:[%s9112_s1 + $0x670] sm:$0xff]  }
  0x6e   :  { %6323 = vmatprep.subr.bf16.mxu1 %v6998_v0  ;;  %v7058_v0 = vld [vmem:[%s9112_s1 + $0x5c0] sm:$0xff]  }
  0x6f   :  { %6302 = vmatpush3.bf16.msra.mxu0 %v6997_v63  ;;  %v7057_v63 = vld [vmem:[%s9112_s1 + $0x500] sm:$0xff]  }
  0x70   :  { %6303 = vmatprep.subr.bf16.mxu0 %v7000_v2  ;;  %v7060_v2 = vld [vmem:[%s9112_s1 + $0x548] sm:$0xff]  }
  0x71   :  { %6324 = vmatpush3.bf16.msra.mxu1 %v6999_v1  ;;  %v7059_v1 = vld [vmem:[%s9112_s1 + $0x580] sm:$0xff]  }
  0x72   :  { %6325 = vmatprep.subr.bf16.mxu1 %v7002_v4  ;;  %v7062_v4 = vld [vmem:[%s9112_s1 + $0x5c8] sm:$0xff]  }
  0x73   :  { %6304 = vmatpush3.bf16.msra.mxu0 %v7001_v3  ;;  %v7061_v3 = vld [vmem:[%s9112_s1 + $0x508] sm:$0xff]  }
  0x74   :  { %6305 = vmatprep.subr.bf16.mxu0 %v7004_v6  ;;  %v7064_v6 = vld [vmem:[%s9112_s1 + $0x550] sm:$0xff]  }
  0x75   :  { %6326 = vmatpush3.bf16.msra.mxu1 %v7003_v5  ;;  %v7063_v5 = vld [vmem:[%s9112_s1 + $0x588] sm:$0xff]  }
  0x76   :  { %6327 = vmatprep.subr.bf16.mxu1 %v7006_v8  ;;  %v7066_v8 = vld [vmem:[%s9112_s1 + $0x5d0] sm:$0xff]  }
  0x77   :  { %6306 = vmatpush3.bf16.msra.mxu0 %v7005_v7  ;;  %v7065_v7 = vld [vmem:[%s9112_s1 + $0x510] sm:$0xff]  }
  0x78   :  { %6307 = vmatprep.subr.bf16.mxu0 %v7008_v10  ;;  %v7068_v10 = vld [vmem:[%s9112_s1 + $0x558] sm:$0xff]  }
  0x79   :  { %6328 = vmatpush3.bf16.msra.mxu1 %v7007_v9  ;;  %v7067_v9 = vld [vmem:[%s9112_s1 + $0x590] sm:$0xff]  }
  0x7a   :  { %6329 = vmatprep.subr.bf16.mxu1 %v7010_v12  ;;  %v7070_v12 = vld [vmem:[%s9112_s1 + $0x5d8] sm:$0xff]  }
  0x7b   :  { %6308 = vmatpush3.bf16.msra.mxu0 %v7009_v11  ;;  %v7069_v11 = vld [vmem:[%s9112_s1 + $0x518] sm:$0xff]  }
  0x7c   :  { %6309 = vmatprep.subr.bf16.mxu0 %v7012_v14  ;;  %v7072_v14 = vld [vmem:[%s9112_s1 + $0x560] sm:$0xff]  }
  0x7d   :  { %6330 = vmatpush3.bf16.msra.mxu1 %v7011_v13  ;;  %v7071_v13 = vld [vmem:[%s9112_s1 + $0x598] sm:$0xff]  }
  0x7e   :  { %6331 = vmatprep.subr.bf16.mxu1 %v7014_v16  ;;  %v7074_v16 = vld [vmem:[%s9112_s1 + $0x5e0] sm:$0xff]  }
  0x7f   :  { %6310 = vmatpush3.bf16.msra.mxu0 %v7013_v15  ;;  %v7073_v15 = vld [vmem:[%s9112_s1 + $0x520] sm:$0xff]  }
  0x80   :  { %6339 = vmatprep.subr.bf16.mxu0 %v7018_v21  ;;  %v7079_v21 = vld [vmem:[%s9112_s1 + $0x5a8] sm:$0xff]  }
  0x81   :  { %6332 = vmatpush3.bf16.msra.mxu1 %v7017_v20  ;;  %v7078_v20 = vld [vmem:[%s9112_s1 + $0x5e8] sm:$0xff]  }
  0x82   :  { %4580 = vmatmul.mubr.bf16.vlgmr.msra.gmra.mrb[12].mxu0 %v5608_v18  ;;  %6361 = vmatprep.subr.bf16.mxu1 %v7022_v26  ;;  %v7076_v18 = vld [vmem:[%s9112_s1 + $0x568] sm:$0xff]   ;;  %v7084_v26 = vld [vmem:[%s9112_s1 + $0x578] sm:$0xff]  }
  0x83   :  { %6340 = vmatpush3.bf16.msra.mxu0 %v7021_v25  ;;  %4659 = vmatprep.mubr.bf16.mxu0 %v5613_v57  ;;  %v7083_v25 = vld [vmem:[%s9112_s1 + $0x5b0] sm:$0xff]   ;;  %v7113_v57 = vld [vmem:[%s9112_s1 + $0x628] sm:$0xff]  }
  0x84   :  { %4620 = vmatmul.mubr.bf16.vlgmr.msra.gmra.mrb[12].mxu1 %v5610_v23  ;;  %6341 = vmatprep.subr.bf16.mxu0 %v7024_v28  ;;  %v7081_v23 = vld [vmem:[%s9112_s1 + $0x530] sm:$0xff]   ;;  %v7086_v28 = vld [vmem:[%s9112_s1 + $0x5f8] sm:$0xff]  }
  0x85   :  { %6362 = vmatpush3.bf16.msra.mxu1 %v7023_v27  ;;  %4699 = vmatprep.mubr.bf16.mxu1 %v5615_v62  ;;  %v7085_v27 = vld [vmem:[%s9112_s1 + $0x538] sm:$0xff]   ;;  %v7118_v62 = vld [vmem:[%s9112_s1 + $0x6f0] sm:$0xff]  }
  0x86   :  { %6363 = vmatprep.subr.bf16.mxu1 %v7026_v30 }
  0x87   :  { %6342 = vmatpush3.bf16.msra.mxu0 %v7025_v29  ;;  %v25_v29 = vld [vmem:[%s9113_s0 + $0x50] sm:$0xff] }
  0x88   :  { %6343 = vmatprep.subr.bf16.mxu0 %v7028_v32  ;;  %v5616_v30 = vcombine.low %v25_v29, %v25_v29  ;;  %v7089_v32 = vld [vmem:[%s9112_s1 + $0x5b8] sm:$0xff]  }
  0x89   :  { %6364 = vmatpush3.bf16.msra.mxu1 %v7027_v31  ;;  %v5617_v31 = vcombine.high %v25_v29, %v25_v29  ;;  %v7146_v29 = vld [vmem:[%s9112_s1 + $0x7e0] sm:$0xff]  }
  0x8a   :  { %6365 = vmatprep.subr.bf16.mxu1 %v7030_v34  ;;  %v26_v34 = vld [vmem:[%s9113_s0 + $0x58] sm:$0xff] }
  0x8b   :  { %6344 = vmatpush3.bf16.msra.mxu0 %v7029_v33  ;;  %v7090_v33 = vld [vmem:[%s9112_s1 + $0x640] sm:$0xff]  }
  0x8c   :  { %6345 = vmatprep.subr.bf16.mxu0 %v7032_v36  ;;  %v5619_v36 = vcombine.high %v26_v34, %v26_v34 }
  0x8d   :  { %6366 = vmatpush3.bf16.msra.mxu1 %v7031_v35  ;;  %v5618_v35 = vcombine.low %v26_v34, %v26_v34 }
  0x8e   :  { %6367 = vmatprep.subr.bf16.mxu1 %v7034_v38  ;;  %v7094_v38 = vld [vmem:[%s9112_s1 + $0x6c0] sm:$0xff]  }
  0x8f   :  { %6346 = vmatpush3.bf16.msra.mxu0 %v7033_v37  ;;  %v7093_v37 = vld [vmem:[%s9112_s1 + $0x600] sm:$0xff]  }
  0x90   :  { %6347 = vmatprep.subr.bf16.mxu0 %v7036_v40  ;;  %v7096_v40 = vld [vmem:[%s9112_s1 + $0x648] sm:$0xff]  }
  0x91   :  { %6368 = vmatpush3.bf16.msra.mxu1 %v7035_v39  ;;  %v7095_v39 = vld [vmem:[%s9112_s1 + $0x680] sm:$0xff]  }
  0x92   :  { %6369 = vmatprep.subr.bf16.mxu1 %v7038_v42  ;;  %v7098_v42 = vld [vmem:[%s9112_s1 + $0x6c8] sm:$0xff]  }
  0x93   :  { %6348 = vmatpush3.bf16.msra.mxu0 %v7037_v41  ;;  %v7097_v41 = vld [vmem:[%s9112_s1 + $0x608] sm:$0xff]  }
  0x94   :  { %6349 = vmatprep.subr.bf16.mxu0 %v7040_v44  ;;  %v7100_v44 = vld [vmem:[%s9112_s1 + $0x650] sm:$0xff]  }
  0x95   :  { %6370 = vmatpush3.bf16.msra.mxu1 %v7039_v43  ;;  %v7099_v43 = vld [vmem:[%s9112_s1 + $0x688] sm:$0xff]  }
  0x96   :  { %6371 = vmatprep.subr.bf16.mxu1 %v7042_v46  ;;  %v7102_v46 = vld [vmem:[%s9112_s1 + $0x6d0] sm:$0xff]  }
  0x97   :  { %6350 = vmatpush3.bf16.msra.mxu0 %v7041_v45  ;;  %v7101_v45 = vld [vmem:[%s9112_s1 + $0x610] sm:$0xff]  }
  0x98   :  { %6351 = vmatprep.subr.bf16.mxu0 %v7044_v48  ;;  %v7104_v48 = vld [vmem:[%s9112_s1 + $0x658] sm:$0xff]  }
  0x99   :  { %6372 = vmatpush3.bf16.msra.mxu1 %v7043_v47  ;;  %v7103_v47 = vld [vmem:[%s9112_s1 + $0x690] sm:$0xff]  }
  0x9a   :  { %6373 = vmatprep.subr.bf16.mxu1 %v7046_v50  ;;  %v7106_v50 = vld [vmem:[%s9112_s1 + $0x6d8] sm:$0xff]  }
  0x9b   :  { %6352 = vmatpush3.bf16.msra.mxu0 %v7045_v49  ;;  %v7105_v49 = vld [vmem:[%s9112_s1 + $0x618] sm:$0xff]  }
  0x9c   :  { %6353 = vmatprep.subr.bf16.mxu0 %v7048_v52  ;;  %v7108_v52 = vld [vmem:[%s9112_s1 + $0x660] sm:$0xff]  }
  0x9d   :  { %6374 = vmatpush3.bf16.msra.mxu1 %v7047_v51  ;;  %v7107_v51 = vld [vmem:[%s9112_s1 + $0x698] sm:$0xff]  }
  0x9e   :  { %6375 = vmatprep.subr.bf16.mxu1 %v7050_v54  ;;  %v7110_v54 = vld [vmem:[%s9112_s1 + $0x6e0] sm:$0xff]  }
  0x9f   :  { %6354 = vmatpush3.bf16.msra.mxu0 %v7049_v53  ;;  %v7109_v53 = vld [vmem:[%s9112_s1 + $0x620] sm:$0xff]  }
  0xa0   :  { %6383 = vmatprep.subr.bf16.mxu0 %v7054_v59  ;;  %v7115_v59 = vld [vmem:[%s9112_s1 + $0x6a8] sm:$0xff]  }
  0xa1   :  { %6376 = vmatpush3.bf16.msra.mxu1 %v7053_v58  ;;  %v7114_v58 = vld [vmem:[%s9112_s1 + $0x6e8] sm:$0xff]  }
  0xa2   :  { %4660 = vmatmul.mubr.bf16.vlgmr.msra.gmra.mrb[16].mxu0 %v5612_v56  ;;  %6405 = vmatprep.subr.bf16.mxu1 %v7058_v0  ;;  %v7112_v56 = vld [vmem:[%s9112_s1 + $0x668] sm:$0xff]   ;;  %v7120_v0 = vld [vmem:[%s9112_s1 + $0x678] sm:$0xff]  }
  0xa3   :  { %6384 = vmatpush3.bf16.msra.mxu0 %v7057_v63  ;;  %4739 = vmatprep.mubr.bf16.mxu0 %v5617_v31  ;;  %v7119_v63 = vld [vmem:[%s9112_s1 + $0x6b0] sm:$0xff]   ;;  %v7147_v31 = vld [vmem:[%s9112_s1 + $0x7a0] sm:$0xff]  }
  0xa4   :  { %4700 = vmatmul.mubr.bf16.vlgmr.msra.gmra.mrb[16].mxu1 %v5614_v61  ;;  %6385 = vmatprep.subr.bf16.mxu0 %v7060_v2  ;;  %v7117_v61 = vld [vmem:[%s9112_s1 + $0x630] sm:$0xff]   ;;  %v7122_v2 = vld [vmem:[%s9112_s1 + $0x6f8] sm:$0xff]  }
  0xa5   :  { %6406 = vmatpush3.bf16.msra.mxu1 %v7059_v1  ;;  %4779 = vmatprep.mubr.bf16.mxu1 %v5619_v36  ;;  %v7121_v1 = vld [vmem:[%s9112_s1 + $0x638] sm:$0xff]  }
  0xa6   :  { %6407 = vmatprep.subr.bf16.mxu1 %v7062_v4 }
  0xa7   :  { %6386 = vmatpush3.bf16.msra.mxu0 %v7061_v3  ;;  %v27_v3 = vld [vmem:[%s9113_s0 + $0x60] sm:$0xff] }
  0xa8   :  { %6387 = vmatprep.subr.bf16.mxu0 %v7064_v6  ;;  %v5620_v4 = vcombine.low %v27_v3, %v27_v3  ;;  %v7125_v6 = vld [vmem:[%s9112_s1 + $0x6b8] sm:$0xff]  }
  0xa9   :  { %6408 = vmatpush3.bf16.msra.mxu1 %v7063_v5  ;;  %v5621_v5 = vcombine.high %v27_v3, %v27_v3  ;;  %v7170_v3 = vld [vmem:[%s9112_s1 + $0x8c8] sm:$0xff]  }
  0xaa   :  { %6409 = vmatprep.subr.bf16.mxu1 %v7066_v8  ;;  %v28_v8 = vld [vmem:[%s9113_s0 + $0x68] sm:$0xff] }
  0xab   :  { %6388 = vmatpush3.bf16.msra.mxu0 %v7065_v7  ;;  %v7126_v7 = vld [vmem:[%s9112_s1 + $0x740] sm:$0xff]  }
  0xac   :  { %6389 = vmatprep.subr.bf16.mxu0 %v7068_v10  ;;  %v5623_v10 = vcombine.high %v28_v8, %v28_v8 }
  0xad   :  { %6410 = vmatpush3.bf16.msra.mxu1 %v7067_v9  ;;  %v5622_v9 = vcombine.low %v28_v8, %v28_v8  ;;  %v7175_v8 = vld [vmem:[%s9112_s1 + $0x890] sm:$0xff]  }
  0xae   :  { %6411 = vmatprep.subr.bf16.mxu1 %v7070_v12  ;;  %v7130_v12 = vld [vmem:[%s9112_s1 + $0x7c0] sm:$0xff]  }
  0xaf   :  { %6390 = vmatpush3.bf16.msra.mxu0 %v7069_v11  ;;  %v7129_v11 = vld [vmem:[%s9112_s1 + $0x700] sm:$0xff]  }
  0xb0   :  { %6391 = vmatprep.subr.bf16.mxu0 %v7072_v14  ;;  %v7132_v14 = vld [vmem:[%s9112_s1 + $0x748] sm:$0xff]  }
  0xb1   :  { %6412 = vmatpush3.bf16.msra.mxu1 %v7071_v13  ;;  %v7131_v13 = vld [vmem:[%s9112_s1 + $0x780] sm:$0xff]  }
  0xb2   :  { %6413 = vmatprep.subr.bf16.mxu1 %v7074_v16  ;;  %v7134_v16 = vld [vmem:[%s9112_s1 + $0x7c8] sm:$0xff]  }
  0xb3   :  { %6392 = vmatpush3.bf16.msra.mxu0 %v7073_v15  ;;  %v7133_v15 = vld [vmem:[%s9112_s1 + $0x708] sm:$0xff]  }
  0xb4   :  { %6393 = vmatprep.subr.bf16.mxu0 %v7076_v18  ;;  %v7136_v18 = vld [vmem:[%s9112_s1 + $0x750] sm:$0xff]  }
  0xb5   :  { %6414 = vmatpush3.bf16.msra.mxu1 %v7075_v17  ;;  %v7135_v17 = vld [vmem:[%s9112_s1 + $0x788] sm:$0xff]  }
  0xb6   :  { %6415 = vmatprep.subr.bf16.mxu1 %v7078_v20  ;;  %v7138_v20 = vld [vmem:[%s9112_s1 + $0x7d0] sm:$0xff]  }
  0xb7   :  { %6394 = vmatpush3.bf16.msra.mxu0 %v7077_v19  ;;  %v7137_v19 = vld [vmem:[%s9112_s1 + $0x710] sm:$0xff]  }
  0xb8   :  { %6395 = vmatprep.subr.bf16.mxu0 %v7080_v22  ;;  %v7140_v22 = vld [vmem:[%s9112_s1 + $0x758] sm:$0xff]  }
  0xb9   :  { %6416 = vmatpush3.bf16.msra.mxu1 %v7079_v21  ;;  %v7139_v21 = vld [vmem:[%s9112_s1 + $0x790] sm:$0xff]  }
  0xba   :  { %6417 = vmatprep.subr.bf16.mxu1 %v7082_v24  ;;  %v7142_v24 = vld [vmem:[%s9112_s1 + $0x7d8] sm:$0xff]  }
  0xbb   :  { %6396 = vmatpush3.bf16.msra.mxu0 %v7081_v23  ;;  %v7141_v23 = vld [vmem:[%s9112_s1 + $0x718] sm:$0xff]  }
  0xbc   :  { %6397 = vmatprep.subr.bf16.mxu0 %v7084_v26  ;;  %v7144_v26 = vld [vmem:[%s9112_s1 + $0x760] sm:$0xff]  }
  0xbd   :  { %6418 = vmatpush3.bf16.msra.mxu1 %v7083_v25  ;;  %v7143_v25 = vld [vmem:[%s9112_s1 + $0x798] sm:$0xff]  }
  0xbe   :  { %6419 = vmatprep.subr.bf16.mxu1 %v7086_v28 }
  0xbf   :  { %6398 = vmatpush3.bf16.msra.mxu0 %v7085_v27  ;;  %v7145_v27 = vld [vmem:[%s9112_s1 + $0x720] sm:$0xff]  }
  0xc0   :  { %6427 = vmatprep.subr.bf16.mxu0 %v7090_v33 }
  0xc1   :  { %6420 = vmatpush3.bf16.msra.mxu1 %v7089_v32  ;;  %v5595_v32 = vld [vmem:[%s9114_s2] ss:$0 sm:$0xff] }
  0xc2   :  { %4740 = vmatmul.mubr.bf16.vlgmr.msra.gmra.mrb[20].mxu0 %v5616_v30  ;;  %6449 = vmatprep.subr.bf16.mxu1 %v7094_v38  ;;  %v7149_v38 = vld [vmem:[%s9112_s1 + $0x728] sm:$0xff]  }
  0xc3   :  { %6428 = vmatpush3.bf16.msra.mxu0 %v7093_v37  ;;  %4819 = vmatprep.mubr.bf16.mxu0 %v5621_v5  ;;  %v7172_v5 = vld [vmem:[%s9112_s1 + $0x850] sm:$0xff]  }
  0xc4   :  { %4780 = vmatmul.mubr.bf16.vlgmr.msra.gmra.mrb[20].mxu1 %v5618_v35  ;;  %6429 = vmatprep.subr.bf16.mxu0 %v7096_v40  ;;  %v7148_v35 = vld [vmem:[%s9112_s1 + $0x768] sm:$0xff]  }
  0xc5   :  { %6450 = vmatpush3.bf16.msra.mxu1 %v7095_v39  ;;  %4859 = vmatprep.mubr.bf16.mxu1 %v5623_v10  ;;  %v7177_v10 = vld [vmem:[%s9112_s1 + $0x818] sm:$0xff]  }
  0xc6   :  { %6451 = vmatprep.subr.bf16.mxu1 %v7098_v42 }
  0xc7   :  { %6430 = vmatpush3.bf16.msra.mxu0 %v7097_v41  ;;  %v7150_v41 = vld [vmem:[%s9112_s1 + $0x7e8] sm:$0xff]  }
  0xc8   :  { %6431 = vmatprep.subr.bf16.mxu0 %v7100_v44 }
  0xc9   :  { %6452 = vmatpush3.bf16.msra.mxu1 %v7099_v43  ;;  %v7151_v43 = vld [vmem:[%s9112_s1 + $0x7a8] sm:$0xff]  }
  0xca   :  { %6453 = vmatprep.subr.bf16.mxu1 %v7102_v46 }
  0xcb   :  { %6432 = vmatpush3.bf16.msra.mxu0 %v7101_v45  ;;  %v7152_v45 = vld [vmem:[%s9112_s1 + $0x770] sm:$0xff]  }
  0xcc   :  { %6433 = vmatprep.subr.bf16.mxu0 %v7104_v48  ;;  %v7153_v48 = vld [vmem:[%s9112_s1 + $0x730] sm:$0xff]  }
  0xcd   :  { %6454 = vmatpush3.bf16.msra.mxu1 %v7103_v47 }
  0xce   :  { %6455 = vmatprep.subr.bf16.mxu1 %v7106_v50  ;;  %v7155_v50 = vld [vmem:[%s9112_s1 + $0x7b0] sm:$0xff]  }
  0xcf   :  { %6434 = vmatpush3.bf16.msra.mxu0 %v7105_v49  ;;  %v7154_v49 = vld [vmem:[%s9112_s1 + $0x7f0] sm:$0xff]  }
  0xd0   :  { %6435 = vmatprep.subr.bf16.mxu0 %v7108_v52  ;;  %v7157_v52 = vld [vmem:[%s9112_s1 + $0x738] sm:$0xff]  }
  0xd1   :  { %6456 = vmatpush3.bf16.msra.mxu1 %v7107_v51  ;;  %v7156_v51 = vld [vmem:[%s9112_s1 + $0x778] sm:$0xff]  }
  0xd2   :  { %6457 = vmatprep.subr.bf16.mxu1 %v7110_v54  ;;  %v29_v54 = vld [vmem:[%s9113_s0 + $0x70] sm:$0xff] }
  0xd3   :  { %6436 = vmatpush3.bf16.msra.mxu0 %v7109_v53  ;;  %v7158_v53 = vld [vmem:[%s9112_s1 + $0x7f8] sm:$0xff]  }
  0xd4   :  { %6437 = vmatprep.subr.bf16.mxu0 %v7112_v56  ;;  %v5625_v56 = vcombine.high %v29_v54, %v29_v54 }
  0xd5   :  { %6458 = vmatpush3.bf16.msra.mxu1 %v7111_v55  ;;  %v5624_v55 = vcombine.low %v29_v54, %v29_v54  ;;  %v7207_v54 = vld [vmem:[%s9112_s1 + $0x988] sm:$0xff]  }
  0xd6   :  { %6459 = vmatprep.subr.bf16.mxu1 %v7114_v58  ;;  %v7162_v58 = vld [vmem:[%s9112_s1 + $0x840] sm:$0xff]  }
  0xd7   :  { %6438 = vmatpush3.bf16.msra.mxu0 %v7113_v57  ;;  %v7161_v57 = vld [vmem:[%s9112_s1 + $0x7b8] sm:$0xff]  }
  0xd8   :  { %6439 = vmatprep.subr.bf16.mxu0 %v7116_v60 }
  0xd9   :  { %6460 = vmatpush3.bf16.msra.mxu1 %v7115_v59  ;;  %v30_v59 = vld [vmem:[%s9113_s0 + $0x78] sm:$0xff] }
  0xda   :  { %6461 = vmatprep.subr.bf16.mxu1 %v7118_v62  ;;  %v5626_v60 = vcombine.low %v30_v59, %v30_v59  ;;  %v7165_v62 = vld [vmem:[%s9112_s1 + $0x800] sm:$0xff]  }
  0xdb   :  { %6440 = vmatpush3.bf16.msra.mxu0 %v7117_v61  ;;  %v5627_v61 = vcombine.high %v30_v59, %v30_v59  ;;  %v7212_v59 = vld [vmem:[%s9112_s1 + $0x958] sm:$0xff]  }
  0xdc   :  { %6441 = vmatprep.subr.bf16.mxu0 %v7120_v0  ;;  %v7167_v0 = vld [vmem:[%s9112_s1 + $0x880] sm:$0xff]  }
  0xdd   :  { %6462 = vmatpush3.bf16.msra.mxu1 %v7119_v63  ;;  %v7166_v63 = vld [vmem:[%s9112_s1 + $0x8c0] sm:$0xff]  }
  0xde   :  { %6463 = vmatprep.subr.bf16.mxu1 %v7122_v2  ;;  %v7169_v2 = vld [vmem:[%s9112_s1 + $0x808] sm:$0xff]  }
  0xdf   :  { %6442 = vmatpush3.bf16.msra.mxu0 %v7121_v1  ;;  %v7168_v1 = vld [vmem:[%s9112_s1 + $0x848] sm:$0xff]  }
  0xe0   :  { %6471 = vmatprep.subr.bf16.mxu0 %v7126_v7  ;;  %v7174_v7 = vld [vmem:[%s9112_s1 + $0x8d0] sm:$0xff]  }
  0xe1   :  { %6464 = vmatpush3.bf16.msra.mxu1 %v7125_v6  ;;  %v7173_v6 = vld [vmem:[%s9112_s1 + $0x810] sm:$0xff]  }
  0xe2   :  { %4820 = vmatmul.mubr.bf16.vlgmr.msra.gmra.mrb[24].mxu0 %v5620_v4  ;;  %6493 = vmatprep.subr.bf16.mxu1 %v7130_v12  ;;  %v7171_v4 = vld [vmem:[%s9112_s1 + $0x888] sm:$0xff]   ;;  %v7179_v12 = vld [vmem:[%s9112_s1 + $0x898] sm:$0xff]  }
  0xe3   :  { %6472 = vmatpush3.bf16.msra.mxu0 %v7129_v11  ;;  %4899 = vmatprep.mubr.bf16.mxu0 %v5625_v56  ;;  %v7178_v11 = vld [vmem:[%s9112_s1 + $0x8d8] sm:$0xff]   ;;  %v7209_v56 = vld [vmem:[%s9112_s1 + $0x910] sm:$0xff]  }
  0xe4   :  { %4860 = vmatmul.mubr.bf16.vlgmr.msra.gmra.mrb[24].mxu1 %v5622_v9  ;;  %6473 = vmatprep.subr.bf16.mxu0 %v7132_v14  ;;  %v7176_v9 = vld [vmem:[%s9112_s1 + $0x858] sm:$0xff]  }
  0xe5   :  { %6494 = vmatpush3.bf16.msra.mxu1 %v7131_v13  ;;  %4939 = vmatprep.mubr.bf16.mxu1 %v5627_v61  ;;  %v7180_v13 = vld [vmem:[%s9112_s1 + $0x860] sm:$0xff]   ;;  %v7214_v61 = vld [vmem:[%s9112_s1 + $0x9d8] sm:$0xff]  }
  0xe6   :  { %6495 = vmatprep.subr.bf16.mxu1 %v7134_v16 }
  0xe7   :  { %6474 = vmatpush3.bf16.msra.mxu0 %v7133_v15  ;;  %v7181_v15 = vld [vmem:[%s9112_s1 + $0x820] sm:$0xff]  }
  0xe8   :  { %6475 = vmatprep.subr.bf16.mxu0 %v7136_v18 }
  0xe9   :  { %6496 = vmatpush3.bf16.msra.mxu1 %v7135_v17  ;;  %v7182_v17 = vld [vmem:[%s9112_s1 + $0x8e0] sm:$0xff]  }
  0xea   :  { %6497 = vmatprep.subr.bf16.mxu1 %v7138_v20  ;;  %v7183_v20 = vld [vmem:[%s9112_s1 + $0x8a0] sm:$0xff]  }
  0xeb   :  { %6476 = vmatpush3.bf16.msra.mxu0 %v7137_v19 }
  0xec   :  { %6477 = vmatprep.subr.bf16.mxu0 %v7140_v22 }
  0xed   :  { %6498 = vmatpush3.bf16.msra.mxu1 %v7139_v21 }
  0xee   :  { %6499 = vmatprep.subr.bf16.mxu1 %v7142_v24 }
  0xef   :  { %6478 = vmatpush3.bf16.msra.mxu0 %v7141_v23  ;;  %v7184_v23 = vld [vmem:[%s9112_s1 + $0x868] sm:$0xff]  }
  0xf0   :  { %6479 = vmatprep.subr.bf16.mxu0 %v7144_v26 }
  0xf1   :  { %6500 = vmatpush3.bf16.msra.mxu1 %v7143_v25  ;;  %v7185_v25 = vld [vmem:[%s9112_s1 + $0x828] sm:$0xff]  }
  0xf2   :  { %6501 = vmatprep.subr.bf16.mxu1 %v7146_v29 }
  0xf3   :  { %6480 = vmatpush3.bf16.msra.mxu0 %v7145_v27 }
  0xf4   :  { %6481 = vmatprep.subr.bf16.mxu0 %v7148_v35  ;;  %v7190_v35 = vld [vmem:[%s9112_s1 + $0x8f0] sm:$0xff]  }
  0xf5   :  { %v6179_v28 = vpop.f32.mrb[0].mxu0  ;;  %6502 = vmatpush3.bf16.msra.mxu1 %v7147_v31 }
  0xf6   :  { %v6180_v30 = vpop.f32.mrb[1].mxu0  ;;  %6503 = vmatprep.subr.bf16.mxu1 %v7150_v41 }
  0xf7   :  { %v6181_v33 = vadd.f32 %v6180_v30, %v6179_v28  ;;  %v6182_v34 = vpop.f32.mrb[2].mxu0  ;;  %v6201_v36 = vpop.f32.mrb[0].mxu1  ;;  %6482 = vmatpush3.bf16.msra.mxu0 %v7149_v38  ;;  %v7186_v28 = vld [vmem:[%s9112_s1 + $0x8e8] sm:$0xff]   ;;  %v7193_v38 = vld [vmem:[%s9112_s1 + $0x838] sm:$0xff]  }
  0xf8   :  { %v6183_v39 = vpop.f32.mrb[3].mxu0  ;;  %v6202_v40 = vpop.f32.mrb[1].mxu1  ;;  %6483 = vmatprep.subr.bf16.mxu0 %v7152_v45  ;;  %v7187_v30 = vld [vmem:[%s9112_s1 + $0x8a8] sm:$0xff]   ;;  %v7189_v34 = vld [vmem:[%s9112_s1 + $0x830] sm:$0xff]  }
  0xf9   :  { %v4342_v37 = vadd.f32 %v6181_v33, %v5595_v32  ;;  %v6203_v42 = vadd.f32 %v6202_v40, %v6201_v36  ;;  %v6204_v44 = vpop.f32.mrb[2].mxu1  ;;  %6504 = vmatpush3.bf16.msra.mxu1 %v7151_v43  ;;  %v7188_v33 = vld [vmem:[%s9112_s1 + $0x870] sm:$0xff]   ;;  %v7194_v39 = vld [vmem:[%s9112_s1 + $0x8f8] sm:$0xff]   ;;  %v31_v40 = vld [vmem:[%s9113_s0 + $0x80] sm:$0xff] }
  0xfa   :  { %v6205_v46 = vpop.f32.mrb[3].mxu1  ;;  %6505 = vmatprep.subr.bf16.mxu1 %v7154_v49  ;;  %v7191_v36 = vld [vmem:[%s9112_s1 + $0x8b0] sm:$0xff]   ;;  %v5628_v41 = vcombine.low %v31_v40, %v31_v40  ;;  %v7197_v43 = vld [vmem:[%s9112_s1 + $0x8b8] sm:$0xff]   ;;  %v7198_v44 = vld [vmem:[%s9112_s1 + $0x940] sm:$0xff]  }
  0xfb   :  { %v8257_v47 = vadd.f32 %v6203_v42, %v4342_v37  ;;  %6484 = vmatpush3.bf16.msra.mxu0 %v7153_v48  ;;  %v7192_v37 = vld [vmem:[%s9112_s1 + $0x878] sm:$0xff]   ;;  %v5629_v42 = vcombine.high %v31_v40, %v31_v40  ;;  %v32_v45 = vld [vmem:[%s9113_s0 + $0x88] sm:$0xff]  ;;  %v7201_v48 = vld [vmem:[%s9112_s1 + $0x900] sm:$0xff]  }
  0xfc   :  { %6485 = vmatprep.subr.bf16.mxu0 %v7156_v51  ;;  %v5630_v46 = vcombine.low %v32_v45, %v32_v45  ;;  %v7202_v49 = vld [vmem:[%s9112_s1 + $0x9c0] sm:$0xff]   ;;  %v7204_v51 = vld [vmem:[%s9112_s1 + $0x948] sm:$0xff]  }
  0xfd   :  { %6506 = vmatpush3.bf16.msra.mxu1 %v7155_v50  ;;  %v7203_v50 = vld [vmem:[%s9112_s1 + $0x980] sm:$0xff]   ;;  %v7243_v40 = vld [vmem:[%s9112_s1 + $0xa88] sm:$0xff]  }
  0xfe   :  { %6507 = vmatprep.subr.bf16.mxu1 %v7158_v53  ;;  %v7206_v53 = vld [vmem:[%s9112_s1 + $0x9c8] sm:$0xff]  }
  0xff   :  { %6486 = vmatpush3.bf16.msra.mxu0 %v7157_v52  ;;  %v7205_v52 = vld [vmem:[%s9112_s1 + $0x908] sm:$0xff]  }
 0x100   :  { %6515 = vmatprep.subr.bf16.mxu0 %v7162_v58  ;;  %v7211_v58 = vld [vmem:[%s9112_s1 + $0x990] sm:$0xff]  }
 0x101   :  { %6508 = vmatpush3.bf16.msra.mxu1 %v7161_v57  ;;  %v7210_v57 = vld [vmem:[%s9112_s1 + $0x9d0] sm:$0xff]  }
 0x102   :  { %4900 = vmatmul.mubr.bf16.vlgmr.msra.gmra.mrb[28].mxu0 %v5624_v55  ;;  %6537 = vmatprep.subr.bf16.mxu1 %v7166_v63  ;;  %v7208_v55 = vld [vmem:[%s9112_s1 + $0x950] sm:$0xff]   ;;  %v7216_v63 = vld [vmem:[%s9112_s1 + $0x960] sm:$0xff]  }
 0x103   :  { %6516 = vmatpush3.bf16.msra.mxu0 %v7165_v62  ;;  %4979 = vmatprep.mubr.bf16.mxu0 %v5629_v42  ;;  %v7215_v62 = vld [vmem:[%s9112_s1 + $0x998] sm:$0xff]   ;;  %v7245_v42 = vld [vmem:[%s9112_s1 + $0xa10] sm:$0xff]  }
 0x104   :  { %4940 = vmatmul.mubr.bf16.vlgmr.msra.gmra.mrb[28].mxu1 %v5626_v60  ;;  %6517 = vmatprep.subr.bf16.mxu0 %v7168_v1  ;;  %v7213_v60 = vld [vmem:[%s9112_s1 + $0x918] sm:$0xff]   ;;  %v7217_v1 = vld [vmem:[%s9112_s1 + $0x920] sm:$0xff]  }
 0x105   :  { %6538 = vmatpush3.bf16.msra.mxu1 %v7167_v0 }
 0x106   :  { %6539 = vmatprep.subr.bf16.mxu1 %v7170_v3  ;;  %v7218_v3 = vld [vmem:[%s9112_s1 + $0x9e0] sm:$0xff]  }
 0x107   :  { %6518 = vmatpush3.bf16.msra.mxu0 %v7169_v2 }
 0x108   :  { %6519 = vmatprep.subr.bf16.mxu0 %v7172_v5 }
 0x109   :  { %6540 = vmatpush3.bf16.msra.mxu1 %v7171_v4 }
 0x10a   :  { %6541 = vmatprep.subr.bf16.mxu1 %v7174_v7 }
 0x10b   :  { %6520 = vmatpush3.bf16.msra.mxu0 %v7173_v6  ;;  %v7219_v6 = vld [vmem:[%s9112_s1 + $0x9a0] sm:$0xff]  }
 0x10c   :  { %6521 = vmatprep.subr.bf16.mxu0 %v7176_v9  ;;  %v7220_v9 = vld [vmem:[%s9112_s1 + $0x968] sm:$0xff]  }
 0x10d   :  { %6542 = vmatpush3.bf16.msra.mxu1 %v7175_v8 }
 0x10e   :  { %6543 = vmatprep.subr.bf16.mxu1 %v7178_v11  ;;  %v7221_v11 = vld [vmem:[%s9112_s1 + $0x928] sm:$0xff]  }
 0x10f   :  { %6522 = vmatpush3.bf16.msra.mxu0 %v7177_v10 }
 0x110   :  { %6523 = vmatprep.subr.bf16.mxu0 %v7180_v13 }
 0x111   :  { %6544 = vmatpush3.bf16.msra.mxu1 %v7179_v12 }
 0x112   :  { %6545 = vmatprep.subr.bf16.mxu1 %v7182_v17 }
 0x113   :  { %6524 = vmatpush3.bf16.msra.mxu0 %v7181_v15 }
 0x114   :  { %6525 = vmatprep.subr.bf16.mxu0 %v7184_v23  ;;  %v7228_v23 = vld [vmem:[%s9112_s1 + $0x978] sm:$0xff]  }
 0x115   :  { %v6223_v14 = vpop.f32.mrb[4].mxu0  ;;  %6546 = vmatpush3.bf16.msra.mxu1 %v7183_v20  ;;  %v7225_v20 = vld [vmem:[%s9112_s1 + $0x930] sm:$0xff]  }
 0x116   :  { %v6224_v16 = vpop.f32.mrb[5].mxu0  ;;  %6547 = vmatprep.subr.bf16.mxu1 %v7186_v28 }
 0x117   :  { %v6225_v18 = vadd.f32 %v6224_v16, %v6223_v14  ;;  %v6226_v19 = vpop.f32.mrb[6].mxu0  ;;  %v6245_v21 = vpop.f32.mrb[4].mxu1  ;;  %6526 = vmatpush3.bf16.msra.mxu0 %v7185_v25  ;;  %v7222_v14 = vld [vmem:[%s9112_s1 + $0x9e8] sm:$0xff]   ;;  %v7230_v25 = vld [vmem:[%s9112_s1 + $0x9f8] sm:$0xff]  }
 0x118   :  { %v6227_v24 = vpop.f32.mrb[7].mxu0  ;;  %v6246_v26 = vpop.f32.mrb[5].mxu1  ;;  %6527 = vmatprep.subr.bf16.mxu0 %v7188_v33  ;;  %v7223_v16 = vld [vmem:[%s9112_s1 + $0x9a8] sm:$0xff]   ;;  %v7224_v19 = vld [vmem:[%s9112_s1 + $0x970] sm:$0xff]  }
 0x119   :  { %v4422_v22 = vadd.f32 %v6225_v18, %v8257_v47  ;;  %v6247_v27 = vadd.f32 %v6246_v26, %v6245_v21  ;;  %v6248_v29 = vpop.f32.mrb[6].mxu1  ;;  %6548 = vmatpush3.bf16.msra.mxu1 %v7187_v30  ;;  %v5631_v47 = vcombine.high %v32_v45, %v32_v45  ;;  %v7226_v21 = vld [vmem:[%s9112_s1 + $0x9f0] sm:$0xff]   ;;  %v7229_v24 = vld [vmem:[%s9112_s1 + $0x938] sm:$0xff]   ;;  %v7234_v30 = vld [vmem:[%s9112_s1 + $0xa40] sm:$0xff]  }
 0x11a   :  { %v6249_v31 = vpop.f32.mrb[7].mxu1  ;;  %6549 = vmatprep.subr.bf16.mxu1 %v7190_v35  ;;  %v33_v26 = vld [vmem:[%s9113_s0 + $0x90] sm:$0xff]  ;;  %v7233_v29 = vld [vmem:[%s9112_s1 + $0x9b8] sm:$0xff]   ;;  %v7238_v35 = vld [vmem:[%s9112_s1 + $0xac0] sm:$0xff]  }
 0x11b   :  { %v8359_v32 = vadd.f32 %v6247_v27, %v4422_v22  ;;  %6528 = vmatpush3.bf16.msra.mxu0 %v7189_v34  ;;  %5019 = vmatprep.mubr.bf16.mxu1 %v5631_v47  ;;  %v7227_v22 = vld [vmem:[%s9112_s1 + $0x9b0] sm:$0xff]   ;;  %v5632_v27 = vcombine.low %v33_v26, %v33_v26  ;;  %v5633_v28 = vcombine.high %v33_v26, %v33_v26  ;;  %v34_v31 = vld [vmem:[%s9113_s0 + $0x98] sm:$0xff]  ;;  %v7237_v34 = vld [vmem:[%s9112_s1 + $0xa00] sm:$0xff]  }
 0x11c   :  { %6529 = vmatprep.subr.bf16.mxu0 %v7192_v37  ;;  %v5635_v33 = vcombine.high %v34_v31, %v34_v31  ;;  %v7240_v37 = vld [vmem:[%s9112_s1 + $0xa48] sm:$0xff]   ;;  %v7248_v45 = vld [vmem:[%s9112_s1 + $0xa58] sm:$0xff]  }
 0x11d   :  { %6550 = vmatpush3.bf16.msra.mxu1 %v7191_v36  ;;  %v7239_v36 = vld [vmem:[%s9112_s1 + $0xa80] sm:$0xff]   ;;  %v7250_v47 = vld [vmem:[%s9112_s1 + $0xad8] sm:$0xff]   ;;  %v7279_v26 = vld [vmem:[%s9112_s1 + $0xb88] sm:$0xff]  }
 0x11e   :  { %6551 = vmatprep.subr.bf16.mxu1 %v7194_v39  ;;  %v7242_v39 = vld [vmem:[%s9112_s1 + $0xac8] sm:$0xff]  }
 0x11f   :  { %6530 = vmatpush3.bf16.msra.mxu0 %v7193_v38  ;;  %v7241_v38 = vld [vmem:[%s9112_s1 + $0xa08] sm:$0xff]  }
 0x120   :  { %6559 = vmatprep.subr.bf16.mxu0 %v7198_v44  ;;  %v7247_v44 = vld [vmem:[%s9112_s1 + $0xa90] sm:$0xff]  }
 0x121   :  { %6552 = vmatpush3.bf16.msra.mxu1 %v7197_v43  ;;  %v7246_v43 = vld [vmem:[%s9112_s1 + $0xad0] sm:$0xff]  }
 0x122   :  { %4980 = vmatmul.mubr.bf16.vlgmr.msra.gmra.mrb[32].mxu0 %v5628_v41  ;;  %6581 = vmatprep.subr.bf16.mxu1 %v7202_v49  ;;  %v7244_v41 = vld [vmem:[%s9112_s1 + $0xa50] sm:$0xff]   ;;  %v7252_v49 = vld [vmem:[%s9112_s1 + $0xa60] sm:$0xff]  }
 0x123   :  { %6560 = vmatpush3.bf16.msra.mxu0 %v7201_v48  ;;  %5059 = vmatprep.mubr.bf16.mxu0 %v5633_v28  ;;  %v7251_v48 = vld [vmem:[%s9112_s1 + $0xa98] sm:$0xff]   ;;  %v7281_v28 = vld [vmem:[%s9112_s1 + $0xb10] sm:$0xff]  }
 0x124   :  { %5020 = vmatmul.mubr.bf16.vlgmr.msra.gmra.mrb[32].mxu1 %v5630_v46  ;;  %6561 = vmatprep.subr.bf16.mxu0 %v7204_v51  ;;  %v7249_v46 = vld [vmem:[%s9112_s1 + $0xa18] sm:$0xff]  }
 0x125   :  { %6582 = vmatpush3.bf16.msra.mxu1 %v7203_v50  ;;  %5099 = vmatprep.mubr.bf16.mxu1 %v5635_v33  ;;  %v7253_v50 = vld [vmem:[%s9112_s1 + $0xa20] sm:$0xff]   ;;  %v7286_v33 = vld [vmem:[%s9112_s1 + $0xbd8] sm:$0xff]  }
 0x126   :  { %6583 = vmatprep.subr.bf16.mxu1 %v7206_v53 }
 0x127   :  { %6562 = vmatpush3.bf16.msra.mxu0 %v7205_v52  ;;  %v7254_v52 = vld [vmem:[%s9112_s1 + $0xae0] sm:$0xff]  }
 0x128   :  { %6563 = vmatprep.subr.bf16.mxu0 %v7208_v55 }
 0x129   :  { %6584 = vmatpush3.bf16.msra.mxu1 %v7207_v54  ;;  %v7255_v54 = vld [vmem:[%s9112_s1 + $0xaa0] sm:$0xff]  }
 0x12a   :  { %6585 = vmatprep.subr.bf16.mxu1 %v7210_v57  ;;  %v7256_v57 = vld [vmem:[%s9112_s1 + $0xa68] sm:$0xff]  }
 0x12b   :  { %6564 = vmatpush3.bf16.msra.mxu0 %v7209_v56 }
 0x12c   :  { %6565 = vmatprep.subr.bf16.mxu0 %v7212_v59 }
 0x12d   :  { %6586 = vmatpush3.bf16.msra.mxu1 %v7211_v58 }
 0x12e   :  { %6587 = vmatprep.subr.bf16.mxu1 %v7214_v61 }
 0x12f   :  { %6566 = vmatpush3.bf16.msra.mxu0 %v7213_v60  ;;  %v7257_v60 = vld [vmem:[%s9112_s1 + $0xa28] sm:$0xff]  }
 0x130   :  { %6567 = vmatprep.subr.bf16.mxu0 %v7216_v63  ;;  %v7258_v63 = vld [vmem:[%s9112_s1 + $0xae8] sm:$0xff]  }
 0x131   :  { %6588 = vmatpush3.bf16.msra.mxu1 %v7215_v62 }
 0x132   :  { %6589 = vmatprep.subr.bf16.mxu1 %v7218_v3  ;;  %v7260_v3 = vld [vmem:[%s9112_s1 + $0xa70] sm:$0xff]  }
 0x133   :  { %6568 = vmatpush3.bf16.msra.mxu0 %v7217_v1  ;;  %v7259_v1 = vld [vmem:[%s9112_s1 + $0xaa8] sm:$0xff]  }
 0x134   :  { %6569 = vmatprep.subr.bf16.mxu0 %v7220_v9  ;;  %v7264_v9 = vld [vmem:[%s9112_s1 + $0xa78] sm:$0xff]  }
 0x135   :  { %v6267_v0 = vpop.f32.mrb[8].mxu0  ;;  %6590 = vmatpush3.bf16.msra.mxu1 %v7219_v6  ;;  %v7261_v6 = vld [vmem:[%s9112_s1 + $0xa30] sm:$0xff]  }
 0x136   :  { %v6268_v2 = vpop.f32.mrb[9].mxu0  ;;  %6591 = vmatprep.subr.bf16.mxu1 %v7222_v14 }
 0x137   :  { %v6269_v4 = vadd.f32 %v6268_v2, %v6267_v0  ;;  %v6270_v5 = vpop.f32.mrb[10].mxu0  ;;  %v6289_v7 = vpop.f32.mrb[8].mxu1  ;;  %6570 = vmatpush3.bf16.msra.mxu0 %v7221_v11  ;;  %v7266_v11 = vld [vmem:[%s9112_s1 + $0xaf8] sm:$0xff]  }
 0x138   :  { %v6271_v10 = vpop.f32.mrb[11].mxu0  ;;  %v6290_v12 = vpop.f32.mrb[9].mxu1  ;;  %6571 = vmatprep.subr.bf16.mxu0 %v7224_v19 }
 0x139   :  { %v4502_v8 = vadd.f32 %v6269_v4, %v8359_v32  ;;  %v6291_v13 = vadd.f32 %v6290_v12, %v6289_v7  ;;  %v6292_v15 = vpop.f32.mrb[10].mxu1  ;;  %6592 = vmatpush3.bf16.msra.mxu1 %v7223_v16  ;;  %v5634_v32 = vcombine.low %v34_v31, %v34_v31  ;;  %v7262_v7 = vld [vmem:[%s9112_s1 + $0xaf0] sm:$0xff]   ;;  %v7265_v10 = vld [vmem:[%s9112_s1 + $0xa38] sm:$0xff]   ;;  %v35_v12 = vld [vmem:[%s9113_s0 + $0xa0] sm:$0xff] }
 0x13a   :  { %v6293_v17 = vpop.f32.mrb[11].mxu1  ;;  %6593 = vmatprep.subr.bf16.mxu1 %v7226_v21  ;;  %v5637_v14 = vcombine.high %v35_v12, %v35_v12  ;;  %v7269_v15 = vld [vmem:[%s9112_s1 + $0xab8] sm:$0xff]   ;;  %v7270_v16 = vld [vmem:[%s9112_s1 + $0xb40] sm:$0xff]  }
 0x13b   :  { %v8464_v18 = vadd.f32 %v6291_v13, %v4502_v8  ;;  %6572 = vmatpush3.bf16.msra.mxu0 %v7225_v20  ;;  %v7263_v8 = vld [vmem:[%s9112_s1 + $0xab0] sm:$0xff]   ;;  %v5636_v13 = vcombine.low %v35_v12, %v35_v12  ;;  %v36_v17 = vld [vmem:[%s9113_s0 + $0xa8] sm:$0xff]  ;;  %v7273_v20 = vld [vmem:[%s9112_s1 + $0xb00] sm:$0xff]  }
 0x13c   :  { %6573 = vmatprep.subr.bf16.mxu0 %v7228_v23  ;;  %v5639_v19 = vcombine.high %v36_v17, %v36_v17  ;;  %v7274_v21 = vld [vmem:[%s9112_s1 + $0xbc0] sm:$0xff]   ;;  %v7276_v23 = vld [vmem:[%s9112_s1 + $0xb48] sm:$0xff]   ;;  %v7284_v31 = vld [vmem:[%s9112_s1 + $0xb58] sm:$0xff]  }
 0x13d   :  { %6594 = vmatpush3.bf16.msra.mxu1 %v7227_v22  ;;  %v7275_v22 = vld [vmem:[%s9112_s1 + $0xb80] sm:$0xff]   ;;  %v7315_v12 = vld [vmem:[%s9112_s1 + $0xc88] sm:$0xff]  }
 0x13e   :  { %6595 = vmatprep.subr.bf16.mxu1 %v7230_v25  ;;  %v7278_v25 = vld [vmem:[%s9112_s1 + $0xbc8] sm:$0xff]  }
 0x13f   :  { %6574 = vmatpush3.bf16.msra.mxu0 %v7229_v24  ;;  %v7277_v24 = vld [vmem:[%s9112_s1 + $0xb08] sm:$0xff]  }
 0x140   :  { %6603 = vmatprep.subr.bf16.mxu0 %v7234_v30  ;;  %v7283_v30 = vld [vmem:[%s9112_s1 + $0xb90] sm:$0xff]  }
 0x141   :  { %6596 = vmatpush3.bf16.msra.mxu1 %v7233_v29  ;;  %v7282_v29 = vld [vmem:[%s9112_s1 + $0xbd0] sm:$0xff]  }
 0x142   :  { %5060 = vmatmul.mubr.bf16.vlgmr.msra.gmra.mrb[36].mxu0 %v5632_v27  ;;  %6625 = vmatprep.subr.bf16.mxu1 %v7238_v35  ;;  %v7280_v27 = vld [vmem:[%s9112_s1 + $0xb50] sm:$0xff]   ;;  %v7288_v35 = vld [vmem:[%s9112_s1 + $0xb60] sm:$0xff]  }
 0x143   :  { %6604 = vmatpush3.bf16.msra.mxu0 %v7237_v34  ;;  %5139 = vmatprep.mubr.bf16.mxu0 %v5637_v14  ;;  %v7287_v34 = vld [vmem:[%s9112_s1 + $0xb98] sm:$0xff]   ;;  %v7317_v14 = vld [vmem:[%s9112_s1 + $0xc10] sm:$0xff]  }
 0x144   :  { %5100 = vmatmul.mubr.bf16.vlgmr.msra.gmra.mrb[36].mxu1 %v5634_v32  ;;  %6605 = vmatprep.subr.bf16.mxu0 %v7240_v37  ;;  %v7285_v32 = vld [vmem:[%s9112_s1 + $0xb18] sm:$0xff]   ;;  %v7289_v37 = vld [vmem:[%s9112_s1 + $0xb20] sm:$0xff]  }
 0x145   :  { %6626 = vmatpush3.bf16.msra.mxu1 %v7239_v36  ;;  %5179 = vmatprep.mubr.bf16.mxu1 %v5639_v19  ;;  %v7322_v19 = vld [vmem:[%s9112_s1 + $0xcd8] sm:$0xff]  }
 0x146   :  { %6627 = vmatprep.subr.bf16.mxu1 %v7242_v39  ;;  %v7290_v39 = vld [vmem:[%s9112_s1 + $0xbe0] sm:$0xff]  }
 0x147   :  { %6606 = vmatpush3.bf16.msra.mxu0 %v7241_v38 }
 0x148   :  { %6607 = vmatprep.subr.bf16.mxu0 %v7244_v41 }
 0x149   :  { %6628 = vmatpush3.bf16.msra.mxu1 %v7243_v40 }
 0x14a   :  { %6629 = vmatprep.subr.bf16.mxu1 %v7246_v43 }
 0x14b   :  { %6608 = vmatpush3.bf16.msra.mxu0 %v7245_v42  ;;  %v7291_v42 = vld [vmem:[%s9112_s1 + $0xba0] sm:$0xff]  }
 0x14c   :  { %6609 = vmatprep.subr.bf16.mxu0 %v7248_v45  ;;  %v7292_v45 = vld [vmem:[%s9112_s1 + $0xb68] sm:$0xff]  }
 0x14d   :  { %6630 = vmatpush3.bf16.msra.mxu1 %v7247_v44 }
 0x14e   :  { %6631 = vmatprep.subr.bf16.mxu1 %v7250_v47  ;;  %v7293_v47 = vld [vmem:[%s9112_s1 + $0xb28] sm:$0xff]  }
 0x14f   :  { %6610 = vmatpush3.bf16.msra.mxu0 %v7249_v46 }
 0x150   :  { %6611 = vmatprep.subr.bf16.mxu0 %v7252_v49 }
 0x151   :  { %6632 = vmatpush3.bf16.msra.mxu1 %v7251_v48 }
 0x152   :  { %6633 = vmatprep.subr.bf16.mxu1 %v7254_v52  ;;  %v7295_v52 = vld [vmem:[%s9112_s1 + $0xba8] sm:$0xff]  }
 0x153   :  { %6612 = vmatpush3.bf16.msra.mxu0 %v7253_v50  ;;  %v7294_v50 = vld [vmem:[%s9112_s1 + $0xbe8] sm:$0xff]  }
 0x154   :  { %6613 = vmatprep.subr.bf16.mxu0 %v7256_v57  ;;  %v7298_v57 = vld [vmem:[%s9112_s1 + $0xbf0] sm:$0xff]  }
 0x155   :  { %v6311_v51 = vpop.f32.mrb[12].mxu0  ;;  %6634 = vmatpush3.bf16.msra.mxu1 %v7255_v54 }
 0x156   :  { %v6312_v53 = vpop.f32.mrb[13].mxu0  ;;  %6635 = vmatprep.subr.bf16.mxu1 %v7258_v63 }
 0x157   :  { %v6313_v55 = vadd.f32 %v6312_v53, %v6311_v51  ;;  %v6314_v56 = vpop.f32.mrb[14].mxu0  ;;  %v6333_v58 = vpop.f32.mrb[12].mxu1  ;;  %6614 = vmatpush3.bf16.msra.mxu0 %v7257_v60  ;;  %v7301_v60 = vld [vmem:[%s9112_s1 + $0xb38] sm:$0xff]  }
 0x158   :  { %v6315_v61 = vpop.f32.mrb[15].mxu0  ;;  %v6334_v62 = vpop.f32.mrb[13].mxu1  ;;  %6615 = vmatprep.subr.bf16.mxu0 %v7260_v3  ;;  %v7297_v56 = vld [vmem:[%s9112_s1 + $0xb30] sm:$0xff]   ;;  %v38_v3 = vld [vmem:[%s9113_s0 + $0xb8] sm:$0xff] }
 0x159   :  { %v4582_v59 = vadd.f32 %v6313_v55, %v8464_v18  ;;  %v6335_v0 = vadd.f32 %v6334_v62, %v6333_v58  ;;  %v6336_v2 = vpop.f32.mrb[14].mxu1  ;;  %6636 = vmatpush3.bf16.msra.mxu1 %v7259_v1  ;;  %v5638_v18 = vcombine.low %v36_v17, %v36_v17  ;;  %v7296_v55 = vld [vmem:[%s9112_s1 + $0xb70] sm:$0xff]   ;;  %v7302_v61 = vld [vmem:[%s9112_s1 + $0xbf8] sm:$0xff]  }
 0x15a   :  { %v6337_v4 = vpop.f32.mrb[15].mxu1  ;;  %6637 = vmatprep.subr.bf16.mxu1 %v7262_v7  ;;  %v7299_v58 = vld [vmem:[%s9112_s1 + $0xbb0] sm:$0xff]   ;;  %v7305_v1 = vld [vmem:[%s9112_s1 + $0xbb8] sm:$0xff]   ;;  %v7306_v2 = vld [vmem:[%s9112_s1 + $0xc40] sm:$0xff]  }
 0x15b   :  { %v8572_v5 = vadd.f32 %v6335_v0, %v4582_v59  ;;  %6616 = vmatpush3.bf16.msra.mxu0 %v7261_v6  ;;  %v7300_v59 = vld [vmem:[%s9112_s1 + $0xb78] sm:$0xff]   ;;  %v37_v62 = vld [vmem:[%s9113_s0 + $0xb0] sm:$0xff]  ;;  %v5642_v4 = vcombine.low %v38_v3, %v38_v3  ;;  %v7309_v6 = vld [vmem:[%s9112_s1 + $0xc00] sm:$0xff]  }
 0x15c   :  { %6617 = vmatprep.subr.bf16.mxu0 %v7264_v9  ;;  %v5640_v63 = vcombine.low %v37_v62, %v37_v62  ;;  %v5641_v0 = vcombine.high %v37_v62, %v37_v62  ;;  %v7310_v7 = vld [vmem:[%s9112_s1 + $0xcc0] sm:$0xff]   ;;  %v7312_v9 = vld [vmem:[%s9112_s1 + $0xc48] sm:$0xff]   ;;  %v7320_v17 = vld [vmem:[%s9112_s1 + $0xc58] sm:$0xff]  }
 0x15d   :  { %6638 = vmatpush3.bf16.msra.mxu1 %v7263_v8  ;;  %v7311_v8 = vld [vmem:[%s9112_s1 + $0xc80] sm:$0xff]   ;;  %v7351_v62 = vld [vmem:[%s9112_s1 + $0xd88] sm:$0xff]  }
 0x15e   :  { %6639 = vmatprep.subr.bf16.mxu1 %v7266_v11  ;;  %v7314_v11 = vld [vmem:[%s9112_s1 + $0xcc8] sm:$0xff]  }
 0x15f   :  { %6618 = vmatpush3.bf16.msra.mxu0 %v7265_v10  ;;  %v7313_v10 = vld [vmem:[%s9112_s1 + $0xc08] sm:$0xff]  }
 0x160   :  { %6647 = vmatprep.subr.bf16.mxu0 %v7270_v16  ;;  %v7319_v16 = vld [vmem:[%s9112_s1 + $0xc90] sm:$0xff]  }
 0x161   :  { %6640 = vmatpush3.bf16.msra.mxu1 %v7269_v15  ;;  %v7318_v15 = vld [vmem:[%s9112_s1 + $0xcd0] sm:$0xff]  }
 0x162   :  { %5140 = vmatmul.mubr.bf16.vlgmr.msra.gmra.mrb[40].mxu0 %v5636_v13  ;;  %6669 = vmatprep.subr.bf16.mxu1 %v7274_v21  ;;  %v7316_v13 = vld [vmem:[%s9112_s1 + $0xc50] sm:$0xff]   ;;  %v7324_v21 = vld [vmem:[%s9112_s1 + $0xc60] sm:$0xff]  }
 0x163   :  { %6648 = vmatpush3.bf16.msra.mxu0 %v7273_v20  ;;  %5219 = vmatprep.mubr.bf16.mxu0 %v5641_v0  ;;  %v7323_v20 = vld [vmem:[%s9112_s1 + $0xc98] sm:$0xff]   ;;  %v7353_v0 = vld [vmem:[%s9112_s1 + $0xd10] sm:$0xff]  }
 0x164   :  { %5180 = vmatmul.mubr.bf16.vlgmr.msra.gmra.mrb[40].mxu1 %v5638_v18  ;;  %6649 = vmatprep.subr.bf16.mxu0 %v7276_v23  ;;  %v7321_v18 = vld [vmem:[%s9112_s1 + $0xc18] sm:$0xff]   ;;  %v7325_v23 = vld [vmem:[%s9112_s1 + $0xc20] sm:$0xff]  }
 0x165   :  { %6670 = vmatpush3.bf16.msra.mxu1 %v7275_v22 }
 0x166   :  { %6671 = vmatprep.subr.bf16.mxu1 %v7278_v25  ;;  %v7326_v25 = vld [vmem:[%s9112_s1 + $0xce0] sm:$0xff]  }
 0x167   :  { %6650 = vmatpush3.bf16.msra.mxu0 %v7277_v24 }
 0x168   :  { %6651 = vmatprep.subr.bf16.mxu0 %v7280_v27 }
 0x169   :  { %6672 = vmatpush3.bf16.msra.mxu1 %v7279_v26 }
 0x16a   :  { %6673 = vmatprep.subr.bf16.mxu1 %v7282_v29 }
 0x16b   :  { %6652 = vmatpush3.bf16.msra.mxu0 %v7281_v28  ;;  %v7327_v28 = vld [vmem:[%s9112_s1 + $0xca0] sm:$0xff]  }
 0x16c   :  { %6653 = vmatprep.subr.bf16.mxu0 %v7284_v31  ;;  %v7328_v31 = vld [vmem:[%s9112_s1 + $0xc68] sm:$0xff]  }
 0x16d   :  { %6674 = vmatpush3.bf16.msra.mxu1 %v7283_v30 }
 0x16e   :  { %6675 = vmatprep.subr.bf16.mxu1 %v7286_v33  ;;  %v7329_v33 = vld [vmem:[%s9112_s1 + $0xc28] sm:$0xff]  }
 0x16f   :  { %6654 = vmatpush3.bf16.msra.mxu0 %v7285_v32 }
 0x170   :  { %6655 = vmatprep.subr.bf16.mxu0 %v7288_v35 }
 0x171   :  { %6676 = vmatpush3.bf16.msra.mxu1 %v7287_v34 }
 0x172   :  { %6677 = vmatprep.subr.bf16.mxu1 %v7290_v39 }
 0x173   :  { %6656 = vmatpush3.bf16.msra.mxu0 %v7289_v37 }
 0x174   :  { %6657 = vmatprep.subr.bf16.mxu0 %v7292_v45  ;;  %v7336_v45 = vld [vmem:[%s9112_s1 + $0xc78] sm:$0xff]  }
 0x175   :  { %v6355_v36 = vpop.f32.mrb[16].mxu0  ;;  %6678 = vmatpush3.bf16.msra.mxu1 %v7291_v42  ;;  %v7333_v42 = vld [vmem:[%s9112_s1 + $0xc30] sm:$0xff]  }
 0x176   :  { %v6356_v38 = vpop.f32.mrb[17].mxu0  ;;  %6679 = vmatprep.subr.bf16.mxu1 %v7294_v50 }
 0x177   :  { %v6357_v40 = vadd.f32 %v6356_v38, %v6355_v36  ;;  %v6358_v41 = vpop.f32.mrb[18].mxu0  ;;  %v6377_v43 = vpop.f32.mrb[16].mxu1  ;;  %6658 = vmatpush3.bf16.msra.mxu0 %v7293_v47  ;;  %v7330_v36 = vld [vmem:[%s9112_s1 + $0xce8] sm:$0xff]   ;;  %v7338_v47 = vld [vmem:[%s9112_s1 + $0xcf8] sm:$0xff]  }
 0x178   :  { %v6359_v46 = vpop.f32.mrb[19].mxu0  ;;  %v6378_v48 = vpop.f32.mrb[17].mxu1  ;;  %6659 = vmatprep.subr.bf16.mxu0 %v7296_v55  ;;  %v7331_v38 = vld [vmem:[%s9112_s1 + $0xca8] sm:$0xff]   ;;  %v7332_v41 = vld [vmem:[%s9112_s1 + $0xc70] sm:$0xff]  }
 0x179   :  { %v4662_v44 = vadd.f32 %v6357_v40, %v8572_v5  ;;  %v6379_v49 = vadd.f32 %v6378_v48, %v6377_v43  ;;  %v6380_v51 = vpop.f32.mrb[18].mxu1  ;;  %6680 = vmatpush3.bf16.msra.mxu1 %v7295_v52  ;;  %v5643_v5 = vcombine.high %v38_v3, %v38_v3  ;;  %v7334_v43 = vld [vmem:[%s9112_s1 + $0xcf0] sm:$0xff]   ;;  %v7337_v46 = vld [vmem:[%s9112_s1 + $0xc38] sm:$0xff]   ;;  %v39_v48 = vld [vmem:[%s9113_s0 + $0xc0] sm:$0xff] }
 0x17a   :  { %v6381_v53 = vpop.f32.mrb[19].mxu1  ;;  %6681 = vmatprep.subr.bf16.mxu1 %v7298_v57  ;;  %v5645_v50 = vcombine.high %v39_v48, %v39_v48  ;;  %v7341_v51 = vld [vmem:[%s9112_s1 + $0xcb8] sm:$0xff]   ;;  %v7342_v52 = vld [vmem:[%s9112_s1 + $0xd40] sm:$0xff]  }
 0x17b   :  { %v8674_v54 = vadd.f32 %v6379_v49, %v4662_v44  ;;  %6660 = vmatpush3.bf16.msra.mxu0 %v7297_v56  ;;  %5259 = vmatprep.mubr.bf16.mxu1 %v5643_v5  ;;  %v7335_v44 = vld [vmem:[%s9112_s1 + $0xcb0] sm:$0xff]   ;;  %v5644_v49 = vcombine.low %v39_v48, %v39_v48  ;;  %v40_v53 = vld [vmem:[%s9113_s0 + $0xc8] sm:$0xff]  ;;  %v7345_v56 = vld [vmem:[%s9112_s1 + $0xd00] sm:$0xff]  }
 0x17c   :  { %6661 = vmatprep.subr.bf16.mxu0 %v7300_v59  ;;  %v5647_v55 = vcombine.high %v40_v53, %v40_v53  ;;  %v7346_v57 = vld [vmem:[%s9112_s1 + $0xdc0] sm:$0xff]   ;;  %v7348_v59 = vld [vmem:[%s9112_s1 + $0xd48] sm:$0xff]   ;;  %v7356_v3 = vld [vmem:[%s9112_s1 + $0xd58] sm:$0xff]  }
 0x17d   :  { %6682 = vmatpush3.bf16.msra.mxu1 %v7299_v58  ;;  %v7347_v58 = vld [vmem:[%s9112_s1 + $0xd80] sm:$0xff]   ;;  %v7358_v5 = vld [vmem:[%s9112_s1 + $0xdd8] sm:$0xff]   ;;  %v7387_v48 = vld [vmem:[%s9112_s1 + $0xe88] sm:$0xff]  }
 0x17e   :  { %6683 = vmatprep.subr.bf16.mxu1 %v7302_v61  ;;  %v7350_v61 = vld [vmem:[%s9112_s1 + $0xdc8] sm:$0xff]  }
 0x17f   :  { %6662 = vmatpush3.bf16.msra.mxu0 %v7301_v60  ;;  %v7349_v60 = vld [vmem:[%s9112_s1 + $0xd08] sm:$0xff]  }
 0x180   :  { %6691 = vmatprep.subr.bf16.mxu0 %v7306_v2  ;;  %v7355_v2 = vld [vmem:[%s9112_s1 + $0xd90] sm:$0xff]  }
 0x181   :  { %6684 = vmatpush3.bf16.msra.mxu1 %v7305_v1  ;;  %v7354_v1 = vld [vmem:[%s9112_s1 + $0xdd0] sm:$0xff]  }
 0x182   :  { %5220 = vmatmul.mubr.bf16.vlgmr.msra.gmra.mrb[44].mxu0 %v5640_v63  ;;  %6713 = vmatprep.subr.bf16.mxu1 %v7310_v7  ;;  %v7352_v63 = vld [vmem:[%s9112_s1 + $0xd50] sm:$0xff]   ;;  %v7360_v7 = vld [vmem:[%s9112_s1 + $0xd60] sm:$0xff]  }
 0x183   :  { %6692 = vmatpush3.bf16.msra.mxu0 %v7309_v6  ;;  %5299 = vmatprep.mubr.bf16.mxu0 %v5645_v50  ;;  %v7359_v6 = vld [vmem:[%s9112_s1 + $0xd98] sm:$0xff]   ;;  %v7389_v50 = vld [vmem:[%s9112_s1 + $0xe10] sm:$0xff]  }
 0x184   :  { %5260 = vmatmul.mubr.bf16.vlgmr.msra.gmra.mrb[44].mxu1 %v5642_v4  ;;  %6693 = vmatprep.subr.bf16.mxu0 %v7312_v9  ;;  %v7357_v4 = vld [vmem:[%s9112_s1 + $0xd18] sm:$0xff]  }
 0x185   :  { %6714 = vmatpush3.bf16.msra.mxu1 %v7311_v8  ;;  %5339 = vmatprep.mubr.bf16.mxu1 %v5647_v55  ;;  %v7361_v8 = vld [vmem:[%s9112_s1 + $0xd20] sm:$0xff]   ;;  %v7394_v55 = vld [vmem:[%s9112_s1 + $0xed8] sm:$0xff]  }
 0x186   :  { %6715 = vmatprep.subr.bf16.mxu1 %v7314_v11 }
 0x187   :  { %6694 = vmatpush3.bf16.msra.mxu0 %v7313_v10  ;;  %v7362_v10 = vld [vmem:[%s9112_s1 + $0xde0] sm:$0xff]  }
 0x188   :  { %6695 = vmatprep.subr.bf16.mxu0 %v7316_v13 }
 0x189   :  { %6716 = vmatpush3.bf16.msra.mxu1 %v7315_v12  ;;  %v7363_v12 = vld [vmem:[%s9112_s1 + $0xda0] sm:$0xff]  }
 0x18a   :  { %6717 = vmatprep.subr.bf16.mxu1 %v7318_v15  ;;  %v7364_v15 = vld [vmem:[%s9112_s1 + $0xd68] sm:$0xff]  }
 0x18b   :  { %6696 = vmatpush3.bf16.msra.mxu0 %v7317_v14 }
 0x18c   :  { %6697 = vmatprep.subr.bf16.mxu0 %v7320_v17 }
 0x18d   :  { %6718 = vmatpush3.bf16.msra.mxu1 %v7319_v16 }
 0x18e   :  { %6719 = vmatprep.subr.bf16.mxu1 %v7322_v19 }
 0x18f   :  { %6698 = vmatpush3.bf16.msra.mxu0 %v7321_v18  ;;  %v7365_v18 = vld [vmem:[%s9112_s1 + $0xd28] sm:$0xff]  }
 0x190   :  { %6699 = vmatprep.subr.bf16.mxu0 %v7324_v21  ;;  %v7366_v21 = vld [vmem:[%s9112_s1 + $0xde8] sm:$0xff]  }
 0x191   :  { %6720 = vmatpush3.bf16.msra.mxu1 %v7323_v20 }
 0x192   :  { %6721 = vmatprep.subr.bf16.mxu1 %v7326_v25  ;;  %v7368_v25 = vld [vmem:[%s9112_s1 + $0xd70] sm:$0xff]  }
 0x193   :  { %6700 = vmatpush3.bf16.msra.mxu0 %v7325_v23  ;;  %v7367_v23 = vld [vmem:[%s9112_s1 + $0xda8] sm:$0xff]  }
 0x194   :  { %6701 = vmatprep.subr.bf16.mxu0 %v7328_v31  ;;  %v7372_v31 = vld [vmem:[%s9112_s1 + $0xd78] sm:$0xff]  }
 0x195   :  { %v6399_v22 = vpop.f32.mrb[20].mxu0  ;;  %6722 = vmatpush3.bf16.msra.mxu1 %v7327_v28  ;;  %v7369_v28 = vld [vmem:[%s9112_s1 + $0xd30] sm:$0xff]  }
 0x196   :  { %v6400_v24 = vpop.f32.mrb[21].mxu0  ;;  %6723 = vmatprep.subr.bf16.mxu1 %v7330_v36 }
 0x197   :  { %v6401_v26 = vadd.f32 %v6400_v24, %v6399_v22  ;;  %v6402_v27 = vpop.f32.mrb[22].mxu0  ;;  %v6421_v29 = vpop.f32.mrb[20].mxu1  ;;  %6702 = vmatpush3.bf16.msra.mxu0 %v7329_v33  ;;  %v7374_v33 = vld [vmem:[%s9112_s1 + $0xdf8] sm:$0xff]  }
 0x198   :  { %v6403_v32 = vpop.f32.mrb[23].mxu0  ;;  %v6422_v34 = vpop.f32.mrb[21].mxu1  ;;  %6703 = vmatprep.subr.bf16.mxu0 %v7332_v41 }
 0x199   :  { %v4742_v30 = vadd.f32 %v6401_v26, %v8674_v54  ;;  %v6423_v35 = vadd.f32 %v6422_v34, %v6421_v29  ;;  %v6424_v37 = vpop.f32.mrb[22].mxu1  ;;  %6724 = vmatpush3.bf16.msra.mxu1 %v7331_v38  ;;  %v5646_v54 = vcombine.low %v40_v53, %v40_v53  ;;  %v7370_v29 = vld [vmem:[%s9112_s1 + $0xdf0] sm:$0xff]   ;;  %v7373_v32 = vld [vmem:[%s9112_s1 + $0xd38] sm:$0xff]   ;;  %v7378_v38 = vld [vmem:[%s9112_s1 + $0xe40] sm:$0xff]  }
 0x19a   :  { %v6425_v39 = vpop.f32.mrb[23].mxu1  ;;  %6725 = vmatprep.subr.bf16.mxu1 %v7334_v43  ;;  %v41_v34 = vld [vmem:[%s9113_s0 + $0xd0] sm:$0xff]  ;;  %v7377_v37 = vld [vmem:[%s9112_s1 + $0xdb8] sm:$0xff]   ;;  %v7382_v43 = vld [vmem:[%s9112_s1 + $0xec0] sm:$0xff]  }
 0x19b   :  { %v8779_v40 = vadd.f32 %v6423_v35, %v4742_v30  ;;  %6704 = vmatpush3.bf16.msra.mxu0 %v7333_v42  ;;  %v7371_v30 = vld [vmem:[%s9112_s1 + $0xdb0] sm:$0xff]   ;;  %v5648_v35 = vcombine.low %v41_v34, %v41_v34  ;;  %v5649_v36 = vcombine.high %v41_v34, %v41_v34  ;;  %v42_v39 = vld [vmem:[%s9113_s0 + $0xd8] sm:$0xff]  ;;  %v7381_v42 = vld [vmem:[%s9112_s1 + $0xe00] sm:$0xff]  }
 0x19c   :  { %6705 = vmatprep.subr.bf16.mxu0 %v7336_v45  ;;  %v5651_v41 = vcombine.high %v42_v39, %v42_v39  ;;  %v7384_v45 = vld [vmem:[%s9112_s1 + $0xe48] sm:$0xff]   ;;  %v7392_v53 = vld [vmem:[%s9112_s1 + $0xe58] sm:$0xff]   ;;  %v7422_v34 = vld [vmem:[%s9112_s1 + $0xf50] sm:$0xff]  }
 0x19d   :  { %6726 = vmatpush3.bf16.msra.mxu1 %v7335_v44  ;;  %v7383_v44 = vld [vmem:[%s9112_s1 + $0xe80] sm:$0xff]  }
 0x19e   :  { %6727 = vmatprep.subr.bf16.mxu1 %v7338_v47  ;;  %v7386_v47 = vld [vmem:[%s9112_s1 + $0xec8] sm:$0xff]  }
 0x19f   :  { %6706 = vmatpush3.bf16.msra.mxu0 %v7337_v46  ;;  %v7385_v46 = vld [vmem:[%s9112_s1 + $0xe08] sm:$0xff]  }
 0x1a0   :  { %6735 = vmatprep.subr.bf16.mxu0 %v7342_v52  ;;  %v7391_v52 = vld [vmem:[%s9112_s1 + $0xe90] sm:$0xff]  }
 0x1a1   :  { %6728 = vmatpush3.bf16.msra.mxu1 %v7341_v51  ;;  %v7390_v51 = vld [vmem:[%s9112_s1 + $0xed0] sm:$0xff]  }
 0x1a2   :  { %5300 = vmatmul.mubr.bf16.vlgmr.msra.gmra.mrb[48].mxu0 %v5644_v49  ;;  %6757 = vmatprep.subr.bf16.mxu1 %v7346_v57  ;;  %v7388_v49 = vld [vmem:[%s9112_s1 + $0xe50] sm:$0xff]   ;;  %v7396_v57 = vld [vmem:[%s9112_s1 + $0xe60] sm:$0xff]  }
 0x1a3   :  { %6736 = vmatpush3.bf16.msra.mxu0 %v7345_v56  ;;  %5379 = vmatprep.mubr.bf16.mxu0 %v5649_v36  ;;  %v7395_v56 = vld [vmem:[%s9112_s1 + $0xe98] sm:$0xff]   ;;  %v7424_v36 = vld [vmem:[%s9112_s1 + $0xf90] sm:$0xff]  }
 0x1a4   :  { %5340 = vmatmul.mubr.bf16.vlgmr.msra.gmra.mrb[48].mxu1 %v5646_v54  ;;  %6737 = vmatprep.subr.bf16.mxu0 %v7348_v59  ;;  %v7393_v54 = vld [vmem:[%s9112_s1 + $0xe18] sm:$0xff]  }
 0x1a5   :  { %6758 = vmatpush3.bf16.msra.mxu1 %v7347_v58  ;;  %5419 = vmatprep.mubr.bf16.mxu1 %v5651_v41  ;;  %v7397_v58 = vld [vmem:[%s9112_s1 + $0xe20] sm:$0xff]  }
 0x1a6   :  { %6759 = vmatprep.subr.bf16.mxu1 %v7350_v61  ;;  %v7429_v41 = vld [vmem:[%s9112_s1 + $0xf20] sm:$0xff]  }
 0x1a7   :  { %6738 = vmatpush3.bf16.msra.mxu0 %v7349_v60  ;;  %v7398_v60 = vld [vmem:[%s9112_s1 + $0xee0] sm:$0xff]  }
 0x1a8   :  { %6739 = vmatprep.subr.bf16.mxu0 %v7352_v63 }
 0x1a9   :  { %6760 = vmatpush3.bf16.msra.mxu1 %v7351_v62  ;;  %v7399_v62 = vld [vmem:[%s9112_s1 + $0xea0] sm:$0xff]  }
 0x1aa   :  { %6761 = vmatprep.subr.bf16.mxu1 %v7354_v1  ;;  %v7400_v1 = vld [vmem:[%s9112_s1 + $0xe68] sm:$0xff]  }
 0x1ab   :  { %6740 = vmatpush3.bf16.msra.mxu0 %v7353_v0 }
 0x1ac   :  { %6741 = vmatprep.subr.bf16.mxu0 %v7356_v3 }
 0x1ad   :  { %6762 = vmatpush3.bf16.msra.mxu1 %v7355_v2 }
 0x1ae   :  { %6763 = vmatprep.subr.bf16.mxu1 %v7358_v5 }
 0x1af   :  { %6742 = vmatpush3.bf16.msra.mxu0 %v7357_v4  ;;  %v7401_v4 = vld [vmem:[%s9112_s1 + $0xe28] sm:$0xff]  }
 0x1b0   :  { %6743 = vmatprep.subr.bf16.mxu0 %v7360_v7  ;;  %v7402_v7 = vld [vmem:[%s9112_s1 + $0xee8] sm:$0xff]  }
 0x1b1   :  { %6764 = vmatpush3.bf16.msra.mxu1 %v7359_v6 }
 0x1b2   :  { %6765 = vmatprep.subr.bf16.mxu1 %v7362_v10 }
 0x1b3   :  { %6744 = vmatpush3.bf16.msra.mxu0 %v7361_v8 }
 0x1b4   :  { %6745 = vmatprep.subr.bf16.mxu0 %v7364_v15  ;;  %v7406_v15 = vld [vmem:[%s9112_s1 + $0xef0] sm:$0xff]  }
 0x1b5   :  { %v6443_v9 = vpop.f32.mrb[24].mxu0  ;;  %6766 = vmatpush3.bf16.msra.mxu1 %v7363_v12  ;;  %v7404_v12 = vld [vmem:[%s9112_s1 + $0xe70] sm:$0xff]  }
 0x1b6   :  { %v6444_v11 = vpop.f32.mrb[25].mxu0  ;;  %6767 = vmatprep.subr.bf16.mxu1 %v7366_v21 }
 0x1b7   :  { %v6445_v13 = vadd.f32 %v6444_v11, %v6443_v9  ;;  %v6446_v14 = vpop.f32.mrb[26].mxu0  ;;  %v6465_v16 = vpop.f32.mrb[24].mxu1  ;;  %6746 = vmatpush3.bf16.msra.mxu0 %v7365_v18  ;;  %v7403_v9 = vld [vmem:[%s9112_s1 + $0xea8] sm:$0xff]   ;;  %v7409_v18 = vld [vmem:[%s9112_s1 + $0xe38] sm:$0xff]  }
 0x1b8   :  { %v6447_v19 = vpop.f32.mrb[27].mxu0  ;;  %v6466_v20 = vpop.f32.mrb[25].mxu1  ;;  %6747 = vmatprep.subr.bf16.mxu0 %v7368_v25  ;;  %v7405_v14 = vld [vmem:[%s9112_s1 + $0xe30] sm:$0xff]   ;;  %v44_v25 = vld [vmem:[%s9113_s0 + $0xe8] sm:$0xff] }
 0x1b9   :  { %v4822_v17 = vadd.f32 %v6445_v13, %v8779_v40  ;;  %v6467_v22 = vadd.f32 %v6466_v20, %v6465_v16  ;;  %v6468_v24 = vpop.f32.mrb[26].mxu1  ;;  %6768 = vmatpush3.bf16.msra.mxu1 %v7367_v23  ;;  %v5650_v40 = vcombine.low %v42_v39, %v42_v39  ;;  %v7407_v16 = vld [vmem:[%s9112_s1 + $0xeb0] sm:$0xff]   ;;  %v7410_v19 = vld [vmem:[%s9112_s1 + $0xef8] sm:$0xff]   ;;  %v43_v20 = vld [vmem:[%s9113_s0 + $0xe0] sm:$0xff] }
 0x1ba   :  { %v6469_v26 = vpop.f32.mrb[27].mxu1  ;;  %6769 = vmatprep.subr.bf16.mxu1 %v7370_v29  ;;  %v5652_v21 = vcombine.low %v43_v20, %v43_v20  ;;  %v7413_v23 = vld [vmem:[%s9112_s1 + $0xeb8] sm:$0xff]   ;;  %v7414_v24 = vld [vmem:[%s9112_s1 + $0xf40] sm:$0xff]   ;;  %v7443_v29 = vmov 0.0  }
 0x1bb   :  { %v8887_v27 = vadd.f32 %v6467_v22, %v4822_v17  ;;  %6748 = vmatpush3.bf16.msra.mxu0 %v7369_v28  ;;  %v7408_v17 = vld [vmem:[%s9112_s1 + $0xe78] sm:$0xff]   ;;  %v5653_v22 = vcombine.high %v43_v20, %v43_v20  ;;  %v5654_v26 = vcombine.low %v44_v25, %v44_v25  ;;  %v7417_v28 = vld [vmem:[%s9112_s1 + $0xf00] sm:$0xff]  }
 0x1bc   :  { %6749 = vmatprep.subr.bf16.mxu0 %v7372_v31  ;;  %v7419_v31 = vld [vmem:[%s9112_s1 + $0xf48] sm:$0xff]   ;;  %v7428_v39 = vld [vmem:[%s9112_s1 + $0xf60] sm:$0xff]  }
 0x1bd   :  { %6770 = vmatpush3.bf16.msra.mxu1 %v7371_v30  ;;  %v7418_v30 = vld [vmem:[%s9112_s1 + $0xf80] sm:$0xff]  }
 0x1be   :  { %6771 = vmatprep.subr.bf16.mxu1 %v7374_v33  ;;  %v7421_v33 = vld [vmem:[%s9112_s1 + $0xf88] sm:$0xff]  }
 0x1bf   :  { %6750 = vmatpush3.bf16.msra.mxu0 %v7373_v32  ;;  %v7420_v32 = vld [vmem:[%s9112_s1 + $0xf08] sm:$0xff]  }
 0x1c0   :  { %6779 = vmatprep.subr.bf16.mxu0 %v7378_v38  ;;  %v7426_v38 = vld [vmem:[%s9112_s1 + $0xf18] sm:$0xff]  }
 0x1c1   :  { %6772 = vmatpush3.bf16.msra.mxu1 %v7377_v37  ;;  %v7425_v37 = vld [vmem:[%s9112_s1 + $0xf58] sm:$0xff]  }
 0x1c2   :  { %5380 = vmatmul.mubr.bf16.vlgmr.msra.gmra.mrb[52].mxu0 %v5648_v35  ;;  %6801 = vmatprep.subr.bf16.mxu1 %v7382_v43  ;;  %v7423_v35 = vld [vmem:[%s9112_s1 + $0xf10] sm:$0xff]   ;;  %v7431_v43 = vld [vmem:[%s9112_s1 + $0xf68] sm:$0xff]  }
 0x1c3   :  { %6780 = vmatpush3.bf16.msra.mxu0 %v7381_v42  ;;  %5459 = vmatprep.mubr.bf16.mxu0 %v5653_v22 }
 0x1c4   :  { %5420 = vmatmul.mubr.bf16.vlgmr.msra.gmra.mrb[52].mxu1 %v5650_v40  ;;  %6781 = vmatprep.subr.bf16.mxu0 %v7384_v45  ;;  %v7427_v40 = vld [vmem:[%s9112_s1 + $0xf98] sm:$0xff]  }
 0x1c5   :  { %6802 = vmatpush3.bf16.msra.mxu1 %v7383_v44  ;;  %v7430_v44 = vld [vmem:[%s9112_s1 + $0xfa0] sm:$0xff]  }
 0x1c6   :  { %6803 = vmatprep.subr.bf16.mxu1 %v7386_v47 }
 0x1c7   :  { %6782 = vmatpush3.bf16.msra.mxu0 %v7385_v46 }
 0x1c8   :  { %6783 = vmatprep.subr.bf16.mxu0 %v7388_v49  ;;  %v7432_v49 = vld [vmem:[%s9112_s1 + $0xf28] sm:$0xff]  }
 0x1c9   :  { %6804 = vmatpush3.bf16.msra.mxu1 %v7387_v48 }
 0x1ca   :  { %6805 = vmatprep.subr.bf16.mxu1 %v7390_v51 }
 0x1cb   :  { %6784 = vmatpush3.bf16.msra.mxu0 %v7389_v50 }
 0x1cc   :  { %6785 = vmatprep.subr.bf16.mxu0 %v7392_v53  ;;  %v7434_v53 = vld [vmem:[%s9112_s1 + $0xf70] sm:$0xff]  }
 0x1cd   :  { %6806 = vmatpush3.bf16.msra.mxu1 %v7391_v52 }
 0x1ce   :  { %6807 = vmatprep.subr.bf16.mxu1 %v7394_v55  ;;  %v7433_v55 = vld [vmem:[%s9112_s1 + $0xfa8] sm:$0xff]  }
 0x1cf   :  { %6786 = vmatpush3.bf16.msra.mxu0 %v7393_v54 }
 0x1d0   :  { %6787 = vmatprep.subr.bf16.mxu0 %v7396_v57 }
 0x1d1   :  { %6808 = vmatpush3.bf16.msra.mxu1 %v7395_v56 }
 0x1d2   :  { %6809 = vmatprep.subr.bf16.mxu1 %v7398_v60  ;;  %v7435_v60 = vld [vmem:[%s9112_s1 + $0xf30] sm:$0xff]  }
 0x1d3   :  { %6788 = vmatpush3.bf16.msra.mxu0 %v7397_v58  ;;  %v45_v58 = vld [vmem:[%s9113_s0 + $0xf0] sm:$0xff] }
 0x1d4   :  { %6789 = vmatprep.subr.bf16.mxu0 %v7400_v1  ;;  %v7441_v1 = vld [vmem:[%s9112_s1 + $0xfb8] sm:$0xff]  }
 0x1d5   :  { %v6487_v59 = vpop.f32.mrb[28].mxu0  ;;  %6810 = vmatpush3.bf16.msra.mxu1 %v7399_v62  ;;  %v7437_v62 = vld [vmem:[%s9112_s1 + $0xf78] sm:$0xff]  }
 0x1d6   :  { %v6488_v61 = vpop.f32.mrb[29].mxu0  ;;  %6811 = vmatprep.subr.bf16.mxu1 %v7402_v7 }
 0x1d7   :  { %v6489_v63 = vadd.f32 %v6488_v61, %v6487_v59  ;;  %v6490_v0 = vpop.f32.mrb[30].mxu0  ;;  %v6509_v2 = vpop.f32.mrb[28].mxu1  ;;  %6790 = vmatpush3.bf16.msra.mxu0 %v7401_v4  ;;  %v5657_v61 = vcombine.high %v45_v58, %v45_v58 }
 0x1d8   :  { %v6491_v5 = vpop.f32.mrb[31].mxu0  ;;  %v6510_v6 = vpop.f32.mrb[29].mxu1  ;;  %6791 = vmatprep.subr.bf16.mxu0 %v7404_v12  ;;  %v7438_v0 = vld [vmem:[%s9112_s1 + $0xf38] sm:$0xff]  }
 0x1d9   :  { %v4902_v3 = vadd.f32 %v6489_v63, %v8887_v27  ;;  %v6511_v8 = vadd.f32 %v6510_v6, %v6509_v2  ;;  %v6512_v10 = vpop.f32.mrb[30].mxu1  ;;  %6812 = vmatpush3.bf16.msra.mxu1 %v7403_v9  ;;  %v5655_v27 = vcombine.high %v44_v25, %v44_v25  ;;  %v7436_v63 = vld [vmem:[%s9112_s1 + $0xfb0] sm:$0xff]   ;;  %v5656_v2 = vcombine.low %v45_v58, %v45_v58 }
 0x1da   :  { %v6513_v13 = vpop.f32.mrb[31].mxu1  ;;  %6813 = vmatprep.subr.bf16.mxu1 %v7406_v15 }
 0x1db   :  { %v8989_v11 = vadd.f32 %v6511_v8, %v4902_v3  ;;  %6792 = vmatpush3.bf16.msra.mxu0 %v7405_v14  ;;  %5499 = vmatprep.mubr.bf16.mxu1 %v5655_v27  ;;  %v7442_v3 = vld [vmem:[%s9113_s0 + $0xf8] ss:$0 sps:$4 sm:$0xff]  }
 0x1dc   :  { %6793 = vmatprep.subr.bf16.mxu0 %v7408_v17 }
 0x1dd   :  { %6814 = vmatpush3.bf16.msra.mxu1 %v7407_v16 }
 0x1de   :  { %6815 = vmatprep.subr.bf16.mxu1 %v7410_v19 }
 0x1df   :  { %6794 = vmatpush3.bf16.msra.mxu0 %v7409_v18 }
 0x1e0   :  { %6823 = vmatprep.subr.bf16.mxu0 %v7414_v24 }
 0x1e1   :  { %6816 = vmatpush3.bf16.msra.mxu1 %v7413_v23 }
 0x1e2   :  { %5460 = vmatmul.mubr.bf16.vlgmr.msra.gmra.mrb[56].mxu0 %v5652_v21  ;;  %6854 = vmatprep.subr.bf16.mxu1 %v7443_v29 }
 0x1e3   :  { %6824 = vmatpush3.bf16.msra.mxu0 %v7417_v28  ;;  %5539 = vmatprep.mubr.bf16.mxu0 %v5657_v61 }
 0x1e4   :  { %5500 = vmatmul.mubr.bf16.vlgmr.msra.gmra.mrb[56].mxu1 %v5654_v26  ;;  %6825 = vmatprep.subr.bf16.mxu0 %v7419_v31 }
 0x1e5   :  { %6855 = vmatpush3.bf16.msra.mxu1 %v7418_v30  ;;  %6870 = vmatprep.mubr.msk.bf16.mxu1 %vm7444_vm0, %v7443_v29 }
 0x1e6   :  { %6856 = vmatprep.subr.bf16.mxu1 %v7443_v29 }
 0x1e7   :  { %6826 = vmatpush3.bf16.msra.mxu0 %v7420_v32 }
 0x1e8   :  { %6827 = vmatprep.subr.bf16.mxu0 %v7422_v34 }
 0x1e9   :  { %6857 = vmatpush3.bf16.msra.mxu1 %v7421_v33 }
 0x1ea   :  { %6858 = vmatprep.subr.bf16.mxu1 %v7443_v29 }
 0x1eb   :  { %6828 = vmatpush3.bf16.msra.mxu0 %v7423_v35 }
 0x1ec   :  { %6829 = vmatprep.subr.bf16.mxu0 %v7425_v37 }
 0x1ed   :  { %6859 = vmatpush3.bf16.msra.mxu1 %v7424_v36 }
 0x1ee   :  { %6860 = vmatprep.subr.bf16.mxu1 %v7443_v29 }
 0x1ef   :  { %6830 = vmatpush3.bf16.msra.mxu0 %v7426_v38 }
 0x1f0   :  { %6831 = vmatprep.subr.bf16.mxu0 %v7428_v39 }
 0x1f1   :  { %6861 = vmatpush3.bf16.msra.mxu1 %v7427_v40 }
 0x1f2   :  { %6862 = vmatprep.subr.bf16.mxu1 %v7443_v29 }
 0x1f3   :  { %6832 = vmatpush3.bf16.msra.mxu0 %v7429_v41 }
 0x1f4   :  { %6833 = vmatprep.subr.bf16.mxu0 %v7431_v43 }
 0x1f5   :  { %v6531_v42 = vpop.f32.mrb[32].mxu0  ;;  %6863 = vmatpush3.bf16.msra.mxu1 %v7430_v44 }
 0x1f6   :  { %v6532_v45 = vpop.f32.mrb[33].mxu0  ;;  %6864 = vmatprep.subr.bf16.mxu1 %v7443_v29 }
 0x1f7   :  { %v6533_v46 = vadd.f32 %v6532_v45, %v6531_v42  ;;  %v6534_v47 = vpop.f32.mrb[34].mxu0  ;;  %v6553_v48 = vpop.f32.mrb[32].mxu1  ;;  %6834 = vmatpush3.bf16.msra.mxu0 %v7432_v49 }
 0x1f8   :  { %v6535_v50 = vpop.f32.mrb[35].mxu0  ;;  %v6554_v52 = vpop.f32.mrb[33].mxu1  ;;  %6835 = vmatprep.subr.bf16.mxu0 %v7434_v53 }
 0x1f9   :  { %v4982_v51 = vadd.f32 %v6533_v46, %v8989_v11  ;;  %v6555_v54 = vadd.f32 %v6554_v52, %v6553_v48  ;;  %v6556_v56 = vpop.f32.mrb[34].mxu1  ;;  %6865 = vmatpush3.bf16.msra.mxu1 %v7433_v55 }
 0x1fa   :  { %v6557_v57 = vpop.f32.mrb[35].mxu1  ;;  %6866 = vmatprep.subr.bf16.mxu1 %v7443_v29 }
 0x1fb   :  { %v5022_v59 = vadd.f32 %v6555_v54, %v4982_v51  ;;  %6836 = vmatpush3.bf16.msra.mxu0 %v7435_v60 }
 0x1fc   :  { %6837 = vmatprep.subr.bf16.mxu0 %v7437_v62 }
 0x1fd   :  { %6867 = vmatpush3.bf16.msra.mxu1 %v7436_v63 }
 0x1fe   :  { %6868 = vmatprep.subr.bf16.mxu1 %v7443_v29 }
 0x1ff   :  { %6838 = vmatpush3.bf16.msra.mxu0 %v7438_v0 }
 0x201   :  { %6869 = vmatpush3.bf16.msra.mxu1 %v7441_v1 }
 0x202   :  { %5540 = vmatmul.mubr.bf16.vlgmr.msra.gmra.mrb[60].mxu0 %v5656_v2 }
 0x204   :  { %6871 = vmatmul.mubr.bf16.vlgmr.msra.gmra.mrb[60].mxu1 %v7442_v3 }
 0x215   :  { %v6575_v4 = vpop.f32.mrb[36].mxu0 }
 0x216   :  { %v6576_v5 = vpop.f32.mrb[37].mxu0 }
 0x217   :  { %v6577_v6 = vadd.f32 %v6576_v5, %v6575_v4  ;;  %v6578_v7 = vpop.f32.mrb[38].mxu0  ;;  %v6597_v8 = vpop.f32.mrb[36].mxu1 }
 0x218   :  { %v6579_v9 = vpop.f32.mrb[39].mxu0  ;;  %v6598_v10 = vpop.f32.mrb[37].mxu1 }
 0x219   :  { %v5062_v11 = vadd.f32 %v6577_v6, %v5022_v59  ;;  %v6599_v12 = vadd.f32 %v6598_v10, %v6597_v8  ;;  %v6600_v13 = vpop.f32.mrb[38].mxu1 }
 0x21a   :  { %v6601_v14 = vpop.f32.mrb[39].mxu1 }
 0x21b   :  { %v5102_v15 = vadd.f32 %v6599_v12, %v5062_v11 }
 0x235   :  { %v6619_v16 = vpop.f32.mrb[40].mxu0 }
 0x236   :  { %v6620_v17 = vpop.f32.mrb[41].mxu0 }
 0x237   :  { %v6621_v18 = vadd.f32 %v6620_v17, %v6619_v16  ;;  %v6622_v19 = vpop.f32.mrb[42].mxu0  ;;  %v6641_v20 = vpop.f32.mrb[40].mxu1 }
 0x238   :  { %v6623_v21 = vpop.f32.mrb[43].mxu0  ;;  %v6642_v22 = vpop.f32.mrb[41].mxu1 }
 0x239   :  { %v5142_v23 = vadd.f32 %v6621_v18, %v5102_v15  ;;  %v6643_v24 = vadd.f32 %v6642_v22, %v6641_v20  ;;  %v6644_v25 = vpop.f32.mrb[42].mxu1 }
 0x23a   :  { %v6645_v26 = vpop.f32.mrb[43].mxu1 }
 0x23b   :  { %v5182_v27 = vadd.f32 %v6643_v24, %v5142_v23 }
 0x255   :  { %v6663_v28 = vpop.f32.mrb[44].mxu0 }
 0x256   :  { %v6664_v29 = vpop.f32.mrb[45].mxu0 }
 0x257   :  { %v6665_v30 = vadd.f32 %v6664_v29, %v6663_v28  ;;  %v6666_v31 = vpop.f32.mrb[46].mxu0  ;;  %v6685_v32 = vpop.f32.mrb[44].mxu1 }
 0x258   :  { %v6667_v33 = vpop.f32.mrb[47].mxu0  ;;  %v6686_v35 = vpop.f32.mrb[45].mxu1 }
 0x259   :  { %v5222_v34 = vadd.f32 %v6665_v30, %v5182_v27  ;;  %v6687_v36 = vadd.f32 %v6686_v35, %v6685_v32  ;;  %v6688_v37 = vpop.f32.mrb[46].mxu1 }
 0x25a   :  { %v6689_v38 = vpop.f32.mrb[47].mxu1 }
 0x25b   :  { %v5262_v39 = vadd.f32 %v6687_v36, %v5222_v34 }
 0x275   :  { %v6707_v40 = vpop.f32.mrb[48].mxu0 }
 0x276   :  { %v6708_v41 = vpop.f32.mrb[49].mxu0 }
 0x277   :  { %v6709_v42 = vadd.f32 %v6708_v41, %v6707_v40  ;;  %v6710_v43 = vpop.f32.mrb[50].mxu0  ;;  %v6729_v44 = vpop.f32.mrb[48].mxu1 }
 0x278   :  { %v6711_v45 = vpop.f32.mrb[51].mxu0  ;;  %v6730_v46 = vpop.f32.mrb[49].mxu1 }
 0x279   :  { %v5302_v47 = vadd.f32 %v6709_v42, %v5262_v39  ;;  %v6731_v48 = vadd.f32 %v6730_v46, %v6729_v44  ;;  %v6732_v49 = vpop.f32.mrb[50].mxu1 }
 0x27a   :  { %v6733_v50 = vpop.f32.mrb[51].mxu1 }
 0x27b   :  { %v5342_v51 = vadd.f32 %v6731_v48, %v5302_v47 }
 0x295   :  { %v6751_v52 = vpop.f32.mrb[52].mxu0 }
 0x296   :  { %v6752_v53 = vpop.f32.mrb[53].mxu0 }
 0x297   :  { %v6753_v54 = vadd.f32 %v6752_v53, %v6751_v52  ;;  %v6754_v55 = vpop.f32.mrb[54].mxu0  ;;  %v6773_v56 = vpop.f32.mrb[52].mxu1 }
 0x298   :  { %v6755_v57 = vpop.f32.mrb[55].mxu0  ;;  %v6774_v58 = vpop.f32.mrb[53].mxu1 }
 0x299   :  { %v5382_v59 = vadd.f32 %v6753_v54, %v5342_v51  ;;  %v6775_v60 = vadd.f32 %v6774_v58, %v6773_v56  ;;  %v6776_v61 = vpop.f32.mrb[54].mxu1 }
 0x29a   :  { %v6777_v62 = vpop.f32.mrb[55].mxu1 }
 0x29b   :  { %v5422_v63 = vadd.f32 %v6775_v60, %v5382_v59 }
 0x2b5   :  { %v6795_v0 = vpop.f32.mrb[56].mxu0 }
 0x2b6   :  { %v6796_v1 = vpop.f32.mrb[57].mxu0 }
 0x2b7   :  { %v6797_v2 = vadd.f32 %v6796_v1, %v6795_v0  ;;  %v6798_v3 = vpop.f32.mrb[58].mxu0  ;;  %v6817_v4 = vpop.f32.mrb[56].mxu1 }
 0x2b8   :  { %v6799_v5 = vpop.f32.mrb[59].mxu0  ;;  %v6818_v7 = vpop.f32.mrb[57].mxu1 }
 0x2b9   :  { %v5462_v6 = vadd.f32 %v6797_v2, %v5422_v63  ;;  %v6819_v8 = vadd.f32 %v6818_v7, %v6817_v4  ;;  %v6820_v9 = vpop.f32.mrb[58].mxu1 }
 0x2ba   :  { %v6821_v10 = vpop.f32.mrb[59].mxu1 }
 0x2bb   :  { %v5502_v11 = vadd.f32 %v6819_v8, %v5462_v6 }
 0x2d5   :  { %v6839_v12 = vpop.f32.mrb[60].mxu0 }
 0x2d6   :  { %v6840_v13 = vpop.f32.mrb[61].mxu0 }
 0x2d7   :  { %v6841_v14 = vadd.f32 %v6840_v13, %v6839_v12  ;;  %v6842_v15 = vpop.f32.mrb[62].mxu0  ;;  %v5581_v16 = vpop.f32.mrb[60].mxu1 }
 0x2d8   :  { %v6843_v17 = vpop.f32.mrb[63].mxu0  ;;  %v6872_v18 = vpop.f32.mrb[61].mxu1 }
 0x2d9   :  { %v5542_v19 = vadd.f32 %v6841_v14, %v5502_v11  ;;  %v5584_v20 = vpop.f32.mrb[62].mxu1 }
 0x2da   :  { %v6873_v21 = vpop.f32.mrb[63].mxu1 }
 0x2db   :  { %v5582_v22 = vadd.f32 %v5581_v16, %v5542_v19 }
 0x2dd   :  { %v5587_v23 = vmax.f32 %v5582_v22, 0.0 }
 0x2df   :  { %v5588_v24 = vpack.c.bf16 %v5587_v23, %v5587_v23 }
 0x2e1   :  { %5590 = vst.msk [vmem:[%s9115_s3] sm:$0xf] %vm5589_vm1, %v5588_v24 }

// kernel: nikola_forward.15
= control target key start
LH: loop header
LB: loop body
LE: loop exit
PB: predicated region body
PF: predicated region fallthrough
CT: control target
= control target key end

     0   :  { %v175_v0 = vmov 0.0   ;;  %vm176_vm0 = vmmov 0   ;;  %vm79_vm1 = vcmask 1041408   ;;  %vm75_vm2 = vcmask 818176   ;;  %s227_s1 = inlined_call_operand.vmem [shape: bf16[100,50], index: 1, kind: input, shape index: {}]   ;;  %s228_s0 = inlined_call_operand.vmem [shape: bf16[8,100], index: 0, kind: input, shape index: {}]   ;;  %s229_s2 = inlined_call_operand.vmem [shape: f32[1,50], index: 2, kind: input, shape index: {}]   ;;  %s230_s3 = inlined_call_operand.vmem [shape: bf16[8,50], index: 3, kind: output, shape index: {}]  }
   0x1   :  { %148 = vmatprep.subr.bf16.mxu0 %v175_v0  ;;  %v168_v1 = vld [vmem:[%s227_s1] sm:$0xff]   ;;  %162 = vmatprep.mubr.msk.bf16.mxu0 %vm176_vm0, %v175_v0  ;;  %v169_v2 = vld [vmem:[%s227_s1 + $0x8] sm:$0xff]   ;;  %v170_v3 = vld [vmem:[%s227_s1 + $0x10] sm:$0xff]   ;;  %vm125_vm3 = vcmask 404480  }
   0x2   :  { %149 = vmatpush3.bf16.msra.mxu0 %v168_v1  ;;  %v171_v4 = vld [vmem:[%s227_s1 + $0x18] sm:$0xff]   ;;  %v172_v5 = vld [vmem:[%s227_s1 + $0x20] sm:$0xff]   ;;  %v173_v6 = vld [vmem:[%s227_s1 + $0x28] sm:$0xff]  }
   0x3   :  { %150 = vmatprep.subr.bf16.mxu0 %v175_v0  ;;  %v174_v7 = vld [vmem:[%s227_s1 + $0x30] ss:$0 sps:$4 sm:$0x33]   ;;  %v15_v9 = vld [vmem:[%s228_s0] sm:$0xf] }
   0x4   :  { %v81_v8 = vsel %vm79_vm1, %v174_v7, 0  ;;  %v131_v10 = vld [vmem:[%s229_s2] ss:$0 sm:$0xff] }
   0x6   :  { %151 = vmatpush3.bf16.msra.mxu0 %v169_v2 }
   0x7   :  { %152 = vmatprep.subr.bf16.mxu0 %v175_v0 }
   0xa   :  { %153 = vmatpush3.bf16.msra.mxu0 %v170_v3 }
   0xb   :  { %154 = vmatprep.subr.bf16.mxu0 %v175_v0 }
   0xe   :  { %155 = vmatpush3.bf16.msra.mxu0 %v171_v4 }
   0xf   :  { %156 = vmatprep.subr.bf16.mxu0 %v175_v0 }
  0x12   :  { %157 = vmatpush3.bf16.msra.mxu0 %v172_v5 }
  0x13   :  { %158 = vmatprep.subr.bf16.mxu0 %v175_v0 }
  0x16   :  { %159 = vmatpush3.bf16.msra.mxu0 %v173_v6 }
  0x17   :  { %160 = vmatprep.subr.bf16.mxu0 %v175_v0 }
  0x1a   :  { %161 = vmatpush3.bf16.msra.mxu0 %v81_v8 }
  0x1d   :  { %163 = vmatmul.mubr.msk.bf16.vlgmr.msra.gmra.mrb[0].mxu0 %vm75_vm2, %v15_v9 }
  0xf0   :  { %v117_v11 = vpop.f32.mrb[0].mxu0 }
  0xf1   :  { %v118_v12 = vadd.f32 %v131_v10, %v117_v11  ;;  %v164_v13 = vpop.f32.mrb[1].mxu0 }
  0xf2   :  { %v120_v14 = vpop.f32.mrb[2].mxu0 }
  0xf3   :  { %v123_v15 = vmax.f32 %v118_v12, 0.0  ;;  %v165_v16 = vpop.f32.mrb[3].mxu0 }
  0xf5   :  { %v124_v17 = vpack.c.bf16 %v123_v15, %v123_v15 }
  0xf7   :  { %126 = vst.msk [vmem:[%s230_s3] sm:$0xf] %vm125_vm3, %v124_v17 }

// kernel: nikola_forward.16
= control target key start
LH: loop header
LB: loop body
LE: loop exit
PB: predicated region body
PF: predicated region fallthrough
CT: control target
= control target key end

     0   :  { %v136_v0 = vmov 0.0   ;;  %vm137_vm0 = vmmov 0   ;;  %vm55_vm1 = vcmask 1040384   ;;  %vm51_vm2 = vcmask 408576   ;;  %s179_s1 = inlined_call_operand.vmem [shape: bf16[50,10], index: 1, kind: input, shape index: {}]   ;;  %s180_s0 = inlined_call_operand.vmem [shape: bf16[8,50], index: 0, kind: input, shape index: {}]   ;;  %s181_s2 = inlined_call_operand.vmem [shape: f32[1,10], index: 2, kind: input, shape index: {}]   ;;  %s182_s3 = inlined_call_operand.vmem [shape: bf16[8,10], index: 3, kind: output, shape index: {}]  }
   0x1   :  { %118 = vmatprep.subr.bf16.mxu0 %v136_v0  ;;  %v132_v1 = vld [vmem:[%s179_s1] sm:$0xff]   ;;  %126 = vmatprep.mubr.msk.bf16.mxu0 %vm137_vm0, %v136_v0  ;;  %v133_v2 = vld [vmem:[%s179_s1 + $0x8] sm:$0xff]   ;;  %v134_v3 = vld [vmem:[%s179_s1 + $0x10] sm:$0xff]   ;;  %vm101_vm3 = vcmask 76800  }
   0x2   :  { %119 = vmatpush3.bf16.msra.mxu0 %v132_v1  ;;  %v135_v4 = vld [vmem:[%s179_s1 + $0x18] ss:$0 sps:$4 sm:$0x11]   ;;  %v15_v6 = vld [vmem:[%s180_s0] sm:$0xf] }
   0x3   :  { %120 = vmatprep.subr.bf16.mxu0 %v136_v0  ;;  %v57_v5 = vsel %vm55_vm1, %v135_v4, 0  ;;  %v107_v7 = vld [vmem:[%s181_s2] ss:$0 sm:$0xff] }
   0x6   :  { %121 = vmatpush3.bf16.msra.mxu0 %v133_v2 }
   0x7   :  { %122 = vmatprep.subr.bf16.mxu0 %v136_v0 }
   0xa   :  { %123 = vmatpush3.bf16.msra.mxu0 %v134_v3 }
   0xb   :  { %124 = vmatprep.subr.bf16.mxu0 %v136_v0 }
   0xe   :  { %125 = vmatpush3.bf16.msra.mxu0 %v57_v5 }
  0x11   :  { %127 = vmatmul.mubr.msk.bf16.vlgmr.msra.gmra.mrb[0].mxu0 %vm51_vm2, %v15_v6 }
  0xe4   :  { %v93_v8 = vpop.f32.mrb[0].mxu0 }
  0xe5   :  { %v94_v9 = vadd.f32 %v107_v7, %v93_v8  ;;  %v128_v10 = vpop.f32.mrb[1].mxu0 }
  0xe6   :  { %v96_v11 = vpop.f32.mrb[2].mxu0 }
  0xe7   :  { %v99_v12 = vmax.f32 %v94_v9, 0.0  ;;  %v129_v13 = vpop.f32.mrb[3].mxu0 }
  0xe9   :  { %v100_v14 = vpack.c.bf16 %v99_v12, %v99_v12 }
  0xeb   :  { %102 = vst.msk [vmem:[%s182_s3] sm:$0xf] %vm101_vm3, %v100_v14 }

// kernel: nikola_forward.17
= control target key start
LH: loop header
LB: loop body
LE: loop exit
PB: predicated region body
PF: predicated region fallthrough
CT: control target
= control target key end

     0   :  { %vm34_vm0 = vcmask 1044480   ;;  %v98_v0 = vmov 0.0   ;;  %vm99_vm1 = vmmov 0   ;;  %vm30_vm2 = vcmask 80896   ;;  %s132_s1 = inlined_call_operand.vmem [shape: bf16[10,4], index: 1, kind: input, shape index: {}]   ;;  %s133_s0 = inlined_call_operand.vmem [shape: bf16[8,10], index: 0, kind: input, shape index: {}]   ;;  %s134_s2 = inlined_call_operand.vmem [shape: f32[1,4], index: 2, kind: input, shape index: {}]   ;;  %s135_s3 = inlined_call_operand.vmem [shape: f32[8,4], index: 3, kind: output, shape index: {}]  }
   0x1   :  { %89 = vmatprep.subr.bf16.mxu0 %v98_v0  ;;  %v97_v1 = vld [vmem:[%s132_s1] sm:$0x1f]   ;;  %91 = vmatprep.mubr.msk.bf16.mxu0 %vm99_vm1, %v98_v0  ;;  %vm78_vm3 = vcmask 31744  }
   0x2   :  { %v36_v2 = vsel %vm34_vm0, %v97_v1, 0  ;;  %v15_v3 = vld [vmem:[%s133_s0] sm:$0xf] }
   0x3   :  { %90 = vmatpush3.bf16.msra.mxu0 %v36_v2  ;;  %v84_v4 = vld [vmem:[%s134_s2] ss:$0 sm:$0xff] }
   0x6   :  { %92 = vmatmul.mubr.msk.bf16.vlgmr.msra.gmra.mrb[0].mxu0 %vm30_vm2, %v15_v3 }
  0xd9   :  { %v72_v5 = vpop.f32.mrb[0].mxu0 }
  0xda   :  { %v73_v6 = vadd.f32 %v84_v4, %v72_v5  ;;  %v93_v7 = vpop.f32.mrb[1].mxu0 }
  0xdb   :  { %v75_v8 = vpop.f32.mrb[2].mxu0 }
  0xdc   :  { %79 = vst.msk [vmem:[%s135_s3] sm:$0xff] %vm78_vm3, %v73_v6  ;;  %v94_v9 = vpop.f32.mrb[3].mxu0 }

</bundles_post_ra>
